<compile_context>
chip_gen: v7x
topology: tpu7x:2x2x1
jax: 0.10.0
libtpu: 0.0.40
codegen_flags: <defaults>
</compile_context>

<pallas_src>
import functools

import jax
import jax.numpy as jnp
from jax.experimental import pallas as pl
from jax.experimental.pallas import tpu as pltpu


def _round_up(x, m):
    return (x + m - 1) // m * m


# ----------------------------- Pallas kernels -----------------------------

def _matmul_bias_kernel(x_ref, w_ref, b_ref, o_ref):
    o_ref[...] = (jnp.dot(x_ref[...], w_ref[...],
                          preferred_element_type=jnp.float32)
                  + b_ref[...]).astype(o_ref.dtype)


def matmul_bias(x, w, b, block_m=512):
    """(M, K) @ (K, N) + b[N] -- hot path of ConvTranspose2d(k=2, s=2).

    M is tiled into row blocks (parallel grid axis) so DMA/compute pipeline
    and VMEM stay bounded when M grows; K/N stay whole (they are small here).
    """
    M, K = x.shape
    Nn = w.shape[1]
    tm = min(block_m, _round_up(M, 8))
    Mp = _round_up(M, tm)
    if Mp != M:
        x = jnp.pad(x, ((0, Mp - M), (0, 0)))
    out = pl.pallas_call(
        _matmul_bias_kernel,
        out_shape=jax.ShapeDtypeStruct((Mp, Nn), jnp.float32),
        grid=(Mp // tm,),
        in_specs=[
            pl.BlockSpec((tm, K), lambda i: (i, 0)),
            pl.BlockSpec((K, Nn), lambda i: (0, 0)),
            pl.BlockSpec((1, Nn), lambda i: (0, 0)),
        ],
        out_specs=pl.BlockSpec((tm, Nn), lambda i: (i, 0)),
        compiler_params=pltpu.CompilerParams(
            dimension_semantics=("parallel",)),
    )(x, w, b.reshape(1, Nn))
    return out[:M] if Mp != M else out


def _conv1_cat_bn_relu_kernel(x2p_ref, yp_ref, w_ref, scale_ref, bias_ref,
                              o_ref):
    # x2p_ref : (H+2, W+2, Cs)  zero-padded skip connection (one batch elem)
    # yp_ref  : (H+2, W+2, Cy)  zero-padded upsampled tensor
    # w_ref   : (3, 3*(Cs+Cy), Cout)  dx taps packed along K; scale/bias (1,Cout)
    H, W, Cout = o_ref.shape
    Cs = x2p_ref.shape[-1]
    Cy = yp_ref.shape[-1]
    C3 = 3 * (Cs + Cy)
    acc = jnp.zeros((H * W, Cout), jnp.float32)
    for dy in range(3):                       # 3 MXU matmuls with K = 3*Cin
        pieces = []
        for dx in range(3):                   # channel concat fuses torch.cat
            pieces.append(x2p_ref[dy:dy + H, dx:dx + W, :])
            pieces.append(yp_ref[dy:dy + H, dx:dx + W, :])
        slab = jnp.concatenate(pieces, axis=-1)            # (H, W, 3*C)
        acc += jnp.dot(slab.reshape(H * W, C3), w_ref[dy],
                       preferred_element_type=jnp.float32)
    yv = jnp.maximum(acc * scale_ref[...] + bias_ref[...], 0.0)   # conv+BN+ReLU
    o_ref[...] = yv.reshape(H, W, Cout).astype(o_ref.dtype)


def conv1_cat_bn_relu(x2_nhwc, y_nhwc, w_packed, scale, bias):
    """Fused: channel-concat([x2, y]) -> conv3x3(pad=1) -> BN -> ReLU."""
    N, H, W, Cs = x2_nhwc.shape
    Cy = y_nhwc.shape[-1]
    Cout = w_packed.shape[-1]
    # TODO(synk): at production resolutions, fold the 1-px halo into an
    # H-tiled index_map instead of these small jnp.pad HBM copies.
    x2p = jnp.pad(x2_nhwc, ((0, 0), (1, 1), (1, 1), (0, 0)))
    yp = jnp.pad(y_nhwc, ((0, 0), (1, 1), (1, 1), (0, 0)))
    return pl.pallas_call(
        _conv1_cat_bn_relu_kernel,
        out_shape=jax.ShapeDtypeStruct((N, H, W, Cout), jnp.float32),
        grid=(N,),
        in_specs=[
            pl.BlockSpec((pl.Squeezed(), H + 2, W + 2, Cs),
                         lambda n: (n, 0, 0, 0)),
            pl.BlockSpec((pl.Squeezed(), H + 2, W + 2, Cy),
                         lambda n: (n, 0, 0, 0)),
            pl.BlockSpec((3, 3 * (Cs + Cy), Cout), lambda n: (0, 0, 0)),
            pl.BlockSpec((1, Cout), lambda n: (0, 0)),
            pl.BlockSpec((1, Cout), lambda n: (0, 0)),
        ],
        out_specs=pl.BlockSpec((pl.Squeezed(), H, W, Cout),
                               lambda n: (n, 0, 0, 0)),
        compiler_params=pltpu.CompilerParams(
            dimension_semantics=("parallel",)),
    )(x2p, yp, w_packed, scale.reshape(1, Cout), bias.reshape(1, Cout))


def _conv2_bn_relu_se_kernel(xp_ref, w_ref, scale_ref, bias_ref,
                             w1_ref, b1_ref, w2_ref, b2_ref, o_ref):
    # xp_ref : (H+2, W+2, C) zero-padded conv1 output (one batch element)
    # w_ref  : (3, 3*C, Cout) dx-packed conv weights
    # w1/b1, w2/b2 : SE fc1/fc2 (fused in -- no extra HBM pass over x)
    H, W, Cout = o_ref.shape
    C = xp_ref.shape[-1]
    C3 = 3 * C
    acc = jnp.zeros((H * W, Cout), jnp.float32)
    for dy in range(3):
        slab = jnp.concatenate(
            [xp_ref[dy:dy + H, dx:dx + W, :] for dx in range(3)], axis=-1)
        acc += jnp.dot(slab.reshape(H * W, C3), w_ref[dy],
                       preferred_element_type=jnp.float32)
    yv = jnp.maximum(acc * scale_ref[...] + bias_ref[...], 0.0)   # (H*W, Cout)
    # SEBlock: global-avg-pool -> fc1 -> relu -> fc2 -> sigmoid -> rescale.
    squeeze = jnp.mean(yv, axis=0, keepdims=True)                 # (1, Cout)
    e = jnp.dot(squeeze, w1_ref[...],
                preferred_element_type=jnp.float32) + b1_ref[...]
    e = jnp.maximum(e, 0.0)
    e = jnp.dot(e, w2_ref[...],
                preferred_element_type=jnp.float32) + b2_ref[...]
    e = 1.0 / (1.0 + jnp.exp(-e))                                 # sigmoid
    o_ref[...] = (yv * e).reshape(H, W, Cout).astype(o_ref.dtype)


def conv2_bn_relu_se(x_nhwc, w_packed, scale, bias, fc1_w, fc1_b, fc2_w, fc2_b):
    """Fused: conv3x3(pad=1) -> BN -> ReLU -> SE attention, one HBM pass."""
    N, H, W, C = x_nhwc.shape
    Cout = w_packed.shape[-1]
    red = fc1_w.shape[1]
    xp = jnp.pad(x_nhwc, ((0, 0), (1, 1), (1, 1), (0, 0)))
    return pl.pallas_call(
        _conv2_bn_relu_se_kernel,
        out_shape=jax.ShapeDtypeStruct((N, H, W, Cout), jnp.float32),
        grid=(N,),
        in_specs=[
            pl.BlockSpec((pl.Squeezed(), H + 2, W + 2, C),
                         lambda n: (n, 0, 0, 0)),
            pl.BlockSpec((3, 3 * C, Cout), lambda n: (0, 0, 0)),
            pl.BlockSpec((1, Cout), lambda n: (0, 0)),
            pl.BlockSpec((1, Cout), lambda n: (0, 0)),
            pl.BlockSpec((Cout, red), lambda n: (0, 0)),
            pl.BlockSpec((1, red), lambda n: (0, 0)),
            pl.BlockSpec((red, Cout), lambda n: (0, 0)),
            pl.BlockSpec((1, Cout), lambda n: (0, 0)),
        ],
        out_specs=pl.BlockSpec((pl.Squeezed(), H, W, Cout),
                               lambda n: (n, 0, 0, 0)),
        compiler_params=pltpu.CompilerParams(
            dimension_semantics=("parallel",)),
    )(xp, w_packed, scale.reshape(1, Cout), bias.reshape(1, Cout),
      fc1_w, fc1_b.reshape(1, red), fc2_w, fc2_b.reshape(1, Cout))


# --------------------------------- glue ----------------------------------

def _bilinear_matrix(out_size, in_size):
    # Matches F.interpolate(mode='bilinear', align_corners=False), separable.
    if out_size == in_size:
        return jnp.eye(out_size, dtype=jnp.float32)
    scale = in_size / out_size
    dst = jnp.arange(out_size, dtype=jnp.float32)
    src = jnp.maximum((dst + 0.5) * scale - 0.5, 0.0)
    i0 = jnp.minimum(jnp.floor(src).astype(jnp.int32), in_size - 1)
    i1 = jnp.minimum(i0 + 1, in_size - 1)
    frac = src - i0.astype(jnp.float32)
    rows = jnp.arange(out_size)
    m = jnp.zeros((out_size, in_size), jnp.float32)
    m = m.at[rows, i0].add(1.0 - frac)
    m = m.at[rows, i1].add(frac)
    return m


def _fold_bn(conv_b, gamma, beta, mean, var, eps=1e-5):
    s = gamma / jnp.sqrt(var + eps)
    return s, (conv_b - mean) * s + beta


def _pack_conv_weight(w_oihw):
    # OIHW -> (kh, kw, Cin, Cout) -> (3, 3*Cin, Cout): dx taps packed along K
    # so the kernel issues 3 MXU matmuls with K = 3*Cin instead of 9 with Cin.
    kh, kw = w_oihw.shape[2], w_oihw.shape[3]
    cin = w_oihw.shape[1]
    cout = w_oihw.shape[0]
    w_hwio = jnp.transpose(w_oihw, (2, 3, 1, 0))
    return w_hwio.reshape(kh, kw * cin, cout)


def init_params(key, in_ch, out_ch, skip_ch, reduction=16):
    ks = jax.random.split(key, 18)
    cat_ch = out_ch + skip_ch
    red = out_ch // reduction
    n = jax.random.normal
    p = {}
    # ConvTranspose2d(in_ch, out_ch, 2, 2): weight (in, out, 2, 2)
    p["up_w"] = 0.1 * n(ks[0], (in_ch, out_ch, 2, 2), jnp.float32)
    p["up_b"] = 0.1 * n(ks[1], (out_ch,), jnp.float32)
    # double_conv
    p["c1_w"] = 0.1 * n(ks[2], (out_ch, cat_ch, 3, 3), jnp.float32)
    p["c1_b"] = 0.1 * n(ks[3], (out_ch,), jnp.float32)
    p["bn1_g"] = 1.0 + 0.1 * n(ks[4], (out_ch,), jnp.float32)
    p["bn1_b"] = 0.1 * n(ks[5], (out_ch,), jnp.float32)
    p["bn1_m"] = 0.1 * n(ks[6], (out_ch,), jnp.float32)
    p["bn1_v"] = jax.random.uniform(ks[7], (out_ch,), jnp.float32, 0.5, 1.5)
    p["c2_w"] = 0.1 * n(ks[8], (out_ch, out_ch, 3, 3), jnp.float32)
    p["c2_b"] = 0.1 * n(ks[9], (out_ch,), jnp.float32)
    p["bn2_g"] = 1.0 + 0.1 * n(ks[10], (out_ch,), jnp.float32)
    p["bn2_b"] = 0.1 * n(ks[11], (out_ch,), jnp.float32)
    p["bn2_m"] = 0.1 * n(ks[12], (out_ch,), jnp.float32)
    p["bn2_v"] = jax.random.uniform(ks[13], (out_ch,), jnp.float32, 0.5, 1.5)
    # SEBlock linears: torch Linear weight is (out_features, in_features)
    p["fc1_w"] = 0.1 * n(ks[14], (red, out_ch), jnp.float32)
    p["fc1_b"] = 0.1 * n(ks[15], (red,), jnp.float32)
    p["fc2_w"] = 0.1 * n(ks[16], (out_ch, red), jnp.float32)
    p["fc2_b"] = 0.1 * n(ks[17], (out_ch,), jnp.float32)
    return p


def up_layer_with_attention_forward(params, x1_nchw, x2_nchw):
    # NCHW -> NHWC
    x1 = jnp.transpose(x1_nchw, (0, 2, 3, 1)).astype(jnp.float32)
    x2 = jnp.transpose(x2_nchw, (0, 2, 3, 1)).astype(jnp.float32)
    N, H1, W1, Cin = x1.shape
    H2, W2 = x2.shape[1], x2.shape[2]
    Cout = params["up_b"].shape[0]

    # --- ConvTranspose2d(k=2, s=2) as a tiled Pallas matmul. Weight is
    #     flattened with Cout lane-dense ((di,dj) outer, co inner) so the
    #     depth-to-space below is a pure spatial permute (no lane shuffle). ---
    wt = jnp.transpose(params["up_w"], (0, 2, 3, 1)).reshape(Cin, 4 * Cout)
    bt = jnp.tile(params["up_b"], 4)
    y = matmul_bias(x1.reshape(N * H1 * W1, Cin), wt, bt)
    y = y.reshape(N, H1, W1, 2, 2, Cout)
    y = jnp.transpose(y, (0, 1, 3, 2, 4, 5)).reshape(N, 2 * H1, 2 * W1, Cout)

    # --- bilinear resize to x2's spatial size (separable, channels-last;
    #     identity fast-path when the transposed conv already hits the size) ---
    if (2 * H1, 2 * W1) != (H2, W2):
        rh = _bilinear_matrix(H2, 2 * H1)
        rw = _bilinear_matrix(W2, 2 * W1)
        y = jnp.einsum("nhwc,Hh->nHwc", y, rh)
        y = jnp.einsum("nHwc,Ww->nHWc", y, rw)

    # --- double_conv + SE:
    #     call 1: concat([x2, y]) -> conv3x3 -> BN -> ReLU        (fused)
    #     call 2: conv3x3 -> BN -> ReLU -> SE attention           (fused)
    # TODO(synk): training-mode Dropout2d / batch-statistics BN are stochastic
    # /train-only; eval-mode semantics (identity dropout, running stats) used.
    s1, b1 = _fold_bn(params["c1_b"], params["bn1_g"], params["bn1_b"],
                      params["bn1_m"], params["bn1_v"])
    w1p = _pack_conv_weight(params["c1_w"])          # (3, 3*(skip+out), out)
    x = conv1_cat_bn_relu(x2, y, w1p, s1, b1)

    s2, b2 = _fold_bn(params["c2_b"], params["bn2_g"], params["bn2_b"],
                      params["bn2_m"], params["bn2_v"])
    w2p = _pack_conv_weight(params["c2_w"])          # (3, 3*out, out)
    x = conv2_bn_relu_se(x, w2p, s2, b2,
                         params["fc1_w"].T, params["fc1_b"],
                         params["fc2_w"].T, params["fc2_b"])

    # NHWC -> NCHW
    return jnp.transpose(x, (0, 3, 1, 2))


if __name__ == "__main__":
    in_ch, out_ch, skip_ch = 8, 32, 16
    batch = 2
    key = jax.random.PRNGKey(0)
    k1, k2, kp = jax.random.split(key, 3)
    # x1: low-res decoder feature; x2: skip connection at target resolution.
    x1 = jax.random.normal(k1, (batch, in_ch, 7, 7), jnp.float32)
    x2 = jax.random.normal(k2, (batch, skip_ch, 16, 16), jnp.float32)
    params = init_params(kp, in_ch, out_ch, skip_ch)

    fwd = jax.jit(functools.partial(up_layer_with_attention_forward, params))
    out = fwd(x1, x2)
    jax.block_until_ready(out)
    assert out.shape == (batch, out_ch, 16, 16), out.shape
    assert bool(jnp.all(jnp.isfinite(out)))
    print("KERNEL_OK")
</pallas_src>

<mosaic_0001>
module attributes {stable_mosaic.version = 11 : i64} {
  func.func private @main(%arg0: i32) attributes {dimension_semantics = [#tpu.dimension_semantics<core_parallel>], iteration_bounds = array<i64: 2>, tpu.core_type = #tpu.core_type<sc_scalar_subcore>, window_params = []} {
    return
  }
}

module attributes {stable_mosaic.version = 11 : i64} {
  func.func private @main(%arg0: i32) attributes {dimension_semantics = [#tpu.dimension_semantics<core_parallel>], iteration_bounds = array<i64: 2>, tpu.core_type = #tpu.core_type<sc_scalar_subcore>, window_params = []} {
    return
  }
}

module attributes {stable_mosaic.version = 11 : i64} {
  func.func @_matmul_bias_kernel(%arg0: i32, %arg1: memref<104x8xf32, #tpu.memory_space<vmem>>, %arg2: memref<8x128xf32, #tpu.memory_space<vmem>>, %arg3: memref<1x128xf32, #tpu.memory_space<vmem>>, %arg4: memref<104x128xf32, #tpu.memory_space<vmem>>) attributes {dimension_semantics = [#tpu.dimension_semantics<parallel>], iteration_bounds = array<i64: 1>, scalar_prefetch = 0 : i64, scratch_operands = 0 : i64, tpu.core_type = #tpu.core_type<tc>, window_params = [{transform_indices = @transform_0, window_bounds = array<i64: 104, 8>}, {pipeline_mode = #tpu.pipeline_mode<synchronous>, transform_indices = @transform_1, window_bounds = array<i64: 8, 128>}, {pipeline_mode = #tpu.pipeline_mode<synchronous>, transform_indices = @transform_2, window_bounds = array<i64: 1, 128>}, {transform_indices = @transform_3, window_bounds = array<i64: 104, 128>}]} {
    %c0 = arith.constant 0 : index
    %c0_0 = arith.constant 0 : index
    %0 = vector.load %arg1[%c0, %c0_0] : memref<104x8xf32, #tpu.memory_space<vmem>>, vector<104x8xf32>
    %c0_1 = arith.constant 0 : index
    %c0_2 = arith.constant 0 : index
    %1 = vector.load %arg2[%c0_1, %c0_2] : memref<8x128xf32, #tpu.memory_space<vmem>>, vector<8x128xf32>
    %cst = arith.constant dense<0.000000e+00> : vector<104x128xf32>
    %2 = tpu.matmul %0, %1, %cst {dimension_numbers = #tpu.dot_dimension_numbers<[1], [0], [0], [1], [0, 0, 1, 1], [], []>} : vector<104x8xf32>, vector<8x128xf32>, vector<104x128xf32> -> vector<104x128xf32>
    %c0_3 = arith.constant 0 : index
    %c0_4 = arith.constant 0 : index
    %3 = vector.load %arg3[%c0_3, %c0_4] : memref<1x128xf32, #tpu.memory_space<vmem>>, vector<1x128xf32>
    %4 = vector.broadcast %3 : vector<1x128xf32> to vector<104x128xf32>
    %5 = arith.addf %2, %4 : vector<104x128xf32>
    %c0_5 = arith.constant 0 : index
    %c0_6 = arith.constant 0 : index
    %6 = vector.load %arg4[%c0_5, %c0_6] : memref<104x128xf32, #tpu.memory_space<vmem>>, vector<104x128xf32>
    tpu.vector_store %arg4[%c0_5, %c0_6], %5 {strides = array<i32>} : memref<104x128xf32, #tpu.memory_space<vmem>>, vector<104x128xf32>,
    return
  }
  func.func @transform_0(%arg0: i32) -> (i32, i32) {
    %c0_i32 = arith.constant 0 : i32
    %c0_i32_0 = arith.constant 0 : i32
    return %arg0, %c0_i32 : i32, i32
  }
  func.func @transform_1(%arg0: i32) -> (i32, i32) {
    %c0_i32 = arith.constant 0 : i32
    %c0_i32_0 = arith.constant 0 : i32
    %c0_i32_1 = arith.constant 0 : i32
    return %c0_i32, %c0_i32_0 : i32, i32
  }
  func.func @transform_2(%arg0: i32) -> (i32, i32) {
    %c0_i32 = arith.constant 0 : i32
    %c0_i32_0 = arith.constant 0 : i32
    %c0_i32_1 = arith.constant 0 : i32
    return %c0_i32, %c0_i32_0 : i32, i32
  }
  func.func @transform_3(%arg0: i32) -> (i32, i32) {
    %c0_i32 = arith.constant 0 : i32
    %c0_i32_0 = arith.constant 0 : i32
    return %arg0, %c0_i32 : i32, i32
  }
}

module attributes {stable_mosaic.version = 11 : i64} {
  func.func @_conv2_bn_relu_se_kernel(%arg0: i32, %arg1: memref<1x18x18x32xf32, #tpu.memory_space<vmem>>, %arg2: memref<3x96x32xf32, #tpu.memory_space<vmem>>, %arg3: memref<1x32xf32, #tpu.memory_space<vmem>>, %arg4: memref<1x32xf32, #tpu.memory_space<vmem>>, %arg5: memref<32x2xf32, #tpu.memory_space<vmem>>, %arg6: memref<1x2xf32, #tpu.memory_space<vmem>>, %arg7: memref<2x32xf32, #tpu.memory_space<vmem>>, %arg8: memref<1x32xf32, #tpu.memory_space<vmem>>, %arg9: memref<1x16x16x32xf32, #tpu.memory_space<vmem>>) attributes {dimension_semantics = [#tpu.dimension_semantics<parallel>], iteration_bounds = array<i64: 2>, scalar_prefetch = 0 : i64, scratch_operands = 0 : i64, tpu.core_type = #tpu.core_type<tc>, window_params = [{transform_indices = @transform_0, window_bounds = array<i64: 1, 18, 18, 32>}, {pipeline_mode = #tpu.pipeline_mode<synchronous>, transform_indices = @transform_1, window_bounds = array<i64: 3, 96, 32>}, {pipeline_mode = #tpu.pipeline_mode<synchronous>, transform_indices = @transform_2, window_bounds = array<i64: 1, 32>}, {pipeline_mode = #tpu.pipeline_mode<synchronous>, transform_indices = @transform_3, window_bounds = array<i64: 1, 32>}, {pipeline_mode = #tpu.pipeline_mode<synchronous>, transform_indices = @transform_4, window_bounds = array<i64: 32, 2>}, {pipeline_mode = #tpu.pipeline_mode<synchronous>, transform_indices = @transform_5, window_bounds = array<i64: 1, 2>}, {pipeline_mode = #tpu.pipeline_mode<synchronous>, transform_indices = @transform_6, window_bounds = array<i64: 2, 32>}, {pipeline_mode = #tpu.pipeline_mode<synchronous>, transform_indices = @transform_7, window_bounds = array<i64: 1, 32>}, {transform_indices = @transform_8, window_bounds = array<i64: 1, 16, 16, 32>}]} {
    %cst = arith.constant 0.000000e+00 : f32
    %0 = vector.broadcast %cst : f32 to vector<256x32xf32>
    %c0 = arith.constant 0 : index
    %c0_0 = arith.constant 0 : index
    %c0_1 = arith.constant 0 : index
    %c0_2 = arith.constant 0 : index
    %1 = vector.load %arg1[%c0, %c0_0, %c0_1, %c0_2] : memref<1x18x18x32xf32, #tpu.memory_space<vmem>>, vector<1x16x16x32xf32>
    %2 = vector.shape_cast %1 : vector<1x16x16x32xf32> to vector<16x16x32xf32>
    %c0_3 = arith.constant 0 : index
    %c0_4 = arith.constant 0 : index
    %c1 = arith.constant 1 : index
    %c0_5 = arith.constant 0 : index
    %3 = vector.load %arg1[%c0_3, %c0_4, %c1, %c0_5] : memref<1x18x18x32xf32, #tpu.memory_space<vmem>>, vector<1x16x16x32xf32>
    %4 = vector.shape_cast %3 : vector<1x16x16x32xf32> to vector<16x16x32xf32>
    %c0_6 = arith.constant 0 : index
    %c0_7 = arith.constant 0 : index
    %c2 = arith.constant 2 : index
    %c0_8 = arith.constant 0 : index
    %5 = vector.load %arg1[%c0_6, %c0_7, %c2, %c0_8] : memref<1x18x18x32xf32, #tpu.memory_space<vmem>>, vector<1x16x16x32xf32>
    %6 = vector.shape_cast %5 : vector<1x16x16x32xf32> to vector<16x16x32xf32>
    %7 = tpu.concatenate %2, %4, %6 in 2 : vector<16x16x32xf32>, vector<16x16x32xf32>, vector<16x16x32xf32> -> vector<16x16x96xf32>
    %8 = vector.shape_cast %7 : vector<16x16x96xf32> to vector<256x96xf32>
    %c0_9 = arith.constant 0 : index
    %c0_10 = arith.constant 0 : index
    %c0_11 = arith.constant 0 : index
    %9 = vector.load %arg2[%c0_9, %c0_10, %c0_11] : memref<3x96x32xf32, #tpu.memory_space<vmem>>, vector<1x96x32xf32>
    %10 = vector.shape_cast %9 : vector<1x96x32xf32> to vector<96x32xf32>
    %cst_12 = arith.constant dense<0.000000e+00> : vector<256x32xf32>
    %11 = tpu.matmul %8, %10, %cst_12 {dimension_numbers = #tpu.dot_dimension_numbers<[1], [0], [0], [1], [0, 0, 1, 1], [], []>} : vector<256x96xf32>, vector<96x32xf32>, vector<256x32xf32> -> vector<256x32xf32>
    %12 = arith.addf %0, %11 : vector<256x32xf32>
    %c0_13 = arith.constant 0 : index
    %c1_14 = arith.constant 1 : index
    %c0_15 = arith.constant 0 : index
    %c0_16 = arith.constant 0 : index
    %13 = vector.load %arg1[%c0_13, %c1_14, %c0_15, %c0_16] : memref<1x18x18x32xf32, #tpu.memory_space<vmem>>, vector<1x16x16x32xf32>
    %14 = vector.shape_cast %13 : vector<1x16x16x32xf32> to vector<16x16x32xf32>
    %c0_17 = arith.constant 0 : index
    %c1_18 = arith.constant 1 : index
    %c1_19 = arith.constant 1 : index
    %c0_20 = arith.constant 0 : index
    %15 = vector.load %arg1[%c0_17, %c1_18, %c1_19, %c0_20] : memref<1x18x18x32xf32, #tpu.memory_space<vmem>>, vector<1x16x16x32xf32>
    %16 = vector.shape_cast %15 : vector<1x16x16x32xf32> to vector<16x16x32xf32>
    %c0_21 = arith.constant 0 : index
    %c1_22 = arith.constant 1 : index
    %c2_23 = arith.constant 2 : index
    %c0_24 = arith.constant 0 : index
    %17 = vector.load %arg1[%c0_21, %c1_22, %c2_23, %c0_24] : memref<1x18x18x32xf32, #tpu.memory_space<vmem>>, vector<1x16x16x32xf32>
    %18 = vector.shape_cast %17 : vector<1x16x16x32xf32> to vector<16x16x32xf32>
    %19 = tpu.concatenate %14, %16, %18 in 2 : vector<16x16x32xf32>, vector<16x16x32xf32>, vector<16x16x32xf32> -> vector<16x16x96xf32>
    %20 = vector.shape_cast %19 : vector<16x16x96xf32> to vector<256x96xf32>
    %c1_25 = arith.constant 1 : index
    %c0_26 = arith.constant 0 : index
    %c0_27 = arith.constant 0 : index
    %21 = vector.load %arg2[%c1_25, %c0_26, %c0_27] : memref<3x96x32xf32, #tpu.memory_space<vmem>>, vector<1x96x32xf32>
    %22 = vector.shape_cast %21 : vector<1x96x32xf32> to vector<96x32xf32>
    %cst_28 = arith.constant dense<0.000000e+00> : vector<256x32xf32>
    %23 = tpu.matmul %20, %22, %cst_28 {dimension_numbers = #tpu.dot_dimension_numbers<[1], [0], [0], [1], [0, 0, 1, 1], [], []>} : vector<256x96xf32>, vector<96x32xf32>, vector<256x32xf32> -> vector<256x32xf32>
    %24 = arith.addf %12, %23 : vector<256x32xf32>
    %c0_29 = arith.constant 0 : index
    %c2_30 = arith.constant 2 : index
    %c0_31 = arith.constant 0 : index
    %c0_32 = arith.constant 0 : index
    %25 = vector.load %arg1[%c0_29, %c2_30, %c0_31, %c0_32] : memref<1x18x18x32xf32, #tpu.memory_space<vmem>>, vector<1x16x16x32xf32>
    %26 = vector.shape_cast %25 : vector<1x16x16x32xf32> to vector<16x16x32xf32>
    %c0_33 = arith.constant 0 : index
    %c2_34 = arith.constant 2 : index
    %c1_35 = arith.constant 1 : index
    %c0_36 = arith.constant 0 : index
    %27 = vector.load %arg1[%c0_33, %c2_34, %c1_35, %c0_36] : memref<1x18x18x32xf32, #tpu.memory_space<vmem>>, vector<1x16x16x32xf32>
    %28 = vector.shape_cast %27 : vector<1x16x16x32xf32> to vector<16x16x32xf32>
    %c0_37 = arith.constant 0 : index
    %c2_38 = arith.constant 2 : index
    %c2_39 = arith.constant 2 : index
    %c0_40 = arith.constant 0 : index
    %29 = vector.load %arg1[%c0_37, %c2_38, %c2_39, %c0_40] : memref<1x18x18x32xf32, #tpu.memory_space<vmem>>, vector<1x16x16x32xf32>
    %30 = vector.shape_cast %29 : vector<1x16x16x32xf32> to vector<16x16x32xf32>
    %31 = tpu.concatenate %26, %28, %30 in 2 : vector<16x16x32xf32>, vector<16x16x32xf32>, vector<16x16x32xf32> -> vector<16x16x96xf32>
    %32 = vector.shape_cast %31 : vector<16x16x96xf32> to vector<256x96xf32>
    %c2_41 = arith.constant 2 : index
    %c0_42 = arith.constant 0 : index
    %c0_43 = arith.constant 0 : index
    %33 = vector.load %arg2[%c2_41, %c0_42, %c0_43] : memref<3x96x32xf32, #tpu.memory_space<vmem>>, vector<1x96x32xf32>
    %34 = vector.shape_cast %33 : vector<1x96x32xf32> to vector<96x32xf32>
    %cst_44 = arith.constant dense<0.000000e+00> : vector<256x32xf32>
    %35 = tpu.matmul %32, %34, %cst_44 {dimension_numbers = #tpu.dot_dimension_numbers<[1], [0], [0], [1], [0, 0, 1, 1], [], []>} : vector<256x96xf32>, vector<96x32xf32>, vector<256x32xf32> -> vector<256x32xf32>
    %36 = arith.addf %24, %35 : vector<256x32xf32>
    %c0_45 = arith.constant 0 : index
    %c0_46 = arith.constant 0 : index
    %37 = vector.load %arg3[%c0_45, %c0_46] : memref<1x32xf32, #tpu.memory_space<vmem>>, vector<1x32xf32>
    %38 = vector.broadcast %37 : vector<1x32xf32> to vector<256x32xf32>
    %39 = arith.mulf %36, %38 : vector<256x32xf32>
    %c0_47 = arith.constant 0 : index
    %c0_48 = arith.constant 0 : index
    %40 = vector.load %arg4[%c0_47, %c0_48] : memref<1x32xf32, #tpu.memory_space<vmem>>, vector<1x32xf32>
    %41 = vector.broadcast %40 : vector<1x32xf32> to vector<256x32xf32>
    %42 = arith.addf %39, %41 : vector<256x32xf32>
    %cst_49 = arith.constant 0.000000e+00 : f32
    %43 = vector.broadcast %cst_49 : f32 to vector<256x32xf32>
    %44 = arith.maximumf %42, %43 : vector<256x32xf32>
    %cst_50 = arith.constant dense<0.000000e+00> : vector<32xf32>
    %45 = vector.multi_reduction <add>, %44, %cst_50 [0] : vector<256x32xf32> to vector<32xf32>
    %46 = vector.shape_cast %45 : vector<32xf32> to vector<1x32xf32>
    %cst_51 = arith.constant 2.560000e+02 : f32
    %47 = vector.broadcast %cst_51 : f32 to vector<1x32xf32>
    %48 = arith.divf %46, %47 : vector<1x32xf32>
    %c0_52 = arith.constant 0 : index
    %c0_53 = arith.constant 0 : index
    %49 = vector.load %arg5[%c0_52, %c0_53] : memref<32x2xf32, #tpu.memory_space<vmem>>, vector<32x2xf32>
    %cst_54 = arith.constant dense<0.000000e+00> : vector<1x2xf32>
    %50 = tpu.matmul %48, %49, %cst_54 {dimension_numbers = #tpu.dot_dimension_numbers<[1], [0], [0], [1], [0, 0, 1, 1], [], []>} : vector<1x32xf32>, vector<32x2xf32>, vector<1x2xf32> -> vector<1x2xf32>
    %c0_55 = arith.constant 0 : index
    %c0_56 = arith.constant 0 : index
    %51 = vector.load %arg6[%c0_55, %c0_56] : memref<1x2xf32, #tpu.memory_space<vmem>>, vector<1x2xf32>
    %52 = arith.addf %50, %51 : vector<1x2xf32>
    %cst_57 = arith.constant 0.000000e+00 : f32
    %53 = vector.broadcast %cst_57 : f32 to vector<1x2xf32>
    %54 = arith.maximumf %52, %53 : vector<1x2xf32>
    %c0_58 = arith.constant 0 : index
    %c0_59 = arith.constant 0 : index
    %55 = vector.load %arg7[%c0_58, %c0_59] : memref<2x32xf32, #tpu.memory_space<vmem>>, vector<2x32xf32>
    %cst_60 = arith.constant dense<0.000000e+00> : vector<1x32xf32>
    %56 = tpu.matmul %54, %55, %cst_60 {dimension_numbers = #tpu.dot_dimension_numbers<[1], [0], [0], [1], [0, 0, 1, 1], [], []>} : vector<1x2xf32>, vector<2x32xf32>, vector<1x32xf32> -> vector<1x32xf32>
    %c0_61 = arith.constant 0 : index
    %c0_62 = arith.constant 0 : index
    %57 = vector.load %arg8[%c0_61, %c0_62] : memref<1x32xf32, #tpu.memory_space<vmem>>, vector<1x32xf32>
    %58 = arith.addf %56, %57 : vector<1x32xf32>
    %cst_63 = arith.constant 0.000000e+00 : f32
    %59 = vector.broadcast %cst_63 : f32 to vector<1x32xf32>
    %60 = arith.subf %59, %58 : vector<1x32xf32>
    %61 = math.exp %60 : vector<1x32xf32>
    %cst_64 = arith.constant 1.000000e+00 : f32
    %62 = vector.broadcast %cst_64 : f32 to vector<1x32xf32>
    %63 = arith.addf %62, %61 : vector<1x32xf32>
    %cst_65 = arith.constant 1.000000e+00 : f32
    %64 = vector.broadcast %cst_65 : f32 to vector<1x32xf32>
    %65 = arith.divf %64, %63 : vector<1x32xf32>
    %66 = vector.broadcast %65 : vector<1x32xf32> to vector<256x32xf32>
    %67 = arith.mulf %44, %66 : vector<256x32xf32>
    %68 = vector.shape_cast %67 : vector<256x32xf32> to vector<16x16x32xf32>
    %c0_66 = arith.constant 0 : index
    %c0_67 = arith.constant 0 : index
    %c0_68 = arith.constant 0 : index
    %c0_69 = arith.constant 0 : index
    %69 = vector.load %arg9[%c0_66, %c0_67, %c0_68, %c0_69] : memref<1x16x16x32xf32, #tpu.memory_space<vmem>>, vector<1x16x16x32xf32>
    %70 = vector.shape_cast %69 : vector<1x16x16x32xf32> to vector<16x16x32xf32>
    %71 = vector.shape_cast %68 : vector<16x16x32xf32> to vector<1x16x16x32xf32>
    tpu.vector_store %arg9[%c0_66, %c0_67, %c0_68, %c0_69], %71 {strides = array<i32>} : memref<1x16x16x32xf32, #tpu.memory_space<vmem>>, vector<1x16x16x32xf32>,
    return
  }
  func.func @transform_0(%arg0: i32) -> (i32, i32, i32, i32) {
    %c0_i32 = arith.constant 0 : i32
    %c0_i32_0 = arith.constant 0 : i32
    %c0_i32_1 = arith.constant 0 : i32
    %c0_i32_2 = arith.constant 0 : i32
    return %arg0, %c0_i32, %c0_i32_0, %c0_i32_1 : i32, i32, i32, i32
  }
  func.func @transform_1(%arg0: i32) -> (i32, i32, i32) {
    %c0_i32 = arith.constant 0 : i32
    %c0_i32_0 = arith.constant 0 : i32
    %c0_i32_1 = arith.constant 0 : i32
    %c0_i32_2 = arith.constant 0 : i32
    return %c0_i32, %c0_i32_0, %c0_i32_1 : i32, i32, i32
  }
  func.func @transform_2(%arg0: i32) -> (i32, i32) {
    %c0_i32 = arith.constant 0 : i32
    %c0_i32_0 = arith.constant 0 : i32
    %c0_i32_1 = arith.constant 0 : i32
    return %c0_i32, %c0_i32_0 : i32, i32
  }
  func.func @transform_3(%arg0: i32) -> (i32, i32) {
    %c0_i32 = arith.constant 0 : i32
    %c0_i32_0 = arith.constant 0 : i32
    %c0_i32_1 = arith.constant 0 : i32
    return %c0_i32, %c0_i32_0 : i32, i32
  }
  func.func @transform_4(%arg0: i32) -> (i32, i32) {
    %c0_i32 = arith.constant 0 : i32
    %c0_i32_0 = arith.constant 0 : i32
    %c0_i32_1 = arith.constant 0 : i32
    return %c0_i32, %c0_i32_0 : i32, i32
  }
  func.func @transform_5(%arg0: i32) -> (i32, i32) {
    %c0_i32 = arith.constant 0 : i32
    %c0_i32_0 = arith.constant 0 : i32
    %c0_i32_1 = arith.constant 0 : i32
    return %c0_i32, %c0_i32_0 : i32, i32
  }
  func.func @transform_6(%arg0: i32) -> (i32, i32) {
    %c0_i32 = arith.constant 0 : i32
    %c0_i32_0 = arith.constant 0 : i32
    %c0_i32_1 = arith.constant 0 : i32
    return %c0_i32, %c0_i32_0 : i32, i32
  }
  func.func @transform_7(%arg0: i32) -> (i32, i32) {
    %c0_i32 = arith.constant 0 : i32
    %c0_i32_0 = arith.constant 0 : i32
    %c0_i32_1 = arith.constant 0 : i32
    return %c0_i32, %c0_i32_0 : i32, i32
  }
  func.func @transform_8(%arg0: i32) -> (i32, i32, i32, i32) {
    %c0_i32 = arith.constant 0 : i32
    %c0_i32_0 = arith.constant 0 : i32
    %c0_i32_1 = arith.constant 0 : i32
    %c0_i32_2 = arith.constant 0 : i32
    return %arg0, %c0_i32, %c0_i32_0, %c0_i32_1 : i32, i32, i32, i32
  }
}

module attributes {stable_mosaic.version = 11 : i64} {
  func.func @_conv1_cat_bn_relu_kernel(%arg0: i32, %arg1: memref<1x18x18x16xf32, #tpu.memory_space<vmem>>, %arg2: memref<1x18x18x32xf32, #tpu.memory_space<vmem>>, %arg3: memref<3x144x32xf32, #tpu.memory_space<vmem>>, %arg4: memref<1x32xf32, #tpu.memory_space<vmem>>, %arg5: memref<1x32xf32, #tpu.memory_space<vmem>>, %arg6: memref<1x16x16x32xf32, #tpu.memory_space<vmem>>) attributes {dimension_semantics = [#tpu.dimension_semantics<parallel>], iteration_bounds = array<i64: 2>, scalar_prefetch = 0 : i64, scratch_operands = 0 : i64, tpu.core_type = #tpu.core_type<tc>, window_params = [{transform_indices = @transform_0, window_bounds = array<i64: 1, 18, 18, 16>}, {transform_indices = @transform_1, window_bounds = array<i64: 1, 18, 18, 32>}, {pipeline_mode = #tpu.pipeline_mode<synchronous>, transform_indices = @transform_2, window_bounds = array<i64: 3, 144, 32>}, {pipeline_mode = #tpu.pipeline_mode<synchronous>, transform_indices = @transform_3, window_bounds = array<i64: 1, 32>}, {pipeline_mode = #tpu.pipeline_mode<synchronous>, transform_indices = @transform_4, window_bounds = array<i64: 1, 32>}, {transform_indices = @transform_5, window_bounds = array<i64: 1, 16, 16, 32>}]} {
    %cst = arith.constant 0.000000e+00 : f32
    %0 = vector.broadcast %cst : f32 to vector<256x32xf32>
    %c0 = arith.constant 0 : index
    %c0_0 = arith.constant 0 : index
    %c0_1 = arith.constant 0 : index
    %c0_2 = arith.constant 0 : index
    %1 = vector.load %arg1[%c0, %c0_0, %c0_1, %c0_2] : memref<1x18x18x16xf32, #tpu.memory_space<vmem>>, vector<1x16x16x16xf32>
    %2 = vector.shape_cast %1 : vector<1x16x16x16xf32> to vector<16x16x16xf32>
    %c0_3 = arith.constant 0 : index
    %c0_4 = arith.constant 0 : index
    %c0_5 = arith.constant 0 : index
    %c0_6 = arith.constant 0 : index
    %3 = vector.load %arg2[%c0_3, %c0_4, %c0_5, %c0_6] : memref<1x18x18x32xf32, #tpu.memory_space<vmem>>, vector<1x16x16x32xf32>
    %4 = vector.shape_cast %3 : vector<1x16x16x32xf32> to vector<16x16x32xf32>
    %c0_7 = arith.constant 0 : index
    %c0_8 = arith.constant 0 : index
    %c1 = arith.constant 1 : index
    %c0_9 = arith.constant 0 : index
    %5 = vector.load %arg1[%c0_7, %c0_8, %c1, %c0_9] : memref<1x18x18x16xf32, #tpu.memory_space<vmem>>, vector<1x16x16x16xf32>
    %6 = vector.shape_cast %5 : vector<1x16x16x16xf32> to vector<16x16x16xf32>
    %c0_10 = arith.constant 0 : index
    %c0_11 = arith.constant 0 : index
    %c1_12 = arith.constant 1 : index
    %c0_13 = arith.constant 0 : index
    %7 = vector.load %arg2[%c0_10, %c0_11, %c1_12, %c0_13] : memref<1x18x18x32xf32, #tpu.memory_space<vmem>>, vector<1x16x16x32xf32>
    %8 = vector.shape_cast %7 : vector<1x16x16x32xf32> to vector<16x16x32xf32>
    %c0_14 = arith.constant 0 : index
    %c0_15 = arith.constant 0 : index
    %c2 = arith.constant 2 : index
    %c0_16 = arith.constant 0 : index
    %9 = vector.load %arg1[%c0_14, %c0_15, %c2, %c0_16] : memref<1x18x18x16xf32, #tpu.memory_space<vmem>>, vector<1x16x16x16xf32>
    %10 = vector.shape_cast %9 : vector<1x16x16x16xf32> to vector<16x16x16xf32>
    %c0_17 = arith.constant 0 : index
    %c0_18 = arith.constant 0 : index
    %c2_19 = arith.constant 2 : index
    %c0_20 = arith.constant 0 : index
    %11 = vector.load %arg2[%c0_17, %c0_18, %c2_19, %c0_20] : memref<1x18x18x32xf32, #tpu.memory_space<vmem>>, vector<1x16x16x32xf32>
    %12 = vector.shape_cast %11 : vector<1x16x16x32xf32> to vector<16x16x32xf32>
    %13 = tpu.concatenate %2, %4, %6, %8, %10, %12 in 2 : vector<16x16x16xf32>, vector<16x16x32xf32>, vector<16x16x16xf32>, vector<16x16x32xf32>, vector<16x16x16xf32>, vector<16x16x32xf32> -> vector<16x16x144xf32>
    %14 = vector.shape_cast %13 : vector<16x16x144xf32> to vector<256x144xf32>
    %c0_21 = arith.constant 0 : index
    %c0_22 = arith.constant 0 : index
    %c0_23 = arith.constant 0 : index
    %15 = vector.load %arg3[%c0_21, %c0_22, %c0_23] : memref<3x144x32xf32, #tpu.memory_space<vmem>>, vector<1x144x32xf32>
    %16 = vector.shape_cast %15 : vector<1x144x32xf32> to vector<144x32xf32>
    %cst_24 = arith.constant dense<0.000000e+00> : vector<256x32xf32>
    %17 = tpu.matmul %14, %16, %cst_24 {dimension_numbers = #tpu.dot_dimension_numbers<[1], [0], [0], [1], [0, 0, 1, 1], [], []>} : vector<256x144xf32>, vector<144x32xf32>, vector<256x32xf32> -> vector<256x32xf32>
    %18 = arith.addf %0, %17 : vector<256x32xf32>
    %c0_25 = arith.constant 0 : index
    %c1_26 = arith.constant 1 : index
    %c0_27 = arith.constant 0 : index
    %c0_28 = arith.constant 0 : index
    %19 = vector.load %arg1[%c0_25, %c1_26, %c0_27, %c0_28] : memref<1x18x18x16xf32, #tpu.memory_space<vmem>>, vector<1x16x16x16xf32>
    %20 = vector.shape_cast %19 : vector<1x16x16x16xf32> to vector<16x16x16xf32>
    %c0_29 = arith.constant 0 : index
    %c1_30 = arith.constant 1 : index
    %c0_31 = arith.constant 0 : index
    %c0_32 = arith.constant 0 : index
    %21 = vector.load %arg2[%c0_29, %c1_30, %c0_31, %c0_32] : memref<1x18x18x32xf32, #tpu.memory_space<vmem>>, vector<1x16x16x32xf32>
    %22 = vector.shape_cast %21 : vector<1x16x16x32xf32> to vector<16x16x32xf32>
    %c0_33 = arith.constant 0 : index
    %c1_34 = arith.constant 1 : index
    %c1_35 = arith.constant 1 : index
    %c0_36 = arith.constant 0 : index
    %23 = vector.load %arg1[%c0_33, %c1_34, %c1_35, %c0_36] : memref<1x18x18x16xf32, #tpu.memory_space<vmem>>, vector<1x16x16x16xf32>
    %24 = vector.shape_cast %23 : vector<1x16x16x16xf32> to vector<16x16x16xf32>
    %c0_37 = arith.constant 0 : index
    %c1_38 = arith.constant 1 : index
    %c1_39 = arith.constant 1 : index
    %c0_40 = arith.constant 0 : index
    %25 = vector.load %arg2[%c0_37, %c1_38, %c1_39, %c0_40] : memref<1x18x18x32xf32, #tpu.memory_space<vmem>>, vector<1x16x16x32xf32>
    %26 = vector.shape_cast %25 : vector<1x16x16x32xf32> to vector<16x16x32xf32>
    %c0_41 = arith.constant 0 : index
    %c1_42 = arith.constant 1 : index
    %c2_43 = arith.constant 2 : index
    %c0_44 = arith.constant 0 : index
    %27 = vector.load %arg1[%c0_41, %c1_42, %c2_43, %c0_44] : memref<1x18x18x16xf32, #tpu.memory_space<vmem>>, vector<1x16x16x16xf32>
    %28 = vector.shape_cast %27 : vector<1x16x16x16xf32> to vector<16x16x16xf32>
    %c0_45 = arith.constant 0 : index
    %c1_46 = arith.constant 1 : index
    %c2_47 = arith.constant 2 : index
    %c0_48 = arith.constant 0 : index
    %29 = vector.load %arg2[%c0_45, %c1_46, %c2_47, %c0_48] : memref<1x18x18x32xf32, #tpu.memory_space<vmem>>, vector<1x16x16x32xf32>
    %30 = vector.shape_cast %29 : vector<1x16x16x32xf32> to vector<16x16x32xf32>
    %31 = tpu.concatenate %20, %22, %24, %26, %28, %30 in 2 : vector<16x16x16xf32>, vector<16x16x32xf32>, vector<16x16x16xf32>, vector<16x16x32xf32>, vector<16x16x16xf32>, vector<16x16x32xf32> -> vector<16x16x144xf32>
    %32 = vector.shape_cast %31 : vector<16x16x144xf32> to vector<256x144xf32>
    %c1_49 = arith.constant 1 : index
    %c0_50 = arith.constant 0 : index
    %c0_51 = arith.constant 0 : index
    %33 = vector.load %arg3[%c1_49, %c0_50, %c0_51] : memref<3x144x32xf32, #tpu.memory_space<vmem>>, vector<1x144x32xf32>
    %34 = vector.shape_cast %33 : vector<1x144x32xf32> to vector<144x32xf32>
    %cst_52 = arith.constant dense<0.000000e+00> : vector<256x32xf32>
    %35 = tpu.matmul %32, %34, %cst_52 {dimension_numbers = #tpu.dot_dimension_numbers<[1], [0], [0], [1], [0, 0, 1, 1], [], []>} : vector<256x144xf32>, vector<144x32xf32>, vector<256x32xf32> -> vector<256x32xf32>
    %36 = arith.addf %18, %35 : vector<256x32xf32>
    %c0_53 = arith.constant 0 : index
    %c2_54 = arith.constant 2 : index
    %c0_55 = arith.constant 0 : index
    %c0_56 = arith.constant 0 : index
    %37 = vector.load %arg1[%c0_53, %c2_54, %c0_55, %c0_56] : memref<1x18x18x16xf32, #tpu.memory_space<vmem>>, vector<1x16x16x16xf32>
    %38 = vector.shape_cast %37 : vector<1x16x16x16xf32> to vector<16x16x16xf32>
    %c0_57 = arith.constant 0 : index
    %c2_58 = arith.constant 2 : index
    %c0_59 = arith.constant 0 : index
    %c0_60 = arith.constant 0 : index
    %39 = vector.load %arg2[%c0_57, %c2_58, %c0_59, %c0_60] : memref<1x18x18x32xf32, #tpu.memory_space<vmem>>, vector<1x16x16x32xf32>
    %40 = vector.shape_cast %39 : vector<1x16x16x32xf32> to vector<16x16x32xf32>
    %c0_61 = arith.constant 0 : index
    %c2_62 = arith.constant 2 : index
    %c1_63 = arith.constant 1 : index
    %c0_64 = arith.constant 0 : index
    %41 = vector.load %arg1[%c0_61, %c2_62, %c1_63, %c0_64] : memref<1x18x18x16xf32, #tpu.memory_space<vmem>>, vector<1x16x16x16xf32>
    %42 = vector.shape_cast %41 : vector<1x16x16x16xf32> to vector<16x16x16xf32>
    %c0_65 = arith.constant 0 : index
    %c2_66 = arith.constant 2 : index
    %c1_67 = arith.constant 1 : index
    %c0_68 = arith.constant 0 : index
    %43 = vector.load %arg2[%c0_65, %c2_66, %c1_67, %c0_68] : memref<1x18x18x32xf32, #tpu.memory_space<vmem>>, vector<1x16x16x32xf32>
    %44 = vector.shape_cast %43 : vector<1x16x16x32xf32> to vector<16x16x32xf32>
    %c0_69 = arith.constant 0 : index
    %c2_70 = arith.constant 2 : index
    %c2_71 = arith.constant 2 : index
    %c0_72 = arith.constant 0 : index
    %45 = vector.load %arg1[%c0_69, %c2_70, %c2_71, %c0_72] : memref<1x18x18x16xf32, #tpu.memory_space<vmem>>, vector<1x16x16x16xf32>
    %46 = vector.shape_cast %45 : vector<1x16x16x16xf32> to vector<16x16x16xf32>
    %c0_73 = arith.constant 0 : index
    %c2_74 = arith.constant 2 : index
    %c2_75 = arith.constant 2 : index
    %c0_76 = arith.constant 0 : index
    %47 = vector.load %arg2[%c0_73, %c2_74, %c2_75, %c0_76] : memref<1x18x18x32xf32, #tpu.memory_space<vmem>>, vector<1x16x16x32xf32>
    %48 = vector.shape_cast %47 : vector<1x16x16x32xf32> to vector<16x16x32xf32>
    %49 = tpu.concatenate %38, %40, %42, %44, %46, %48 in 2 : vector<16x16x16xf32>, vector<16x16x32xf32>, vector<16x16x16xf32>, vector<16x16x32xf32>, vector<16x16x16xf32>, vector<16x16x32xf32> -> vector<16x16x144xf32>
    %50 = vector.shape_cast %49 : vector<16x16x144xf32> to vector<256x144xf32>
    %c2_77 = arith.constant 2 : index
    %c0_78 = arith.constant 0 : index
    %c0_79 = arith.constant 0 : index
    %51 = vector.load %arg3[%c2_77, %c0_78, %c0_79] : memref<3x144x32xf32, #tpu.memory_space<vmem>>, vector<1x144x32xf32>
    %52 = vector.shape_cast %51 : vector<1x144x32xf32> to vector<144x32xf32>
    %cst_80 = arith.constant dense<0.000000e+00> : vector<256x32xf32>
    %53 = tpu.matmul %50, %52, %cst_80 {dimension_numbers = #tpu.dot_dimension_numbers<[1], [0], [0], [1], [0, 0, 1, 1], [], []>} : vector<256x144xf32>, vector<144x32xf32>, vector<256x32xf32> -> vector<256x32xf32>
    %54 = arith.addf %36, %53 : vector<256x32xf32>
    %c0_81 = arith.constant 0 : index
    %c0_82 = arith.constant 0 : index
    %55 = vector.load %arg4[%c0_81, %c0_82] : memref<1x32xf32, #tpu.memory_space<vmem>>, vector<1x32xf32>
    %56 = vector.broadcast %55 : vector<1x32xf32> to vector<256x32xf32>
    %57 = arith.mulf %54, %56 : vector<256x32xf32>
    %c0_83 = arith.constant 0 : index
    %c0_84 = arith.constant 0 : index
    %58 = vector.load %arg5[%c0_83, %c0_84] : memref<1x32xf32, #tpu.memory_space<vmem>>, vector<1x32xf32>
    %59 = vector.broadcast %58 : vector<1x32xf32> to vector<256x32xf32>
    %60 = arith.addf %57, %59 : vector<256x32xf32>
    %cst_85 = arith.constant 0.000000e+00 : f32
    %61 = vector.broadcast %cst_85 : f32 to vector<256x32xf32>
    %62 = arith.maximumf %60, %61 : vector<256x32xf32>
    %63 = vector.shape_cast %62 : vector<256x32xf32> to vector<16x16x32xf32>
    %c0_86 = arith.constant 0 : index
    %c0_87 = arith.constant 0 : index
    %c0_88 = arith.constant 0 : index
    %c0_89 = arith.constant 0 : index
    %64 = vector.load %arg6[%c0_86, %c0_87, %c0_88, %c0_89] : memref<1x16x16x32xf32, #tpu.memory_space<vmem>>, vector<1x16x16x32xf32>
    %65 = vector.shape_cast %64 : vector<1x16x16x32xf32> to vector<16x16x32xf32>
    %66 = vector.shape_cast %63 : vector<16x16x32xf32> to vector<1x16x16x32xf32>
    tpu.vector_store %arg6[%c0_86, %c0_87, %c0_88, %c0_89], %66 {strides = array<i32>} : memref<1x16x16x32xf32, #tpu.memory_space<vmem>>, vector<1x16x16x32xf32>,
    return
  }
  func.func @transform_0(%arg0: i32) -> (i32, i32, i32, i32) {
    %c0_i32 = arith.constant 0 : i32
    %c0_i32_0 = arith.constant 0 : i32
    %c0_i32_1 = arith.constant 0 : i32
    %c0_i32_2 = arith.constant 0 : i32
    return %arg0, %c0_i32, %c0_i32_0, %c0_i32_1 : i32, i32, i32, i32
  }
  func.func @transform_1(%arg0: i32) -> (i32, i32, i32, i32) {
    %c0_i32 = arith.constant 0 : i32
    %c0_i32_0 = arith.constant 0 : i32
    %c0_i32_1 = arith.constant 0 : i32
    %c0_i32_2 = arith.constant 0 : i32
    return %arg0, %c0_i32, %c0_i32_0, %c0_i32_1 : i32, i32, i32, i32
  }
  func.func @transform_2(%arg0: i32) -> (i32, i32, i32) {
    %c0_i32 = arith.constant 0 : i32
    %c0_i32_0 = arith.constant 0 : i32
    %c0_i32_1 = arith.constant 0 : i32
    %c0_i32_2 = arith.constant 0 : i32
    return %c0_i32, %c0_i32_0, %c0_i32_1 : i32, i32, i32
  }
  func.func @transform_3(%arg0: i32) -> (i32, i32) {
    %c0_i32 = arith.constant 0 : i32
    %c0_i32_0 = arith.constant 0 : i32
    %c0_i32_1 = arith.constant 0 : i32
    return %c0_i32, %c0_i32_0 : i32, i32
  }
  func.func @transform_4(%arg0: i32) -> (i32, i32) {
    %c0_i32 = arith.constant 0 : i32
    %c0_i32_0 = arith.constant 0 : i32
    %c0_i32_1 = arith.constant 0 : i32
    return %c0_i32, %c0_i32_0 : i32, i32
  }
  func.func @transform_5(%arg0: i32) -> (i32, i32, i32, i32) {
    %c0_i32 = arith.constant 0 : i32
    %c0_i32_0 = arith.constant 0 : i32
    %c0_i32_1 = arith.constant 0 : i32
    %c0_i32_2 = arith.constant 0 : i32
    return %arg0, %c0_i32, %c0_i32_0, %c0_i32_1 : i32, i32, i32, i32
  }
}

</mosaic_0001>

<bundles_post_ra>
// kernel: tile.6
= control target key start
LH: loop header
LB: loop body
LE: loop exit
PB: predicated region body
PF: predicated region fallthrough
CT: control target
= control target key end

     0   :  { %s22_s0 = inlined_call_operand.vmem [shape: f32[32], index: 0, kind: input, shape index: {}]   ;;  %s23_s1 = inlined_call_operand.vmem [shape: f32[4,32], index: 1, kind: output, shape index: {}]  }
   0x1   :  { %v4_v0 = vld [vmem:[%s22_s0] ss:$0 sm:$0xff] }
   0x2   :  { %5 = vst [vmem:[%s23_s1] sm:$0xf] %v4_v0 }

// kernel: tile.7
= control target key start
LH: loop header
LB: loop body
LE: loop exit
PB: predicated region body
PF: predicated region fallthrough
CT: control target
= control target key end

     0   :  { %vm7_vm0 = vcmask 261120   ;;  %s37_s8 = smov 32   ;;  %s38_s9 = smov 64   ;;  %vm13_vm1 = vcmask 1048320   ;;  %vm19_vm2 = vcmask 785920   ;;  %vm25_vm3 = vcmask 523520   ;;  %s55_s0 = inlined_call_operand.vmem [shape: f32[4,32], index: 0, kind: input, shape index: {}]   ;;  %s56_s1 = inlined_call_operand.vmem [shape: f32[1,128], index: 1, kind: output, shape index: {}]  }
   0x1   :  { %v4_v0 = vld [vmem:[%s55_s0] sm:$0xf]  ;;  %s36_s0 = smov 96  }
   0x2   :  { %5 = vst [vmem:[#allocation1] sm:$0xf] %v4_v0 }
   0x9   :  { %v10_v1 = vld [vmem:[#allocation1 + $0x3] sm:$0x1]   ;;  %v22_v2 = vld [vmem:[#allocation1 + $0x1] sm:$0x1]   ;;  %v6_v3 = vld [vmem:[#allocation1] sm:$0x1]  }
   0xa   :  { %11 = vrot.lane.b32.xlu0 %v10_v1, %s36_s0  ;;  %23 = vrot.lane.b32.xlu1 %v22_v2, %s37_s8  ;;  %v16_v4 = vld [vmem:[#allocation1 + $0x2] sm:$0x1]   ;;  %8 = vst.msk [vmem:[#allocation0] sm:$0x1] %vm7_vm0, %v6_v3  }
   0xe   :  { %17 = vrot.lane.b32.xlu0 %v16_v4, %s38_s9 }
  0x7c   :  { %v12_v5 = vpop.permute.xlu0 %11   ;;  %v24_v6 = vpop.permute.xlu1 %23  }
  0x7d   :  { %14 = vst.msk [vmem:[#allocation0] sm:$0x1] %vm13_vm1, %v12_v5  }
  0x80   :  { %v18_v7 = vpop.permute.xlu0 %17  }
  0x81   :  { %20 = vst.msk [vmem:[#allocation0] sm:$0x1] %vm19_vm2, %v18_v7  }
  0x82   :  { %26 = vst.msk [vmem:[#allocation0] sm:$0x1] %vm25_vm3, %v24_v6  }
  0x89   :  { %v30_v8 = vld [vmem:[#allocation0] sm:$0x1] }
  0x8a   :  { %32 = vst [vmem:[%s56_s1] sm:$0x1] %v30_v8 }

// kernel: up_layer_with_attention_forward.3
= control target key start
LH: loop header
LB: loop body
LE: loop exit
PB: predicated region body
PF: predicated region fallthrough
CT: control target
= control target key end

     0   :  { %vm35_vm0 = vcmask 64512   ;;  %v295_v0 = vmov 0.0   ;;  %vm296_vm1 = vmmov 0   ;;  %s427_s1 = inlined_call_operand.vmem [shape: f32[8,128], index: 1, kind: input, shape index: {}]   ;;  %s428_s0 = inlined_call_operand.vmem [shape: f32[104,8], index: 0, kind: input, shape index: {}]   ;;  %s429_s2 = inlined_call_operand.vmem [shape: f32[1,128], index: 2, kind: input, shape index: {}]   ;;  %s430_s3 = inlined_call_operand.vmem [shape: f32[104,128], index: 3, kind: output, shape index: {}]  }
   0x1   :  { %250 = vmatprep.subr.mxu0 %v295_v0  ;;  %v27_v1 = vld [vmem:[%s427_s1] sm:$0xff]  ;;  %252 = vmatprep.mubr.msk.f32.mxu0 %vm296_vm1, %v295_v0  ;;  %v21_v3 = vld [vmem:[%s428_s0 + $0x38] sm:$0xff]  ;;  %v15_v4 = vld [vmem:[%s428_s0 + $0x8] sm:$0xff] }
   0x2   :  { %v14_v2 = vld [vmem:[%s428_s0] sm:$0xff]  ;;  %251 = vmatpush3.msra.mxu0 %v27_v1  ;;  %291 = vmatprep.subr.mxu1 %v295_v0  ;;  %v16_v6 = vld [vmem:[%s428_s0 + $0x10] sm:$0xff]  ;;  %v23_v7 = vld [vmem:[%s428_s0 + $0x48] sm:$0xff] }
   0x3   :  { %253 = vmatmul.mubr.msk.f32.vlgmr.msra.gmra.mrb[0].mxu0 %vm35_vm0, %v14_v2  ;;  %292 = vmatpush3.msra.mxu1 %v27_v1  ;;  %v22_v5 = vld [vmem:[%s428_s0 + $0x40] sm:$0xff]  ;;  %v17_v8 = vld [vmem:[%s428_s0 + $0x18] sm:$0xff]  ;;  %v24_v9 = vld [vmem:[%s428_s0 + $0x50] sm:$0xff] }
   0x4   :  { %273 = vmatprep.mubr.msk.f32.mxu1 %vm296_vm1, %v295_v0  ;;  %255 = vmatprep.mubr.msk.f32.mxu0 %vm296_vm1, %v295_v0  ;;  %v18_v10 = vld [vmem:[%s428_s0 + $0x20] sm:$0xff]  ;;  %v25_v11 = vld [vmem:[%s428_s0 + $0x58] sm:$0xff]  ;;  %v19_v12 = vld [vmem:[%s428_s0 + $0x28] sm:$0xff] }
   0x5   :  { %274 = vmatmul.mubr.msk.f32.vlgmr.msra.gmra.mrb[0].mxu1 %vm35_vm0, %v21_v3  ;;  %v26_v13 = vld [vmem:[%s428_s0 + $0x60] sm:$0xff]  ;;  %v20_v14 = vld [vmem:[%s428_s0 + $0x30] sm:$0xff] }
   0x6   :  { %276 = vmatprep.mubr.msk.f32.mxu1 %vm296_vm1, %v295_v0  ;;  %v222_v15 = vld [vmem:[%s429_s2] ss:$0 sm:$0xff] }
   0x7   :  { %256 = vmatmul.mubr.msk.f32.gmra.mrb[2].mxu0 %vm35_vm0, %v15_v4 }
   0x8   :  { %258 = vmatprep.mubr.msk.f32.mxu0 %vm296_vm1, %v295_v0 }
   0x9   :  { %277 = vmatmul.mubr.msk.f32.gmra.mrb[2].mxu1 %vm35_vm0, %v22_v5 }
   0xa   :  { %279 = vmatprep.mubr.msk.f32.mxu1 %vm296_vm1, %v295_v0 }
   0xb   :  { %259 = vmatmul.mubr.msk.f32.gmra.mrb[4].mxu0 %vm35_vm0, %v16_v6 }
   0xc   :  { %261 = vmatprep.mubr.msk.f32.mxu0 %vm296_vm1, %v295_v0 }
   0xd   :  { %280 = vmatmul.mubr.msk.f32.gmra.mrb[4].mxu1 %vm35_vm0, %v23_v7 }
   0xe   :  { %282 = vmatprep.mubr.msk.f32.mxu1 %vm296_vm1, %v295_v0 }
   0xf   :  { %262 = vmatmul.mubr.msk.f32.gmra.mrb[6].mxu0 %vm35_vm0, %v17_v8 }
  0x10   :  { %264 = vmatprep.mubr.msk.f32.mxu0 %vm296_vm1, %v295_v0 }
  0x11   :  { %283 = vmatmul.mubr.msk.f32.gmra.mrb[6].mxu1 %vm35_vm0, %v24_v9 }
  0x12   :  { %285 = vmatprep.mubr.msk.f32.mxu1 %vm296_vm1, %v295_v0 }
  0x13   :  { %265 = vmatmul.mubr.msk.f32.gmra.mrb[8].mxu0 %vm35_vm0, %v18_v10 }
  0x14   :  { %267 = vmatprep.mubr.msk.f32.mxu0 %vm296_vm1, %v295_v0 }
  0x15   :  { %286 = vmatmul.mubr.msk.f32.gmra.mrb[8].mxu1 %vm35_vm0, %v25_v11 }
  0x16   :  { %288 = vmatprep.mubr.msk.f32.mxu1 %vm296_vm1, %v295_v0 }
  0x17   :  { %268 = vmatmul.mubr.msk.f32.gmra.mrb[10].mxu0 %vm35_vm0, %v19_v12 }
  0x18   :  { %270 = vmatprep.mubr.msk.f32.mxu0 %vm296_vm1, %v295_v0 }
  0x19   :  { %289 = vmatmul.mubr.msk.f32.gmra.mrb[10].mxu1 %vm35_vm0, %v26_v13 }
  0x1b   :  { %271 = vmatmul.mubr.msk.f32.gmra.mrb[12].mxu0 %vm35_vm0, %v20_v14 }
  0xd6   :  { %v141_v16 = vpop.f32.mrb[0].mxu0 }
  0xd7   :  { %v142_v17 = vadd.f32 %v222_v15, %v141_v16  ;;  %v254_v18 = vpop.f32.mrb[1].mxu0 }
  0xd8   :  { %v176_v19 = vpop.f32.mrb[0].mxu1 }
  0xd9   :  { %205 = vst [vmem:[%s430_s3] sm:$0xff] %v142_v17  ;;  %v177_v20 = vadd.f32 %v222_v15, %v176_v19  ;;  %v275_v21 = vpop.f32.mrb[1].mxu1 }
  0xda   :  { %v146_v22 = vpop.f32.mrb[2].mxu0 }
  0xdb   :  { %212 = vst [vmem:[%s430_s3 + $0x38] sm:$0xff] %v177_v20  ;;  %v147_v23 = vadd.f32 %v222_v15, %v146_v22  ;;  %v257_v24 = vpop.f32.mrb[3].mxu0 }
  0xdc   :  { %v181_v25 = vpop.f32.mrb[2].mxu1 }
  0xdd   :  { %206 = vst [vmem:[%s430_s3 + $0x8] sm:$0xff] %v147_v23  ;;  %v182_v26 = vadd.f32 %v222_v15, %v181_v25  ;;  %v278_v27 = vpop.f32.mrb[3].mxu1 }
  0xde   :  { %v151_v28 = vpop.f32.mrb[4].mxu0 }
  0xdf   :  { %213 = vst [vmem:[%s430_s3 + $0x40] sm:$0xff] %v182_v26  ;;  %v152_v29 = vadd.f32 %v222_v15, %v151_v28  ;;  %v260_v30 = vpop.f32.mrb[5].mxu0 }
  0xe0   :  { %v186_v31 = vpop.f32.mrb[4].mxu1 }
  0xe1   :  { %207 = vst [vmem:[%s430_s3 + $0x10] sm:$0xff] %v152_v29  ;;  %v187_v32 = vadd.f32 %v222_v15, %v186_v31  ;;  %v281_v33 = vpop.f32.mrb[5].mxu1 }
  0xe2   :  { %v156_v34 = vpop.f32.mrb[6].mxu0 }
  0xe3   :  { %214 = vst [vmem:[%s430_s3 + $0x48] sm:$0xff] %v187_v32  ;;  %v157_v35 = vadd.f32 %v222_v15, %v156_v34  ;;  %v263_v36 = vpop.f32.mrb[7].mxu0 }
  0xe4   :  { %v191_v37 = vpop.f32.mrb[6].mxu1 }
  0xe5   :  { %208 = vst [vmem:[%s430_s3 + $0x18] sm:$0xff] %v157_v35  ;;  %v192_v38 = vadd.f32 %v222_v15, %v191_v37  ;;  %v284_v39 = vpop.f32.mrb[7].mxu1 }
  0xe6   :  { %v161_v40 = vpop.f32.mrb[8].mxu0 }
  0xe7   :  { %215 = vst [vmem:[%s430_s3 + $0x50] sm:$0xff] %v192_v38  ;;  %v162_v41 = vadd.f32 %v222_v15, %v161_v40  ;;  %v266_v42 = vpop.f32.mrb[9].mxu0 }
  0xe8   :  { %v196_v43 = vpop.f32.mrb[8].mxu1 }
  0xe9   :  { %209 = vst [vmem:[%s430_s3 + $0x20] sm:$0xff] %v162_v41  ;;  %v197_v44 = vadd.f32 %v222_v15, %v196_v43  ;;  %v287_v45 = vpop.f32.mrb[9].mxu1 }
  0xea   :  { %v166_v46 = vpop.f32.mrb[10].mxu0 }
  0xeb   :  { %216 = vst [vmem:[%s430_s3 + $0x58] sm:$0xff] %v197_v44  ;;  %v167_v47 = vadd.f32 %v222_v15, %v166_v46  ;;  %v269_v48 = vpop.f32.mrb[11].mxu0 }
  0xec   :  { %v201_v49 = vpop.f32.mrb[10].mxu1 }
  0xed   :  { %210 = vst [vmem:[%s430_s3 + $0x28] sm:$0xff] %v167_v47  ;;  %v202_v50 = vadd.f32 %v222_v15, %v201_v49  ;;  %v290_v51 = vpop.f32.mrb[11].mxu1 }
  0xee   :  { %v171_v52 = vpop.f32.mrb[12].mxu0 }
  0xef   :  { %217 = vst [vmem:[%s430_s3 + $0x60] sm:$0xff] %v202_v50  ;;  %v172_v53 = vadd.f32 %v222_v15, %v171_v52  ;;  %v272_v54 = vpop.f32.mrb[13].mxu0 }
  0xf1   :  { %211 = vst [vmem:[%s430_s3 + $0x30] sm:$0xff] %v172_v53 }

// kernel: up_layer_with_attention_forward.5
= control target key start
LH: loop header
LB: loop body
LE: loop exit
PB: predicated region body
PF: predicated region fallthrough
CT: control target
= control target key end

     0   :  { %13 = vsyncpa [#allocation3], 0  ;;  %s5928_s0 = inlined_call_operand.vmem [shape: f32[2,18,18,32], index: 0, kind: input, shape index: {}]   ;;  %s5929_s1 = inlined_call_operand.vmem [shape: f32[3,96,32], index: 1, kind: input, shape index: {}]   ;;  %s5930_s2 = inlined_call_operand.vmem [shape: f32[1,32], index: 2, kind: input, shape index: {}]   ;;  %s5931_s3 = inlined_call_operand.vmem [shape: f32[1,32], index: 3, kind: input, shape index: {}]   ;;  %s5932_s4 = inlined_call_operand.vmem [shape: f32[32,2], index: 4, kind: input, shape index: {}]   ;;  %s5933_s5 = inlined_call_operand.vmem [shape: f32[1,2], index: 5, kind: input, shape index: {}]   ;;  %s5934_s6 = inlined_call_operand.vmem [shape: f32[2,32], index: 6, kind: input, shape index: {}]   ;;  %s5935_s7 = inlined_call_operand.vmem [shape: f32[1,32], index: 7, kind: input, shape index: {}]   ;;  %s5936_s8 = inlined_call_operand.hbm [shape: f32[2,16,16,32], index: 8, kind: output, shape index: {}]  }
   0x1   :  { %15 = vsyncpa [#allocation3 + $0x1], 0  ;;  %s4102_s27 = smov 0   ;;  %s4104_s28 = smov 0  }
   0x2   :  { %s4106_s29 = smov 0   ;;  %s4108_s30 = smov 0  }
   0x3 LB: > { %s4123_s9 = sadd.s32 4294967295, %s4047_s30   ;;  %s3080_s10 = sadd.s32 4294967294, %s4047_s30   ;;  %s4047_s30 = sphi %s4108_s30, %s5972_s30   ;;  %s4043_s29 = sphi %s4106_s29, %s5971_s29   ;;  %s4039_s28 = sphi %s4104_s28, %s5970_s28   ;;  %s4035_s27 = sphi %s4102_s27, %s5969_s27  }
   0x4   : > { %s4127_s11 = sadd.s32 1, %s4047_s30   ;;  %s201_s12 = sadd.s32 1, %s4043_s29 }
   0x5   : > { %s198_s13 = ssub.s32 %s4047_s30, %s4127_s11  ;;  %p211_p0 = scmp.ne.s32.totalorder %s4043_s29, %s4039_s28 }
   0x6   : > { %p199_p1 = scmp.eq.s32.totalorder %s198_s13, 0  ;;  %p212_p2 = scmp.eq.s32.totalorder %s4123_s9, 1 }
   0x7   : > { %p217_p3 = scmp.ne.s32.totalorder %s4039_s28, %s4035_s27  ;;  %p218_p4 = scmp.eq.s32.totalorder %s3080_s10, 1 }
   0x8   : > { %s4138_s14 = scalar_select %p199_p1, %s4043_s29, %s201_s12  }
   0x9   : > { %p4140_p5 = por %p212_p2, %p211_p0  ;;  %p4144_p6 = por %p218_p4, %p217_p3 }
   0xa   : > { %p3083_p7 = scmp.ge.s32.totalorder %s4047_s30, 1  ;;  %p265_p8 = scmp.lt.s32.totalorder %s4047_s30, 3 }
   0xc   : > { %p266_p9 = pnand %p3083_p7, %p265_p8 }
   0xd   : > { %p299_p10 = scmp.lt.s32.totalorder (!%p266_p9), %s4123_s9, 1  ;;  %v722_v0 = vld [vmem:[%s5929_s1] sm:$0xff] (!%p266_p9)  ;;  %v723_v1 = vld [vmem:[%s5929_s1 + $0x8] sm:$0xff] (!%p266_p9)  ;;  %v724_v2 = vld [vmem:[%s5929_s1 + $0x10] sm:$0xff] (!%p266_p9)  ;;  %s4049_s24 = smov (!%p266_p9), 64   ;;  %vm656_vm0 = vcmask (!%p266_p9), 261120  }
   0xe   : > { %269 = sbr.rel (%p266_p9) target bundleno = 1257 (0x4e9), region = 52  ;;  %v4160_v3 = vpack.c.bf16 (!%p266_p9), %v723_v1, %v722_v0  ;;  %v725_v4 = vld [vmem:[%s5929_s1 + $0x18] sm:$0xff] (!%p266_p9)  ;;  %v726_v6 = vld [vmem:[%s5929_s1 + $0x20] sm:$0xff] (!%p266_p9)  ;;  %v727_v7 = vld [vmem:[%s5929_s1 + $0x28] sm:$0xff] (!%p266_p9)  ;;  %s4050_s26 = smov (!%p266_p9), 32   ;;  %vm689_vm1 = vcmask (!%p266_p9), 523264  }
   0xf   : > { %v4166_v5 = vpack.c.bf16 (!%p266_p9), %v725_v4, %v724_v2  ;;  %v3182_v8 = vld [vmem:[%s5929_s1 + $0x60] sm:$0xff] (!%p266_p9)  ;;  %v3183_v9 = vld [vmem:[%s5929_s1 + $0x68] sm:$0xff] (!%p266_p9)  ;;  %v3184_v10 = vld [vmem:[%s5929_s1 + $0x70] sm:$0xff] (!%p266_p9)  ;;  %v4194_v13 = vpack.c.bf16 (!%p266_p9), %v727_v7, %v726_v6  ;;  %vm1164_vm2 = vcmask (!%p266_p9), 785408   ;;  %vm4052_vm3 = vmmov (!%p266_p9), 0   ;;  %s296_s21 = sand.u32 (!%p266_p9), 1, %s4039_s28  }
  0x10   : > { %3805 = vmatprep.subr.bf16.mxu0 (!%p266_p9), %v4160_v3  ;;  %v3780_v11 = vpack.c.bf16 (!%p266_p9), %v3183_v9, %v3182_v8  ;;  %v3185_v12 = vld [vmem:[%s5929_s1 + $0x78] sm:$0xff] (!%p266_p9)  ;;  %v728_v14 = vld [vmem:[%s5929_s1 + $0x30] sm:$0xff] (!%p266_p9)  ;;  %v3186_v17 = vld [vmem:[%s5929_s1 + $0x80] sm:$0xff] (!%p266_p9)  ;;  %vm2856_vm4 = vcmask (!%p266_p9), 1041408   ;;  %vm2852_vm5 = vcmask (!%p266_p9), 15360   ;;  %s3084_s22 = sshll.u32 (!%p266_p9), %s296_s21, 8 }
  0x11   : > { %3807 = vmatpush3.bf16.msra.mxu0 (!%p266_p9), %v4160_v3  ;;  %v729_v15 = vld [vmem:[%s5929_s1 + $0x38] sm:$0xff] (!%p266_p9)  ;;  %v3784_v16 = vpack.c.bf16 (!%p266_p9), %v3185_v12, %v3184_v10  ;;  %v3187_v20 = vld [vmem:[%s5929_s1 + $0x88] sm:$0xff] (!%p266_p9)  ;;  %v730_v25 = vld [vmem:[%s5929_s1 + $0x40] sm:$0xff] (!%p266_p9)  ;;  %s3408_s23 = sshll.u32 (!%p266_p9), %s4123_s9, 12  ;;  %s5887_s18 = scalar_lea.sflag (!%p266_p9), [#allocation3], %s296_s21 }
  0x12   : > { %3809 = vmatprep.subr.bf16.mxu0 (!%p266_p9), %v4166_v5  ;;  %3781 = vmatprep.subr.bf16.mxu1 (!%p266_p9), %v3780_v11  ;;  %v4216_v23 = vpack.c.bf16 (!%p266_p9), %v729_v15, %v728_v14  ;;  %v3788_v24 = vpack.c.bf16 (!%p266_p9), %v3187_v20, %v3186_v17  ;;  %v731_v26 = vld [vmem:[%s5929_s1 + $0x48] sm:$0xff] (!%p266_p9)  ;;  %v732_v30 = vld [vmem:[%s5929_s1 + $0x50] sm:$0xff] (!%p266_p9)  ;;  %v733_v31 = vld [vmem:[%s5929_s1 + $0x58] sm:$0xff] (!%p266_p9)  ;;  %s5849_s13 = scalar_lea.hbm (!%p266_p9), %s5936_s8, %s3408_s23 }
  0x13   : > { %3783 = vmatpush3.bf16.msra.mxu1 (!%p266_p9), %v3780_v11  ;;  %v4230_v29 = vpack.c.bf16 (!%p266_p9), %v731_v26, %v730_v25  ;;  %v4244_v34 = vpack.c.bf16 (!%p266_p9), %v733_v31, %v732_v30  ;;  %v3188_v36 = vld [vmem:[%s5929_s1 + $0x90] sm:$0xff] (!%p266_p9)  ;;  %v3189_v37 = vld [vmem:[%s5929_s1 + $0x98] sm:$0xff] (!%p266_p9)  ;;  %v3190_v39 = vld [vmem:[%s5929_s1 + $0xa0] sm:$0xff] (!%p266_p9) }
  0x14   : > { %3785 = vmatprep.subr.bf16.mxu1 (!%p266_p9), %v3784_v16  ;;  %v3792_v38 = vpack.c.bf16 (!%p266_p9), %v3189_v37, %v3188_v36  ;;  %v3191_v40 = vld [vmem:[%s5929_s1 + $0xa8] sm:$0xff] (!%p266_p9)  ;;  %v3192_v42 = vld [vmem:[%s5929_s1 + $0xb0] sm:$0xff] (!%p266_p9)  ;;  %v3193_v43 = vld [vmem:[%s5929_s1 + $0xb8] sm:$0xff] (!%p266_p9) }
  0x15   : > { %s300_s25 = scalar_select %p299_p10, %s4123_s9, 1  ;;  %3811 = vmatpush3.bf16.msra.mxu0 %v4166_v5  ;;  %v3796_v41 = vpack.c.bf16 %v3191_v40, %v3190_v39  ;;  %v3800_v46 = vpack.c.bf16 %v3193_v43, %v3192_v42  ;;  %v3354_v4 = vld [vmem:[%s5929_s1 + $0xc0] sm:$0xff]  ;;  %v3355_v6 = vld [vmem:[%s5929_s1 + $0xc8] sm:$0xff]  ;;  %v3357_v20 = vld [vmem:[%s5929_s1 + $0xd8] sm:$0xff] }
  0x16   : > { %3813 = vmatprep.subr.bf16.mxu0 %v4194_v13  ;;  %v3828_v7 = vpack.c.bf16 %v3355_v6, %v3354_v4  ;;  %v3360_v42 = vld [vmem:[%s5929_s1 + $0xf0] sm:$0xff]  ;;  %v3361_v43 = vld [vmem:[%s5929_s1 + $0xf8] sm:$0xff] }
  0x17   : > { %s3934_s17 = smul.u32 432, %s300_s25  ;;  %3787 = vmatpush3.bf16.msra.mxu1 %v3784_v16  ;;  %v3840_v6 = vpack.c.bf16 %v3361_v43, %v3360_v42 }
  0x18   : > { %3789 = vmatprep.subr.bf16.mxu1 %v3788_v24 }
  0x19   : > { %s4192_s12 = scalar_lea.vmem %s5928_s0, %s3934_s17  ;;  %3815 = vmatpush3.bf16.msra.mxu0 %v4194_v13  ;;  %s5770_s17 = scalar_lea.vmem [#allocation2], %s3084_s22 }
  0x1a   : > { %v368_v18 = vld [vmem:[%s4192_s12 + $0x2] sm:$0xff]  ;;  %v369_v21 = vld [vmem:[%s4192_s12 + $0xa] sm:$0xff]  ;;  %v338_v28 = vld [vmem:[%s4192_s12 + $0x19] sm:$0xff]  ;;  %3817 = vmatprep.subr.bf16.mxu0 %v4216_v23  ;;  %s3018_s25 = sshll.u32 %s5770_s17, 4  ;;  %s5851_s25 = int_to_ptr.vmem [resolvable:$true] %s3018_s25 }
  0x1b   : > { %v336_v19 = vld [vmem:[%s4192_s12 + $0x1] sm:$0xff]  ;;  %560 = vrot.lane.b32.xlu1 %v368_v18, %s4049_s24  ;;  %v337_v22 = vld [vmem:[%s4192_s12 + $0x9] sm:$0xff]  ;;  %3791 = vmatpush3.bf16.msra.mxu1 %v3788_v24  ;;  %v4249_v35 = vld [vmem:[%s4192_s12 + $0x31] sm:$0xff] }
  0x1c   : > { %432 = vrot.lane.b32.xlu0 %v336_v19, %s4050_s26  ;;  %v339_v27 = vld [vmem:[%s4192_s12 + $0x21] sm:$0xff]  ;;  %v4275_v44 = vld [vmem:[%s4192_s12 + $0x32] sm:$0xff]  ;;  %3793 = vmatprep.subr.bf16.mxu1 %v3792_v38  ;;  %v4295_v48 = vld [vmem:[%s4192_s12 + $0x49] sm:$0xff] }
  0x1d   : > { %v371_v32 = vld [vmem:[%s4192_s12 + $0x22] sm:$0xff]  ;;  %v370_v33 = vld [vmem:[%s4192_s12 + $0x1a] sm:$0xff]  ;;  %3819 = vmatpush3.bf16.msra.mxu0 %v4216_v23  ;;  %v4302_v49 = vld [vmem:[%s4192_s12 + $0x4a] sm:$0xff] }
  0x1e   : > { %3821 = vmatprep.subr.bf16.mxu0 %v4230_v29  ;;  %v4278_v45 = vld [vmem:[%s4192_s12 + $0x39] sm:$0xff]  ;;  %v4305_v50 = vld [vmem:[%s4192_s12 + $0x51] sm:$0xff]  ;;  %v4323_v52 = vld [vmem:[%s4192_s12 + $0x61] sm:$0xff] }
  0x1f   : > { %562 = vrot.lane.b32.xlu1 %v369_v21, %s4049_s24  ;;  %3795 = vmatpush3.bf16.msra.mxu1 %v3792_v38  ;;  %v4288_v47 = vld [vmem:[%s4192_s12 + $0x3a] sm:$0xff]  ;;  %v4316_v51 = vld [vmem:[%s4192_s12 + $0x52] sm:$0xff]  ;;  %v4330_v53 = vld [vmem:[%s4192_s12 + $0x62] sm:$0xff] }
  0x20   : > { %434 = vrot.lane.b32.xlu0 %v337_v22, %s4050_s26  ;;  %3797 = vmatprep.subr.bf16.mxu1 %v3796_v41  ;;  %v4333_v54 = vld [vmem:[%s4192_s12 + $0x69] sm:$0xff]  ;;  %v4351_v56 = vld [vmem:[%s4192_s12 + $0x79] sm:$0xff]  ;;  %v4361_v58 = vld [vmem:[%s4192_s12 + $0x81] sm:$0xff] }
  0x21   : > { %3823 = vmatpush3.bf16.msra.mxu0 %v4230_v29  ;;  %v4344_v55 = vld [vmem:[%s4192_s12 + $0x6a] sm:$0xff]  ;;  %v4358_v57 = vld [vmem:[%s4192_s12 + $0x7a] sm:$0xff]  ;;  %v4372_v59 = vld [vmem:[%s4192_s12 + $0x82] sm:$0xff] }
  0x22   : > { %3825 = vmatprep.subr.bf16.mxu0 %v4244_v34  ;;  %v4379_v60 = vld [vmem:[%s4192_s12 + $0x91] sm:$0xff]  ;;  %v4389_v62 = vld [vmem:[%s4192_s12 + $0x99] sm:$0xff]  ;;  %v4407_v0 = vld [vmem:[%s4192_s12 + $0xa9] sm:$0xff] }
  0x23   : > { %438 = vrot.lane.b32.xlu1 %v339_v27, %s4050_s26  ;;  %3799 = vmatpush3.bf16.msra.mxu1 %v3796_v41  ;;  %v4386_v61 = vld [vmem:[%s4192_s12 + $0x92] sm:$0xff]  ;;  %v4400_v63 = vld [vmem:[%s4192_s12 + $0x9a] sm:$0xff]  ;;  %v4414_v1 = vld [vmem:[%s4192_s12 + $0xaa] sm:$0xff] }
  0x24   : > { %436 = vrot.lane.b32.xlu0 %v338_v28, %s4050_s26  ;;  %3801 = vmatprep.subr.bf16.mxu1 %v3800_v46  ;;  %v4417_v2 = vld [vmem:[%s4192_s12 + $0xb1] sm:$0xff]  ;;  %v4441_v9 = vld [vmem:[%s4192_s12 + $0xc1] sm:$0xff]  ;;  %v4452_v12 = vld [vmem:[%s4192_s12 + $0xc9] sm:$0xff] }
  0x25   : > { %3827 = vmatpush3.bf16.msra.mxu0 %v4244_v34  ;;  %v4434_v8 = vld [vmem:[%s4192_s12 + $0xb2] sm:$0xff]  ;;  %v304_v10 = vld [vmem:[%s4192_s12] sm:$0xff]  ;;  %v305_v17 = vld [vmem:[%s4192_s12 + $0x8] sm:$0xff] }
  0x26   : > { %3829 = vmatprep.subr.bf16.mxu0 %v3828_v7  ;;  %v4449_v11 = vld [vmem:[%s4192_s12 + $0xc2] sm:$0xff]  ;;  %v3356_v19 = vld [vmem:[%s5929_s1 + $0xd0] sm:$0xff]  ;;  %v306_v36 = vld [vmem:[%s4192_s12 + $0x18] sm:$0xff] }
  0x27   : > { %566 = vrot.lane.b32.xlu1 %v371_v32, %s4049_s24  ;;  %3803 = vmatpush3.bf16.msra.mxu1 %v3800_v46  ;;  %v3832_v25 = vpack.c.bf16 %v3357_v20, %v3356_v19  ;;  %v4482_v30 = vld [vmem:[%s4192_s12 + $0xca] sm:$0xff] }
  0x28   : > { %564 = vrot.lane.b32.xlu0 %v370_v33, %s4049_s24  ;;  %3858 = vmatprep.subr.bf16.mxu1 %v4160_v3  ;;  %v3364_v20 = vld [vmem:[%s5929_s1 + $0x110] sm:$0xff]  ;;  %v4565_v42 = vld [vmem:[%s4192_s12 + $0x48] sm:$0xff] }
  0x2b   : > { %863 = vrot.lane.b32.xlu1 %v338_v28, %s4050_s26  ;;  %v3359_v28 = vld [vmem:[%s5929_s1 + $0xe8] sm:$0xff] }
  0x2c   : > { %440 = vrot.lane.b32.xlu0 %v4249_v35, %s4050_s26 }
  0x2f   : > { %568 = vrot.lane.b32.xlu1 %v4275_v44, %s4049_s24 }
  0x30   : > { %442 = vrot.lane.b32.xlu0 %v4278_v45, %s4050_s26 }
  0x33   : > { %991 = vrot.lane.b32.xlu1 %v370_v33, %s4049_s24  ;;  %v307_v33 = vld [vmem:[%s4192_s12 + $0x20] sm:$0xff] }
  0x34   : > { %865 = vrot.lane.b32.xlu0 %v339_v27, %s4050_s26  ;;  %v3358_v27 = vld [vmem:[%s5929_s1 + $0xe0] sm:$0xff] }
  0x35   : > { %v3836_v37 = vpack.c.bf16 %v3359_v28, %v3358_v27  ;;  %v4535_v28 = vld [vmem:[%s4192_s12 + $0x38] sm:$0xff] }
  0x37   : > { %993 = vrot.lane.b32.xlu1 %v371_v32, %s4049_s24 }
  0x38   : > { %570 = vrot.lane.b32.xlu0 %v4288_v47, %s4049_s24 }
  0x3b   : > { %867 = vrot.lane.b32.xlu1 %v4249_v35, %s4050_s26 }
  0x3c   : > { %444 = vrot.lane.b32.xlu0 %v4295_v48, %s4050_s26 }
  0x3f   : > { %572 = vrot.lane.b32.xlu1 %v4302_v49, %s4049_s24 }
  0x40   : > { %446 = vrot.lane.b32.xlu0 %v4305_v50, %s4050_s26 }
  0x43   : > { %995 = vrot.lane.b32.xlu1 %v4275_v44, %s4049_s24 }
  0x44   : > { %869 = vrot.lane.b32.xlu0 %v4278_v45, %s4050_s26 }
  0x47   : > { %997 = vrot.lane.b32.xlu1 %v4288_v47, %s4049_s24 }
  0x48   : > { %574 = vrot.lane.b32.xlu0 %v4316_v51, %s4049_s24 }
  0x4b   : > { %871 = vrot.lane.b32.xlu1 %v4295_v48, %s4050_s26 }
  0x4c   : > { %448 = vrot.lane.b32.xlu0 %v4323_v52, %s4050_s26 }
  0x4f   : > { %576 = vrot.lane.b32.xlu1 %v4330_v53, %s4049_s24 }
  0x50   : > { %450 = vrot.lane.b32.xlu0 %v4333_v54, %s4050_s26 }
  0x53   : > { %999 = vrot.lane.b32.xlu1 %v4302_v49, %s4049_s24 }
  0x54   : > { %873 = vrot.lane.b32.xlu0 %v4305_v50, %s4050_s26 }
  0x57   : > { %1001 = vrot.lane.b32.xlu1 %v4316_v51, %s4049_s24 }
  0x58   : > { %578 = vrot.lane.b32.xlu0 %v4344_v55, %s4049_s24 }
  0x5b   : > { %875 = vrot.lane.b32.xlu1 %v4323_v52, %s4050_s26 }
  0x5c   : > { %452 = vrot.lane.b32.xlu0 %v4351_v56, %s4050_s26 }
  0x5f   : > { %580 = vrot.lane.b32.xlu1 %v4358_v57, %s4049_s24 }
  0x60   : > { %454 = vrot.lane.b32.xlu0 %v4361_v58, %s4050_s26 }
  0x63   : > { %1003 = vrot.lane.b32.xlu1 %v4330_v53, %s4049_s24 }
  0x64   : > { %877 = vrot.lane.b32.xlu0 %v4333_v54, %s4050_s26 }
  0x67   : > { %1005 = vrot.lane.b32.xlu1 %v4344_v55, %s4049_s24 }
  0x68   : > { %582 = vrot.lane.b32.xlu0 %v4372_v59, %s4049_s24 }
  0x6b   : > { %879 = vrot.lane.b32.xlu1 %v4351_v56, %s4050_s26 }
  0x6c   : > { %456 = vrot.lane.b32.xlu0 %v4379_v60, %s4050_s26 }
  0x6f   : > { %584 = vrot.lane.b32.xlu1 %v4386_v61, %s4049_s24 }
  0x70   : > { %458 = vrot.lane.b32.xlu0 %v4389_v62, %s4050_s26 }
  0x73   : > { %1007 = vrot.lane.b32.xlu1 %v4358_v57, %s4049_s24 }
  0x74   : > { %881 = vrot.lane.b32.xlu0 %v4361_v58, %s4050_s26 }
  0x77   : > { %1009 = vrot.lane.b32.xlu1 %v4372_v59, %s4049_s24 }
  0x78   : > { %586 = vrot.lane.b32.xlu0 %v4400_v63, %s4049_s24 }
  0x7b   : > { %883 = vrot.lane.b32.xlu1 %v4379_v60, %s4050_s26 }
  0x7c   : > { %460 = vrot.lane.b32.xlu0 %v4407_v0, %s4050_s26 }
  0x7f   : > { %588 = vrot.lane.b32.xlu1 %v4414_v1, %s4049_s24 }
  0x80   : > { %462 = vrot.lane.b32.xlu0 %v4417_v2, %s4050_s26 }
  0x83   : > { %1011 = vrot.lane.b32.xlu1 %v4386_v61, %s4049_s24 }
  0x84   : > { %885 = vrot.lane.b32.xlu0 %v4389_v62, %s4050_s26 }
  0x87   : > { %1013 = vrot.lane.b32.xlu1 %v4400_v63, %s4049_s24 }
  0x88   : > { %590 = vrot.lane.b32.xlu0 %v4434_v8, %s4049_s24 }
  0x8b   : > { %887 = vrot.lane.b32.xlu1 %v4407_v0, %s4050_s26 }
  0x8c   : > { %464 = vrot.lane.b32.xlu0 %v4441_v9, %s4050_s26 }
  0x8d   : > { %v561_v14 = vpop.permute.xlu1 %560 }
  0x8e   : > { %v433_v15 = vpop.permute.xlu0 %432 }
  0x8f   : > { %v657_v16 = vsel %vm656_vm0, %v304_v10, %v433_v15  ;;  %592 = vrot.lane.b32.xlu1 %v4449_v11, %s4049_s24  ;;  %v3363_v15 = vld [vmem:[%s5929_s1 + $0x108] sm:$0xff] }
  0x90   : > { %466 = vrot.lane.b32.xlu0 %v4452_v12, %s4050_s26  ;;  %v690_v18 = vsel %vm689_vm1, %v657_v16, %v561_v14  ;;  %v3362_v14 = vld [vmem:[%s5929_s1 + $0x100] sm:$0xff]  ;;  %v4513_v16 = vld [vmem:[%s4192_s12 + $0x30] sm:$0xff] }
  0x91   : > { %3644 = vmatprep.mubr.msk.f32.mxu0 %vm1164_vm2, %v690_v18  ;;  %v563_v21 = vpop.permute.xlu1 %562 }
  0x92   : > { %v435_v22 = vpop.permute.xlu0 %434 }
  0x93   : > { %v658_v24 = vsel %vm656_vm0, %v305_v17, %v435_v22  ;;  %1015 = vrot.lane.b32.xlu1 %v4414_v1, %s4049_s24 }
  0x94   : > { %889 = vrot.lane.b32.xlu0 %v4417_v2, %s4050_s26  ;;  %v691_v26 = vsel %vm689_vm1, %v658_v24, %v563_v21  ;;  %v3365_v21 = vld [vmem:[%s5929_s1 + $0x118] sm:$0xff] }
  0x95   : > { %3645 = vmatmul.mubr.msk.f32.vlgmr.msra.gmra.mrb[0].mxu0 %vm1164_vm2, %v691_v26  ;;  %v439_v31 = vpop.permute.xlu1 %438  ;;  %v3848_v24 = vpack.c.bf16 %v3365_v21, %v3364_v20  ;;  %v4619_v20 = vld [vmem:[%s4192_s12 + $0xf9] sm:$0xff] }
  0x96   : > { %v437_v32 = vpop.permute.xlu0 %436  ;;  %3831 = vmatpush3.bf16.msra.mxu0 %v3828_v7  ;;  %v660_v38 = vsel %vm656_vm0, %v307_v33, %v439_v31  ;;  %v4623_v21 = vld [vmem:[%s4192_s12 + $0x60] sm:$0xff] }
  0x97   : > { %3833 = vmatprep.subr.bf16.mxu0 %v3832_v25  ;;  %1017 = vrot.lane.b32.xlu1 %v4434_v8, %s4049_s24  ;;  %v659_v39 = vsel %vm656_vm0, %v306_v36, %v437_v32 }
  0x98   : > { %594 = vrot.lane.b32.xlu0 %v4482_v30, %s4049_s24 }
  0x99   : > { %v567_v40 = vpop.permute.xlu1 %566 }
  0x9a   : > { %v565_v41 = vpop.permute.xlu0 %564  ;;  %3835 = vmatpush3.bf16.msra.mxu0 %v3832_v25  ;;  %v693_v46 = vsel %vm689_vm1, %v660_v38, %v567_v40 }
  0x9b   : > { %v692_v4 = vsel %vm689_vm1, %v659_v39, %v565_v41  ;;  %3837 = vmatprep.subr.bf16.mxu0 %v3836_v37  ;;  %1936 = vrot.lane.b32.xlu1 %v4249_v35, %s4050_s26  ;;  %v3844_v35 = vpack.c.bf16 %v3363_v15, %v3362_v14  ;;  %v4561_v41 = vld [vmem:[%s4192_s12 + $0xe1] sm:$0xff] }
  0x9c   : > { %891 = vrot.lane.b32.xlu0 %v4441_v9, %s4050_s26  ;;  %3647 = vmatprep.mubr.msk.f32.mxu0 %vm1164_vm2, %v692_v4 }
  0x9d   : > { %3648 = vmatmul.mubr.msk.f32.gmra.mrb[2].mxu0 %vm1164_vm2, %v693_v46  ;;  %v864_v7 = vpop.permute.xlu1 %863 }
  0x9e   : > { %v441_v10 = vpop.permute.xlu0 %440  ;;  %3839 = vmatpush3.bf16.msra.mxu0 %v3836_v37  ;;  %v1087_v25 = vsel %vm656_vm0, %v306_v36, %v864_v7  ;;  %v4547_v37 = vld [vmem:[%s4192_s12 + $0xd9] sm:$0xff] }
  0x9f   : > { %1019 = vrot.lane.b32.xlu1 %v4449_v11, %s4049_s24  ;;  %3841 = vmatprep.subr.bf16.mxu0 %v3840_v6  ;;  %v661_v17 = vsel %vm656_vm0, %v4513_v16, %v441_v10  ;;  %v4585_v10 = vld [vmem:[%s4192_s12 + $0xe2] sm:$0xff] }
  0xa0   : > { %893 = vrot.lane.b32.xlu0 %v4452_v12, %s4050_s26 }
  0xa1   : > { %v569_v18 = vpop.permute.xlu1 %568 }
  0xa2   : > { %v443_v19 = vpop.permute.xlu0 %442  ;;  %v694_v22 = vsel %vm689_vm1, %v661_v17, %v569_v18  ;;  %3843 = vmatpush3.bf16.msra.mxu0 %v3840_v6  ;;  %v4616_v18 = vld [vmem:[%s4192_s12 + $0xf2] sm:$0xff] }
  0xa3   : > { %2064 = vrot.lane.b32.xlu1 %v4275_v44, %s4049_s24  ;;  %3650 = vmatprep.mubr.msk.f32.mxu0 %vm1164_vm2, %v694_v22  ;;  %v662_v44 = vsel %vm656_vm0, %v4535_v28, %v443_v19 }
  0xa4   : > { %1938 = vrot.lane.b32.xlu0 %v4278_v45, %s4050_s26  ;;  %3845 = vmatprep.subr.bf16.mxu0 %v3844_v35 }
  0xa5   : > { %v992_v26 = vpop.permute.xlu1 %991 }
  0xa6   : > { %v866_v27 = vpop.permute.xlu0 %865  ;;  %v1119_v31 = vsel %vm689_vm1, %v1087_v25, %v992_v26  ;;  %3847 = vmatpush3.bf16.msra.mxu0 %v3844_v35  ;;  %v4603_v35 = vld [vmem:[%s4192_s12 + $0xf1] sm:$0xff] }
  0xa7   : > { %2066 = vrot.lane.b32.xlu1 %v4288_v47, %s4049_s24  ;;  %3572 = vmatprep.mubr.msk.f32.mxu1 %vm1164_vm2, %v1119_v31  ;;  %v1088_v45 = vsel %vm656_vm0, %v307_v33, %v866_v27  ;;  %v4558_v33 = vld [vmem:[%s4192_s12 + $0xda] sm:$0xff] }
  0xa8   : > { %1021 = vrot.lane.b32.xlu0 %v4482_v30, %s4049_s24  ;;  %3849 = vmatprep.subr.bf16.mxu0 %v3848_v24  ;;  %v4642_v31 = vld [vmem:[%s4192_s12 + $0xfa] sm:$0xff] }
  0xa9   : > { %v994_v32 = vpop.permute.xlu1 %993 }
  0xaa   : > { %v571_v36 = vpop.permute.xlu0 %570  ;;  %v1120_v47 = vsel %vm689_vm1, %v1088_v45, %v994_v32  ;;  %3851 = vmatpush3.bf16.msra.mxu0 %v3848_v24 }
  0xab   : > { %v695_v38 = vsel %vm689_vm1, %v662_v44, %v571_v36  ;;  %1940 = vrot.lane.b32.xlu1 %v4295_v48, %s4050_s26  ;;  %3573 = vmatmul.mubr.msk.f32.vlgmr.msra.gmra.mrb[0].mxu1 %vm1164_vm2, %v1120_v47  ;;  %v4645_v44 = vld [vmem:[%s4192_s12 + $0x68] sm:$0xff] }
  0xac   : > { %895 = vrot.lane.b32.xlu0 %v4547_v37, %s4050_s26  ;;  %3651 = vmatmul.mubr.msk.f32.gmra.mrb[4].mxu0 %vm1164_vm2, %v695_v38  ;;  %v4658_v36 = vld [vmem:[%s4192_s12 + $0x109] sm:$0xff] }
  0xad   : > { %v868_v39 = vpop.permute.xlu1 %867  ;;  %3864 = vmatpush3.bf16.msra.mxu1 %v4160_v3  ;;  %v4669_v38 = vld [vmem:[%s4192_s12 + $0x10a] sm:$0xff] }
  0xae   : > { %v445_v40 = vpop.permute.xlu0 %444  ;;  %3859 = vmatprep.subr.bf16.mxu1 %v4166_v5  ;;  %v1089_v4 = vsel %vm656_vm0, %v4513_v16, %v868_v39 }
  0xaf   : > { %1023 = vrot.lane.b32.xlu1 %v4558_v33, %s4049_s24  ;;  %v663_v48 = vsel %vm656_vm0, %v4565_v42, %v445_v40 }
  0xb0   : > { %897 = vrot.lane.b32.xlu0 %v4561_v41, %s4050_s26 }
  0xb1   : > { %v573_v43 = vpop.permute.xlu1 %572  ;;  %3865 = vmatpush3.bf16.msra.mxu1 %v4166_v5  ;;  %v4589_v5 = vld [vmem:[%s4192_s12 + $0x50] sm:$0xff] }
  0xb2   : > { %v447_v46 = vpop.permute.xlu0 %446  ;;  %v696_v3 = vsel %vm689_vm1, %v663_v48, %v573_v43  ;;  %3860 = vmatprep.subr.bf16.mxu1 %v4194_v13  ;;  %v4672_v48 = vld [vmem:[%s4192_s12 + $0x111] sm:$0xff] }
  0xb3   : > { %2068 = vrot.lane.b32.xlu1 %v4302_v49, %s4049_s24  ;;  %3653 = vmatprep.mubr.msk.f32.mxu0 %vm1164_vm2, %v696_v3  ;;  %v664_v49 = vsel %vm656_vm0, %v4589_v5, %v447_v46  ;;  %v4675_v43 = vld [vmem:[%s4192_s12 + $0x78] sm:$0xff] }
  0xb4   : > { %1942 = vrot.lane.b32.xlu0 %v4305_v50, %s4050_s26 }
  0xb5   : > { %v996_v6 = vpop.permute.xlu1 %995  ;;  %3866 = vmatpush3.bf16.msra.mxu1 %v4194_v13 }
  0xb6   : > { %v870_v7 = vpop.permute.xlu0 %869  ;;  %v1121_v14 = vsel %vm689_vm1, %v1089_v4, %v996_v6  ;;  %3861 = vmatprep.subr.bf16.mxu1 %v4216_v23 }
  0xb7   : > { %2070 = vrot.lane.b32.xlu1 %v4316_v51, %s4049_s24  ;;  %3575 = vmatprep.mubr.msk.f32.mxu1 %vm1164_vm2, %v1121_v14  ;;  %v1090_v13 = vsel %vm656_vm0, %v4535_v28, %v870_v7 }
  0xb8   : > { %1025 = vrot.lane.b32.xlu0 %v4585_v10, %s4049_s24 }
  0xb9   : > { %v998_v50 = vpop.permute.xlu1 %997  ;;  %3867 = vmatpush3.bf16.msra.mxu1 %v4216_v23 }
  0xba   : > { %v575_v15 = vpop.permute.xlu0 %574  ;;  %v1122_v51 = vsel %vm689_vm1, %v1090_v13, %v998_v50  ;;  %3862 = vmatprep.subr.bf16.mxu1 %v4230_v29  ;;  %v4695_v13 = vld [vmem:[%s4192_s12 + $0x80] sm:$0xff] }
  0xbb   : > { %v697_v17 = vsel %vm689_vm1, %v664_v49, %v575_v15  ;;  %1944 = vrot.lane.b32.xlu1 %v4323_v52, %s4050_s26  ;;  %3576 = vmatmul.mubr.msk.f32.gmra.mrb[2].mxu1 %vm1164_vm2, %v1122_v51  ;;  %v4692_v49 = vld [vmem:[%s4192_s12 + $0x112] sm:$0xff] }
  0xbc   : > { %899 = vrot.lane.b32.xlu0 %v4603_v35, %s4050_s26  ;;  %3654 = vmatmul.mubr.msk.f32.gmra.mrb[6].mxu0 %vm1164_vm2, %v697_v17  ;;  %v4708_v17 = vld [vmem:[%s4192_s12 + $0x121] sm:$0xff] }
  0xbd   : > { %v872_v19 = vpop.permute.xlu1 %871  ;;  %3868 = vmatpush3.bf16.msra.mxu1 %v4230_v29 }
  0xbe   : > { %v449_v23 = vpop.permute.xlu0 %448  ;;  %3863 = vmatprep.subr.bf16.mxu1 %v4244_v34  ;;  %v1091_v25 = vsel %vm656_vm0, %v4565_v42, %v872_v19 }
  0xbf   : > { %1027 = vrot.lane.b32.xlu1 %v4616_v18, %s4049_s24  ;;  %v665_v52 = vsel %vm656_vm0, %v4623_v21, %v449_v23  ;;  %v4719_v23 = vld [vmem:[%s4192_s12 + $0x122] sm:$0xff] }
  0xc0   : > { %901 = vrot.lane.b32.xlu0 %v4619_v20, %s4050_s26 }
  0xc1   : > { %v577_v22 = vpop.permute.xlu1 %576  ;;  %3869 = vmatpush3.bf16.msra.mxu1 %v4244_v34 }
  0xc2   : > { %v451_v24 = vpop.permute.xlu0 %450  ;;  %v698_v29 = vsel %vm689_vm1, %v665_v52, %v577_v22 }
  0xc3   : > { %2072 = vrot.lane.b32.xlu1 %v4330_v53, %s4049_s24  ;;  %3656 = vmatprep.mubr.msk.f32.mxu0 %vm1164_vm2, %v698_v29  ;;  %v666_v53 = vsel %vm656_vm0, %v4645_v44, %v451_v24  ;;  %v4722_v24 = vld [vmem:[%s4192_s12 + $0x129] sm:$0xff] }
  0xc4   : > { %1946 = vrot.lane.b32.xlu0 %v4333_v54, %s4050_s26  ;;  %v4725_v29 = vld [vmem:[%s4192_s12 + $0x90] sm:$0xff] }
  0xc5   : > { %v1000_v26 = vpop.permute.xlu1 %999 }
  0xc6   : > { %v874_v27 = vpop.permute.xlu0 %873  ;;  %v1123_v34 = vsel %vm689_vm1, %v1091_v25, %v1000_v26 }
  0xc7   : > { %2074 = vrot.lane.b32.xlu1 %v4344_v55, %s4049_s24  ;;  %3578 = vmatprep.mubr.msk.f32.mxu1 %vm1164_vm2, %v1123_v34  ;;  %v1092_v54 = vsel %vm656_vm0, %v4589_v5, %v874_v27 }
  0xc8   : > { %1029 = vrot.lane.b32.xlu0 %v4642_v31, %s4049_s24 }
  0xc9   : > { %v1002_v45 = vpop.permute.xlu1 %1001 }
  0xca   : > { %v579_v32 = vpop.permute.xlu0 %578  ;;  %v1124_v47 = vsel %vm689_vm1, %v1092_v54, %v1002_v45  ;;  %v4742_v45 = vld [vmem:[%s4192_s12 + $0x12a] sm:$0xff] }
  0xcb   : > { %v699_v55 = vsel %vm689_vm1, %v666_v53, %v579_v32  ;;  %1948 = vrot.lane.b32.xlu1 %v4351_v56, %s4050_s26  ;;  %3579 = vmatmul.mubr.msk.f32.gmra.mrb[4].mxu1 %vm1164_vm2, %v1124_v47  ;;  %v4745_v32 = vld [vmem:[%s4192_s12 + $0x98] sm:$0xff] }
  0xcc   : > { %903 = vrot.lane.b32.xlu0 %v4658_v36, %s4050_s26  ;;  %3657 = vmatmul.mubr.msk.f32.gmra.mrb[8].mxu0 %vm1164_vm2, %v699_v55 }
  0xcd   : > { %v876_v39 = vpop.permute.xlu1 %875 }
  0xce   : > { %v453_v40 = vpop.permute.xlu0 %452  ;;  %v1093_v6 = vsel %vm656_vm0, %v4623_v21, %v876_v39 }
  0xcf   : > { %1031 = vrot.lane.b32.xlu1 %v4669_v38, %s4049_s24  ;;  %v667_v56 = vsel %vm656_vm0, %v4675_v43, %v453_v40  ;;  %v4758_v40 = vld [vmem:[%s4192_s12 + $0x139] sm:$0xff] }
  0xd0   : > { %905 = vrot.lane.b32.xlu0 %v4672_v48, %s4050_s26 }
  0xd1   : > { %v581_v46 = vpop.permute.xlu1 %580 }
  0xd2   : > { %v455_v3 = vpop.permute.xlu0 %454  ;;  %v700_v4 = vsel %vm689_vm1, %v667_v56, %v581_v46  ;;  %v4769_v46 = vld [vmem:[%s4192_s12 + $0x13a] sm:$0xff] }
  0xd3   : > { %2076 = vrot.lane.b32.xlu1 %v4358_v57, %s4049_s24  ;;  %3659 = vmatprep.mubr.msk.f32.mxu0 %vm1164_vm2, %v700_v4  ;;  %v668_v57 = vsel %vm656_vm0, %v4695_v13, %v455_v3 }
  0xd4   : > { %1950 = vrot.lane.b32.xlu0 %v4361_v58, %s4050_s26 }
  0xd5   : > { %v1004_v7 = vpop.permute.xlu1 %1003 }
  0xd6   : > { %v878_v14 = vpop.permute.xlu0 %877  ;;  %v1125_v50 = vsel %vm689_vm1, %v1093_v6, %v1004_v7  ;;  %v4772_v6 = vld [vmem:[%s4192_s12 + $0x141] sm:$0xff] }
  0xd7   : > { %2078 = vrot.lane.b32.xlu1 %v4372_v59, %s4049_s24  ;;  %3581 = vmatprep.mubr.msk.f32.mxu1 %vm1164_vm2, %v1125_v50  ;;  %v1094_v58 = vsel %vm656_vm0, %v4645_v44, %v878_v14  ;;  %v4775_v7 = vld [vmem:[%s4192_s12 + $0xa8] sm:$0xff] }
  0xd8   : > { %1033 = vrot.lane.b32.xlu0 %v4692_v49, %s4049_s24 }
  0xd9   : > { %v1006_v15 = vpop.permute.xlu1 %1005 }
  0xda   : > { %v583_v51 = vpop.permute.xlu0 %582  ;;  %v1126_v19 = vsel %vm689_vm1, %v1094_v58, %v1006_v15 }
  0xdb   : > { %v701_v59 = vsel %vm689_vm1, %v668_v57, %v583_v51  ;;  %1952 = vrot.lane.b32.xlu1 %v4379_v60, %s4050_s26  ;;  %3582 = vmatmul.mubr.msk.f32.gmra.mrb[6].mxu1 %vm1164_vm2, %v1126_v19  ;;  %v4792_v19 = vld [vmem:[%s4192_s12 + $0x142] sm:$0xff] }
  0xdc   : > { %907 = vrot.lane.b32.xlu0 %v4708_v17, %s4050_s26  ;;  %3660 = vmatmul.mubr.msk.f32.gmra.mrb[10].mxu0 %vm1164_vm2, %v701_v59  ;;  %v4795_v59 = vld [vmem:[%s4192_s12 + $0xb0] sm:$0xff] }
  0xdd   : > { %v880_v52 = vpop.permute.xlu1 %879 }
  0xde   : > { %v457_v22 = vpop.permute.xlu0 %456  ;;  %v1095_v34 = vsel %vm656_vm0, %v4675_v43, %v880_v52 }
  0xdf   : > { %1035 = vrot.lane.b32.xlu1 %v4719_v23, %s4049_s24  ;;  %v669_v60 = vsel %vm656_vm0, %v4725_v29, %v457_v22 }
  0xe0   : > { %909 = vrot.lane.b32.xlu0 %v4722_v24, %s4050_s26 }
  0xe1   : > { %v585_v25 = vpop.permute.xlu1 %584 }
  0xe2   : > { %v459_v26 = vpop.permute.xlu0 %458  ;;  %v702_v27 = vsel %vm689_vm1, %v669_v60, %v585_v25  ;;  %v4808_v25 = vld [vmem:[%s4192_s12 + $0x151] sm:$0xff] }
  0xe3   : > { %2080 = vrot.lane.b32.xlu1 %v4386_v61, %s4049_s24  ;;  %3662 = vmatprep.mubr.msk.f32.mxu0 %vm1164_vm2, %v702_v27  ;;  %v670_v61 = vsel %vm656_vm0, %v4745_v32, %v459_v26  ;;  %v4819_v27 = vld [vmem:[%s4192_s12 + $0x152] sm:$0xff] }
  0xe4   : > { %1954 = vrot.lane.b32.xlu0 %v4389_v62, %s4050_s26 }
  0xe5   : > { %v1008_v53 = vpop.permute.xlu1 %1007 }
  0xe6   : > { %v882_v54 = vpop.permute.xlu0 %881  ;;  %v1127_v47 = vsel %vm689_vm1, %v1095_v34, %v1008_v53 }
  0xe7   : > { %2082 = vrot.lane.b32.xlu1 %v4400_v63, %s4049_s24  ;;  %3584 = vmatprep.mubr.msk.f32.mxu1 %vm1164_vm2, %v1127_v47  ;;  %v1096_v62 = vsel %vm656_vm0, %v4695_v13, %v882_v54  ;;  %v4822_v54 = vld [vmem:[%s4192_s12 + $0x159] sm:$0xff] }
  0xe8   : > { %1037 = vrot.lane.b32.xlu0 %v4742_v45, %s4049_s24  ;;  %v4825_v47 = vld [vmem:[%s4192_s12 + $0xc0] sm:$0xff] }
  0xe9   : > { %v1010_v55 = vpop.permute.xlu1 %1009 }
  0xea   : > { %v587_v39 = vpop.permute.xlu0 %586  ;;  %v1128_v56 = vsel %vm689_vm1, %v1096_v62, %v1010_v55 }
  0xeb   : > { %v703_v63 = vsel %vm689_vm1, %v670_v61, %v587_v39  ;;  %1956 = vrot.lane.b32.xlu1 %v4407_v0, %s4050_s26  ;;  %3585 = vmatmul.mubr.msk.f32.gmra.mrb[8].mxu1 %vm1164_vm2, %v1128_v56 }
  0xec   : > { %911 = vrot.lane.b32.xlu0 %v4758_v40, %s4050_s26  ;;  %3663 = vmatmul.mubr.msk.f32.gmra.mrb[12].mxu0 %vm1164_vm2, %v703_v63 }
  0xed   : > { %v884_v3 = vpop.permute.xlu1 %883 }
  0xee   : > { %v461_v4 = vpop.permute.xlu0 %460  ;;  %v1097_v58 = vsel %vm656_vm0, %v4725_v29, %v884_v3  ;;  %v4842_v3 = vld [vmem:[%s4192_s12 + $0x15a] sm:$0xff] }
  0xef   : > { %1039 = vrot.lane.b32.xlu1 %v4769_v46, %s4049_s24  ;;  %v671_v0 = vsel %vm656_vm0, %v4775_v7, %v461_v4  ;;  %v4845_v4 = vld [vmem:[%s4192_s12 + $0xc8] sm:$0xff] }
  0xf0   : > { %913 = vrot.lane.b32.xlu0 %v4772_v6, %s4050_s26 }
  0xf1   : > { %v589_v14 = vpop.permute.xlu1 %588 }
  0xf2   : > { %v463_v50 = vpop.permute.xlu0 %462  ;;  %v704_v57 = vsel %vm689_vm1, %v671_v0, %v589_v14 }
  0xf3   : > { %2084 = vrot.lane.b32.xlu1 %v4414_v1, %s4049_s24  ;;  %3665 = vmatprep.mubr.msk.f32.mxu0 %vm1164_vm2, %v704_v57  ;;  %v672_v1 = vsel %vm656_vm0, %v4795_v59, %v463_v50  ;;  %v4858_v57 = vld [vmem:[%s4192_s12 + $0x169] sm:$0xff] }
  0xf4   : > { %1958 = vrot.lane.b32.xlu0 %v4417_v2, %s4050_s26 }
  0xf5   : > { %v1012_v15 = vpop.permute.xlu1 %1011 }
  0xf6   : > { %v886_v51 = vpop.permute.xlu0 %885  ;;  %v1129_v52 = vsel %vm689_vm1, %v1097_v58, %v1012_v15  ;;  %v4869_v15 = vld [vmem:[%s4192_s12 + $0x16a] sm:$0xff] }
  0xf7   : > { %2086 = vrot.lane.b32.xlu1 %v4434_v8, %s4049_s24  ;;  %3587 = vmatprep.mubr.msk.f32.mxu1 %vm1164_vm2, %v1129_v52  ;;  %v1098_v2 = vsel %vm656_vm0, %v4745_v32, %v886_v51 }
  0xf8   : > { %1041 = vrot.lane.b32.xlu0 %v4792_v19, %s4049_s24 }
  0xf9   : > { %v1014_v22 = vpop.permute.xlu1 %1013 }
  0xfa   : > { %v591_v60 = vpop.permute.xlu0 %590  ;;  %v1130_v26 = vsel %vm689_vm1, %v1098_v2, %v1014_v22 }
  0xfb   : > { %v705_v8 = vsel %vm689_vm1, %v672_v1, %v591_v60  ;;  %1960 = vrot.lane.b32.xlu1 %v4441_v9, %s4050_s26  ;;  %3588 = vmatmul.mubr.msk.f32.gmra.mrb[10].mxu1 %vm1164_vm2, %v1130_v26  ;;  %v4872_v1 = vld [vmem:[%s4192_s12 + $0x171] sm:$0xff] }
  0xfc   : > { %915 = vrot.lane.b32.xlu0 %v4808_v25, %s4050_s26  ;;  %3666 = vmatmul.mubr.msk.f32.gmra.mrb[14].mxu0 %vm1164_vm2, %v705_v8 }
  0xfd   : > { %v888_v34 = vpop.permute.xlu1 %887 }
  0xfe   : > { %v465_v53 = vpop.permute.xlu0 %464  ;;  %v1099_v39 = vsel %vm656_vm0, %v4775_v7, %v888_v34 }
  0xff   : > { %1043 = vrot.lane.b32.xlu1 %v4819_v27, %s4049_s24  ;;  %v673_v9 = vsel %vm656_vm0, %v4825_v47, %v465_v53 }
 0x100   : > { %917 = vrot.lane.b32.xlu0 %v4822_v54, %s4050_s26 }
 0x101   : > { %v593_v61 = vpop.permute.xlu1 %592 }
 0x102   : > { %v467_v62 = vpop.permute.xlu0 %466  ;;  %v706_v55 = vsel %vm689_vm1, %v673_v9, %v593_v61  ;;  %v4889_v9 = vld [vmem:[%s4192_s12 + $0x172] sm:$0xff] }
 0x103   : > { %2088 = vrot.lane.b32.xlu1 %v4449_v11, %s4049_s24  ;;  %3668 = vmatprep.mubr.msk.f32.mxu0 %vm1164_vm2, %v706_v55  ;;  %v674_v11 = vsel %vm656_vm0, %v4845_v4, %v467_v62  ;;  %v4900_v55 = vld [vmem:[%s4192_s12 + $0x181] sm:$0xff] }
 0x104   : > { %1962 = vrot.lane.b32.xlu0 %v4452_v12, %s4050_s26 }
 0x105   : > { %v1016_v56 = vpop.permute.xlu1 %1015 }
 0x106   : > { %v890_v63 = vpop.permute.xlu0 %889  ;;  %v1131_v0 = vsel %vm689_vm1, %v1099_v39, %v1016_v56 }
 0x107   : > { %2090 = vrot.lane.b32.xlu1 %v4482_v30, %s4049_s24  ;;  %3590 = vmatprep.mubr.msk.f32.mxu1 %vm1164_vm2, %v1131_v0  ;;  %v1100_v12 = vsel %vm656_vm0, %v4795_v59, %v890_v63 }
 0x108   : > { %1045 = vrot.lane.b32.xlu0 %v4842_v3, %s4049_s24 }
 0x109   : > { %v1018_v14 = vpop.permute.xlu1 %1017 }
 0x10a   : > { %v595_v50 = vpop.permute.xlu0 %594  ;;  %v1132_v58 = vsel %vm689_vm1, %v1100_v12, %v1018_v14  ;;  %v4916_v12 = vld [vmem:[%s4192_s12 + $0x189] sm:$0xff]  ;;  %v4919_v14 = vld [vmem:[%s4192_s12 + $0xd8] sm:$0xff] }
 0x10b   : > { %v707_v30 = vsel %vm689_vm1, %v674_v11, %v595_v50  ;;  %1964 = vrot.lane.b32.xlu1 %v4547_v37, %s4050_s26  ;;  %3591 = vmatmul.mubr.msk.f32.gmra.mrb[12].mxu1 %vm1164_vm2, %v1132_v58 }
 0x10c   : > { %919 = vrot.lane.b32.xlu0 %v4858_v57, %s4050_s26  ;;  %3669 = vmatmul.mubr.msk.f32.gmra.mrb[16].mxu0 %vm1164_vm2, %v707_v30 }
 0x10d   : > { %v1937_v51 = vpop.permute.xlu1 %1936 }
 0x10e   : > { %v892_v52 = vpop.permute.xlu0 %891  ;;  %v2160_v8 = vsel %vm656_vm0, %v4513_v16, %v1937_v51 }
 0x10f   : > { %1047 = vrot.lane.b32.xlu1 %v4869_v15, %s4049_s24  ;;  %v1101_v2 = vsel %vm656_vm0, %v4825_v47, %v892_v52 }
 0x110   : > { %921 = vrot.lane.b32.xlu0 %v4872_v1, %s4050_s26 }
 0x111   : > { %v1020_v22 = vpop.permute.xlu1 %1019 }
 0x112   : > { %v894_v60 = vpop.permute.xlu0 %893  ;;  %v1133_v26 = vsel %vm689_vm1, %v1101_v2, %v1020_v22 }
 0x113   : > { %2092 = vrot.lane.b32.xlu1 %v4558_v33, %s4049_s24  ;;  %3593 = vmatprep.mubr.msk.f32.mxu1 %vm1164_vm2, %v1133_v26  ;;  %v1102_v39 = vsel %vm656_vm0, %v4845_v4, %v894_v60  ;;  %v4936_v60 = vld [vmem:[%s4192_s12 + $0x18a] sm:$0xff] }
 0x114   : > { %1966 = vrot.lane.b32.xlu0 %v4561_v41, %s4050_s26 }
 0x115   : > { %v2065_v34 = vpop.permute.xlu1 %2064 }
 0x116   : > { %v1939_v53 = vpop.permute.xlu0 %1938  ;;  %v2192_v61 = vsel %vm689_vm1, %v2160_v8, %v2065_v34  ;;  %v4940_v34 = vld [vmem:[%s4192_s12 + $0xe0] sm:$0xff] }
 0x117   : > { %2094 = vrot.lane.b32.xlu1 %v4585_v10, %s4049_s24  ;;  %3716 = vmatprep.mubr.msk.f32.mxu0 %vm1164_vm2, %v2192_v61  ;;  %v2161_v16 = vsel %vm656_vm0, %v4535_v28, %v1939_v53  ;;  %v4913_v28 = vld [vmem:[%s4192_s12 + $0x182] sm:$0xff] }
 0x118   : > { %1049 = vrot.lane.b32.xlu0 %v4889_v9, %s4049_s24 }
 0x119   : > { %v2067_v62 = vpop.permute.xlu1 %2066 }
 0x11a   : > { %v2193_v56 = vsel %vm689_vm1, %v2161_v16, %v2067_v62  ;;  %v1022_v63 = vpop.permute.xlu0 %1021 }
 0x11b   : > { %v1134_v0 = vsel %vm689_vm1, %v1102_v39, %v1022_v63  ;;  %1968 = vrot.lane.b32.xlu1 %v4603_v35, %s4050_s26  ;;  %3717 = vmatmul.mubr.msk.f32.vlgmr.msra.gmra.mrb[0].mxu0 %vm1164_vm2, %v2193_v56  ;;  %v4960_v56 = vld [vmem:[%s4192_s12 + $0xf0] sm:$0xff] }
 0x11c   : > { %923 = vrot.lane.b32.xlu0 %v4900_v55, %s4050_s26  ;;  %3594 = vmatmul.mubr.msk.f32.gmra.mrb[14].mxu1 %vm1164_vm2, %v1134_v0 }
 0x11d   : > { %v1941_v11 = vpop.permute.xlu1 %1940 }
 0x11e   : > { %v896_v50 = vpop.permute.xlu0 %895  ;;  %v2162_v2 = vsel %vm656_vm0, %v4565_v42, %v1941_v11 }
 0x11f   : > { %1051 = vrot.lane.b32.xlu1 %v4913_v28, %s4049_s24  ;;  %v1103_v58 = vsel %vm656_vm0, %v4919_v14, %v896_v50 }
 0x120   : > { %925 = vrot.lane.b32.xlu0 %v4916_v12, %s4050_s26 }
 0x121   : > { %v1024_v30 = vpop.permute.xlu1 %1023 }
 0x122   : > { %v1135_v51 = vsel %vm689_vm1, %v1103_v58, %v1024_v30  ;;  %v898_v52 = vpop.permute.xlu0 %897 }
 0x123   : > { %2096 = vrot.lane.b32.xlu1 %v4616_v18, %s4049_s24  ;;  %3596 = vmatprep.mubr.msk.f32.mxu1 %vm1164_vm2, %v1135_v51  ;;  %v1104_v61 = vsel %vm656_vm0, %v4940_v34, %v898_v52  ;;  %v4978_v51 = vld [vmem:[%s4192_s12 + $0xf8] sm:$0xff] }
 0x124   : > { %1970 = vrot.lane.b32.xlu0 %v4619_v20, %s4050_s26 }
 0x125   : > { %v2069_v22 = vpop.permute.xlu1 %2068 }
 0x126   : > { %v2194_v26 = vsel %vm689_vm1, %v2162_v2, %v2069_v22  ;;  %v1943_v8 = vpop.permute.xlu0 %1942 }
 0x127   : > { %2098 = vrot.lane.b32.xlu1 %v4642_v31, %s4049_s24  ;;  %3719 = vmatprep.mubr.msk.f32.mxu0 %vm1164_vm2, %v2194_v26  ;;  %v2163_v42 = vsel %vm656_vm0, %v4589_v5, %v1943_v8 }
 0x128   : > { %1053 = vrot.lane.b32.xlu0 %v4936_v60, %s4049_s24 }
 0x129   : > { %v2071_v53 = vpop.permute.xlu1 %2070 }
 0x12a   : > { %v2195_v16 = vsel %vm689_vm1, %v2163_v42, %v2071_v53  ;;  %v1026_v62 = vpop.permute.xlu0 %1025 }
 0x12b   : > { %v1136_v39 = vsel %vm689_vm1, %v1104_v61, %v1026_v62  ;;  %1972 = vrot.lane.b32.xlu1 %v4658_v36, %s4050_s26  ;;  %3720 = vmatmul.mubr.msk.f32.gmra.mrb[2].mxu0 %vm1164_vm2, %v2195_v16 }
 0x12c   : > { %468 = vrot.lane.b32.xlu0 %v4547_v37, %s4050_s26  ;;  %3597 = vmatmul.mubr.msk.f32.gmra.mrb[16].mxu1 %vm1164_vm2, %v1136_v39 }
 0x12d   : > { %v1945_v5 = vpop.permute.xlu1 %1944 }
 0x12e   : > { %v900_v63 = vpop.permute.xlu0 %899 }
 0x12f   : > { %596 = vrot.lane.b32.xlu1 %v4558_v33, %s4049_s24  ;;  %v1105_v0 = vsel %vm656_vm0, %v4960_v56, %v900_v63  ;;  %v2164_v33 = vsel %vm656_vm0, %v4623_v21, %v1945_v5  ;;  %v5016_v5 = vld [vmem:[%s4192_s12 + $0x110] sm:$0xff] }
 0x130   : > { %470 = vrot.lane.b32.xlu0 %v4561_v41, %s4050_s26 }
 0x131   : > { %v1028_v11 = vpop.permute.xlu1 %1027 }
 0x132   : > { %v1137_v50 = vsel %vm689_vm1, %v1105_v0, %v1028_v11  ;;  %v902_v37 = vpop.permute.xlu0 %901 }
 0x133   : > { %2100 = vrot.lane.b32.xlu1 %v4669_v38, %s4049_s24  ;;  %3599 = vmatprep.mubr.msk.f32.mxu1 %vm1164_vm2, %v1137_v50  ;;  %v1106_v21 = vsel %vm656_vm0, %v4978_v51, %v902_v37 }
 0x134   : > { %1974 = vrot.lane.b32.xlu0 %v4672_v48, %s4050_s26 }
 0x135   : > { %v2073_v58 = vpop.permute.xlu1 %2072 }
 0x136   : > { %v2196_v41 = vsel %vm689_vm1, %v2164_v33, %v2073_v58  ;;  %v1947_v30 = vpop.permute.xlu0 %1946 }
 0x137   : > { %2102 = vrot.lane.b32.xlu1 %v4692_v49, %s4049_s24  ;;  %3722 = vmatprep.mubr.msk.f32.mxu0 %vm1164_vm2, %v2196_v41  ;;  %v2165_v52 = vsel %vm656_vm0, %v4645_v44, %v1947_v30  ;;  %v4998_v44 = vld [vmem:[%s4192_s12 + $0x108] sm:$0xff] }
 0x138   : > { %598 = vrot.lane.b32.xlu0 %v4585_v10, %s4049_s24 }
 0x139   : > { %v2075_v2 = vpop.permute.xlu1 %2074 }
 0x13a   : > { %v2197_v22 = vsel %vm689_vm1, %v2165_v52, %v2075_v2  ;;  %v1030_v26 = vpop.permute.xlu0 %1029 }
 0x13b   : > { %v1138_v8 = vsel %vm689_vm1, %v1106_v21, %v1030_v26  ;;  %1976 = vrot.lane.b32.xlu1 %v4708_v17, %s4050_s26  ;;  %3723 = vmatmul.mubr.msk.f32.gmra.mrb[4].mxu0 %vm1164_vm2, %v2197_v22  ;;  %v5054_v21 = vld [vmem:[%s4192_s12 + $0x128] sm:$0xff] }
 0x13c   : > { %472 = vrot.lane.b32.xlu0 %v4603_v35, %s4050_s26  ;;  %3600 = vmatmul.mubr.msk.f32.gmra.mrb[18].mxu1 %vm1164_vm2, %v1138_v8 }
 0x13d   : > { %v1949_v10 = vpop.permute.xlu1 %1948 }
 0x13e   : > { %v904_v42 = vpop.permute.xlu0 %903 }
 0x13f   : > { %600 = vrot.lane.b32.xlu1 %v4616_v18, %s4049_s24  ;;  %v1107_v53 = vsel %vm656_vm0, %v4998_v44, %v904_v42  ;;  %v2166_v18 = vsel %vm656_vm0, %v4675_v43, %v1949_v10 }
 0x140   : > { %474 = vrot.lane.b32.xlu0 %v4619_v20, %s4050_s26 }
 0x141   : > { %v1032_v61 = vpop.permute.xlu1 %1031 }
 0x142   : > { %v1139_v16 = vsel %vm689_vm1, %v1107_v53, %v1032_v61  ;;  %v906_v35 = vpop.permute.xlu0 %905 }
 0x143   : > { %2104 = vrot.lane.b32.xlu1 %v4719_v23, %s4049_s24  ;;  %3602 = vmatprep.mubr.msk.f32.mxu1 %vm1164_vm2, %v1139_v16  ;;  %v1108_v43 = vsel %vm656_vm0, %v5016_v5, %v906_v35 }
 0x144   : > { %1978 = vrot.lane.b32.xlu0 %v4722_v24, %s4050_s26 }
 0x145   : > { %v2077_v62 = vpop.permute.xlu1 %2076 }
 0x146   : > { %v2198_v20 = vsel %vm689_vm1, %v2166_v18, %v2077_v62  ;;  %v1951_v39 = vpop.permute.xlu0 %1950 }
 0x147   : > { %2106 = vrot.lane.b32.xlu1 %v4742_v45, %s4049_s24  ;;  %3725 = vmatprep.mubr.msk.f32.mxu0 %vm1164_vm2, %v2198_v20  ;;  %v2167_v63 = vsel %vm656_vm0, %v4695_v13, %v1951_v39  ;;  %v5036_v13 = vld [vmem:[%s4192_s12 + $0x120] sm:$0xff] }
 0x148   : > { %602 = vrot.lane.b32.xlu0 %v4642_v31, %s4049_s24  ;;  %v5092_v20 = vld [vmem:[%s4192_s12 + $0x140] sm:$0xff] }
 0x149   : > { %v2079_v0 = vpop.permute.xlu1 %2078 }
 0x14a   : > { %v2199_v11 = vsel %vm689_vm1, %v2167_v63, %v2079_v0  ;;  %v1034_v50 = vpop.permute.xlu0 %1033 }
 0x14b   : > { %v1140_v37 = vsel %vm689_vm1, %v1108_v43, %v1034_v50  ;;  %1980 = vrot.lane.b32.xlu1 %v4758_v40, %s4050_s26  ;;  %3726 = vmatmul.mubr.msk.f32.gmra.mrb[6].mxu0 %vm1164_vm2, %v2199_v11 }
 0x14c   : > { %476 = vrot.lane.b32.xlu0 %v4658_v36, %s4050_s26  ;;  %3603 = vmatmul.mubr.msk.f32.gmra.mrb[20].mxu1 %vm1164_vm2, %v1140_v37 }
 0x14d   : > { %v1953_v31 = vpop.permute.xlu1 %1952 }
 0x14e   : > { %v908_v33 = vpop.permute.xlu0 %907 }
 0x14f   : > { %604 = vrot.lane.b32.xlu1 %v4669_v38, %s4049_s24  ;;  %v1109_v58 = vsel %vm656_vm0, %v5036_v13, %v908_v33  ;;  %v2168_v38 = vsel %vm656_vm0, %v4725_v29, %v1953_v31 }
 0x150   : > { %478 = vrot.lane.b32.xlu0 %v4672_v48, %s4050_s26 }
 0x151   : > { %v1036_v41 = vpop.permute.xlu1 %1035 }
 0x152   : > { %v1141_v30 = vsel %vm689_vm1, %v1109_v58, %v1036_v41  ;;  %v910_v36 = vpop.permute.xlu0 %909 }
 0x153   : > { %2108 = vrot.lane.b32.xlu1 %v4769_v46, %s4049_s24  ;;  %3605 = vmatprep.mubr.msk.f32.mxu1 %vm1164_vm2, %v1141_v30  ;;  %v1110_v29 = vsel %vm656_vm0, %v5054_v21, %v910_v36  ;;  %v5130_v30 = vld [vmem:[%s4192_s12 + $0x158] sm:$0xff] }
 0x154   : > { %1982 = vrot.lane.b32.xlu0 %v4772_v6, %s4050_s26 }
 0x155   : > { %v2081_v52 = vpop.permute.xlu1 %2080 }
 0x156   : > { %v2200_v48 = vsel %vm689_vm1, %v2168_v38, %v2081_v52  ;;  %v1955_v2 = vpop.permute.xlu0 %1954 }
 0x157   : > { %2110 = vrot.lane.b32.xlu1 %v4792_v19, %s4049_s24  ;;  %3728 = vmatprep.mubr.msk.f32.mxu0 %vm1164_vm2, %v2200_v48  ;;  %v2169_v22 = vsel %vm656_vm0, %v4745_v32, %v1955_v2  ;;  %v5074_v32 = vld [vmem:[%s4192_s12 + $0x138] sm:$0xff] }
 0x158   : > { %606 = vrot.lane.b32.xlu0 %v4692_v49, %s4049_s24 }
 0x159   : > { %v2083_v26 = vpop.permute.xlu1 %2082 }
 0x15a   : > { %v2201_v8 = vsel %vm689_vm1, %v2169_v22, %v2083_v26  ;;  %v1038_v10 = vpop.permute.xlu0 %1037 }
 0x15b   : > { %v1142_v42 = vsel %vm689_vm1, %v1110_v29, %v1038_v10  ;;  %1984 = vrot.lane.b32.xlu1 %v4808_v25, %s4050_s26  ;;  %3729 = vmatmul.mubr.msk.f32.gmra.mrb[8].mxu0 %vm1164_vm2, %v2201_v8 }
 0x15c   : > { %480 = vrot.lane.b32.xlu0 %v4708_v17, %s4050_s26  ;;  %3606 = vmatmul.mubr.msk.f32.gmra.mrb[22].mxu1 %vm1164_vm2, %v1142_v42 }
 0x15d   : > { %v1957_v49 = vpop.permute.xlu1 %1956 }
 0x15e   : > { %v912_v53 = vpop.permute.xlu0 %911 }
 0x15f   : > { %608 = vrot.lane.b32.xlu1 %v4719_v23, %s4049_s24  ;;  %v1111_v61 = vsel %vm656_vm0, %v5074_v32, %v912_v53  ;;  %v2170_v23 = vsel %vm656_vm0, %v4775_v7, %v1957_v49  ;;  %v5172_v53 = vld [vmem:[%s4192_s12 + $0x170] sm:$0xff] }
 0x160   : > { %482 = vrot.lane.b32.xlu0 %v4722_v24, %s4050_s26 }
 0x161   : > { %v1040_v16 = vpop.permute.xlu1 %1039 }
 0x162   : > { %v1143_v35 = vsel %vm689_vm1, %v1111_v61, %v1040_v16  ;;  %v914_v17 = vpop.permute.xlu0 %913 }
 0x163   : > { %2112 = vrot.lane.b32.xlu1 %v4819_v27, %s4049_s24  ;;  %3608 = vmatprep.mubr.msk.f32.mxu1 %vm1164_vm2, %v1143_v35  ;;  %v1112_v7 = vsel %vm656_vm0, %v5092_v20, %v914_v17 }
 0x164   : > { %1986 = vrot.lane.b32.xlu0 %v4822_v54, %s4050_s26 }
 0x165   : > { %v2085_v18 = vpop.permute.xlu1 %2084 }
 0x166   : > { %v2202_v24 = vsel %vm689_vm1, %v2170_v23, %v2085_v18  ;;  %v1959_v62 = vpop.permute.xlu0 %1958  ;;  %v5192_v23 = vld [vmem:[%s4192_s12 + $0x180] sm:$0xff] }
 0x167   : > { %2114 = vrot.lane.b32.xlu1 %v4842_v3, %s4049_s24  ;;  %3731 = vmatprep.mubr.msk.f32.mxu0 %vm1164_vm2, %v2202_v24  ;;  %v2171_v39 = vsel %vm656_vm0, %v4795_v59, %v1959_v62  ;;  %v5112_v59 = vld [vmem:[%s4192_s12 + $0x150] sm:$0xff] }
 0x168   : > { %610 = vrot.lane.b32.xlu0 %v4742_v45, %s4049_s24 }
 0x169   : > { %v2087_v63 = vpop.permute.xlu1 %2086 }
 0x16a   : > { %v2203_v0 = vsel %vm689_vm1, %v2171_v39, %v2087_v63  ;;  %v1042_v43 = vpop.permute.xlu0 %1041  ;;  %v3352_v39 = vld [vmem:[%s4192_s12 + $0x19a] sm:$0xff] }
 0x16b   : > { %v1144_v11 = vsel %vm689_vm1, %v1112_v7, %v1042_v43  ;;  %1988 = vrot.lane.b32.xlu1 %v4858_v57, %s4050_s26  ;;  %3732 = vmatmul.mubr.msk.f32.gmra.mrb[10].mxu0 %vm1164_vm2, %v2203_v0  ;;  %v3321_v7 = vld [vmem:[%s4192_s12 + $0x1a1] sm:$0xff] }
 0x16c   : > { %484 = vrot.lane.b32.xlu0 %v4758_v40, %s4050_s26  ;;  %3609 = vmatmul.mubr.msk.f32.gmra.mrb[24].mxu1 %vm1164_vm2, %v1144_v11 }
 0x16d   : > { %v1961_v45 = vpop.permute.xlu1 %1960 }
 0x16e   : > { %v916_v50 = vpop.permute.xlu0 %915 }
 0x16f   : > { %612 = vrot.lane.b32.xlu1 %v4769_v46, %s4049_s24  ;;  %v1113_v37 = vsel %vm656_vm0, %v5112_v59, %v916_v50  ;;  %v2172_v46 = vsel %vm656_vm0, %v4825_v47, %v1961_v45 }
 0x170   : > { %486 = vrot.lane.b32.xlu0 %v4772_v6, %s4050_s26 }
 0x171   : > { %v1044_v31 = vpop.permute.xlu1 %1043 }
 0x172   : > { %v1145_v33 = vsel %vm689_vm1, %v1113_v37, %v1044_v31  ;;  %v918_v40 = vpop.permute.xlu0 %917  ;;  %v5215_v37 = vld [vmem:[%s4192_s12 + $0x188] sm:$0xff] }
 0x173   : > { %2116 = vrot.lane.b32.xlu1 %v4869_v15, %s4049_s24  ;;  %3611 = vmatprep.mubr.msk.f32.mxu1 %vm1164_vm2, %v1145_v33  ;;  %v1114_v47 = vsel %vm656_vm0, %v5130_v30, %v918_v40 }
 0x174   : > { %1990 = vrot.lane.b32.xlu0 %v4872_v1, %s4050_s26 }
 0x175   : > { %v2089_v58 = vpop.permute.xlu1 %2088 }
 0x176   : > { %v2204_v6 = vsel %vm689_vm1, %v2172_v46, %v2089_v58  ;;  %v1963_v41 = vpop.permute.xlu0 %1962 }
 0x177   : > { %2118 = vrot.lane.b32.xlu1 %v4889_v9, %s4049_s24  ;;  %3734 = vmatprep.mubr.msk.f32.mxu0 %vm1164_vm2, %v2204_v6  ;;  %v2173_v36 = vsel %vm656_vm0, %v4845_v4, %v1963_v41  ;;  %v5150_v4 = vld [vmem:[%s4192_s12 + $0x168] sm:$0xff] }
 0x178   : > { %614 = vrot.lane.b32.xlu0 %v4792_v19, %s4049_s24 }
 0x179   : > { %v2091_v38 = vpop.permute.xlu1 %2090 }
 0x17a   : > { %v2205_v52 = vsel %vm689_vm1, %v2173_v36, %v2091_v38  ;;  %v1046_v48 = vpop.permute.xlu0 %1045 }
 0x17b   : > { %v1146_v2 = vsel %vm689_vm1, %v1114_v47, %v1046_v48  ;;  %1992 = vrot.lane.b32.xlu1 %v4900_v55, %s4050_s26  ;;  %3735 = vmatmul.mubr.msk.f32.gmra.mrb[12].mxu0 %vm1164_vm2, %v2205_v52 }
 0x17c   : > { %488 = vrot.lane.b32.xlu0 %v4808_v25, %s4050_s26  ;;  %3612 = vmatmul.mubr.msk.f32.gmra.mrb[26].mxu1 %vm1164_vm2, %v1146_v2 }
 0x17d   : > { %v1965_v19 = vpop.permute.xlu1 %1964 }
 0x17e   : > { %v920_v22 = vpop.permute.xlu0 %919  ;;  %v5152_v26 = vpop.f32.mrb[0].mxu1 }
 0x17f   : > { %616 = vrot.lane.b32.xlu1 %v4819_v27, %s4049_s24  ;;  %v5156_v29 = vpop.f32.mrb[1].mxu1  ;;  %v1115_v25 = vsel %vm656_vm0, %v5150_v4, %v920_v22  ;;  %v2174_v27 = vsel %vm656_vm0, %v4919_v14, %v1965_v19 }
 0x180   : > { %490 = vrot.lane.b32.xlu0 %v4822_v54, %s4050_s26 }
 0x181   : > { %v1048_v55 = vpop.permute.xlu1 %1047 }
 0x182   : > { %v1147_v8 = vsel %vm689_vm1, %v1115_v25, %v1048_v55  ;;  %v922_v10 = vpop.permute.xlu0 %921 }
 0x183   : > { %2120 = vrot.lane.b32.xlu1 %v4913_v28, %s4049_s24  ;;  %3614 = vmatprep.mubr.msk.f32.mxu1 %vm1164_vm2, %v1147_v8  ;;  %v3320_v28 = vld [vmem:[%s4192_s12 + $0x199] sm:$0xff]  ;;  %v1116_v16 = vsel %vm656_vm0, %v5172_v53, %v922_v10 }
 0x184   : > { %1994 = vrot.lane.b32.xlu0 %v4916_v12, %s4050_s26 }
 0x185   : > { %v2093_v54 = vpop.permute.xlu1 %2092 }
 0x186   : > { %v2206_v42 = vsel %vm689_vm1, %v2174_v27, %v2093_v54  ;;  %v1967_v49 = vpop.permute.xlu0 %1966 }
 0x187   : > { %2122 = vrot.lane.b32.xlu1 %v4936_v60, %s4049_s24  ;;  %3737 = vmatprep.mubr.msk.f32.mxu0 %vm1164_vm2, %v2206_v42  ;;  %v2175_v12 = vsel %vm656_vm0, %v4940_v34, %v1967_v49 }
 0x188   : > { %618 = vrot.lane.b32.xlu0 %v4842_v3, %s4049_s24 }
 0x189   : > { %v2095_v61 = vpop.permute.xlu1 %2094 }
 0x18a   : > { %v2207_v35 = vsel %vm689_vm1, %v2175_v12, %v2095_v61  ;;  %v1050_v17 = vpop.permute.xlu0 %1049 }
 0x18b   : > { %v1148_v60 = vsel %vm689_vm1, %v1116_v16, %v1050_v17  ;;  %1996 = vrot.lane.b32.xlu1 %v3320_v28, %s4050_s26  ;;  %3738 = vmatmul.mubr.msk.f32.gmra.mrb[14].mxu0 %vm1164_vm2, %v2207_v35 }
 0x18c   : > { %492 = vrot.lane.b32.xlu0 %v4858_v57, %s4050_s26  ;;  %3615 = vmatmul.mubr.msk.f32.gmra.mrb[28].mxu1 %vm1164_vm2, %v1148_v60 }
 0x18d   : > { %v1969_v3 = vpop.permute.xlu1 %1968 }
 0x18e   : > { %v924_v18 = vpop.permute.xlu0 %923  ;;  %v5194_v24 = vpop.f32.mrb[2].mxu1  ;;  %v2176_v11 = vsel %vm656_vm0, %v4960_v56, %v1969_v3 }
 0x18f   : > { %620 = vrot.lane.b32.xlu1 %v4869_v15, %s4049_s24  ;;  %v5198_v62 = vpop.f32.mrb[3].mxu1  ;;  %v1117_v57 = vsel %vm656_vm0, %v5192_v23, %v924_v18  ;;  %v3353_v15 = vld [vmem:[%s4192_s12 + $0x1a2] sm:$0xff] }
 0x190   : > { %494 = vrot.lane.b32.xlu0 %v4872_v1, %s4050_s26 }
 0x191   : > { %v1052_v63 = vpop.permute.xlu1 %1051 }
 0x192   : > { %v1149_v0 = vsel %vm689_vm1, %v1117_v57, %v1052_v63  ;;  %v926_v43 = vpop.permute.xlu0 %925 }
 0x193   : > { %2124 = vrot.lane.b32.xlu1 %v3352_v39, %s4049_s24  ;;  %3617 = vmatprep.mubr.msk.f32.mxu1 %vm1164_vm2, %v1149_v0  ;;  %v1118_v40 = vsel %vm656_vm0, %v5215_v37, %v926_v43 }
 0x194   : > { %1998 = vrot.lane.b32.xlu0 %v3321_v7, %s4050_s26 }
 0x195   : > { %v2097_v1 = vpop.permute.xlu1 %2096 }
 0x196   : > { %v2208_v45 = vsel %vm689_vm1, %v2176_v11, %v2097_v1  ;;  %v1971_v50 = vpop.permute.xlu0 %1970 }
 0x197   : > { %2126 = vrot.lane.b32.xlu1 %v3353_v15, %s4049_s24  ;;  %3740 = vmatprep.mubr.msk.f32.mxu0 %vm1164_vm2, %v2208_v45  ;;  %v2177_v31 = vsel %vm656_vm0, %v4978_v51, %v1971_v50 }
 0x198   : > { %622 = vrot.lane.b32.xlu0 %v4889_v9, %s4049_s24  ;;  %s4054_s24 = smov [#allocation2]  }
 0x199   : > { %v2099_v33 = vpop.permute.xlu1 %2098  ;;  %s3989_s26 = sshll.u32 %s4054_s24, 4  ;;  %s3990_s26 = int_to_ptr.vmem [resolvable:$false] %s3989_s26 }
 0x19a   : > { %v2209_v46 = vsel %vm689_vm1, %v2177_v31, %v2099_v33  ;;  %v1054_v58 = vpop.permute.xlu0 %1053  ;;  %s3991_s19 = scalar_lea.vmem %s3990_s26, 8192  ;;  %p3992_p0 = scmp.lt.s32.totalorder %s5851_s25, %s3990_s26 }
 0x19b   : > { %v1150_v6 = vsel %vm689_vm1, %v1118_v40, %v1054_v58  ;;  %3741 = vmatmul.mubr.msk.f32.gmra.mrb[16].mxu0 %vm1164_vm2, %v2209_v46 }
 0x19c   : > { %3618 = vmatmul.mubr.msk.f32.gmra.mrb[30].mxu1 %vm1164_vm2, %v1150_v6 }
 0x19d   : > { %v1973_v41 = vpop.permute.xlu1 %1972 }
 0x19e   : > { %v469_v36 = vpop.permute.xlu0 %468  ;;  %v5229_v38 = vpop.f32.mrb[4].mxu1  ;;  %v2178_v19 = vsel %vm656_vm0, %v4998_v44, %v1973_v41 }
 0x19f   : > { %v5231_v9 = vpop.f32.mrb[5].mxu1  ;;  %v675_v47 = vsel %vm656_vm0, %v4919_v14, %v469_v36 }
 0x1a1   : > { %v597_v52 = vpop.permute.xlu1 %596 }
 0x1a2   : > { %v708_v48 = vsel %vm689_vm1, %v675_v47, %v597_v52  ;;  %v471_v2 = vpop.permute.xlu0 %470 }
 0x1a3   : > { %3671 = vmatprep.mubr.msk.f32.mxu1 %vm1164_vm2, %v708_v48  ;;  %v676_v14 = vsel %vm656_vm0, %v4940_v34, %v471_v2 }
 0x1a5   : > { %v2101_v22 = vpop.permute.xlu1 %2100 }
 0x1a6   : > { %v2210_v25 = vsel %vm689_vm1, %v2178_v19, %v2101_v22  ;;  %v1975_v55 = vpop.permute.xlu0 %1974 }
 0x1a7   : > { %3743 = vmatprep.mubr.msk.f32.mxu0 %vm1164_vm2, %v2210_v25  ;;  %v2179_v8 = vsel %vm656_vm0, %v5016_v5, %v1975_v55 }
 0x1a9   : > { %v2103_v10 = vpop.permute.xlu1 %2102 }
 0x1aa   : > { %v2211_v27 = vsel %vm689_vm1, %v2179_v8, %v2103_v10  ;;  %v599_v54 = vpop.permute.xlu0 %598 }
 0x1ab   : > { %v709_v42 = vsel %vm689_vm1, %v676_v14, %v599_v54  ;;  %3744 = vmatmul.mubr.msk.f32.gmra.mrb[18].mxu0 %vm1164_vm2, %v2211_v27 }
 0x1ac   : > { %3672 = vmatmul.mubr.msk.f32.vlgmr.msra.gmra.mrb[18].mxu1 %vm1164_vm2, %v709_v42 }
 0x1ad   : > { %v1977_v49 = vpop.permute.xlu1 %1976 }
 0x1ae   : > { %v473_v28 = vpop.permute.xlu0 %472  ;;  %v5249_v12 = vpop.f32.mrb[6].mxu1  ;;  %v2180_v60 = vsel %vm656_vm0, %v5036_v13, %v1977_v49 }
 0x1af   : > { %v5251_v61 = vpop.f32.mrb[7].mxu1  ;;  %v677_v16 = vsel %vm656_vm0, %v4960_v56, %v473_v28 }
 0x1b1   : > { %v601_v35 = vpop.permute.xlu1 %600 }
 0x1b2   : > { %v710_v34 = vsel %vm689_vm1, %v677_v16, %v601_v35  ;;  %v475_v17 = vpop.permute.xlu0 %474 }
 0x1b3   : > { %3674 = vmatprep.mubr.msk.f32.mxu1 %vm1164_vm2, %v710_v34  ;;  %v678_v56 = vsel %vm656_vm0, %v4978_v51, %v475_v17 }
 0x1b5   : > { %v2105_v3 = vpop.permute.xlu1 %2104 }
 0x1b6   : > { %v2212_v18 = vsel %vm689_vm1, %v2180_v60, %v2105_v3  ;;  %v1979_v39 = vpop.permute.xlu0 %1978 }
 0x1b7   : > { %3746 = vmatprep.mubr.msk.f32.mxu0 %vm1164_vm2, %v2212_v18  ;;  %v2181_v57 = vsel %vm656_vm0, %v5054_v21, %v1979_v39 }
 0x1b9   : > { %v2107_v63 = vpop.permute.xlu1 %2106 }
 0x1ba   : > { %v2213_v7 = vsel %vm689_vm1, %v2181_v57, %v2107_v63  ;;  %v603_v0 = vpop.permute.xlu0 %602 }
 0x1bb   : > { %v711_v43 = vsel %vm689_vm1, %v678_v56, %v603_v0  ;;  %3747 = vmatmul.mubr.msk.f32.gmra.mrb[20].mxu0 %vm1164_vm2, %v2213_v7 }
 0x1bc   : > { %3675 = vmatmul.mubr.msk.f32.gmra.mrb[20].mxu1 %vm1164_vm2, %v711_v43 }
 0x1bd   : > { %v1981_v15 = vpop.permute.xlu1 %1980 }
 0x1be   : > { %v477_v11 = vpop.permute.xlu0 %476  ;;  %v5269_v1 = vpop.f32.mrb[8].mxu1  ;;  %v2182_v40 = vsel %vm656_vm0, %v5074_v32, %v1981_v15 }
 0x1bf   : > { %v5271_v45 = vpop.f32.mrb[9].mxu1  ;;  %v679_v50 = vsel %vm656_vm0, %v4998_v44, %v477_v11 }
 0x1c1   : > { %v605_v31 = vpop.permute.xlu1 %604 }
 0x1c2   : > { %v712_v51 = vsel %vm689_vm1, %v679_v50, %v605_v31  ;;  %v479_v33 = vpop.permute.xlu0 %478 }
 0x1c3   : > { %3677 = vmatprep.mubr.msk.f32.mxu1 %vm1164_vm2, %v712_v51  ;;  %v680_v44 = vsel %vm656_vm0, %v5016_v5, %v479_v33 }
 0x1c5   : > { %v2109_v46 = vpop.permute.xlu1 %2108 }
 0x1c6   : > { %v2214_v58 = vsel %vm689_vm1, %v2182_v40, %v2109_v46  ;;  %v1983_v6 = vpop.permute.xlu0 %1982 }
 0x1c7   : > { %3749 = vmatprep.mubr.msk.f32.mxu0 %vm1164_vm2, %v2214_v58  ;;  %v2183_v41 = vsel %vm656_vm0, %v5092_v20, %v1983_v6 }
 0x1c9   : > { %v2111_v36 = vpop.permute.xlu1 %2110 }
 0x1ca   : > { %v2215_v47 = vsel %vm689_vm1, %v2183_v41, %v2111_v36  ;;  %v607_v52 = vpop.permute.xlu0 %606 }
 0x1cb   : > { %v713_v48 = vsel %vm689_vm1, %v680_v44, %v607_v52  ;;  %3750 = vmatmul.mubr.msk.f32.gmra.mrb[22].mxu0 %vm1164_vm2, %v2215_v47 }
 0x1cc   : > { %3678 = vmatmul.mubr.msk.f32.gmra.mrb[22].mxu1 %vm1164_vm2, %v713_v48 }
 0x1cd   : > { %v1985_v2 = vpop.permute.xlu1 %1984 }
 0x1ce   : > { %v481_v19 = vpop.permute.xlu0 %480  ;;  %v5289_v22 = vpop.f32.mrb[10].mxu1  ;;  %v2184_v14 = vsel %vm656_vm0, %v5112_v59, %v1985_v2 }
 0x1cf   : > { %v5291_v25 = vpop.f32.mrb[11].mxu1  ;;  %v681_v55 = vsel %vm656_vm0, %v5036_v13, %v481_v19 }
 0x1d1   : > { %v609_v8 = vpop.permute.xlu1 %608 }
 0x1d2   : > { %v714_v5 = vsel %vm689_vm1, %v681_v55, %v609_v8  ;;  %v483_v10 = vpop.permute.xlu0 %482 }
 0x1d3   : > { %3680 = vmatprep.mubr.msk.f32.mxu1 %vm1164_vm2, %v714_v5  ;;  %v682_v13 = vsel %vm656_vm0, %v5054_v21, %v483_v10 }
 0x1d5   : > { %v2113_v27 = vpop.permute.xlu1 %2112 }
 0x1d6   : > { %v2216_v54 = vsel %vm689_vm1, %v2184_v14, %v2113_v27  ;;  %v1987_v42 = vpop.permute.xlu0 %1986 }
 0x1d7   : > { %3752 = vmatprep.mubr.msk.f32.mxu0 %vm1164_vm2, %v2216_v54  ;;  %v2185_v49 = vsel %vm656_vm0, %v5130_v30, %v1987_v42 }
 0x1d9   : > { %v2115_v28 = vpop.permute.xlu1 %2114 }
 0x1da   : > { %v2217_v16 = vsel %vm689_vm1, %v2185_v49, %v2115_v28  ;;  %v611_v35 = vpop.permute.xlu0 %610 }
 0x1db   : > { %v715_v34 = vsel %vm689_vm1, %v682_v13, %v611_v35  ;;  %3753 = vmatmul.mubr.msk.f32.gmra.mrb[24].mxu0 %vm1164_vm2, %v2217_v16  ;;  %v3288_v35 = vld [vmem:[%s4192_s12 + $0x198] sm:$0xff] }
 0x1dc   : > { %3681 = vmatmul.mubr.msk.f32.gmra.mrb[24].mxu1 %vm1164_vm2, %v715_v34 }
 0x1dd   : > { %v1989_v17 = vpop.permute.xlu1 %1988 }
 0x1de   : > { %v485_v60 = vpop.permute.xlu0 %484  ;;  %v5309_v3 = vpop.f32.mrb[12].mxu1  ;;  %v2186_v56 = vsel %vm656_vm0, %v5150_v4, %v1989_v17 }
 0x1df   : > { %v5311_v18 = vpop.f32.mrb[13].mxu1  ;;  %v683_v39 = vsel %vm656_vm0, %v5074_v32, %v485_v60 }
 0x1e1   : > { %v613_v57 = vpop.permute.xlu1 %612 }
 0x1e2   : > { %v716_v21 = vsel %vm689_vm1, %v683_v39, %v613_v57  ;;  %v487_v63 = vpop.permute.xlu0 %486  ;;  %v3289_v57 = vld [vmem:[%s4192_s12 + $0x1a0] sm:$0xff]  ;;  %s3985_s12 = scalar_lea.vmem %s5851_s25, 4096 }
 0x1e3   : > { %3683 = vmatprep.mubr.msk.f32.mxu1 %vm1164_vm2, %v716_v21  ;;  %v684_v32 = vsel %vm656_vm0, %v5092_v20, %v487_v63  ;;  %p3986_p11 = scmp.ne.s32.totalorder %s5851_s25, %s3985_s12  ;;  %p3993_p1 = scmp.lt.s32.totalorder %s3991_s19, %s3985_s12 }
 0x1e5   : > { %v2117_v7 = vpop.permute.xlu1 %2116  ;;  %p3987_p12 = pnand %p3986_p11, %p4140_p5  ;;  %p3994_p2 = por %p3993_p1, %p3992_p0 }
 0x1e6   : > { %v2218_v0 = vsel %vm689_vm1, %v2186_v56, %v2117_v7  ;;  %v1991_v43 = vpop.permute.xlu0 %1990 }
 0x1e7   : > { %3755 = vmatprep.mubr.msk.f32.mxu0 %vm1164_vm2, %v2218_v0  ;;  %v2187_v15 = vsel %vm656_vm0, %v5172_v53, %v1991_v43  ;;  %p3988_p13 = pneg %p3987_p12 }
 0x1e9   : > { %v2119_v11 = vpop.permute.xlu1 %2118  ;;  %p3995_p3 = pnand %p3994_p2, %p3988_p13 }
 0x1ea   : > { %v2219_v50 = vsel %vm689_vm1, %v2187_v15, %v2119_v11  ;;  %v615_v31 = vpop.permute.xlu0 %614 }
 0x1eb   : > { %v717_v51 = vsel %vm689_vm1, %v684_v32, %v615_v31  ;;  %3756 = vmatmul.mubr.msk.f32.gmra.mrb[26].mxu0 %vm1164_vm2, %v2219_v50 }
 0x1ec   : > { %3684 = vmatmul.mubr.msk.f32.gmra.mrb[26].mxu1 %vm1164_vm2, %v717_v51 }
 0x1ed   : > { %v1993_v33 = vpop.permute.xlu1 %1992 }
 0x1ee   : > { %v489_v40 = vpop.permute.xlu0 %488  ;;  %v3718_v46 = vpop.f32.mrb[0].mxu0  ;;  %v2188_v2 = vsel %vm656_vm0, %v5192_v23, %v1993_v33 }
 0x1ef   : > { %v5329_v58 = vpop.f32.mrb[14].mxu1  ;;  %v5332_v6 = vadd.f32 %v3718_v46, %v5152_v26  ;;  %v2399_v41 = vpop.f32.mrb[1].mxu0  ;;  %v685_v44 = vsel %vm656_vm0, %v5112_v59, %v489_v40 }
 0x1f0   : > { %v5334_v36 = vpop.f32.mrb[15].mxu1  ;;  %v5337_v20 = vadd.f32 %v2399_v41, %v5156_v29 }
 0x1f1   : > { %v617_v47 = vpop.permute.xlu1 %616 }
 0x1f2   : > { %v718_v52 = vsel %vm689_vm1, %v685_v44, %v617_v47  ;;  %v491_v48 = vpop.permute.xlu0 %490 }
 0x1f3   : > { %3686 = vmatprep.mubr.msk.f32.mxu1 %vm1164_vm2, %v718_v52  ;;  %v686_v59 = vsel %vm656_vm0, %v5130_v30, %v491_v48 }
 0x1f5   : > { %v2121_v26 = vpop.permute.xlu1 %2120 }
 0x1f6   : > { %v2220_v19 = vsel %vm689_vm1, %v2188_v2, %v2121_v26  ;;  %v1995_v55 = vpop.permute.xlu0 %1994  ;;  %v4051_v26 = vmov 0.0|0.0  }
 0x1f7   : > { %3758 = vmatprep.mubr.msk.f32.mxu0 %vm1164_vm2, %v2220_v19  ;;  %v2189_v29 = vsel %vm656_vm0, %v5215_v37, %v1995_v55  ;;  %3852 = vmatprep.subr.bf16.mxu1 %v4051_v26 }
 0x1f9   : > { %v2123_v8 = vpop.permute.xlu1 %2122 }
 0x1fa   : > { %v2221_v5 = vsel %vm689_vm1, %v2189_v29, %v2123_v8  ;;  %v619_v10 = vpop.permute.xlu0 %618  ;;  %v2774_v8 = vld [vmem:[%s5932_s4 + $0x18] sm:$0xff] }
 0x1fb   : > { %v719_v14 = vsel %vm689_vm1, %v686_v59, %v619_v10  ;;  %3759 = vmatmul.mubr.msk.f32.gmra.mrb[28].mxu0 %vm1164_vm2, %v2221_v5  ;;  %v4053_v5 = vmov 0.0  }
 0x1fc   : > { %3687 = vmatmul.mubr.msk.f32.gmra.mrb[28].mxu1 %vm1164_vm2, %v719_v14 }
 0x1fd   : > { %v1997_v23 = vpop.permute.xlu1 %1996 }
 0x1fe   : > { %v493_v27 = vpop.permute.xlu0 %492  ;;  %v3721_v54 = vpop.f32.mrb[2].mxu0  ;;  %v2190_v60 = vsel %vm656_vm0, %v3288_v35, %v1997_v23 }
 0x1ff   : > { %v3598_v42 = vpop.f32.mrb[16].mxu1  ;;  %v5356_v37 = vadd.f32 %v3721_v54, %v5194_v24  ;;  %v2409_v49 = vpop.f32.mrb[3].mxu0  ;;  %v687_v13 = vsel %vm656_vm0, %v5150_v4, %v493_v27 }
 0x200   : > { %v1407_v30 = vpop.f32.mrb[17].mxu1  ;;  %v5359_v28 = vadd.f32 %v2409_v49, %v5198_v62 }
 0x201   : > { %v621_v16 = vpop.permute.xlu1 %620 }
 0x202   : > { %v720_v34 = vsel %vm689_vm1, %v687_v13, %v621_v16  ;;  %v495_v17 = vpop.permute.xlu0 %494  ;;  %v5444_v13 = vld [vmem:[%s5931_s3] ss:$0 sm:$0xff] }
 0x203   : > { %3689 = vmatprep.mubr.msk.f32.mxu1 %vm1164_vm2, %v720_v34  ;;  %v688_v4 = vsel %vm656_vm0, %v5172_v53, %v495_v17 }
 0x205   : > { %v2125_v39 = vpop.permute.xlu1 %2124 }
 0x206   : > { %v2222_v24 = vsel %vm689_vm1, %v2190_v60, %v2125_v39  ;;  %v1999_v21 = vpop.permute.xlu0 %1998 }
 0x207   : > { %3761 = vmatprep.mubr.msk.f32.mxu0 %vm1164_vm2, %v2222_v24  ;;  %v2191_v62 = vsel %vm656_vm0, %v3289_v57, %v1999_v21 }
 0x209   : > { %v2127_v63 = vpop.permute.xlu1 %2126 }
 0x20a   : > { %v2223_v56 = vsel %vm689_vm1, %v2191_v62, %v2127_v63  ;;  %v623_v7 = vpop.permute.xlu0 %622 }
 0x20b   : > { %v721_v0 = vsel %vm689_vm1, %v688_v4, %v623_v7  ;;  %3762 = vmatmul.mubr.msk.f32.gmra.mrb[30].mxu0 %vm1164_vm2, %v2223_v56 }
 0x20c   : > { %3690 = vmatmul.mubr.msk.f32.gmra.mrb[30].mxu1 %vm1164_vm2, %v721_v0 }
 0x20d   : > { %3772 = vmatprep.mubr.msk.f32.mxu1 %vm4052_vm3, %v4053_v5 }
 0x20e   : > { %v3724_v43 = vpop.f32.mrb[4].mxu0 }
 0x20f   : > { %v5378_v15 = vadd.f32 %v3724_v43, %v5229_v38  ;;  %v2419_v11 = vpop.f32.mrb[5].mxu0 }
 0x210   : > { %v3875_v32 = vadd.f32 %v2419_v11, %v5231_v9 }
 0x21e   : > { %v3727_v50 = vpop.f32.mrb[6].mxu0 }
 0x21f   : > { %v5382_v31 = vadd.f32 %v3727_v50, %v5249_v12  ;;  %v2429_v53 = vpop.f32.mrb[7].mxu0 }
 0x220   : > { %v5385_v51 = vadd.f32 %v2429_v53, %v5251_v61 }
 0x22e   : > { %v3730_v33 = vpop.f32.mrb[8].mxu0 }
 0x22f   : > { %v5388_v40 = vadd.f32 %v3730_v33, %v5269_v1  ;;  %v2439_v46 = vpop.f32.mrb[9].mxu0 }
 0x230   : > { %v5391_v41 = vadd.f32 %v2439_v46, %v5271_v45 }
 0x23e   : > { %v3733_v38 = vpop.f32.mrb[10].mxu0 }
 0x23f   : > { %v5394_v44 = vadd.f32 %v3733_v38, %v5289_v22  ;;  %v2449_v9 = vpop.f32.mrb[11].mxu0 }
 0x240   : > { %v5397_v12 = vadd.f32 %v2449_v9, %v5291_v25 }
 0x24e   : > { %v3736_v47 = vpop.f32.mrb[12].mxu0 }
 0x24f   : > { %v5400_v61 = vadd.f32 %v3736_v47, %v5309_v3  ;;  %v2459_v52 = vpop.f32.mrb[13].mxu0 }
 0x250   : > { %v5403_v1 = vadd.f32 %v2459_v52, %v5311_v18  ;;  %v2771_v18 = vld [vmem:[%s5932_s4] sm:$0xff] }
 0x25e   : > { %v3739_v48 = vpop.f32.mrb[14].mxu0 }
 0x25f   : > { %v5406_v45 = vadd.f32 %v3739_v48, %v5329_v58  ;;  %v2469_v2 = vpop.f32.mrb[15].mxu0  ;;  %v2772_v58 = vld [vmem:[%s5932_s4 + $0x8] sm:$0xff] }
 0x260   : > { %v5409_v22 = vadd.f32 %v2469_v2, %v5334_v36  ;;  %v3853_v29 = vpack.c.bf16 %v2772_v58, %v2771_v18  ;;  %v2773_v36 = vld [vmem:[%s5932_s4 + $0x10] sm:$0xff] }
 0x261   : > { %v3856_v59 = vpack.c.bf16 %v2774_v8, %v2773_v36 }
 0x262   : > { %3854 = vmatpush3.bf16.msra.mxu1 %v3853_v29 }
 0x263   : > { %3855 = vmatprep.subr.bf16.mxu1 %v4051_v26 }
 0x266   : > { %3857 = vmatpush3.bf16.msra.mxu1 %v3856_v59 }
 0x267   : > { %3775 = vmatprep.subr.mxu1 %v4053_v5 }
 0x26e   : > { %v3742_v25 = vpop.f32.mrb[16].mxu0 }
 0x26f   : > { %v5411_v19 = vadd.f32 %v3742_v25, %v3598_v42  ;;  %v2479_v55 = vpop.f32.mrb[17].mxu0  ;;  %v5435_v42 = vld [vmem:[%s5930_s2] ss:$0 sm:$0xff] }
 0x270   : > { %v5413_v3 = vadd.f32 %v2479_v55, %v1407_v30  ;;  %v2598_v30 = vmul.f32 %v5332_v6, %v5435_v42  ;;  %v2597_v16 = vmul.f32 %v5337_v20, %v5435_v42  ;;  %v2599_v35 = vmul.f32 %v5359_v28, %v5435_v42 }
 0x271   : > { %v2600_v24 = vmul.f32 %v5356_v37, %v5435_v42  ;;  %v2601_v20 = vmul.f32 %v3875_v32, %v5435_v42  ;;  %v2602_v32 = vmul.f32 %v5378_v15, %v5435_v42  ;;  %v2603_v50 = vmul.f32 %v5385_v51, %v5435_v42 }
 0x272   : > { %v5451_v34 = vadd.f32 %v5444_v13, %v2598_v30  ;;  %v5454_v17 = vadd.f32 %v5444_v13, %v2597_v16  ;;  %v5457_v60 = vadd.f32 %v5444_v13, %v2599_v35  ;;  %v2604_v51 = vmul.f32 %v5382_v31, %v5435_v42 }
 0x273   : > { %v5474_v37 = vadd.f32 %v5444_v13, %v2600_v24  ;;  %v5477_v0 = vadd.f32 %v5444_v13, %v2601_v20  ;;  %v5491_v9 = vadd.f32 %v5444_v13, %v2602_v32  ;;  %v5494_v47 = vadd.f32 %v5444_v13, %v2603_v50 }
 0x274   : > { %v2669_v6 = vmax.f32 %v5451_v34, 0.0  ;;  %v2668_v39 = vmax.f32 %v5454_v17, 0.0  ;;  %v2670_v28 = vmax.f32 %v5457_v60, 0.0  ;;  %v2605_v48 = vmul.f32 %v5391_v41, %v5435_v42 }
 0x275   : > { %v2671_v33 = vmax.f32 %v5474_v37, 0.0  ;;  %v2672_v46 = vmax.f32 %v5477_v0, 0.0  ;;  %v2673_v26 = vmax.f32 %v5491_v9, 0.0  ;;  %v2674_v25 = vmax.f32 %v5494_v47, 0.0 }
 0x276   : > { %v2701_v63 = vsel %vm656_vm0, %v2669_v6, 0.0  ;;  %v2700_v7 = vsel %vm656_vm0, %v2668_v39, 0.0  ;;  %v2703_v11 = vsel %vm656_vm0, %v2670_v28, 0.0  ;;  %v5509_v18 = vadd.f32 %v5444_v13, %v2604_v51 }
 0x277   : > { %v2702_v53 = vadd.f32 %v2701_v63, %v2700_v7  ;;  %v2705_v52 = vsel %vm656_vm0, %v2671_v33, 0.0  ;;  %v2707_v15 = vsel %vm656_vm0, %v2672_v46, 0.0  ;;  %v5512_v58 = vadd.f32 %v5444_v13, %v2605_v48 }
 0x278   : > { %v2709_v31 = vsel %vm656_vm0, %v2673_v26, 0.0  ;;  %v2711_v41 = vsel %vm656_vm0, %v2674_v25, 0.0  ;;  %v2606_v36 = vmul.f32 %v5388_v40, %v5435_v42  ;;  %v2607_v8 = vmul.f32 %v5397_v12, %v5435_v42 }
 0x279   : > { %v2704_v38 = vadd.f32 %v2703_v11, %v2702_v53  ;;  %v2675_v30 = vmax.f32 %v5509_v18, 0.0  ;;  %v2676_v16 = vmax.f32 %v5512_v58, 0.0  ;;  %v2608_v12 = vmul.f32 %v5394_v44, %v5435_v42 }
 0x27a   : > { %v5531_v20 = vadd.f32 %v5444_v13, %v2606_v36  ;;  %v5534_v40 = vadd.f32 %v5444_v13, %v2607_v8  ;;  %v2610_v53 = vmul.f32 %v5400_v61, %v5435_v42 }
 0x27b   : > { %v2706_v2 = vadd.f32 %v2705_v52, %v2704_v38  ;;  %v5549_v32 = vadd.f32 %v5444_v13, %v2608_v12  ;;  %v2611_v38 = vmul.f32 %v5409_v22, %v5435_v42 }
 0x27c   : > { %v2678_v7 = vmax.f32 %v5534_v40, 0.0 }
 0x27d   : > { %v2708_v55 = vadd.f32 %v2707_v15, %v2706_v2  ;;  %v2679_v52 = vmax.f32 %v5549_v32, 0.0 }
 0x27e   : > { %v3745_v10 = vpop.f32.mrb[18].mxu0 }
 0x27f   : > { %v3673_v14 = vpop.f32.mrb[18].mxu1  ;;  %v2489_v23 = vpop.f32.mrb[19].mxu0  ;;  %v2721_v61 = vsel %vm656_vm0, %v2679_v52, 0.0 }
 0x280   : > { %v5430_v27 = vadd.f32 %v3745_v10, %v3673_v14  ;;  %v1738_v54 = vpop.f32.mrb[19].mxu1  ;;  %v2710_v14 = vadd.f32 %v2709_v31, %v2708_v55  ;;  %v5567_v55 = vadd.f32 %v5444_v13, %v2610_v53 }
 0x281   : > { %v5437_v49 = vadd.f32 %v2489_v23, %v1738_v54 }
 0x282   : > { %v2712_v24 = vadd.f32 %v2711_v41, %v2710_v14 }
 0x28e   : > { %v3748_v57 = vpop.f32.mrb[20].mxu0 }
 0x28f   : > { %v3676_v21 = vpop.f32.mrb[20].mxu1  ;;  %v2499_v62 = vpop.f32.mrb[21].mxu0 }
 0x290   : > { %v5468_v4 = vadd.f32 %v3748_v57, %v3676_v21  ;;  %v1748_v56 = vpop.f32.mrb[21].mxu1  ;;  %v2713_v57 = vsel %vm656_vm0, %v2675_v30, 0.0  ;;  %v2715_v21 = vsel %vm656_vm0, %v2676_v16, 0.0 }
 0x291   : > { %v5479_v43 = vadd.f32 %v2499_v62, %v1748_v56  ;;  %v2609_v62 = vmul.f32 %v5403_v1, %v5435_v42  ;;  %v2714_v63 = vadd.f32 %v2713_v57, %v2712_v24  ;;  %v2677_v56 = vmax.f32 %v5531_v20, 0.0 }
 0x292   : > { %v2719_v1 = vsel %vm656_vm0, %v2678_v7, 0.0  ;;  %v2681_v24 = vmax.f32 %v5567_v55, 0.0 }
 0x293   : > { %v2716_v11 = vadd.f32 %v2715_v21, %v2714_v63  ;;  %v5552_v44 = vadd.f32 %v5444_v13, %v2609_v62  ;;  %v2717_v50 = vsel %vm656_vm0, %v2677_v56, 0.0  ;;  %v2614_v63 = vmul.f32 %v5411_v19, %v5435_v42 }
 0x295   : > { %v2718_v15 = vadd.f32 %v2717_v50, %v2716_v11  ;;  %v2680_v51 = vmax.f32 %v5552_v44, 0.0  ;;  %v2615_v11 = vmul.f32 %v5437_v49, %v5435_v42  ;;  %v2616_v49 = vmul.f32 %v5430_v27, %v5435_v42 }
 0x297   : > { %v2720_v48 = vadd.f32 %v2719_v1, %v2718_v15  ;;  %v2723_v8 = vsel %vm656_vm0, %v2680_v51, 0.0  ;;  %v5603_v15 = vadd.f32 %v5444_v13, %v2614_v63 }
 0x29e   : > { %v3751_v29 = vpop.f32.mrb[22].mxu0 }
 0x29f   : > { %v3679_v59 = vpop.f32.mrb[22].mxu1  ;;  %v2509_v10 = vpop.f32.mrb[23].mxu0 }
 0x2a0   : > { %v5524_v23 = vadd.f32 %v3751_v29, %v3679_v59  ;;  %v1758_v54 = vpop.f32.mrb[23].mxu1  ;;  %v5570_v29 = vadd.f32 %v5444_v13, %v2611_v38  ;;  %v2612_v59 = vmul.f32 %v5406_v45, %v5435_v42  ;;  %v2725_v45 = vsel %vm656_vm0, %v2681_v24, 0.0 }
 0x2a1   : > { %v5528_v35 = vadd.f32 %v2509_v10, %v1758_v54  ;;  %v2613_v10 = vmul.f32 %v5413_v3, %v5435_v42  ;;  %v2722_v54 = vadd.f32 %v2721_v61, %v2720_v48  ;;  %v5606_v48 = vadd.f32 %v5444_v13, %v2615_v11 }
 0x2a2   : > { %v2682_v12 = vmax.f32 %v5570_v29, 0.0  ;;  %v5585_v21 = vadd.f32 %v5444_v13, %v2612_v59 }
 0x2a3   : > { %v2724_v57 = vadd.f32 %v2723_v8, %v2722_v54  ;;  %v5588_v62 = vadd.f32 %v5444_v13, %v2613_v10  ;;  %v5939_v8 = vmax.f32 %v5606_v48, 0.0  ;;  %v5957_v18 = vmax.f32 %v5606_v48, 0.0 }
 0x2a4   : > { %v2727_v3 = vsel %vm656_vm0, %v2682_v12, 0.0  ;;  %v5948_v1 = vmax.f32 %v5585_v21, 0.0 }
 0x2a5   : > { %v2726_v50 = vadd.f32 %v2725_v45, %v2724_v57  ;;  %v5941_v53 = vmax.f32 %v5588_v62, 0.0  ;;  %v2735_v11 = vsel %vm656_vm0, %v5939_v8, 0.0  ;;  %v5955_v9 = vmax.f32 %v5588_v62, 0.0 }
 0x2a7   : > { %v2728_v38 = vadd.f32 %v2727_v3, %v2726_v50  ;;  %v2731_v19 = vsel %vm656_vm0, %v5941_v53, 0.0  ;;  %v5621_v3 = vadd.f32 %v5444_v13, %v2616_v49  ;;  %v2618_v50 = vmul.f32 %v5468_v4, %v5435_v42 }
 0x2ae   : > { %v3754_v2 = vpop.f32.mrb[24].mxu0 }
 0x2af   : > { %v3682_v31 = vpop.f32.mrb[24].mxu1  ;;  %v2519_v41 = vpop.f32.mrb[25].mxu0 }
 0x2b0   : > { %v3894_v22 = vadd.f32 %v3754_v2, %v3682_v31  ;;  %v1768_v36 = vpop.f32.mrb[25].mxu1  ;;  %v2729_v2 = vsel %vm656_vm0, %v5948_v1, 0.0  ;;  %v2617_v31 = vmul.f32 %v5479_v43, %v5435_v42 }
 0x2b1   : > { %v3895_v14 = vadd.f32 %v2519_v41, %v1768_v36  ;;  %v2730_v41 = vadd.f32 %v2729_v2, %v2728_v38  ;;  %v5940_v36 = vmax.f32 %v5603_v15, 0.0  ;;  %v2619_v38 = vmul.f32 %v5528_v35, %v5435_v42 }
 0x2b2   : > { %v5624_v63 = vadd.f32 %v5444_v13, %v2617_v31  ;;  %v2620_v35 = vmul.f32 %v5524_v23, %v5435_v42 }
 0x2b3   : > { %v2732_v54 = vadd.f32 %v2731_v19, %v2730_v41  ;;  %v2733_v43 = vsel %vm656_vm0, %v5940_v36, 0.0  ;;  %v5938_v19 = vmax.f32 %v5621_v3, 0.0  ;;  %v5639_v41 = vadd.f32 %v5444_v13, %v2618_v50 }
 0x2b4   : > { %v5937_v49 = vmax.f32 %v5624_v63, 0.0  ;;  %v5656_v50 = vadd.f32 %v5444_v13, %v2620_v35  ;;  %v5959_v20 = vmax.f32 %v5624_v63, 0.0 }
 0x2b5   : > { %v2734_v2 = vadd.f32 %v2733_v43, %v2732_v54 }
 0x2b6   : > { %v2739_v4 = vsel %vm656_vm0, %v5937_v49, 0.0 }
 0x2b7   : > { %v2736_v31 = vadd.f32 %v2735_v11, %v2734_v2 }
 0x2be   : > { %v3757_v61 = vpop.f32.mrb[26].mxu0 }
 0x2bf   : > { %v3685_v59 = vpop.f32.mrb[26].mxu1  ;;  %v2529_v10 = vpop.f32.mrb[27].mxu0 }
 0x2c0   : > { %v3896_v57 = vadd.f32 %v3757_v61, %v3685_v59  ;;  %v1778_v45 = vpop.f32.mrb[27].mxu1  ;;  %v5642_v61 = vadd.f32 %v5444_v13, %v2619_v38  ;;  %v2737_v59 = vsel %vm656_vm0, %v5938_v19, 0.0 }
 0x2c1   : > { %v3897_v27 = vadd.f32 %v2529_v10, %v1778_v45  ;;  %v2621_v10 = vmul.f32 %v3895_v14, %v5435_v42  ;;  %v2738_v54 = vadd.f32 %v2737_v59, %v2736_v31  ;;  %v5942_v45 = vmax.f32 %v5639_v41, 0.0 }
 0x2c2   : > { %v5943_v43 = vmax.f32 %v5642_v61, 0.0  ;;  %v2622_v14 = vmul.f32 %v3894_v22, %v5435_v42  ;;  %v5961_v32 = vmax.f32 %v5642_v61, 0.0 }
 0x2c3   : > { %v2740_v11 = vadd.f32 %v2739_v4, %v2738_v54  ;;  %v5659_v38 = vadd.f32 %v5444_v13, %v2621_v10  ;;  %v2741_v49 = vsel %vm656_vm0, %v5942_v45, 0.0  ;;  %v2623_v31 = vmul.f32 %v3897_v27, %v5435_v42 }
 0x2c4   : > { %v2743_v23 = vsel %vm656_vm0, %v5943_v43, 0.0  ;;  %v5945_v10 = vmax.f32 %v5656_v50, 0.0  ;;  %v5672_v45 = vadd.f32 %v5444_v13, %v2622_v14 }
 0x2c5   : > { %v2742_v35 = vadd.f32 %v2741_v49, %v2740_v11  ;;  %v5944_v8 = vmax.f32 %v5659_v38, 0.0  ;;  %v5675_v43 = vadd.f32 %v5444_v13, %v2623_v31  ;;  %v2624_v49 = vmul.f32 %v3896_v57, %v5435_v42 }
 0x2c6   : > { %v2745_v22 = vsel %vm656_vm0, %v5945_v10, 0.0  ;;  %v5963_v55 = vmax.f32 %v5659_v38, 0.0 }
 0x2c7   : > { %v2744_v53 = vadd.f32 %v2743_v23, %v2742_v35  ;;  %v2747_v27 = vsel %vm656_vm0, %v5944_v8, 0.0  ;;  %v5947_v23 = vmax.f32 %v5675_v43, 0.0  ;;  %v5688_v31 = vadd.f32 %v5444_v13, %v2624_v49 }
 0x2c9   : > { %v5949_v35 = vmax.f32 %v5688_v31, 0.0 }
 0x2ce   : > { %v3760_v2 = vpop.f32.mrb[28].mxu0 }
 0x2cf   : > { %v3688_v59 = vpop.f32.mrb[28].mxu1  ;;  %v2539_v4 = vpop.f32.mrb[29].mxu0 }
 0x2d0   : > { %v3898_v54 = vadd.f32 %v3760_v2, %v3688_v59  ;;  %v1788_v19 = vpop.f32.mrb[29].mxu1  ;;  %v5946_v2 = vmax.f32 %v5672_v45, 0.0 }
 0x2d1   : > { %v3899_v36 = vadd.f32 %v2539_v4, %v1788_v19  ;;  %v2746_v19 = vadd.f32 %v2745_v22, %v2744_v53 }
 0x2d2   : > { %v2749_v4 = vsel %vm656_vm0, %v5946_v2, 0.0  ;;  %v2626_v53 = vmul.f32 %v3898_v54, %v5435_v42 }
 0x2d3   : > { %v2625_v11 = vmul.f32 %v3899_v36, %v5435_v42  ;;  %v2748_v14 = vadd.f32 %v2747_v27, %v2746_v19  ;;  %v2751_v36 = vsel %vm656_vm0, %v5947_v23, 0.0  ;;  %v2753_v23 = vsel %vm656_vm0, %v5949_v35, 0.0 }
 0x2d5   : > { %v5691_v59 = vadd.f32 %v5444_v13, %v2625_v11  ;;  %v2750_v57 = vadd.f32 %v2749_v4, %v2748_v14  ;;  %v5703_v11 = vadd.f32 %v5444_v13, %v2626_v53 }
 0x2d7   : > { %v5951_v22 = vmax.f32 %v5691_v59, 0.0  ;;  %v2752_v27 = vadd.f32 %v2751_v36, %v2750_v57  ;;  %v5950_v57 = vmax.f32 %v5703_v11, 0.0 }
 0x2d9   : > { %v2755_v54 = vsel %vm656_vm0, %v5951_v22, 0.0  ;;  %v2754_v4 = vadd.f32 %v2753_v23, %v2752_v27  ;;  %v2757_v35 = vsel %vm656_vm0, %v5950_v57, 0.0 }
 0x2db   : > { %v2756_v1 = vadd.f32 %v2755_v54, %v2754_v4 }
 0x2de   : > { %v3763_v49 = vpop.f32.mrb[30].mxu0 }
 0x2df   : > { %v3691_v19 = vpop.f32.mrb[30].mxu1  ;;  %v2549_v8 = vpop.f32.mrb[31].mxu0 }
 0x2e0   : > { %v3900_v10 = vadd.f32 %v3763_v49, %v3691_v19  ;;  %v1798_v2 = vpop.f32.mrb[31].mxu1 }
 0x2e1   : > { %v3901_v14 = vadd.f32 %v2549_v8, %v1798_v2 }
 0x2e2   : > { %v2628_v36 = vmul.f32 %v3900_v10, %v5435_v42  ;;  %v2758_v10 = vadd.f32 %v2757_v35, %v2756_v1  ;;  %v2850_v1 = vld [vmem:[%s5934_s6] sm:$0x3] }
 0x2e3   : > { %v2627_v53 = vmul.f32 %v3901_v14, %v5435_v42  ;;  %v2775_v35 = vld [vmem:[%s5933_s5] sm:$0x1] }
 0x2e4   : > { %v5715_v49 = vadd.f32 %v5444_v13, %v2628_v36 }
 0x2e5   : > { %v5718_v19 = vadd.f32 %v5444_v13, %v2627_v53 }
 0x2e6   : > { %v2699_v8 = vmax.f32 %v5715_v49, 0.0 }
 0x2e7   : > { %v2698_v2 = vmax.f32 %v5718_v19, 0.0 }
 0x2e8   : > { %v2761_v27 = vsel %vm656_vm0, %v2699_v8, 0.0 }
 0x2e9   : > { %v2759_v42 = vsel %vm656_vm0, %v2698_v2, 0.0 }
 0x2ea   : > { %v2760_v23 = vadd.f32 %v2759_v42, %v2758_v10 }
 0x2ec   : > { %v2762_v13 = vadd.f32 %v2761_v27, %v2760_v23 }
 0x2ee   : > { %v2763_v54 = vrot.slane %v2762_v13, 4 }
 0x2f0   : > { %v2764_v14 = vadd.f32 %v2763_v54, %v2762_v13 }
 0x2f2   : > { %v2765_v4 = vrot.slane %v2764_v14, 2 }
 0x2f4   : > { %v2766_v36 = vadd.f32 %v2765_v4, %v2764_v14 }
 0x2f6   : > { %v2767_v53 = vrot.slane %v2766_v36, 1 }
 0x2f8   : > { %v2768_v57 = vadd.f32 %v2767_v53, %v2766_v36  ;;  %v2936_v53 = vlaneseq }
 0x2fa   : > { %v2770_v22 = vmul.f32 0.00390625, %v2768_v57 }
 0x2fc   : > { %3773 = vmatmul.mubr.msk.f32.vlgmr.msra.gmra.mrb[32].mxu1 %vm656_vm0, %v2770_v22 }
 0x2fd   : > { %3777 = vmatprep.mubr.msk.f32.mxu1 %vm4052_vm3, %v4053_v5  ;;  %3776 = vmatpush3.msk.msra.mxu1 %vm2856_vm4, %v2850_v1  ;;  %v2851_v5 = vld [vmem:[%s5935_s7] sm:$0x1]  ;;  %v2937_v1 = vshrl.u32 %v2936_v53, 7 }
 0x3cf   : > { %v2845_v10 = vpop.f32.mrb[32].mxu1 }
 0x3d0   : > { %v2846_v42 = vadd.f32 %v2845_v10, %v2775_v35  ;;  %v3774_v23 = vpop.f32.mrb[33].mxu1  ;;  %v2938_v35 = vsub.s32 0, %v2937_v1 }
 0x3d2   : > { %v2849_v57 = vmax.f32 %v2846_v42, 0.0 }
 0x3d4   : > { %3778 = vmatmul.mubr.msk.f32.vlgmr.msra.gmra.mrb[34].mxu1 %vm2852_vm5, %v2849_v57 }
 0x4a7   : > { %v2926_v22 = vpop.f32.mrb[34].mxu1 }
 0x4a8   : > { %v2927_v27 = vadd.f32 %v2926_v22, %v2851_v5  ;;  %v3779_v13 = vpop.f32.mrb[35].mxu1 }
 0x4aa   : > { %v2930_v54 = vsub.f32 0.0, %v2927_v27 }
 0x4ac   : > { %v2931_v14 = vmul.f32 1.442695, %v2930_v54 }
 0x4ae   : > { %3981 = vpow2.f32 %v2931_v14 }
 0x4b8   : > { %v3982_v4 = vpop.eup %3981 }
 0x4b9   : > { %v2933_v36 = vadd.f32 1.0, %v3982_v4 }
 0x4bb   : > { %3983 = vrcp.f32 %v2933_v36 }
 0x4c5   : > { %v3984_v10 = vpop.eup %3983 }
 0x4c6   : > { %v2939_v42 = vrot.slane %v3984_v10, %v2938_v35 }
 0x4c8   : > { %v2940_v23 = vmul.f32 %v2939_v42, %v2668_v39  ;;  %v2941_v57 = vmul.f32 %v2939_v42, %v2669_v6  ;;  %v2942_v5 = vmul.f32 %v2939_v42, %v2670_v28  ;;  %v2943_v22 = vmul.f32 %v2939_v42, %v2671_v33 }
 0x4c9   : > { %v2944_v27 = vmul.f32 %v2939_v42, %v2672_v46  ;;  %v2945_v13 = vmul.f32 %v2939_v42, %v2673_v26  ;;  %v2946_v54 = vmul.f32 %v2939_v42, %v2674_v25  ;;  %v2947_v17 = vmul.f32 %v2939_v42, %v2675_v30 }
 0x4ca   : > { %v2948_v34 = vmul.f32 %v2939_v42, %v2676_v16  ;;  %v2949_v60 = vmul.f32 %v2939_v42, %v2677_v56  ;;  %v2950_v6 = vmul.f32 %v2939_v42, %v2678_v7  ;;  %v2951_v39 = vmul.f32 %v2939_v42, %v2679_v52  ;;  %2972 = vst.msk [vmem:[%s5770_s17] sm:$0xff] %vm656_vm0, %v2940_v23 }
 0x4cb   : > { %2973 = vst.msk [vmem:[%s5770_s17 + $0x8] sm:$0xff] %vm656_vm0, %v2941_v57  ;;  %2974 = vst.msk [vmem:[%s5770_s17 + $0x10] sm:$0xff] %vm656_vm0, %v2942_v5  ;;  %v2952_v28 = vmul.f32 %v2939_v42, %v2680_v51  ;;  %v2953_v37 = vmul.f32 %v2939_v42, %v2681_v24  ;;  %v2954_v0 = vmul.f32 %v2939_v42, %v2682_v12  ;;  %v5954_v33 = vmax.f32 %v5585_v21, 0.0 }
 0x4cc   : > { %2975 = vst.msk [vmem:[%s5770_s17 + $0x18] sm:$0xff] %vm656_vm0, %v2943_v22  ;;  %2976 = vst.msk [vmem:[%s5770_s17 + $0x20] sm:$0xff] %vm656_vm0, %v2944_v27  ;;  %v2956_v47 = vmul.f32 %v2939_v42, %v5955_v9  ;;  %v5956_v26 = vmax.f32 %v5603_v15, 0.0  ;;  %v2958_v58 = vmul.f32 %v2939_v42, %v5957_v18  ;;  %v5958_v30 = vmax.f32 %v5621_v3, 0.0 }
 0x4cd   : > { %v2955_v46 = vmul.f32 %v2939_v42, %v5954_v33  ;;  %2977 = vst.msk [vmem:[%s5770_s17 + $0x28] sm:$0xff] %vm656_vm0, %v2945_v13  ;;  %2978 = vst.msk [vmem:[%s5770_s17 + $0x30] sm:$0xff] %vm656_vm0, %v2946_v54  ;;  %v2960_v40 = vmul.f32 %v2939_v42, %v5959_v20  ;;  %v5960_v56 = vmax.f32 %v5639_v41, 0.0  ;;  %v2962_v44 = vmul.f32 %v2939_v42, %v5961_v32 }
 0x4ce   : > { %2979 = vst.msk [vmem:[%s5770_s17 + $0x38] sm:$0xff] %vm656_vm0, %v2947_v17  ;;  %v2957_v25 = vmul.f32 %v2939_v42, %v5956_v26  ;;  %v2959_v16 = vmul.f32 %v2939_v42, %v5958_v30  ;;  %2980 = vst.msk [vmem:[%s5770_s17 + $0x40] sm:$0xff] %vm656_vm0, %v2948_v34  ;;  %v5962_v52 = vmax.f32 %v5656_v50, 0.0  ;;  %v2964_v29 = vmul.f32 %v2939_v42, %v5963_v55 }
 0x4cf   : > { %2981 = vst.msk [vmem:[%s5770_s17 + $0x48] sm:$0xff] %vm656_vm0, %v2949_v60  ;;  %2982 = vst.msk [vmem:[%s5770_s17 + $0x50] sm:$0xff] %vm656_vm0, %v2950_v6  ;;  %v2961_v7 = vmul.f32 %v2939_v42, %v5960_v56  ;;  %v5964_v24 = vmax.f32 %v5672_v45, 0.0  ;;  %v5965_v21 = vmax.f32 %v5675_v43, 0.0  ;;  %v5966_v15 = vmax.f32 %v5688_v31, 0.0 }
 0x4d0   : > { %2983 = vst.msk [vmem:[%s5770_s17 + $0x58] sm:$0xff] %vm656_vm0, %v2951_v39  ;;  %v2963_v51 = vmul.f32 %v2939_v42, %v5962_v52  ;;  %2984 = vst.msk [vmem:[%s5770_s17 + $0x60] sm:$0xff] %vm656_vm0, %v2952_v28  ;;  %v5967_v3 = vmax.f32 %v5691_v59, 0.0  ;;  %v5968_v41 = vmax.f32 %v5703_v11, 0.0  ;;  %v2970_v45 = vmul.f32 %v2939_v42, %v2698_v2 }
 0x4d1   : > { %2985 = vst.msk [vmem:[%s5770_s17 + $0x68] sm:$0xff] %vm656_vm0, %v2953_v37  ;;  %2986 = vst.msk [vmem:[%s5770_s17 + $0x70] sm:$0xff] %vm656_vm0, %v2954_v0  ;;  %v2965_v12 = vmul.f32 %v2939_v42, %v5964_v24  ;;  %v2966_v62 = vmul.f32 %v2939_v42, %v5965_v21  ;;  %v2967_v48 = vmul.f32 %v2939_v42, %v5966_v15 }
 0x4d2   : > { %2987 = vst.msk [vmem:[%s5770_s17 + $0x78] sm:$0xff] %vm656_vm0, %v2955_v46  ;;  %2988 = vst.msk [vmem:[%s5770_s17 + $0x80] sm:$0xff] %vm656_vm0, %v2956_v47  ;;  %v2968_v63 = vmul.f32 %v2939_v42, %v5967_v3  ;;  %v2969_v61 = vmul.f32 %v2939_v42, %v5968_v41  ;;  %v2971_v43 = vmul.f32 %v2939_v42, %v2699_v8 }
 0x4d3   : > { %2989 = vst.msk [vmem:[%s5770_s17 + $0x88] sm:$0xff] %vm656_vm0, %v2957_v25  ;;  %2990 = vst.msk [vmem:[%s5770_s17 + $0x90] sm:$0xff] %vm656_vm0, %v2958_v58 }
 0x4d4   : > { %2991 = vst.msk [vmem:[%s5770_s17 + $0x98] sm:$0xff] %vm656_vm0, %v2959_v16  ;;  %2992 = vst.msk [vmem:[%s5770_s17 + $0xa0] sm:$0xff] %vm656_vm0, %v2960_v40 }
 0x4d5   : > { %2993 = vst.msk [vmem:[%s5770_s17 + $0xa8] sm:$0xff] %vm656_vm0, %v2961_v7  ;;  %2994 = vst.msk [vmem:[%s5770_s17 + $0xb0] sm:$0xff] %vm656_vm0, %v2962_v44 }
 0x4d6   : > { %2995 = vst.msk [vmem:[%s5770_s17 + $0xb8] sm:$0xff] %vm656_vm0, %v2963_v51  ;;  %2996 = vst.msk [vmem:[%s5770_s17 + $0xc0] sm:$0xff] %vm656_vm0, %v2964_v29 }
 0x4d7   : > { %2997 = vst.msk [vmem:[%s5770_s17 + $0xc8] sm:$0xff] %vm656_vm0, %v2965_v12  ;;  %2998 = vst.msk [vmem:[%s5770_s17 + $0xd0] sm:$0xff] %vm656_vm0, %v2966_v62 }
 0x4d8   : > { %2999 = vst.msk [vmem:[%s5770_s17 + $0xd8] sm:$0xff] %vm656_vm0, %v2967_v48  ;;  %3000 = vst.msk [vmem:[%s5770_s17 + $0xe0] sm:$0xff] %vm656_vm0, %v2968_v63 }
 0x4d9   : > { %3001 = vst.msk [vmem:[%s5770_s17 + $0xe8] sm:$0xff] %vm656_vm0, %v2969_v61  ;;  %3002 = vst.msk [vmem:[%s5770_s17 + $0xf0] sm:$0xff] %vm656_vm0, %v2970_v45 }
 0x4da   : > { %3003 = vst.msk [vmem:[%s5770_s17 + $0xf8] sm:$0xff] %vm656_vm0, %v2971_v43 }
 0x4db   : > { %3998 = shalt.err (!%p3995_p3)
}
 0x4dc   : > { %s3999_s20 = scalar_lea.hbm %s5849_s13, 4096  ;;  %s4003_s17 = scalar_lea.hbm %s5936_s8, 8192 }
 0x4dd   : > { %p4000_p4 = scmp.ne.s32.totalorder %s5849_s13, %s3999_s20  ;;  %p4004_p9 = scmp.lt.u32.totalorder %s5849_s13, %s5936_s8 }
 0x4de   : > { %p4005_p10 = scmp.lt.u32.totalorder %s4003_s17, %s3999_s20  ;;  %p4007_p12 = scmp.lt.u32.totalorder %s3999_s20, %s5849_s13 }
 0x4df   : > { %p4001_p7 = pnand %p4000_p4, %p4140_p5 }
 0x4e0   : > { %p4006_p11 = por %p4005_p10, %p4004_p9 }
 0x4e1   : > { %p4002_p8 = pneg %p4001_p7 }
 0x4e2   : > { %p4008_p13 = por %p4007_p12, %p4006_p11 }
 0x4e4   : > { %p4009_p0 = pnand %p4008_p13, %p4002_p8 }
 0x4e6   : > { %4012 = shalt.err (!%p4009_p0)
}
 0x4e7   : > { %s4055_s10 = smov 128   ;;  %s4056_s12 = smov 8  }
 0x4e8   : > { %3935 = dma.vmem_to_hbm [thread:$0]  (%p4140_p5), %s5851_s25, 4096, %s5849_s13, %s5887_s18, %s4055_s10, %s4055_s10, %s4056_s12  }
 0x4e9 PF: > { %p3941_p1 = scmp.ge.s32.totalorder %s4047_s30, 2  ;;  %s3033_s24 = sand.u32 1, %s4035_s27  }
 0x4ea   : > { %s3034_s26 = scalar_lea.sflag [#allocation3], %s3033_s24 }
 0x4eb   : > { %p3938_p2 = pnand %p3941_p1, %p4144_p6 }
 0x4ed   : > { %4030 = dma.done.wait (!%p3938_p2), %s3034_s26, 4096  }
 0x4ee   : > { %4032 = vsyncadd (!%p3938_p2), %s3034_s26, 4294963200  ;;  %p18_p3 = scmp.ge.s32.totalorder %s4127_s11, 4   ;;  %s5969_s27 = smov %s4039_s28 }
 0x4ef   : > { %s5970_s28 = smov %s4043_s29  ;;  %s5971_s29 = smov %s4138_s14 }
 0x4f0   : > { %s5972_s30 = smov %s4127_s11  ;;  %20 = sbr.rel (!%p18_p3) target bundleno = 3 (0x3), region = 91 }
 0x4f7   :  { %3039 = vsyncpa [#allocation3], 1 }
 0x4f8   :  { %3041 = vsyncpa [#allocation3 + $0x1], 1 }

// kernel: up_layer_with_attention_forward.4
= control target key start
LH: loop header
LB: loop body
LE: loop exit
PB: predicated region body
PF: predicated region fallthrough
CT: control target
= control target key end

     0   :  { %s6137_s18 = smov 0   ;;  %s8832_s0 = inlined_call_operand.vmem [shape: f32[2,18,18,16], index: 0, kind: input, shape index: {}]   ;;  %s8833_s1 = inlined_call_operand.vmem [shape: f32[2,18,18,32], index: 1, kind: input, shape index: {}]   ;;  %s8834_s2 = inlined_call_operand.vmem [shape: f32[3,144,32], index: 2, kind: input, shape index: {}]   ;;  %s8835_s3 = inlined_call_operand.vmem [shape: f32[1,32], index: 3, kind: input, shape index: {}]   ;;  %s8836_s4 = inlined_call_operand.vmem [shape: f32[1,32], index: 4, kind: input, shape index: {}]   ;;  %s8837_s5 = inlined_call_operand.vmem [shape: f32[2,16,16,32], index: 5, kind: output, shape index: {}]  }
   0x1 LB: > { %s4395_s19 = sadd.s32 4294967295, %s6099_s18   ;;  %p4399_p0 = scmp.ge.s32.totalorder %s6099_s18, 1  ;;  %s6099_s18 = sphi %s6137_s18, %s15_s18  }
   0x2   : > { %p197_p1 = scmp.lt.s32.totalorder %s6099_s18, 3 }
   0x4   : > { %p198_p2 = pnand %p4399_p0, %p197_p1 }
   0x6   : > { %201 = sbr.rel (%p198_p2) target bundleno = 937 (0x3a9), region = 40 }
   0xd   : > { %p230_p3 = scmp.lt.s32.totalorder %s4395_s19, 1  ;;  %s6101_s24 = smov 16   ;;  %vm1077_vm0 = vcmask 130048   ;;  %vm1110_vm1 = vcmask 392192   ;;  %vm1143_vm2 = vcmask 523264   ;;  %vm1176_vm3 = vcmask 785408  }
   0xe   : > { %s6102_s28 = smov 48   ;;  %s6103_s29 = smov 64   ;;  %vm1209_vm4 = vcmask 916480   ;;  %vm4295_vm5 = vcmask 261120  }
   0xf   : > { %s9034_s19 = smov (!%p230_p3, %s4395_s19), 1  ;;  %s6105_s7 = smov 96  }
  0x10   : > { %s5120_s20 = smul.u32 432, %s9034_s19  ;;  %s6106_s6 = smov 112  }
  0x12   : > { %s6153_s23 = scalar_lea.vmem %s8833_s1, %s5120_s20  ;;  %s6204_s27 = scalar_lea.vmem %s8832_s0, %s5120_s20 }
  0x13   : > { %v281_v0 = vld [vmem:[%s6153_s23 + $0x30] sm:$0xff]  ;;  %v282_v1 = vld [vmem:[%s6153_s23 + $0x38] sm:$0xff]  ;;  %v277_v2 = vld [vmem:[%s6153_s23] sm:$0xff] }
  0x14   : > { %v5145_v3 = vpack.i.bf16 %v282_v1, %v281_v0  ;;  %v278_v4 = vld [vmem:[%s6153_s23 + $0x8] sm:$0xff]  ;;  %v284_v6 = vld [vmem:[%s6153_s23 + $0x50] sm:$0xff]  ;;  %v279_v8 = vld [vmem:[%s6153_s23 + $0x18] sm:$0xff] }
  0x15   : > { %v283_v5 = vld [vmem:[%s6153_s23 + $0x48] sm:$0xff]  ;;  %v5135_v7 = vpack.i.bf16 %v278_v4, %v277_v2  ;;  %v280_v9 = vld [vmem:[%s6153_s23 + $0x20] sm:$0xff]  ;;  %v287_v12 = vld [vmem:[%s6153_s23 + $0x78] sm:$0xff] }
  0x16   : > { %5146 = vrot.lane.b32.xlu1 %v5145_v3, %s6101_s24  ;;  %v5150_v10 = vpack.i.bf16 %v284_v6, %v283_v5  ;;  %v5140_v11 = vpack.i.bf16 %v280_v9, %v279_v8  ;;  %v288_v13 = vld [vmem:[%s6153_s23 + $0x80] sm:$0xff]  ;;  %v286_v15 = vld [vmem:[%s6153_s23 + $0x68] sm:$0xff]  ;;  %v292_v19 = vld [vmem:[%s6153_s23 + $0xb0] sm:$0xff] }
  0x17   : > { %5136 = vrot.lane.b32.xlu0 %v5135_v7, %s6101_s24  ;;  %v285_v14 = vld [vmem:[%s6153_s23 + $0x60] sm:$0xff]  ;;  %v5160_v16 = vpack.i.bf16 %v288_v13, %v287_v12  ;;  %v291_v18 = vld [vmem:[%s6153_s23 + $0xa8] sm:$0xff]  ;;  %v289_v20 = vld [vmem:[%s6153_s23 + $0x90] sm:$0xff] }
  0x18   : > { %v5155_v17 = vpack.i.bf16 %v286_v15, %v285_v14  ;;  %v290_v21 = vld [vmem:[%s6153_s23 + $0x98] sm:$0xff]  ;;  %v5170_v22 = vpack.i.bf16 %v292_v19, %v291_v18  ;;  %v296_v25 = vld [vmem:[%s6153_s23 + $0xe0] sm:$0xff]  ;;  %v294_v27 = vld [vmem:[%s6153_s23 + $0xc8] sm:$0xff] }
  0x19   : > { %v5165_v23 = vpack.i.bf16 %v290_v21, %v289_v20  ;;  %v295_v24 = vld [vmem:[%s6153_s23 + $0xd8] sm:$0xff]  ;;  %v293_v26 = vld [vmem:[%s6153_s23 + $0xc0] sm:$0xff]  ;;  %v299_v30 = vld [vmem:[%s6153_s23 + $0x108] sm:$0xff] }
  0x1a   : > { %5151 = vrot.lane.b32.xlu1 %v5150_v10, %s6101_s24  ;;  %v5180_v28 = vpack.i.bf16 %v296_v25, %v295_v24  ;;  %v5175_v29 = vpack.i.bf16 %v294_v27, %v293_v26  ;;  %v300_v31 = vld [vmem:[%s6153_s23 + $0x110] sm:$0xff]  ;;  %v298_v33 = vld [vmem:[%s6153_s23 + $0xf8] sm:$0xff]  ;;  %v304_v37 = vld [vmem:[%s6153_s23 + $0x140] sm:$0xff] }
  0x1b   : > { %5141 = vrot.lane.b32.xlu0 %v5140_v11, %s6101_s24  ;;  %v297_v32 = vld [vmem:[%s6153_s23 + $0xf0] sm:$0xff]  ;;  %v5190_v34 = vpack.i.bf16 %v300_v31, %v299_v30  ;;  %v303_v36 = vld [vmem:[%s6153_s23 + $0x138] sm:$0xff]  ;;  %v301_v38 = vld [vmem:[%s6153_s23 + $0x120] sm:$0xff] }
  0x1c   : > { %v5185_v35 = vpack.i.bf16 %v298_v33, %v297_v32  ;;  %v302_v39 = vld [vmem:[%s6153_s23 + $0x128] sm:$0xff]  ;;  %v5200_v40 = vpack.i.bf16 %v304_v37, %v303_v36  ;;  %v308_v43 = vld [vmem:[%s6153_s23 + $0x170] sm:$0xff]  ;;  %v306_v45 = vld [vmem:[%s6153_s23 + $0x158] sm:$0xff] }
  0x1d   : > { %v5195_v41 = vpack.i.bf16 %v302_v39, %v301_v38  ;;  %v307_v42 = vld [vmem:[%s6153_s23 + $0x168] sm:$0xff]  ;;  %v305_v44 = vld [vmem:[%s6153_s23 + $0x150] sm:$0xff]  ;;  %v311_v48 = vld [vmem:[%s6204_s27 + $0x19] sm:$0xff] }
  0x1e   : > { %5161 = vrot.lane.b32.xlu1 %v5160_v16, %s6101_s24  ;;  %v5210_v46 = vpack.i.bf16 %v308_v43, %v307_v42  ;;  %v5205_v47 = vpack.i.bf16 %v306_v45, %v305_v44  ;;  %v312_v49 = vld [vmem:[%s6204_s27 + $0x21] sm:$0xff]  ;;  %v310_v51 = vld [vmem:[%s6204_s27 + $0x9] sm:$0xff]  ;;  %v316_v55 = vld [vmem:[%s6204_s27 + $0x51] sm:$0xff] }
  0x1f   : > { %5156 = vrot.lane.b32.xlu0 %v5155_v17, %s6101_s24  ;;  %v309_v50 = vld [vmem:[%s6204_s27 + $0x1] sm:$0xff]  ;;  %v5220_v52 = vpack.i.bf16 %v312_v49, %v311_v48  ;;  %v315_v54 = vld [vmem:[%s6204_s27 + $0x49] sm:$0xff]  ;;  %v313_v56 = vld [vmem:[%s6204_s27 + $0x31] sm:$0xff] }
  0x20   : > { %v5215_v53 = vpack.i.bf16 %v310_v51, %v309_v50  ;;  %v314_v57 = vld [vmem:[%s6204_s27 + $0x39] sm:$0xff]  ;;  %v5230_v58 = vpack.i.bf16 %v316_v55, %v315_v54  ;;  %v320_v61 = vld [vmem:[%s6204_s27 + $0x81] sm:$0xff]  ;;  %v318_v63 = vld [vmem:[%s6204_s27 + $0x69] sm:$0xff] }
  0x21   : > { %v5225_v59 = vpack.i.bf16 %v314_v57, %v313_v56  ;;  %v319_v60 = vld [vmem:[%s6204_s27 + $0x79] sm:$0xff]  ;;  %v317_v62 = vld [vmem:[%s6204_s27 + $0x61] sm:$0xff]  ;;  %v323_v2 = vld [vmem:[%s6204_s27 + $0xa9] sm:$0xff] }
  0x22   : > { %5171 = vrot.lane.b32.xlu1 %v5170_v22, %s6101_s24  ;;  %v5240_v0 = vpack.i.bf16 %v320_v61, %v319_v60  ;;  %v5235_v1 = vpack.i.bf16 %v318_v63, %v317_v62  ;;  %v324_v3 = vld [vmem:[%s6204_s27 + $0xb1] sm:$0xff]  ;;  %v322_v5 = vld [vmem:[%s6204_s27 + $0x99] sm:$0xff]  ;;  %v328_v9 = vld [vmem:[%s6204_s27 + $0xe1] sm:$0xff] }
  0x23   : > { %5166 = vrot.lane.b32.xlu0 %v5165_v23, %s6101_s24  ;;  %v321_v4 = vld [vmem:[%s6204_s27 + $0x91] sm:$0xff]  ;;  %v5250_v6 = vpack.i.bf16 %v324_v3, %v323_v2  ;;  %v327_v8 = vld [vmem:[%s6204_s27 + $0xd9] sm:$0xff]  ;;  %v325_v10 = vld [vmem:[%s6204_s27 + $0xc1] sm:$0xff] }
  0x24   : > { %v5245_v7 = vpack.i.bf16 %v322_v5, %v321_v4  ;;  %v326_v11 = vld [vmem:[%s6204_s27 + $0xc9] sm:$0xff]  ;;  %v5260_v12 = vpack.i.bf16 %v328_v9, %v327_v8  ;;  %v332_v15 = vld [vmem:[%s6204_s27 + $0x111] sm:$0xff]  ;;  %v330_v17 = vld [vmem:[%s6204_s27 + $0xf9] sm:$0xff]  ;;  %v8838_v9 = vmov 0.0|0.0  }
  0x25   : > { %v5255_v13 = vpack.i.bf16 %v326_v11, %v325_v10  ;;  %v331_v14 = vld [vmem:[%s6204_s27 + $0x109] sm:$0xff]  ;;  %v329_v16 = vld [vmem:[%s6204_s27 + $0xf1] sm:$0xff]  ;;  %v335_v20 = vld [vmem:[%s6204_s27 + $0x139] sm:$0xff]  ;;  %4952 = vmatprep.subr.bf16.mxu0 %v8838_v9  ;;  %4925 = vmatprep.subr.bf16.mxu1 %v8838_v9 }
  0x26   : > { %5181 = vrot.lane.b32.xlu1 %v5180_v28, %s6101_s24  ;;  %v5270_v18 = vpack.i.bf16 %v332_v15, %v331_v14  ;;  %v5265_v19 = vpack.i.bf16 %v330_v17, %v329_v16  ;;  %v336_v21 = vld [vmem:[%s6204_s27 + $0x141] sm:$0xff]  ;;  %v334_v23 = vld [vmem:[%s6204_s27 + $0x129] sm:$0xff]  ;;  %v340_v27 = vld [vmem:[%s6204_s27 + $0x171] sm:$0xff] }
  0x27   : > { %5176 = vrot.lane.b32.xlu0 %v5175_v29, %s6101_s24  ;;  %v333_v22 = vld [vmem:[%s6204_s27 + $0x121] sm:$0xff]  ;;  %v5280_v24 = vpack.i.bf16 %v336_v21, %v335_v20  ;;  %v339_v26 = vld [vmem:[%s6204_s27 + $0x169] sm:$0xff]  ;;  %v337_v28 = vld [vmem:[%s6204_s27 + $0x151] sm:$0xff] }
  0x28   : > { %v5275_v25 = vpack.i.bf16 %v334_v23, %v333_v22  ;;  %v338_v29 = vld [vmem:[%s6204_s27 + $0x159] sm:$0xff]  ;;  %v5290_v30 = vpack.i.bf16 %v340_v27, %v339_v26  ;;  %v344_v33 = vld [vmem:[%s6153_s23 + $0x21] sm:$0xff]  ;;  %v347_v38 = vld [vmem:[%s6153_s23 + $0x49] sm:$0xff] }
  0x29   : > { %v5285_v31 = vpack.i.bf16 %v338_v29, %v337_v28  ;;  %v343_v32 = vld [vmem:[%s6153_s23 + $0x19] sm:$0xff]  ;;  %v348_v39 = vld [vmem:[%s6153_s23 + $0x51] sm:$0xff]  ;;  %v352_v45 = vld [vmem:[%s6153_s23 + $0x81] sm:$0xff] }
  0x2a   : > { %5191 = vrot.lane.b32.xlu1 %v5190_v34, %s6101_s24  ;;  %v341_v34 = vld [vmem:[%s6153_s23 + $0x1] sm:$0xff]  ;;  %v5300_v36 = vpack.i.bf16 %v344_v33, %v343_v32  ;;  %v5310_v42 = vpack.i.bf16 %v348_v39, %v347_v38  ;;  %v351_v44 = vld [vmem:[%s6153_s23 + $0x79] sm:$0xff]  ;;  %v355_v50 = vld [vmem:[%s6153_s23 + $0xa9] sm:$0xff] }
  0x2b   : > { %5186 = vrot.lane.b32.xlu0 %v5185_v35, %s6101_s24  ;;  %v342_v35 = vld [vmem:[%s6153_s23 + $0x9] sm:$0xff]  ;;  %v5320_v48 = vpack.i.bf16 %v352_v45, %v351_v44  ;;  %v356_v51 = vld [vmem:[%s6153_s23 + $0xb1] sm:$0xff]  ;;  %v359_v56 = vld [vmem:[%s6153_s23 + $0xd9] sm:$0xff] }
  0x2c   : > { %v5295_v37 = vpack.i.bf16 %v342_v35, %v341_v34  ;;  %v5330_v54 = vpack.i.bf16 %v356_v51, %v355_v50  ;;  %v360_v57 = vld [vmem:[%s6153_s23 + $0xe1] sm:$0xff]  ;;  %v363_v62 = vld [vmem:[%s6153_s23 + $0x109] sm:$0xff]  ;;  %v364_v63 = vld [vmem:[%s6153_s23 + $0x111] sm:$0xff] }
  0x2d   : > { %v5340_v60 = vpack.i.bf16 %v360_v57, %v359_v56  ;;  %v1242_v2 = vld [vmem:[%s8834_s2] sm:$0xff]  ;;  %v1243_v3 = vld [vmem:[%s8834_s2 + $0x8] sm:$0xff]  ;;  %v5350_v4 = vpack.i.bf16 %v364_v63, %v363_v62 }
  0x2e   : > { %5201 = vrot.lane.b32.xlu1 %v5200_v40, %s6101_s24  ;;  %v345_v40 = vld [vmem:[%s6153_s23 + $0x31] sm:$0xff]  ;;  %v6297_v5 = vpack.c.bf16 %v1243_v3, %v1242_v2  ;;  %v368_v8 = vld [vmem:[%s6153_s23 + $0x141] sm:$0xff]  ;;  %v366_v11 = vld [vmem:[%s6153_s23 + $0x129] sm:$0xff] }
  0x2f   : > { %5196 = vrot.lane.b32.xlu0 %v5195_v41, %s6101_s24  ;;  %v346_v41 = vld [vmem:[%s6153_s23 + $0x39] sm:$0xff]  ;;  %v365_v10 = vld [vmem:[%s6153_s23 + $0x121] sm:$0xff]  ;;  %v371_v17 = vld [vmem:[%s6153_s23 + $0x169] sm:$0xff] }
  0x30   : > { %v5305_v43 = vpack.i.bf16 %v346_v41, %v345_v40  ;;  %4954 = vmatpush1.bf16.msra.mxu0 %v6297_v5  ;;  %v5355_v16 = vpack.i.bf16 %v366_v11, %v365_v10  ;;  %v370_v20 = vld [vmem:[%s6153_s23 + $0x159] sm:$0xff]  ;;  %v1247_v22 = vld [vmem:[%s8834_s2 + $0x28] sm:$0xff]  ;;  %v1256_v2 = vld [vmem:[%s8834_s2 + $0x70] sm:$0xff] }
  0x31   : > { %4955 = vmatprep.subr.bf16.mxu0 %v8838_v9  ;;  %v1246_v21 = vld [vmem:[%s8834_s2 + $0x20] sm:$0xff]  ;;  %v374_v29 = vld [vmem:[%s6204_s27 + $0xa] sm:$0xff]  ;;  %v1257_v3 = vld [vmem:[%s8834_s2 + $0x78] sm:$0xff] }
  0x32   : > { %5211 = vrot.lane.b32.xlu1 %v5210_v46, %s6101_s24  ;;  %v349_v46 = vld [vmem:[%s6153_s23 + $0x61] sm:$0xff]  ;;  %v379_v35 = vld [vmem:[%s6204_s27 + $0x4a] sm:$0xff]  ;;  %v396_v10 = vld [vmem:[%s6204_s27 + $0x112] sm:$0xff] }
  0x33   : > { %5206 = vrot.lane.b32.xlu0 %v5205_v47, %s6101_s24  ;;  %v350_v47 = vld [vmem:[%s6153_s23 + $0x69] sm:$0xff]  ;;  %v375_v26 = vld [vmem:[%s6204_s27 + $0x1a] sm:$0xff]  ;;  %v393_v11 = vld [vmem:[%s6204_s27 + $0xf2] sm:$0xff] }
  0x34   : > { %v5315_v49 = vpack.i.bf16 %v350_v47, %v349_v46  ;;  %v376_v27 = vld [vmem:[%s6204_s27 + $0x22] sm:$0xff]  ;;  %v378_v38 = vld [vmem:[%s6204_s27 + $0x3a] sm:$0xff]  ;;  %v382_v47 = vld [vmem:[%s6204_s27 + $0x6a] sm:$0xff] }
  0x35   : > { %v373_v28 = vld [vmem:[%s6204_s27 + $0x2] sm:$0xff]  ;;  %v5380_v32 = vpack.i.bf16 %v376_v27, %v375_v26  ;;  %v383_v44 = vld [vmem:[%s6204_s27 + $0x7a] sm:$0xff] }
  0x36   : > { %5221 = vrot.lane.b32.xlu1 %v5220_v52, %s6102_s28  ;;  %v353_v52 = vld [vmem:[%s6153_s23 + $0x91] sm:$0xff]  ;;  %v5375_v34 = vpack.i.bf16 %v374_v29, %v373_v28  ;;  %v1250_v39 = vld [vmem:[%s8834_s2 + $0x40] sm:$0xff]  ;;  %v1251_v40 = vld [vmem:[%s8834_s2 + $0x48] sm:$0xff] }
  0x37   : > { %5216 = vrot.lane.b32.xlu0 %v5215_v53, %s6102_s28  ;;  %v354_v53 = vld [vmem:[%s6153_s23 + $0x99] sm:$0xff]  ;;  %v384_v45 = vld [vmem:[%s6204_s27 + $0x82] sm:$0xff]  ;;  %v403_v28 = vld [vmem:[%s6204_s27 + $0x16a] sm:$0xff] }
  0x38   : > { %v5325_v55 = vpack.i.bf16 %v354_v53, %v353_v52  ;;  %v381_v46 = vld [vmem:[%s6204_s27 + $0x62] sm:$0xff]  ;;  %v5400_v50 = vpack.i.bf16 %v384_v45, %v383_v44  ;;  %v387_v53 = vld [vmem:[%s6204_s27 + $0xaa] sm:$0xff]  ;;  %v386_v56 = vld [vmem:[%s6204_s27 + $0x9a] sm:$0xff] }
  0x39   : > { %v5395_v52 = vpack.i.bf16 %v382_v47, %v381_v46  ;;  %v1254_v57 = vld [vmem:[%s8834_s2 + $0x60] sm:$0xff]  ;;  %v404_v29 = vld [vmem:[%s6204_s27 + $0x172] sm:$0xff] }
  0x3a   : > { %5231 = vrot.lane.b32.xlu1 %v5230_v58, %s6102_s28  ;;  %v357_v58 = vld [vmem:[%s6153_s23 + $0xc1] sm:$0xff] }
  0x3b   : > { %5226 = vrot.lane.b32.xlu0 %v5225_v59, %s6102_s28  ;;  %v358_v59 = vld [vmem:[%s6153_s23 + $0xc9] sm:$0xff]  ;;  %v391_v62 = vld [vmem:[%s6204_s27 + $0xda] sm:$0xff] }
  0x3c   : > { %v5335_v61 = vpack.i.bf16 %v358_v59, %v357_v58  ;;  %v1255_v58 = vld [vmem:[%s8834_s2 + $0x68] sm:$0xff]  ;;  %v407_v46 = vld [vmem:[%s6153_s23 + $0x1a] sm:$0xff] }
  0x3d   : > { %v392_v63 = vld [vmem:[%s6204_s27 + $0xe2] sm:$0xff] }
  0x3e   : > { %5241 = vrot.lane.b32.xlu1 %v5240_v0, %s6102_s28  ;;  %v361_v0 = vld [vmem:[%s6153_s23 + $0xf1] sm:$0xff]  ;;  %v408_v44 = vld [vmem:[%s6153_s23 + $0x22] sm:$0xff] }
  0x3f   : > { %5236 = vrot.lane.b32.xlu0 %v5235_v1, %s6102_s28  ;;  %v362_v1 = vld [vmem:[%s6153_s23 + $0xf9] sm:$0xff] }
  0x42   : > { %5251 = vrot.lane.b32.xlu1 %v5250_v6, %s6102_s28  ;;  %v5345_v6 = vpack.i.bf16 %v362_v1, %v361_v0  ;;  %v389_v0 = vld [vmem:[%s6204_s27 + $0xc2] sm:$0xff]  ;;  %v390_v1 = vld [vmem:[%s6204_s27 + $0xca] sm:$0xff] }
  0x43   : > { %5246 = vrot.lane.b32.xlu0 %v5245_v7, %s6102_s28  ;;  %v367_v7 = vld [vmem:[%s6153_s23 + $0x139] sm:$0xff] }
  0x44   : > { %v5360_v14 = vpack.i.bf16 %v368_v8, %v367_v7  ;;  %v5415_v7 = vpack.i.bf16 %v390_v1, %v389_v0  ;;  %v395_v8 = vld [vmem:[%s6204_s27 + $0x10a] sm:$0xff]  ;;  %v415_v0 = vld [vmem:[%s6153_s23 + $0x7a] sm:$0xff] }
  0x46   : > { %5261 = vrot.lane.b32.xlu1 %v5260_v12, %s6102_s28  ;;  %v1244_v12 = vld [vmem:[%s8834_s2 + $0x10] sm:$0xff] }
  0x47   : > { %5256 = vrot.lane.b32.xlu0 %v5255_v13, %s6102_s28  ;;  %v1245_v13 = vld [vmem:[%s8834_s2 + $0x18] sm:$0xff] }
  0x48   : > { %v6315_v15 = vpack.c.bf16 %v1245_v13, %v1244_v12  ;;  %v394_v12 = vld [vmem:[%s6204_s27 + $0xfa] sm:$0xff] }
  0x49   : > { %v1258_v13 = vld [vmem:[%s8834_s2 + $0x80] sm:$0xff] }
  0x4a   : > { %5271 = vrot.lane.b32.xlu1 %v5270_v18, %s6102_s28  ;;  %v372_v18 = vld [vmem:[%s6153_s23 + $0x171] sm:$0xff]  ;;  %4957 = vmatpush1.bf16.msra.mxu0 %v6315_v15 }
  0x4b   : > { %5266 = vrot.lane.b32.xlu0 %v5265_v19, %s6102_s28  ;;  %v369_v19 = vld [vmem:[%s6153_s23 + $0x151] sm:$0xff]  ;;  %4958 = vmatprep.subr.bf16.mxu0 %v8838_v9  ;;  %v5370_v23 = vpack.i.bf16 %v372_v18, %v371_v17  ;;  %v5425_v18 = vpack.i.bf16 %v394_v12, %v393_v11 }
  0x4c   : > { %v419_v11 = vld [vmem:[%s6153_s23 + $0xaa] sm:$0xff] }
  0x4e   : > { %5281 = vrot.lane.b32.xlu1 %v5280_v24, %s6102_s28  ;;  %v6331_v24 = vpack.c.bf16 %v1247_v22, %v1246_v21  ;;  %v397_v22 = vld [vmem:[%s6204_s27 + $0x122] sm:$0xff] }
  0x4f   : > { %5276 = vrot.lane.b32.xlu0 %v5275_v25, %s6102_s28  ;;  %v5365_v25 = vpack.i.bf16 %v370_v20, %v369_v19  ;;  %v399_v19 = vld [vmem:[%s6204_s27 + $0x13a] sm:$0xff]  ;;  %v400_v20 = vld [vmem:[%s6204_s27 + $0x142] sm:$0xff] }
  0x50   : > { %4960 = vmatpush1.bf16.msra.mxu0 %v6331_v24  ;;  %v5440_v26 = vpack.i.bf16 %v400_v20, %v399_v19  ;;  %v424_v19 = vld [vmem:[%s6153_s23 + $0xe2] sm:$0xff] }
  0x51   : > { %4961 = vmatprep.subr.bf16.mxu0 %v8838_v9 }
  0x52   : > { %5291 = vrot.lane.b32.xlu1 %v5290_v30, %s6102_s28  ;;  %v1248_v30 = vld [vmem:[%s8834_s2 + $0x30] sm:$0xff] }
  0x53   : > { %5286 = vrot.lane.b32.xlu0 %v5285_v31, %s6102_s28  ;;  %v1249_v31 = vld [vmem:[%s8834_s2 + $0x38] sm:$0xff] }
  0x54   : > { %v6347_v33 = vpack.c.bf16 %v1249_v31, %v1248_v30  ;;  %v401_v31 = vld [vmem:[%s6204_s27 + $0x152] sm:$0xff] }
  0x56   : > { %5301 = vrot.lane.b32.xlu1 %v5300_v36, %s6103_s29  ;;  %v380_v36 = vld [vmem:[%s6204_s27 + $0x52] sm:$0xff]  ;;  %4963 = vmatpush1.bf16.msra.mxu0 %v6347_v33 }
  0x57   : > { %5296 = vrot.lane.b32.xlu0 %v5295_v37, %s6103_s29  ;;  %v377_v37 = vld [vmem:[%s6204_s27 + $0x32] sm:$0xff]  ;;  %4964 = vmatprep.subr.bf16.mxu0 %v8838_v9  ;;  %v5390_v41 = vpack.i.bf16 %v380_v36, %v379_v35  ;;  %v5450_v35 = vpack.i.bf16 %v404_v29, %v403_v28 }
  0x58   : > { %v425_v28 = vld [vmem:[%s6153_s23 + $0xf2] sm:$0xff] }
  0x5a   : > { %5311 = vrot.lane.b32.xlu1 %v5310_v42, %s6103_s29  ;;  %v6363_v42 = vpack.c.bf16 %v1251_v40, %v1250_v39  ;;  %v406_v39 = vld [vmem:[%s6153_s23 + $0xa] sm:$0xff] }
  0x5b   : > { %5306 = vrot.lane.b32.xlu0 %v5305_v43, %s6103_s29  ;;  %v5385_v43 = vpack.i.bf16 %v378_v38, %v377_v37 }
  0x5c   : > { %4966 = vmatpush1.bf16.msra.mxu0 %v6363_v42 }
  0x5d   : > { %4967 = vmatprep.subr.bf16.mxu0 %v8838_v9 }
  0x5e   : > { %5321 = vrot.lane.b32.xlu1 %v5320_v48, %s6103_s29  ;;  %v1252_v48 = vld [vmem:[%s8834_s2 + $0x50] sm:$0xff] }
  0x5f   : > { %5316 = vrot.lane.b32.xlu0 %v5315_v49, %s6103_s29  ;;  %v1253_v49 = vld [vmem:[%s8834_s2 + $0x58] sm:$0xff] }
  0x60   : > { %v6379_v51 = vpack.c.bf16 %v1253_v49, %v1252_v48  ;;  %v410_v48 = vld [vmem:[%s6153_s23 + $0x3a] sm:$0xff] }
  0x62   : > { %5331 = vrot.lane.b32.xlu1 %v5330_v54, %s6103_s29  ;;  %8904 = vst [vmem:[#allocation2_spill] sm:$0xff] %v6379_v51  ;;  %v388_v54 = vld [vmem:[%s6204_s27 + $0xb2] sm:$0xff]  ;;  %4969 = vmatpush1.bf16.msra.mxu0 %v6379_v51 }
  0x63   : > { %5326 = vrot.lane.b32.xlu0 %v5325_v55, %s6103_s29  ;;  %v385_v55 = vld [vmem:[%s6204_s27 + $0x92] sm:$0xff]  ;;  %4970 = vmatprep.subr.bf16.mxu0 %v8838_v9  ;;  %v5410_v59 = vpack.i.bf16 %v388_v54, %v387_v53 }
  0x64   : > { %v412_v53 = vld [vmem:[%s6153_s23 + $0x52] sm:$0xff] }
  0x66   : > { %5341 = vrot.lane.b32.xlu1 %v5340_v60, %s6103_s29  ;;  %v6395_v60 = vpack.c.bf16 %v1255_v58, %v1254_v57  ;;  %v414_v57 = vld [vmem:[%s6153_s23 + $0x6a] sm:$0xff] }
  0x67   : > { %5336 = vrot.lane.b32.xlu0 %v5335_v61, %s6103_s29  ;;  %v5405_v61 = vpack.i.bf16 %v386_v56, %v385_v55  ;;  %v411_v55 = vld [vmem:[%s6153_s23 + $0x4a] sm:$0xff] }
  0x68   : > { %8905 = vst [vmem:[#allocation3_spill] sm:$0xff] %v6395_v60  ;;  %4972 = vmatpush1.bf16.msra.mxu0 %v6395_v60 }
  0x69   : > { %4973 = vmatprep.subr.bf16.mxu0 %v8838_v9 }
  0x6a   : > { %5351 = vrot.lane.b32.xlu1 %v5350_v4, %s6103_s29  ;;  %v5420_v4 = vpack.i.bf16 %v392_v63, %v391_v62  ;;  %v416_v62 = vld [vmem:[%s6153_s23 + $0x82] sm:$0xff] }
  0x6b   : > { %5346 = vrot.lane.b32.xlu0 %v5345_v6, %s6103_s29  ;;  %v6411_v6 = vpack.c.bf16 %v1257_v3, %v1256_v2  ;;  %v418_v2 = vld [vmem:[%s6153_s23 + $0x9a] sm:$0xff] }
  0x6d   : > { %8906 = vst [vmem:[#allocation4_spill] sm:$0xff] %v6411_v6  ;;  %4975 = vmatpush1.bf16.msra.mxu0 %v6411_v6  ;;  %v4495_v6 = vld [vmem:[%s6204_s27 + $0x159] sm:$0xff] }
  0x6e   : > { %5361 = vrot.lane.b32.xlu1 %v5360_v14, %s6103_s29  ;;  %4976 = vmatprep.subr.bf16.mxu0 %v8838_v9  ;;  %v1259_v14 = vld [vmem:[%s8834_s2 + $0x88] sm:$0xff] }
  0x6f   : > { %5356 = vrot.lane.b32.xlu0 %v5355_v16, %s6103_s29  ;;  %v5430_v16 = vpack.i.bf16 %v396_v10, %v395_v8  ;;  %v6427_v17 = vpack.c.bf16 %v1259_v14, %v1258_v13  ;;  %v420_v8 = vld [vmem:[%s6153_s23 + $0xb2] sm:$0xff]  ;;  %v422_v13 = vld [vmem:[%s6153_s23 + $0xca] sm:$0xff] }
  0x71   : > { %8907 = vst [vmem:[#allocation5_spill] sm:$0xff] %v6427_v17  ;;  %4978 = vmatpush1.bf16.msra.mxu0 %v6427_v17  ;;  %v4494_v17 = vld [vmem:[%s6204_s27 + $0x151] sm:$0xff] }
  0x72   : > { %5371 = vrot.lane.b32.xlu1 %v5370_v23, %s6103_s29  ;;  %v398_v23 = vld [vmem:[%s6204_s27 + $0x12a] sm:$0xff]  ;;  %4979 = vmatprep.subr.bf16.mxu0 %v8838_v9 }
  0x73   : > { %5366 = vrot.lane.b32.xlu0 %v5365_v25, %s6103_s29  ;;  %v5435_v27 = vpack.i.bf16 %v398_v23, %v397_v22  ;;  %v423_v22 = vld [vmem:[%s6153_s23 + $0xda] sm:$0xff] }
  0x76   : > { %5381 = vrot.lane.b32.xlu1 %v5380_v32, %s6105_s7  ;;  %v402_v32 = vld [vmem:[%s6204_s27 + $0x15a] sm:$0xff] }
  0x77   : > { %5376 = vrot.lane.b32.xlu0 %v5375_v34, %s6105_s7  ;;  %v5445_v36 = vpack.i.bf16 %v402_v32, %v401_v31  ;;  %v428_v31 = vld [vmem:[%s6153_s23 + $0x112] sm:$0xff] }
  0x7a   : > { %5391 = vrot.lane.b32.xlu1 %v5390_v41, %s6105_s7  ;;  %v405_v41 = vld [vmem:[%s6153_s23 + $0x2] sm:$0xff] }
  0x7b   : > { %5386 = vrot.lane.b32.xlu0 %v5385_v43, %s6105_s7 }
  0x7e   : > { %5401 = vrot.lane.b32.xlu1 %v5400_v50, %s6105_s7  ;;  %v409_v50 = vld [vmem:[%s6153_s23 + $0x32] sm:$0xff] }
  0x7f   : > { %5396 = vrot.lane.b32.xlu0 %v5395_v52, %s6105_s7 }
  0x82   : > { %5411 = vrot.lane.b32.xlu1 %v5410_v59, %s6105_s7  ;;  %v413_v59 = vld [vmem:[%s6153_s23 + $0x62] sm:$0xff] }
  0x83   : > { %5406 = vrot.lane.b32.xlu0 %v5405_v61, %s6105_s7 }
  0x86   : > { %5421 = vrot.lane.b32.xlu1 %v5420_v4, %s6105_s7  ;;  %v417_v4 = vld [vmem:[%s6153_s23 + $0x92] sm:$0xff] }
  0x87   : > { %5416 = vrot.lane.b32.xlu0 %v5415_v7, %s6105_s7 }
  0x88   : > { %v6432_v21 = vpop.permute.xlu1 %5146 }
  0x89   : > { %v6437_v25 = vpop.permute.xlu0 %5136 }
  0x8a   : > { %5431 = vrot.lane.b32.xlu1 %v5430_v16, %s6105_s7  ;;  %v421_v16 = vld [vmem:[%s6153_s23 + $0xc2] sm:$0xff] }
  0x8b   : > { %5426 = vrot.lane.b32.xlu0 %v5425_v18, %s6105_s7 }
  0x8c   : > { %v6444_v30 = vpop.permute.xlu1 %5151 }
  0x8d   : > { %v6448_v34 = vpop.permute.xlu0 %5141 }
  0x8e   : > { %5441 = vrot.lane.b32.xlu1 %v5440_v26, %s6105_s7  ;;  %v426_v26 = vld [vmem:[%s6153_s23 + $0xfa] sm:$0xff] }
  0x8f   : > { %5436 = vrot.lane.b32.xlu0 %v5435_v27, %s6105_s7 }
  0x90   : > { %v6452_v37 = vpop.permute.xlu1 %5161 }
  0x91   : > { %v6454_v38 = vpop.permute.xlu0 %5156 }
  0x92   : > { %5451 = vrot.lane.b32.xlu1 %v5450_v35, %s6105_s7  ;;  %v427_v35 = vld [vmem:[%s6153_s23 + $0x10a] sm:$0xff] }
  0x93   : > { %5446 = vrot.lane.b32.xlu0 %v5445_v36, %s6105_s7 }
  0x94   : > { %v6459_v40 = vpop.permute.xlu1 %5171 }
  0x95   : > { %v6462_v43 = vpop.permute.xlu0 %5166 }
  0x96   : > { %983 = vrot.lane.b32.xlu1 %v406_v39, %s6106_s6  ;;  %v430_v39 = vld [vmem:[%s6153_s23 + $0x12a] sm:$0xff] }
  0x97   : > { %981 = vrot.lane.b32.xlu0 %v405_v41, %s6106_s6 }
  0x98   : > { %v6467_v45 = vpop.permute.xlu1 %5181 }
  0x99   : > { %8908 = vst [vmem:[#allocation6_spill] sm:$0xff] %v6467_v45  ;;  %v6470_v47 = vpop.permute.xlu0 %5176 }
  0x9a   : > { %8909 = vst [vmem:[#allocation7_spill] sm:$0xff] %v6470_v47  ;;  %987 = vrot.lane.b32.xlu1 %v408_v44, %s6106_s6  ;;  %v429_v44 = vld [vmem:[%s6153_s23 + $0x122] sm:$0xff]  ;;  %v4489_v47 = vld [vmem:[%s6204_s27 + $0x111] sm:$0xff] }
  0x9b   : > { %985 = vrot.lane.b32.xlu0 %v407_v46, %s6106_s6 }
  0x9c   : > { %v6475_v49 = vpop.permute.xlu1 %5191 }
  0x9d   : > { %8910 = vst [vmem:[#allocation8_spill] sm:$0xff] %v6475_v49  ;;  %v6478_v52 = vpop.permute.xlu0 %5186 }
  0x9e   : > { %8911 = vst [vmem:[#allocation9_spill] sm:$0xff] %v6478_v52  ;;  %991 = vrot.lane.b32.xlu1 %v410_v48, %s6106_s6  ;;  %v432_v48 = vld [vmem:[%s6153_s23 + $0x142] sm:$0xff] }
  0x9f   : > { %989 = vrot.lane.b32.xlu0 %v409_v50, %s6106_s6 }
  0xa0   : > { %v6483_v54 = vpop.permute.xlu1 %5201 }
  0xa1   : > { %8912 = vst [vmem:[#allocation10_spill] sm:$0xff] %v6483_v54  ;;  %v6486_v56 = vpop.permute.xlu0 %5196 }
  0xa2   : > { %8913 = vst [vmem:[#allocation11_spill] sm:$0xff] %v6486_v56  ;;  %995 = vrot.lane.b32.xlu1 %v412_v53, %s6106_s6  ;;  %v431_v53 = vld [vmem:[%s6153_s23 + $0x13a] sm:$0xff] }
  0xa3   : > { %993 = vrot.lane.b32.xlu0 %v411_v55, %s6106_s6 }
  0xa4   : > { %v6491_v58 = vpop.permute.xlu1 %5211 }
  0xa5   : > { %8914 = vst [vmem:[#allocation12_spill] sm:$0xff] %v6491_v58  ;;  %v6494_v61 = vpop.permute.xlu0 %5206 }
  0xa6   : > { %8915 = vst [vmem:[#allocation13_spill] sm:$0xff] %v6494_v61  ;;  %999 = vrot.lane.b32.xlu1 %v414_v57, %s6106_s6  ;;  %v434_v57 = vld [vmem:[%s6153_s23 + $0x15a] sm:$0xff] }
  0xa7   : > { %997 = vrot.lane.b32.xlu0 %v413_v59, %s6106_s6 }
  0xa8   : > { %v6499_v63 = vpop.permute.xlu1 %5221 }
  0xa9   : > { %v6502_v1 = vpop.permute.xlu0 %5216 }
  0xaa   : > { %1003 = vrot.lane.b32.xlu1 %v416_v62, %s6106_s6  ;;  %v433_v62 = vld [vmem:[%s6153_s23 + $0x152] sm:$0xff] }
  0xab   : > { %1001 = vrot.lane.b32.xlu0 %v415_v0, %s6106_s6 }
  0xac   : > { %v6507_v3 = vpop.permute.xlu1 %5231 }
  0xad   : > { %v6510_v7 = vpop.permute.xlu0 %5226 }
  0xae   : > { %1007 = vrot.lane.b32.xlu1 %v418_v2, %s6106_s6  ;;  %v436_v2 = vld [vmem:[%s6153_s23 + $0x172] sm:$0xff] }
  0xaf   : > { %1005 = vrot.lane.b32.xlu0 %v417_v4, %s6106_s6  ;;  %v4438_v4 = vld [vmem:[%s6153_s23 + $0x30] sm:$0xff] }
  0xb0   : > { %v6515_v10 = vpop.permute.xlu1 %5241 }
  0xb1   : > { %v6518_v12 = vpop.permute.xlu0 %5236 }
  0xb2   : > { %1011 = vrot.lane.b32.xlu1 %v420_v8, %s6106_s6  ;;  %v4439_v8 = vld [vmem:[%s6153_s23 + $0x38] sm:$0xff] }
  0xb3   : > { %1009 = vrot.lane.b32.xlu0 %v419_v11, %s6106_s6 }
  0xb4   : > { %v6523_v14 = vpop.permute.xlu1 %5251 }
  0xb5   : > { %v6526_v18 = vpop.permute.xlu0 %5246 }
  0xb6   : > { %1015 = vrot.lane.b32.xlu1 %v422_v13, %s6106_s6  ;;  %v435_v13 = vld [vmem:[%s6153_s23 + $0x16a] sm:$0xff] }
  0xb7   : > { %1013 = vrot.lane.b32.xlu0 %v421_v16, %s6106_s6  ;;  %v4436_v16 = vld [vmem:[%s6153_s23 + $0x18] sm:$0xff] }
  0xb8   : > { %v6531_v20 = vpop.permute.xlu1 %5261 }
  0xb9   : > { %8916 = vst [vmem:[#allocation14_spill] sm:$0xff] %v6531_v20  ;;  %v6534_v23 = vpop.permute.xlu0 %5256  ;;  %v4485_v20 = vld [vmem:[%s6204_s27 + $0xe1] sm:$0xff] }
  0xba   : > { %8917 = vst [vmem:[#allocation15_spill] sm:$0xff] %v6534_v23  ;;  %1019 = vrot.lane.b32.xlu1 %v424_v19, %s6106_s6  ;;  %v4437_v19 = vld [vmem:[%s6153_s23 + $0x20] sm:$0xff]  ;;  %v4488_v23 = vld [vmem:[%s6204_s27 + $0x109] sm:$0xff] }
  0xbb   : > { %1017 = vrot.lane.b32.xlu0 %v423_v22, %s6106_s6 }
  0xbc   : > { %v6539_v27 = vpop.permute.xlu1 %5271 }
  0xbd   : > { %8918 = vst [vmem:[#allocation16_spill] sm:$0xff] %v6539_v27  ;;  %v6542_v29 = vpop.permute.xlu0 %5266  ;;  %v4477_v27 = vld [vmem:[%s6204_s27 + $0x81] sm:$0xff] }
  0xbe   : > { %8919 = vst [vmem:[#allocation17_spill] sm:$0xff] %v6542_v29  ;;  %1023 = vrot.lane.b32.xlu1 %v426_v26, %s6106_s6  ;;  %v5460_v26 = vpack.i.bf16 %v4439_v8, %v4438_v4  ;;  %v4447_v4 = vld [vmem:[%s6153_s23 + $0x98] sm:$0xff] }
  0xbf   : > { %1021 = vrot.lane.b32.xlu0 %v425_v28, %s6106_s6  ;;  %v5455_v28 = vpack.i.bf16 %v4437_v19, %v4436_v16  ;;  %v4445_v16 = vld [vmem:[%s6153_s23 + $0x80] sm:$0xff]  ;;  %v4481_v29 = vld [vmem:[%s6204_s27 + $0xb1] sm:$0xff] }
  0xc0   : > { %v6547_v32 = vpop.permute.xlu1 %5281 }
  0xc1   : > { %8920 = vst [vmem:[#allocation18_spill] sm:$0xff] %v6547_v32  ;;  %v6550_v36 = vpop.permute.xlu0 %5276 }
  0xc2   : > { %8921 = vst [vmem:[#allocation19_spill] sm:$0xff] %v6550_v36  ;;  %1027 = vrot.lane.b32.xlu1 %v428_v31, %s6106_s6  ;;  %v4442_v31 = vld [vmem:[%s6153_s23 + $0x60] sm:$0xff] }
  0xc3   : > { %1025 = vrot.lane.b32.xlu0 %v427_v35, %s6106_s6  ;;  %v4443_v35 = vld [vmem:[%s6153_s23 + $0x68] sm:$0xff] }
  0xc4   : > { %v6555_v41 = vpop.permute.xlu1 %5291 }
  0xc5   : > { %8922 = vst [vmem:[#allocation20_spill] sm:$0xff] %v6555_v41  ;;  %v6558_v46 = vpop.permute.xlu0 %5286 }
  0xc6   : > { %8923 = vst [vmem:[#allocation21_spill] sm:$0xff] %v6558_v46  ;;  %1031 = vrot.lane.b32.xlu1 %v430_v39, %s6106_s6 }
  0xc7   : > { %1029 = vrot.lane.b32.xlu0 %v429_v44, %s6106_s6  ;;  %v4440_v44 = vld [vmem:[%s6153_s23 + $0x48] sm:$0xff] }
  0xc8   : > { %v6563_v50 = vpop.permute.xlu1 %5301 }
  0xc9   : > { %v6566_v55 = vpop.permute.xlu0 %5296 }
  0xca   : > { %1035 = vrot.lane.b32.xlu1 %v432_v48, %s6106_s6  ;;  %v4441_v48 = vld [vmem:[%s6153_s23 + $0x50] sm:$0xff]  ;;  %v5299_v60 = vunpack.i.h.bf16 %v6566_v55 }
  0xcb   : > { %1033 = vrot.lane.b32.xlu0 %v431_v53, %s6106_s6 }
  0xcc   : > { %v6571_v59 = vpop.permute.xlu1 %5311 }
  0xcd   : > { %v6574_v0 = vpop.permute.xlu0 %5306 }
  0xce   : > { %1039 = vrot.lane.b32.xlu1 %v434_v57, %s6106_s6  ;;  %v5470_v57 = vpack.i.bf16 %v4443_v35, %v4442_v31  ;;  %v4451_v31 = vld [vmem:[%s6153_s23 + $0xc8] sm:$0xff] }
  0xcf   : > { %1037 = vrot.lane.b32.xlu0 %v433_v62, %s6106_s6  ;;  %v5465_v62 = vpack.i.bf16 %v4441_v48, %v4440_v44  ;;  %v4448_v44 = vld [vmem:[%s6153_s23 + $0xa8] sm:$0xff]  ;;  %v4449_v48 = vld [vmem:[%s6153_s23 + $0xb0] sm:$0xff] }
  0xd0   : > { %v6581_v11 = vpop.permute.xlu1 %5321 }
  0xd1   : > { %v6586_v22 = vpop.permute.xlu0 %5316 }
  0xd2   : > { %1043 = vrot.lane.b32.xlu1 %v436_v2, %s6106_s6  ;;  %v4446_v2 = vld [vmem:[%s6153_s23 + $0x90] sm:$0xff] }
  0xd3   : > { %1041 = vrot.lane.b32.xlu0 %v435_v13, %s6106_s6  ;;  %v4444_v13 = vld [vmem:[%s6153_s23 + $0x78] sm:$0xff]  ;;  %v5480_v9 = vpack.i.bf16 %v4447_v4, %v4446_v2 }
  0xd4   : > { %v6592_v39 = vpop.permute.xlu1 %5331  ;;  %v4455_v2 = vld [vmem:[%s6153_s23 + $0xf8] sm:$0xff] }
  0xd5   : > { %v6596_v53 = vpop.permute.xlu0 %5326 }
  0xd6   : > { %5461 = vrot.lane.b32.xlu1 %v5460_v26, %s6101_s24  ;;  %v5475_v26 = vpack.i.bf16 %v4445_v16, %v4444_v13  ;;  %v4452_v13 = vld [vmem:[%s6153_s23 + $0xd8] sm:$0xff]  ;;  %v4453_v16 = vld [vmem:[%s6153_s23 + $0xe0] sm:$0xff] }
  0xd7   : > { %5456 = vrot.lane.b32.xlu0 %v5455_v28, %s6101_s24  ;;  %v4450_v28 = vld [vmem:[%s6153_s23 + $0xc0] sm:$0xff] }
  0xd8   : > { %v6602_v8 = vpop.permute.xlu1 %5341  ;;  %v5490_v58 = vpack.i.bf16 %v4451_v31, %v4450_v28  ;;  %v4459_v28 = vld [vmem:[%s6153_s23 + $0x128] sm:$0xff] }
  0xd9   : > { %8924 = vst [vmem:[#allocation22_spill] sm:$0xff] %v6602_v8  ;;  %v6606_v19 = vpop.permute.xlu0 %5336  ;;  %v4487_v8 = vld [vmem:[%s6204_s27 + $0xf9] sm:$0xff] }
  0xda   : > { %8925 = vst [vmem:[#allocation23_spill] sm:$0xff] %v6606_v19  ;;  %5471 = vrot.lane.b32.xlu1 %v5470_v57, %s6101_s24  ;;  %v5485_v57 = vpack.i.bf16 %v4449_v48, %v4448_v44  ;;  %v4456_v44 = vld [vmem:[%s6153_s23 + $0x108] sm:$0xff]  ;;  %v4457_v48 = vld [vmem:[%s6153_s23 + $0x110] sm:$0xff]  ;;  %v8938_v19 = vmov 0.0|0.0  }
  0xdb   : > { %5466 = vrot.lane.b32.xlu0 %v5465_v62, %s6101_s24  ;;  %v4454_v62 = vld [vmem:[%s6153_s23 + $0xf0] sm:$0xff] }
  0xdc   : > { %v6612_v35 = vpop.permute.xlu1 %5351  ;;  %v5500_v61 = vpack.i.bf16 %v4455_v2, %v4454_v62  ;;  %v4463_v62 = vld [vmem:[%s6153_s23 + $0x158] sm:$0xff] }
  0xdd   : > { %8926 = vst [vmem:[#allocation24_spill] sm:$0xff] %v6612_v35  ;;  %v6616_v41 = vpop.permute.xlu0 %5346 }
  0xde   : > { %8927 = vst [vmem:[#allocation25_spill] sm:$0xff] %v6616_v41  ;;  %5481 = vrot.lane.b32.xlu1 %v5480_v9, %s6101_s24  ;;  %v5495_v9 = vpack.i.bf16 %v4453_v16, %v4452_v13  ;;  %v4460_v13 = vld [vmem:[%s6153_s23 + $0x138] sm:$0xff]  ;;  %v4461_v16 = vld [vmem:[%s6153_s23 + $0x140] sm:$0xff] }
  0xdf   : > { %5476 = vrot.lane.b32.xlu0 %v5475_v26, %s6101_s24  ;;  %v4458_v26 = vld [vmem:[%s6153_s23 + $0x120] sm:$0xff] }
  0xe0   : > { %v6622_v4 = vpop.permute.xlu1 %5361  ;;  %v5510_v32 = vpack.i.bf16 %v4459_v28, %v4458_v26  ;;  %v4467_v26 = vld [vmem:[%s6153_s23 + $0x188] sm:$0xff] }
  0xe1   : > { %8928 = vst [vmem:[#allocation26_spill] sm:$0xff] %v6622_v4  ;;  %v6626_v46 = vpop.permute.xlu0 %5356 }
  0xe2   : > { %8929 = vst [vmem:[#allocation27_spill] sm:$0xff] %v6626_v46  ;;  %5491 = vrot.lane.b32.xlu1 %v5490_v58, %s6101_s24  ;;  %v5505_v58 = vpack.i.bf16 %v4457_v48, %v4456_v44  ;;  %v4464_v44 = vld [vmem:[%s6153_s23 + $0x168] sm:$0xff]  ;;  %v4465_v48 = vld [vmem:[%s6153_s23 + $0x170] sm:$0xff] }
  0xe3   : > { %5486 = vrot.lane.b32.xlu0 %v5485_v57, %s6101_s24  ;;  %v4462_v57 = vld [vmem:[%s6153_s23 + $0x150] sm:$0xff] }
  0xe4   : > { %v6632_v31 = vpop.permute.xlu1 %5371 }
  0xe5   : > { %8930 = vst [vmem:[#allocation28_spill] sm:$0xff] %v6632_v31  ;;  %v6636_v4 = vpop.permute.xlu0 %5366 }
  0xe6   : > { %8931 = vst [vmem:[#allocation29_spill] sm:$0xff] %v6636_v4  ;;  %5501 = vrot.lane.b32.xlu1 %v5500_v61, %s6101_s24  ;;  %v5520_v4 = vpack.i.bf16 %v4463_v62, %v4462_v57  ;;  %v5515_v61 = vpack.i.bf16 %v4461_v16, %v4460_v13  ;;  %v4471_v57 = vld [vmem:[%s6204_s27 + $0x39] sm:$0xff]  ;;  %v4469_v16 = vld [vmem:[%s6204_s27 + $0x21] sm:$0xff] }
  0xe7   : > { %5496 = vrot.lane.b32.xlu0 %v5495_v9, %s6101_s24  ;;  %v4466_v9 = vld [vmem:[%s6153_s23 + $0x180] sm:$0xff] }
  0xe8   : > { %v6642_v2 = vpop.permute.xlu1 %5381  ;;  %v5530_v36 = vpack.i.bf16 %v4467_v26, %v4466_v9  ;;  %v4468_v13 = vld [vmem:[%s6204_s27 + $0x19] sm:$0xff]  ;;  %v4475_v9 = vld [vmem:[%s6204_s27 + $0x69] sm:$0xff] }
  0xe9   : > { %v6646_v31 = vpop.permute.xlu0 %5376 }
  0xea   : > { %5511 = vrot.lane.b32.xlu1 %v5510_v32, %s6101_s24  ;;  %v5525_v32 = vpack.i.bf16 %v4465_v48, %v4464_v44  ;;  %v4472_v44 = vld [vmem:[%s6204_s27 + $0x49] sm:$0xff]  ;;  %v4473_v48 = vld [vmem:[%s6204_s27 + $0x51] sm:$0xff] }
  0xeb   : > { %5506 = vrot.lane.b32.xlu0 %v5505_v58, %s6101_s24  ;;  %v4470_v58 = vld [vmem:[%s6204_s27 + $0x31] sm:$0xff] }
  0xec   : > { %v6652_v28 = vpop.permute.xlu1 %5391  ;;  %v6669_v56 = vpack.i.bf16 %v4471_v57, %v4470_v58  ;;  %v4478_v58 = vld [vmem:[%s6204_s27 + $0x91] sm:$0xff]  ;;  %v4479_v57 = vld [vmem:[%s6204_s27 + $0x99] sm:$0xff] }
  0xed   : > { %v6656_v46 = vpop.permute.xlu0 %5386  ;;  %v5560_v41 = vpack.i.bf16 %v4479_v57, %v4478_v58  ;;  %v4597_v58 = vld [vmem:[%s8834_s2 + $0x98] sm:$0xff] }
  0xee   : > { %5521 = vrot.lane.b32.xlu1 %v5520_v4, %s6101_s24  ;;  %v5535_v4 = vpack.i.bf16 %v4469_v16, %v4468_v13  ;;  %v4476_v16 = vld [vmem:[%s6204_s27 + $0x79] sm:$0xff] }
  0xef   : > { %5516 = vrot.lane.b32.xlu0 %v5515_v61, %s6101_s24  ;;  %v4474_v61 = vld [vmem:[%s6204_s27 + $0x61] sm:$0xff] }
  0xf0   : > { %v6662_v62 = vpop.permute.xlu1 %5401 }
  0xf1   : > { %v6666_v54 = vpop.permute.xlu0 %5396 }
  0xf2   : > { %5531 = vrot.lane.b32.xlu1 %v5530_v36, %s6101_s24  ;;  %v5550_v36 = vpack.i.bf16 %v4475_v9, %v4474_v61  ;;  %v4482_v61 = vld [vmem:[%s6204_s27 + $0xc1] sm:$0xff]  ;;  %v4483_v9 = vld [vmem:[%s6204_s27 + $0xc9] sm:$0xff] }
  0xf3   : > { %5526 = vrot.lane.b32.xlu0 %v5525_v32, %s6101_s24  ;;  %v6683_v32 = vpack.i.bf16 %v4473_v48, %v4472_v44  ;;  %v4480_v48 = vld [vmem:[%s6204_s27 + $0xa9] sm:$0xff] }
  0xf4   : > { %v6674_v26 = vpop.permute.xlu1 %5411 }
  0xf5   : > { %v6678_v35 = vpop.permute.xlu0 %5406 }
  0xf6   : > { %5541 = vrot.lane.b32.xlu1 %v6669_v56, %s6102_s28 }
  0xf7   : > { %5536 = vrot.lane.b32.xlu0 %v5535_v4, %s6102_s28  ;;  %v5555_v4 = vpack.i.bf16 %v4477_v27, %v4476_v16  ;;  %v5570_v27 = vpack.i.bf16 %v4483_v9, %v4482_v61  ;;  %v5565_v16 = vpack.i.bf16 %v4481_v29, %v4480_v48  ;;  %v4599_v29 = vld [vmem:[%s8834_s2 + $0xa8] sm:$0xff]  ;;  %v245_v48 = vld [vmem:[%s6204_s27] sm:$0xff] }
  0xf8   : > { %v6687_v13 = vpop.permute.xlu1 %5421 }
  0xf9   : > { %8932 = vst [vmem:[#allocation30_spill] sm:$0xff] %v6687_v13  ;;  %v6691_v49 = vpop.permute.xlu0 %5416 }
  0xfa   : > { %8933 = vst [vmem:[#allocation31_spill] sm:$0xff] %v6691_v49  ;;  %5551 = vrot.lane.b32.xlu1 %v5550_v36, %s6102_s28  ;;  %v4596_v36 = vld [vmem:[%s8834_s2 + $0x90] sm:$0xff] }
  0xfb   : > { %5546 = vrot.lane.b32.xlu0 %v6683_v32, %s6102_s28  ;;  %v4926_v57 = vpack.c.bf16 %v4597_v58, %v4596_v36  ;;  %v5218_v36 = vunpack.i.l.bf16 %v6502_v1 }
  0xfc   : > { %v6698_v44 = vpop.permute.xlu1 %5431 }
  0xfd   : > { %8934 = vst [vmem:[#allocation32_spill] sm:$0xff] %v6698_v44  ;;  %v6702_v13 = vpop.permute.xlu0 %5426  ;;  %v4486_v44 = vld [vmem:[%s6204_s27 + $0xf1] sm:$0xff]  ;;  %4927 = vmatpush1.bf16.msra.mxu1 %v4926_v57  ;;  %v4490_v57 = vld [vmem:[%s6204_s27 + $0x121] sm:$0xff] }
  0xfe   : > { %8935 = vst [vmem:[#allocation33_spill] sm:$0xff] %v6702_v13  ;;  %5561 = vrot.lane.b32.xlu1 %v5560_v41, %s6102_s28  ;;  %v4484_v13 = vld [vmem:[%s6204_s27 + $0xd9] sm:$0xff]  ;;  %4928 = vmatprep.subr.bf16.mxu1 %v8938_v19  ;;  %v5580_v61 = vpack.i.bf16 %v4487_v8, %v4486_v44  ;;  %v5139_v8 = vunpack.i.h.bf16 %v6437_v25  ;;  %v5378_v44 = vunpack.i.l.bf16 %v6646_v31 }
  0xff   : > { %5556 = vrot.lane.b32.xlu0 %v5555_v4, %s6102_s28  ;;  %v4598_v41 = vld [vmem:[%s8834_s2 + $0xa0] sm:$0xff]  ;;  %v5138_v4 = vunpack.i.l.bf16 %v6437_v25  ;;  %v5575_v58 = vpack.i.bf16 %v4485_v20, %v4484_v13  ;;  %v4600_v20 = vld [vmem:[%s8834_s2 + $0xb0] sm:$0xff]  ;;  %v4601_v13 = vld [vmem:[%s8834_s2 + $0xb8] sm:$0xff] }
 0x100   : > { %v6714_v52 = vpop.permute.xlu1 %5441  ;;  %v4929_v9 = vpack.c.bf16 %v4599_v29, %v4598_v41  ;;  %v4932_v29 = vpack.c.bf16 %v4601_v13, %v4600_v20  ;;  %v4498_v13 = vld [vmem:[%s6204_s27 + $0x181] sm:$0xff] }
 0x101   : > { %8936 = vst [vmem:[#allocation34_spill] sm:$0xff] %v6714_v52  ;;  %v6718_v49 = vpop.permute.xlu0 %5436  ;;  %v4491_v52 = vld [vmem:[%s6204_s27 + $0x129] sm:$0xff]  ;;  %v1078_v25 = vsel %vm1077_vm0, %v245_v48, %v5138_v4  ;;  %v4492_v48 = vld [vmem:[%s6204_s27 + $0x139] sm:$0xff] }
 0x102   : > { %8937 = vst [vmem:[#allocation35_spill] sm:$0xff] %v6718_v49  ;;  %5571 = vrot.lane.b32.xlu1 %v5570_v27, %s6102_s28  ;;  %v5298_v49 = vunpack.i.l.bf16 %v6566_v55  ;;  %4930 = vmatpush1.bf16.msra.mxu1 %v4929_v9  ;;  %v5590_v41 = vpack.i.bf16 %v4491_v52, %v4490_v57  ;;  %v5219_v9 = vunpack.i.h.bf16 %v6502_v1  ;;  %v4493_v52 = vld [vmem:[%s6204_s27 + $0x141] sm:$0xff]  ;;  %v5379_v1 = vunpack.i.h.bf16 %v6646_v31  ;;  %v247_v57 = vld [vmem:[%s6204_s27 + $0x18] sm:$0xff] }
 0x103   : > { %5566 = vrot.lane.b32.xlu0 %v5565_v16, %s6102_s28  ;;  %4931 = vmatprep.subr.bf16.mxu1 %v8938_v19  ;;  %v246_v16 = vld [vmem:[%s6204_s27 + $0x8] sm:$0xff]  ;;  %v5600_v55 = vpack.i.bf16 %v4495_v6, %v4494_v17  ;;  %v5595_v20 = vpack.i.bf16 %v4493_v52, %v4492_v48  ;;  %v4604_v52 = vld [vmem:[%s8834_s2 + $0xd0] sm:$0xff] }
 0x104   : > { %v6735_v45 = vpop.permute.xlu1 %5451  ;;  %v4496_v17 = vld [vmem:[%s6204_s27 + $0x169] sm:$0xff] }
 0x105   : > { %8939 = vst [vmem:[#allocation36_spill] sm:$0xff] %v6735_v45  ;;  %v6741_v27 = vpop.permute.xlu0 %5446  ;;  %v1111_v45 = vsel %vm1110_vm1, %v1078_v25, %v5218_v36  ;;  %v5303_v25 = vunpack.i.l.bf16 %v6563_v50 }
 0x106   : > { %8940 = vst [vmem:[#allocation37_spill] sm:$0xff] %v6741_v27  ;;  %5581 = vrot.lane.b32.xlu1 %v5580_v61, %s6102_s28  ;;  %v5585_v27 = vpack.i.bf16 %v4489_v47, %v4488_v23  ;;  %v1144_v4 = vsel %vm1143_vm2, %v1111_v45, %v5298_v49  ;;  %4933 = vmatpush1.bf16.msra.mxu1 %v4932_v29  ;;  %v4602_v47 = vld [vmem:[%s8834_s2 + $0xc0] sm:$0xff]  ;;  %v4603_v45 = vld [vmem:[%s8834_s2 + $0xc8] sm:$0xff]  ;;  %v5143_v49 = vunpack.i.l.bf16 %v6448_v34  ;;  %v4497_v29 = vld [vmem:[%s6204_s27 + $0x171] sm:$0xff] }
 0x107   : > { %5576 = vrot.lane.b32.xlu0 %v5575_v58, %s6102_s28  ;;  %v1079_v61 = vsel %vm1077_vm0, %v246_v16, %v5139_v8  ;;  %v1177_v58 = vsel %vm1176_vm3, %v1144_v4, %v5378_v44  ;;  %4934 = vmatprep.subr.bf16.mxu1 %v8938_v19  ;;  %v4935_v31 = vpack.c.bf16 %v4603_v45, %v4602_v47  ;;  %v5223_v8 = vunpack.i.l.bf16 %v6499_v63  ;;  %v4499_v16 = vld [vmem:[%s6204_s27 + $0x189] sm:$0xff] }
 0x108   : > { %v984_v51 = vpop.permute.xlu1 %983  ;;  %v1112_v44 = vsel %vm1110_vm1, %v1079_v61, %v5219_v9  ;;  %v5144_v9 = vunpack.i.h.bf16 %v6448_v34  ;;  %v1080_v61 = vsel %vm1077_vm0, %v247_v57, %v5143_v49  ;;  %v5224_v47 = vunpack.i.h.bf16 %v6499_v63  ;;  %v4500_v57 = vld [vmem:[%s6153_s23 + $0x19] sm:$0xff] }
 0x109   : > { %v982_v36 = vpop.permute.xlu0 %981  ;;  %v1145_v6 = vsel %vm1143_vm2, %v1112_v44, %v5299_v60  ;;  %v4605_v60 = vld [vmem:[%s8834_s2 + $0xd8] sm:$0xff]  ;;  %v1113_v45 = vsel %vm1110_vm1, %v1080_v61, %v5223_v8  ;;  %v5304_v49 = vunpack.i.h.bf16 %v6563_v50  ;;  %v5148_v63 = vunpack.i.l.bf16 %v6432_v21  ;;  %v4606_v50 = vld [vmem:[%s8834_s2 + $0xe0] sm:$0xff] }
 0x10a   : > { %4646 = vmatprep.mubr.msk.f32.mxu0 %vm1077_vm0, %v982_v36  ;;  %5591 = vrot.lane.b32.xlu1 %v5590_v41, %s6102_s28  ;;  %v1210_v23 = vsel %vm1209_vm4, %v1177_v58, %v982_v36  ;;  %v1178_v48 = vsel %vm1176_vm3, %v1145_v6, %v5379_v1  ;;  %v5610_v1 = vpack.i.bf16 %v4499_v16, %v4498_v13  ;;  %v248_v58 = vld [vmem:[%s6204_s27 + $0x20] sm:$0xff]  ;;  %v5384_v8 = vunpack.i.h.bf16 %v6642_v2 }
 0x10b   : > { %5586 = vrot.lane.b32.xlu0 %v5585_v27, %s6102_s28  ;;  %2691 = vmatmul.mubr.f32.vlgmr.msra.gmra.mrb[0].mxu0 %v1210_v23  ;;  %v5383_v27 = vunpack.i.l.bf16 %v6642_v2  ;;  %v1211_v34 = vsel %vm1209_vm4, %v1178_v48, %v984_v51  ;;  %v4938_v36 = vpack.c.bf16 %v4605_v60, %v4604_v52  ;;  %v5605_v23 = vpack.i.bf16 %v4497_v29, %v4496_v17  ;;  %v4503_v44 = vld [vmem:[%s6153_s23 + $0x39] sm:$0xff]  ;;  %v4501_v13 = vld [vmem:[%s6153_s23 + $0x21] sm:$0xff] }
 0x10c   : > { %4647 = vmatprep.mubr.msk.f32.mxu0 %vm1077_vm0, %v984_v51  ;;  %v6784_v41 = vpop.permute.xlu1 %987  ;;  %4936 = vmatpush1.bf16.msra.mxu1 %v4935_v31  ;;  %v4502_v31 = vld [vmem:[%s6153_s23 + $0x31] sm:$0xff]  ;;  %v1146_v51 = vsel %vm1143_vm2, %v1113_v45, %v5303_v25  ;;  %v4607_v25 = vld [vmem:[%s8834_s2 + $0xe8] sm:$0xff]  ;;  %v1081_v6 = vsel %vm1077_vm0, %v248_v58, %v5144_v9  ;;  %v5228_v52 = vunpack.i.l.bf16 %v6510_v7  ;;  %v5615_v60 = vpack.i.bf16 %v4501_v13, %v4500_v57 }
 0x10d   : > { %v986_v4 = vpop.permute.xlu0 %985  ;;  %4937 = vmatprep.subr.bf16.mxu1 %v8938_v19  ;;  %v1179_v16 = vsel %vm1176_vm3, %v1146_v51, %v5383_v27  ;;  %v6828_v17 = vpack.i.bf16 %v4503_v44, %v4502_v31  ;;  %v4941_v29 = vpack.c.bf16 %v4607_v25, %v4606_v50  ;;  %v249_v27 = vld [vmem:[%s6204_s27 + $0x30] sm:$0xff]  ;;  %v1114_v48 = vsel %vm1110_vm1, %v1081_v6, %v5224_v47  ;;  %v4506_v61 = vld [vmem:[%s6153_s23 + $0x61] sm:$0xff]  ;;  %v250_v51 = vld [vmem:[%s6204_s27 + $0x38] sm:$0xff] }
 0x10e   : > { %5601 = vrot.lane.b32.xlu1 %v5600_v55, %s6102_s28  ;;  %v1212_v2 = vsel %vm1209_vm4, %v1179_v16, %v986_v4  ;;  %v4507_v9 = vld [vmem:[%s6153_s23 + $0x69] sm:$0xff]  ;;  %v4505_v58 = vld [vmem:[%s6153_s23 + $0x51] sm:$0xff]  ;;  %v5149_v47 = vunpack.i.h.bf16 %v6432_v21  ;;  %v5388_v45 = vunpack.i.l.bf16 %v6656_v46  ;;  %v1082_v21 = vsel %vm1077_vm0, %v249_v27, %v5148_v63  ;;  %v4511_v6 = vld [vmem:[%s6153_s23 + $0x99] sm:$0xff] }
 0x10f   : > { %5596 = vrot.lane.b32.xlu0 %v5595_v20, %s6102_s28  ;;  %2696 = vmatmul.mubr.f32.gmra.mrb[2].mxu0 %v1211_v34  ;;  %v5308_v34 = vunpack.i.l.bf16 %v6574_v0  ;;  %v4608_v44 = vld [vmem:[%s8834_s2 + $0xf0] sm:$0xff]  ;;  %v6862_v13 = vpack.i.bf16 %v4507_v9, %v4506_v61  ;;  %v5229_v16 = vunpack.i.h.bf16 %v6510_v7  ;;  %v1115_v50 = vsel %vm1110_vm1, %v1082_v21, %v5228_v52  ;;  %v6877_v27 = vld [vmem:[%s6153_s23 + $0x79] sm:$0xff]  ;;  %v4509_v7 = vld [vmem:[%s6153_s23 + $0x81] sm:$0xff] }
 0x110   : > { %4648 = vmatprep.mubr.msk.f32.mxu0 %vm1077_vm0, %v986_v4  ;;  %v6810_v55 = vpop.permute.xlu1 %991  ;;  %4939 = vmatpush1.bf16.msra.mxu1 %v4938_v36  ;;  %v4504_v36 = vld [vmem:[%s6153_s23 + $0x49] sm:$0xff]  ;;  %v4510_v63 = vld [vmem:[%s6153_s23 + $0x91] sm:$0xff]  ;;  %v5389_v52 = vunpack.i.h.bf16 %v6656_v46  ;;  %v4610_v61 = vld [vmem:[%s8834_s2 + $0x100] sm:$0xff] }
 0x111   : > { %v990_v20 = vpop.permute.xlu0 %989  ;;  %4940 = vmatprep.subr.bf16.mxu1 %v8938_v19  ;;  %v6867_v25 = vpack.i.bf16 %v4505_v58, %v4504_v36  ;;  %v4611_v9 = vld [vmem:[%s8834_s2 + $0x108] sm:$0xff] }
 0x112   : > { %5611 = vrot.lane.b32.xlu1 %v5610_v1, %s6102_s28  ;;  %v1147_v1 = vsel %vm1143_vm2, %v1114_v48, %v5304_v49  ;;  %v4609_v49 = vld [vmem:[%s8834_s2 + $0xf8] sm:$0xff]  ;;  %v1083_v48 = vsel %vm1077_vm0, %v250_v51, %v5149_v47  ;;  %v4947_v36 = vpack.c.bf16 %v4611_v9, %v4610_v61  ;;  %v251_v58 = vld [vmem:[%s6204_s27 + $0x48] sm:$0xff]  ;;  %v5233_v47 = vunpack.i.l.bf16 %v6507_v3 }
 0x113   : > { %5606 = vrot.lane.b32.xlu0 %v5605_v23, %s6102_s28  ;;  %2701 = vmatmul.mubr.f32.gmra.mrb[4].mxu0 %v1212_v2  ;;  %v1180_v31 = vsel %vm1176_vm3, %v1147_v1, %v5384_v8  ;;  %v4944_v8 = vpack.c.bf16 %v4609_v49, %v4608_v44  ;;  %v5309_v2 = vunpack.i.h.bf16 %v6574_v0  ;;  %v5640_v1 = vpack.i.bf16 %v4511_v6, %v4510_v63  ;;  %v4514_v44 = vld [vmem:[%s6153_s23 + $0xc1] sm:$0xff]  ;;  %v4515_v49 = vld [vmem:[%s6153_s23 + $0xc9] sm:$0xff] }
 0x114   : > { %4649 = vmatprep.mubr.msk.f32.mxu0 %vm1077_vm0, %v6784_v41  ;;  %v6839_v4 = vpop.permute.xlu1 %995  ;;  %4942 = vmatpush1.bf16.msra.mxu1 %v4941_v29  ;;  %v1213_v57 = vsel %vm1209_vm4, %v1180_v31, %v6784_v41  ;;  %v1148_v41 = vsel %vm1143_vm2, %v1115_v50, %v5308_v34  ;;  %v5153_v34 = vunpack.i.l.bf16 %v6444_v30  ;;  %v5635_v31 = vpack.i.bf16 %v4509_v7, %v6877_v27 }
 0x115   : > { %v6846_v23 = vpop.permute.xlu0 %993  ;;  %4943 = vmatprep.subr.bf16.mxu1 %v8938_v19  ;;  %v1181_v0 = vsel %vm1176_vm3, %v1148_v41, %v5388_v45  ;;  %v1116_v45 = vsel %vm1110_vm1, %v1083_v48, %v5229_v16  ;;  %v5313_v51 = vunpack.i.l.bf16 %v6571_v59  ;;  %v5154_v16 = vunpack.i.h.bf16 %v6444_v30  ;;  %v4613_v41 = vld [vmem:[%s8834_s2 + $0x118] sm:$0xff] }
 0x116   : > { %5621 = vrot.lane.b32.xlu1 %v6828_v17, %s6103_s29  ;;  %v1214_v46 = vsel %vm1209_vm4, %v1181_v0, %v990_v20  ;;  %v1149_v21 = vsel %vm1143_vm2, %v1116_v45, %v5309_v2  ;;  %v5393_v50 = vunpack.i.l.bf16 %v6652_v28  ;;  %v4612_v2 = vld [vmem:[%s8834_s2 + $0x110] sm:$0xff]  ;;  %v1084_v30 = vsel %vm1077_vm0, %v251_v58, %v5153_v34  ;;  %v4519_v34 = vld [vmem:[%s6153_s23 + $0xf9] sm:$0xff] }
 0x117   : > { %5616 = vrot.lane.b32.xlu0 %v5615_v60, %s6103_s29  ;;  %2706 = vmatmul.mubr.f32.gmra.mrb[6].mxu0 %v1213_v57  ;;  %v4512_v57 = vld [vmem:[%s6153_s23 + $0xa9] sm:$0xff]  ;;  %v1182_v6 = vsel %vm1176_vm3, %v1149_v21, %v5389_v52  ;;  %v5650_v48 = vpack.i.bf16 %v4515_v49, %v4514_v44  ;;  %v4950_v52 = vpack.c.bf16 %v4613_v41, %v4612_v2  ;;  %v5234_v61 = vunpack.i.h.bf16 %v6507_v3  ;;  %v4516_v45 = vld [vmem:[%s6153_s23 + $0xd9] sm:$0xff]  ;;  %v4517_v3 = vld [vmem:[%s6153_s23 + $0xe1] sm:$0xff] }
 0x118   : > { %4650 = vmatprep.mubr.msk.f32.mxu0 %vm1077_vm0, %v990_v20  ;;  %v6873_v29 = vpop.permute.xlu1 %999  ;;  %4945 = vmatpush1.bf16.msra.mxu1 %v4944_v8  ;;  %v4513_v8 = vld [vmem:[%s6153_s23 + $0xb1] sm:$0xff]  ;;  %v1215_v7 = vsel %vm1209_vm4, %v1182_v6, %v6810_v55  ;;  %v1117_v9 = vsel %vm1110_vm1, %v1084_v30, %v5233_v47  ;;  %v5394_v47 = vunpack.i.h.bf16 %v6652_v28  ;;  %v5158_v49 = vunpack.i.l.bf16 %v6454_v38  ;;  %v253_v28 = vld [vmem:[%s6204_s27 + $0x60] sm:$0xff]  ;;  %v4520_v30 = vld [vmem:[%s6153_s23 + $0x109] sm:$0xff] }
 0x119   : > { %v6882_v60 = vpop.permute.xlu0 %997  ;;  %4946 = vmatprep.subr.bf16.mxu1 %v8938_v19  ;;  %v252_v0 = vld [vmem:[%s6204_s27 + $0x50] sm:$0xff]  ;;  %v1150_v58 = vsel %vm1143_vm2, %v1117_v9, %v5313_v51  ;;  %v4533_v6 = vld [vmem:[%s6204_s27 + $0x22] sm:$0xff]  ;;  %v5318_v2 = vunpack.i.l.bf16 %v6586_v22 }
 0x11a   : > { %5631 = vrot.lane.b32.xlu1 %v6862_v13, %s6103_s29  ;;  %v1183_v44 = vsel %vm1176_vm3, %v1150_v58, %v5393_v50  ;;  %v5655_v50 = vpack.i.bf16 %v4517_v3, %v4516_v45  ;;  %v1086_v9 = vsel %vm1077_vm0, %v253_v28, %v5158_v49  ;;  %v4565_v28 = vld [vmem:[%s6153_s23 + $0x22] sm:$0xff] }
 0x11b   : > { %5626 = vrot.lane.b32.xlu0 %v6867_v25, %s6103_s29  ;;  %2711 = vmatmul.mubr.f32.gmra.mrb[8].mxu0 %v1214_v46  ;;  %v5645_v46 = vpack.i.bf16 %v4513_v8, %v4512_v57  ;;  %v1216_v51 = vsel %vm1209_vm4, %v1183_v44, %v6846_v23  ;;  %v5238_v8 = vunpack.i.l.bf16 %v6518_v12 }
 0x11c   : > { %4651 = vmatprep.mubr.msk.f32.mxu0 %vm1077_vm0, %v6810_v55  ;;  %v6907_v20 = vpop.permute.xlu1 %1003  ;;  %4948 = vmatpush1.bf16.msra.mxu1 %v4947_v36  ;;  %v4518_v36 = vld [vmem:[%s6153_s23 + $0xf1] sm:$0xff] }
 0x11d   : > { %v6914_v63 = vpop.permute.xlu0 %1001  ;;  %4949 = vmatprep.subr.bf16.mxu1 %v8938_v19  ;;  %v5660_v21 = vpack.i.bf16 %v4519_v34, %v4518_v36  ;;  %v254_v34 = vld [vmem:[%s6204_s27 + $0x68] sm:$0xff]  ;;  %v1119_v58 = vsel %vm1110_vm1, %v1086_v9, %v5238_v8  ;;  %v5244_v9 = vunpack.i.h.bf16 %v6515_v10 }
 0x11e   : > { %5641 = vrot.lane.b32.xlu1 %v5640_v1, %s6103_s29  ;;  %v5314_v1 = vunpack.i.h.bf16 %v6571_v59  ;;  %v1085_v59 = vsel %vm1077_vm0, %v252_v0, %v5154_v16  ;;  %v4532_v16 = vld [vmem:[%s6204_s27 + $0x1a] sm:$0xff] }
 0x11f   : > { %5636 = vrot.lane.b32.xlu0 %v5635_v31, %s6103_s29  ;;  %2716 = vmatmul.mubr.f32.gmra.mrb[10].mxu0 %v1215_v7  ;;  %v1118_v57 = vsel %vm1110_vm1, %v1085_v59, %v5234_v61  ;;  %v4521_v7 = vld [vmem:[%s6153_s23 + $0x111] sm:$0xff]  ;;  %v5159_v61 = vunpack.i.h.bf16 %v6454_v38  ;;  %v5670_v36 = vpack.i.bf16 %v4533_v6, %v4532_v16  ;;  %v5319_v38 = vunpack.i.h.bf16 %v6586_v22  ;;  %v7010_v6 = vld [vmem:[%s6204_s27 + $0x3a] sm:$0xff] }
 0x120   : > { %4652 = vmatprep.mubr.msk.f32.mxu0 %vm1077_vm0, %v6846_v23  ;;  %v6937_v55 = vpop.permute.xlu1 %1007  ;;  %4951 = vmatpush1.bf16.msra.mxu1 %v4950_v52  ;;  %v1151_v23 = vsel %vm1143_vm2, %v1118_v57, %v5314_v1  ;;  %v5239_v1 = vunpack.i.h.bf16 %v6518_v12  ;;  %v5665_v45 = vpack.i.bf16 %v4521_v7, %v4520_v30  ;;  %v5163_v59 = vunpack.i.l.bf16 %v6452_v37  ;;  %v7007_v16 = vld [vmem:[%s6204_s27 + $0x32] sm:$0xff] }
 0x121   : > { %v6943_v31 = vpop.permute.xlu0 %1005  ;;  %5006 = vmatprep.subr.bf16.mxu1 %v8938_v19  ;;  %v1184_v0 = vsel %vm1176_vm3, %v1151_v23, %v5394_v47  ;;  %v5399_v47 = vunpack.i.h.bf16 %v6666_v54  ;;  %v1087_v22 = vsel %vm1077_vm0, %v254_v34, %v5159_v61  ;;  %v5323_v57 = vunpack.i.l.bf16 %v6581_v11  ;;  %v7031_v34 = vld [vmem:[%s6204_s27 + $0x4a] sm:$0xff] }
 0x122   : > { %5651 = vrot.lane.b32.xlu1 %v5650_v48, %s6103_s29  ;;  %v5398_v48 = vunpack.i.l.bf16 %v6666_v54  ;;  %v1120_v54 = vsel %vm1110_vm1, %v1087_v22, %v5239_v1  ;;  %v5164_v7 = vunpack.i.h.bf16 %v6452_v37  ;;  %v5675_v37 = vpack.i.bf16 %v7010_v6, %v7007_v16  ;;  %v7034_v1 = vld [vmem:[%s6204_s27 + $0x52] sm:$0xff] }
 0x123   : > { %5646 = vrot.lane.b32.xlu0 %v5645_v46, %s6103_s29  ;;  %2721 = vmatmul.mubr.f32.gmra.mrb[12].mxu0 %v1216_v51  ;;  %v1217_v46 = vsel %vm1209_vm4, %v1184_v0, %v6839_v4  ;;  %v255_v51 = vld [vmem:[%s6204_s27 + $0x78] sm:$0xff]  ;;  %v257_v22 = vld [vmem:[%s6204_s27 + $0x90] sm:$0xff] }
 0x124   : > { %4653 = vmatprep.mubr.msk.f32.mxu0 %vm1077_vm0, %v6839_v4  ;;  %v6961_v41 = vpop.permute.xlu1 %1011  ;;  %v1152_v4 = vsel %vm1143_vm2, %v1119_v58, %v5318_v2  ;;  %v5403_v2 = vunpack.i.l.bf16 %v6662_v62  ;;  %v1088_v0 = vsel %vm1077_vm0, %v255_v51, %v5163_v59  ;;  %v5324_v58 = vunpack.i.h.bf16 %v6581_v11 }
 0x125   : > { %v6967_v52 = vpop.permute.xlu0 %1009  ;;  %v1185_v44 = vsel %vm1176_vm3, %v1152_v4, %v5398_v48  ;;  %v256_v48 = vld [vmem:[%s6204_s27 + $0x80] sm:$0xff]  ;;  %v5680_v59 = vpack.i.bf16 %v7034_v1, %v7031_v34  ;;  %v5328_v51 = vunpack.i.l.bf16 %v6596_v53 }
 0x126   : > { %5661 = vrot.lane.b32.xlu1 %v5660_v21, %s6103_s29  ;;  %v1218_v49 = vsel %vm1209_vm4, %v1185_v44, %v6882_v60  ;;  %v5243_v21 = vunpack.i.l.bf16 %v6515_v10  ;;  %v5168_v44 = vunpack.i.l.bf16 %v6462_v43 }
 0x127   : > { %5656 = vrot.lane.b32.xlu0 %v5655_v50, %s6103_s29  ;;  %2726 = vmatmul.mubr.f32.gmra.mrb[14].mxu0 %v1217_v46  ;;  %v4564_v50 = vld [vmem:[%s6153_s23 + $0x1a] sm:$0xff] }
 0x128   : > { %4654 = vmatprep.mubr.msk.f32.mxu0 %vm1077_vm0, %v6882_v60  ;;  %v6982_v3 = vpop.permute.xlu1 %1015  ;;  %v1153_v60 = vsel %vm1143_vm2, %v1120_v54, %v5319_v38  ;;  %v1121_v46 = vsel %vm1110_vm1, %v1088_v0, %v5243_v21 }
 0x129   : > { %8941 = vst [vmem:[#allocation38_spill] sm:$0xff] %v6982_v3  ;;  %v6986_v12 = vpop.permute.xlu0 %1013  ;;  %v1186_v30 = vsel %vm1176_vm3, %v1153_v60, %v5399_v47  ;;  %v1089_v47 = vsel %vm1077_vm0, %v256_v48, %v5164_v7  ;;  %v4870_v60 = vld [vmem:[%s8834_s2 + $0x120] sm:$0xff]  ;;  %v1090_v7 = vsel %vm1077_vm0, %v257_v22, %v5168_v44  ;;  %v4872_v44 = vld [vmem:[%s8834_s2 + $0x130] sm:$0xff] }
 0x12a   : > { %8942 = vst [vmem:[#allocation39_spill] sm:$0xff] %v6986_v12  ;;  %5671 = vrot.lane.b32.xlu1 %v5670_v36, %s6105_s7  ;;  %v1219_v61 = vsel %vm1209_vm4, %v1186_v30, %v6873_v29  ;;  %v7026_v36 = vld [vmem:[%s6153_s23 + $0x32] sm:$0xff]  ;;  %v5169_v30 = vunpack.i.h.bf16 %v6462_v43  ;;  %v4554_v12 = vld [vmem:[%s6204_s27 + $0x122] sm:$0xff] }
 0x12b   : > { %5666 = vrot.lane.b32.xlu0 %v5665_v45, %s6103_s29  ;;  %2731 = vmatmul.mubr.f32.gmra.mrb[16].mxu0 %v1218_v49  ;;  %v5404_v45 = vunpack.i.h.bf16 %v6662_v62  ;;  %v1122_v62 = vsel %vm1110_vm1, %v1089_v47, %v5244_v9  ;;  %v5248_v49 = vunpack.i.l.bf16 %v6526_v18  ;;  %v5249_v9 = vunpack.i.h.bf16 %v6526_v18  ;;  %v7088_v43 = vld [vmem:[%s6153_s23 + $0x52] sm:$0xff] }
 0x12c   : > { %4655 = vmatprep.mubr.msk.f32.mxu0 %vm1077_vm0, %v6873_v29  ;;  %v7002_v8 = vpop.permute.xlu1 %1019  ;;  %v1154_v29 = vsel %vm1143_vm2, %v1121_v46, %v5323_v57  ;;  %v1155_v54 = vsel %vm1143_vm2, %v1122_v62, %v5324_v58 }
 0x12d   : > { %8943 = vst [vmem:[#allocation40_spill] sm:$0xff] %v7002_v8  ;;  %v7013_v23 = vpop.permute.xlu0 %1017  ;;  %v1187_v4 = vsel %vm1176_vm3, %v1154_v29, %v5403_v2  ;;  %v4871_v2 = vld [vmem:[%s8834_s2 + $0x128] sm:$0xff]  ;;  %v1123_v46 = vsel %vm1110_vm1, %v1090_v7, %v5248_v49 }
 0x12e   : > { %8944 = vst [vmem:[#allocation41_spill] sm:$0xff] %v7013_v23  ;;  %2000 = vrot.lane.b32.xlu1 %v4565_v28, %s6106_s6  ;;  %v1220_v11 = vsel %vm1209_vm4, %v1187_v4, %v6914_v63  ;;  %v5408_v28 = vunpack.i.l.bf16 %v6678_v35  ;;  %v4980_v0 = vpack.c.bf16 %v4871_v2, %v4870_v60  ;;  %v1156_v18 = vsel %vm1143_vm2, %v1123_v46, %v5328_v51  ;;  %v7100_v29 = vld [vmem:[%s6204_s27 + $0x62] sm:$0xff]  ;;  %v7133_v60 = vld [vmem:[%s6204_s27 + $0x7a] sm:$0xff] }
 0x12f   : > { %1998 = vrot.lane.b32.xlu0 %v4564_v50, %s6106_s6  ;;  %2736 = vmatmul.mubr.f32.gmra.mrb[18].mxu0 %v1219_v61  ;;  %v1188_v50 = vsel %vm1176_vm3, %v1155_v54, %v5404_v45  ;;  %v258_v61 = vld [vmem:[%s6204_s27 + $0x98] sm:$0xff]  ;;  %v7103_v45 = vld [vmem:[%s6204_s27 + $0x6a] sm:$0xff]  ;;  %v5409_v4 = vunpack.i.h.bf16 %v6678_v35  ;;  %v5253_v51 = vunpack.i.l.bf16 %v6523_v14  ;;  %v7136_v2 = vld [vmem:[%s6204_s27 + $0x82] sm:$0xff] }
 0x130   : > { %4656 = vmatprep.mubr.msk.f32.mxu0 %vm1077_vm0, %v6914_v63  ;;  %v7039_v10 = vpop.permute.xlu1 %1023  ;;  %v7064_v63 = vld [vmem:[%s6153_s23 + $0x3a] sm:$0xff]  ;;  %v1221_v48 = vsel %vm1209_vm4, %v1188_v50, %v6907_v20  ;;  %4981 = vmatpush1.bf16.msra.mxu0 %v4980_v0  ;;  %v259_v35 = vld [vmem:[%s6204_s27 + $0xa8] sm:$0xff]  ;;  %v1091_v22 = vsel %vm1077_vm0, %v258_v61, %v5169_v30  ;;  %v5685_v50 = vpack.i.bf16 %v7103_v45, %v7100_v29  ;;  %v5413_v0 = vunpack.i.l.bf16 %v6674_v26 }
 0x131   : > { %8945 = vst [vmem:[#allocation42_spill] sm:$0xff] %v7039_v10  ;;  %v7043_v38 = vpop.permute.xlu0 %1021  ;;  %4982 = vmatprep.subr.bf16.mxu0 %v8938_v19  ;;  %v1124_v54 = vsel %vm1110_vm1, %v1091_v22, %v5249_v9  ;;  %v4874_v46 = vld [vmem:[%s8834_s2 + $0x140] sm:$0xff]  ;;  %v4747_v10 = vld [vmem:[%s6204_s27 + $0x69] sm:$0xff] }
 0x132   : > { %8946 = vst [vmem:[#allocation43_spill] sm:$0xff] %v7043_v38  ;;  %2002 = vrot.lane.b32.xlu1 %v7026_v36, %s6106_s6 }
 0x133   : > { %5676 = vrot.lane.b32.xlu0 %v5675_v37, %s6105_s7  ;;  %2741 = vmatmul.mubr.f32.gmra.mrb[20].mxu0 %v1220_v11  ;;  %v5329_v37 = vunpack.i.h.bf16 %v6596_v53  ;;  %v1189_v53 = vsel %vm1176_vm3, %v1156_v18, %v5408_v28  ;;  %v4873_v11 = vld [vmem:[%s8834_s2 + $0x138] sm:$0xff]  ;;  %v7128_v28 = vld [vmem:[%s6153_s23 + $0x62] sm:$0xff] }
 0x134   : > { %4657 = vmatprep.mubr.msk.f32.mxu0 %vm1077_vm0, %v6907_v20  ;;  %v7061_v21 = vpop.permute.xlu1 %1027  ;;  %v7096_v20 = vld [vmem:[%s6153_s23 + $0x4a] sm:$0xff]  ;;  %v1222_v62 = vsel %vm1209_vm4, %v1189_v53, %v6943_v31  ;;  %v4983_v49 = vpack.c.bf16 %v4873_v11, %v4872_v44  ;;  %v5254_v11 = vunpack.i.h.bf16 %v6523_v14  ;;  %v5414_v14 = vunpack.i.h.bf16 %v6674_v26 }
 0x135   : > { %8947 = vst [vmem:[#allocation44_spill] sm:$0xff] %v7061_v21  ;;  %v7068_v57 = vpop.permute.xlu0 %1025  ;;  %v1157_v7 = vsel %vm1143_vm2, %v1124_v54, %v5329_v37  ;;  %v4875_v37 = vld [vmem:[%s8834_s2 + $0x148] sm:$0xff]  ;;  %v260_v44 = vld [vmem:[%s6204_s27 + $0xb0] sm:$0xff]  ;;  %v4877_v54 = vld [vmem:[%s8834_s2 + $0x158] sm:$0xff] }
 0x136   : > { %8948 = vst [vmem:[#allocation45_spill] sm:$0xff] %v7068_v57  ;;  %5681 = vrot.lane.b32.xlu1 %v5680_v59, %s6105_s7  ;;  %v5173_v59 = vunpack.i.l.bf16 %v6459_v40  ;;  %4984 = vmatpush1.bf16.msra.mxu0 %v4983_v49  ;;  %v1190_v9 = vsel %vm1176_vm3, %v1157_v7, %v5409_v4  ;;  %v5690_v4 = vpack.i.bf16 %v7136_v2, %v7133_v60 }
 0x137   : > { %2004 = vrot.lane.b32.xlu0 %v7064_v63, %s6106_s6  ;;  %2746 = vmatmul.mubr.f32.gmra.mrb[22].mxu0 %v1221_v48  ;;  %v5174_v48 = vunpack.i.h.bf16 %v6459_v40  ;;  %v1223_v40 = vsel %vm1209_vm4, %v1190_v9, %v6937_v55  ;;  %v4986_v53 = vpack.c.bf16 %v4875_v37, %v4874_v46  ;;  %v7209_v37 = vld [vmem:[%s6204_s27 + $0x9a] sm:$0xff] }
 0x138   : > { %4658 = vmatprep.mubr.msk.f32.mxu0 %vm1077_vm0, %v6943_v31  ;;  %v7093_v58 = vpop.permute.xlu1 %1031  ;;  %v5333_v31 = vunpack.i.l.bf16 %v6592_v39  ;;  %4985 = vmatprep.subr.bf16.mxu0 %v8938_v19  ;;  %v1092_v18 = vsel %vm1077_vm0, %v259_v35, %v5173_v59  ;;  %v5334_v59 = vunpack.i.h.bf16 %v6592_v39  ;;  %v4876_v39 = vld [vmem:[%s8834_s2 + $0x150] sm:$0xff] }
 0x139   : > { %8949 = vst [vmem:[#allocation46_spill] sm:$0xff] %v7093_v58  ;;  %v7106_v47 = vpop.permute.xlu0 %1029  ;;  %v1125_v22 = vsel %vm1110_vm1, %v1092_v18, %v5253_v51 }
 0x13a   : > { %8950 = vst [vmem:[#allocation47_spill] sm:$0xff] %v7106_v47  ;;  %2008 = vrot.lane.b32.xlu1 %v7088_v43, %s6106_s6  ;;  %4987 = vmatpush1.bf16.msra.mxu0 %v4986_v53  ;;  %v4879_v53 = vld [vmem:[%s8834_s2 + $0x168] sm:$0xff] }
 0x13b   : > { %2006 = vrot.lane.b32.xlu0 %v7096_v20, %s6106_s6  ;;  %2751 = vmatmul.mubr.f32.gmra.mrb[24].mxu0 %v1222_v62  ;;  %v1158_v62 = vsel %vm1143_vm2, %v1125_v22, %v5333_v31  ;;  %v4989_v31 = vpack.c.bf16 %v4877_v54, %v4876_v39  ;;  %v7228_v22 = vld [vmem:[%s6153_s23 + $0x92] sm:$0xff]  ;;  %v4715_v47 = vld [vmem:[%s6153_s23 + $0x68] sm:$0xff] }
 0x13c   : > { %4659 = vmatprep.mubr.msk.f32.mxu0 %vm1077_vm0, %v6937_v55  ;;  %v7141_v30 = vpop.permute.xlu1 %1035  ;;  %v7173_v55 = vld [vmem:[%s6153_s23 + $0x6a] sm:$0xff]  ;;  %v1191_v51 = vsel %vm1176_vm3, %v1158_v62, %v5413_v0  ;;  %4988 = vmatprep.subr.bf16.mxu0 %v8938_v19  ;;  %v7195_v0 = vld [vmem:[%s6153_s23 + $0x82] sm:$0xff]  ;;  %v4881_v54 = vld [vmem:[%s8834_s2 + $0x178] sm:$0xff] }
 0x13d   : > { %8951 = vst [vmem:[#allocation48_spill] sm:$0xff] %v7141_v30  ;;  %v7146_v61 = vpop.permute.xlu0 %1033  ;;  %v1224_v26 = vsel %vm1209_vm4, %v1191_v51, %v6967_v52  ;;  %v7233_v62 = vld [vmem:[%s6204_s27 + $0xaa] sm:$0xff] }
 0x13e   : > { %8952 = vst [vmem:[#allocation49_spill] sm:$0xff] %v7146_v61  ;;  %2010 = vrot.lane.b32.xlu1 %v7128_v28, %s6106_s6  ;;  %4990 = vmatpush1.bf16.msra.mxu0 %v4989_v31 }
 0x13f   : > { %5686 = vrot.lane.b32.xlu0 %v5685_v50, %s6105_s7  ;;  %2756 = vmatmul.mubr.f32.gmra.mrb[26].mxu0 %v1223_v40  ;;  %v1093_v50 = vsel %vm1077_vm0, %v260_v44, %v5174_v48  ;;  %v7202_v48 = vld [vmem:[%s6153_s23 + $0x7a] sm:$0xff] }
 0x140   : > { %4660 = vmatprep.mubr.msk.f32.mxu0 %vm1077_vm0, %v6967_v52  ;;  %v7170_v35 = vpop.permute.xlu1 %1039  ;;  %v1126_v7 = vsel %vm1110_vm1, %v1093_v50, %v5254_v11  ;;  %v7206_v52 = vld [vmem:[%s6204_s27 + $0x92] sm:$0xff]  ;;  %4991 = vmatprep.subr.bf16.mxu0 %v8938_v19 }
 0x141   : > { %8953 = vst [vmem:[#allocation50_spill] sm:$0xff] %v7170_v35  ;;  %v7177_v49 = vpop.permute.xlu0 %1037  ;;  %v1159_v46 = vsel %vm1143_vm2, %v1126_v7, %v5334_v59  ;;  %v5695_v59 = vpack.i.bf16 %v7209_v37, %v7206_v52  ;;  %v7254_v7 = vld [vmem:[%s6153_s23 + $0x9a] sm:$0xff] }
 0x142   : > { %8954 = vst [vmem:[#allocation51_spill] sm:$0xff] %v7177_v49  ;;  %5691 = vrot.lane.b32.xlu1 %v5690_v4, %s6105_s7  ;;  %v1192_v40 = vsel %vm1176_vm3, %v1159_v46, %v5414_v14  ;;  %v4878_v4 = vld [vmem:[%s8834_s2 + $0x160] sm:$0xff]  ;;  %v4545_v14 = vld [vmem:[%s6204_s27 + $0xb2] sm:$0xff] }
 0x143   : > { %2012 = vrot.lane.b32.xlu0 %v7173_v55, %s6106_s6  ;;  %2761 = vmatmul.mubr.f32.gmra.mrb[28].mxu0 %v1224_v26  ;;  %v1225_v44 = vsel %vm1209_vm4, %v1192_v40, %v6961_v41  ;;  %v4992_v11 = vpack.c.bf16 %v4879_v53, %v4878_v4  ;;  %v5700_v50 = vpack.i.bf16 %v4545_v14, %v7233_v62  ;;  %v4882_v40 = vld [vmem:[%s8834_s2 + $0x180] sm:$0xff]  ;;  %v4883_v4 = vld [vmem:[%s8834_s2 + $0x188] sm:$0xff] }
 0x144   : > { %4661 = vmatprep.mubr.msk.f32.mxu0 %vm1077_vm0, %v6961_v41  ;;  %v7199_v9 = vpop.permute.xlu1 %1043  ;;  %v4880_v41 = vld [vmem:[%s8834_s2 + $0x170] sm:$0xff]  ;;  %v4998_v53 = vpack.c.bf16 %v4883_v4, %v4882_v40  ;;  %v4546_v14 = vld [vmem:[%s6204_s27 + $0xc2] sm:$0xff] }
 0x145   : > { %8955 = vst [vmem:[#allocation52_spill] sm:$0xff] %v7199_v9  ;;  %v7211_v18 = vpop.permute.xlu0 %1041  ;;  %4993 = vmatpush1.bf16.msra.mxu0 %v4992_v11  ;;  %v4995_v26 = vpack.c.bf16 %v4881_v54, %v4880_v41  ;;  %v4547_v41 = vld [vmem:[%s6204_s27 + $0xca] sm:$0xff]  ;;  %v4578_v4 = vld [vmem:[%s6153_s23 + $0xc2] sm:$0xff] }
 0x146   : > { %8956 = vst [vmem:[#allocation53_spill] sm:$0xff] %v7211_v18  ;;  %2016 = vrot.lane.b32.xlu1 %v7195_v0, %s6106_s6  ;;  %4994 = vmatprep.subr.bf16.mxu0 %v8938_v19  ;;  %v4710_v9 = vld [vmem:[%s6153_s23 + $0x30] sm:$0xff]  ;;  %v4711_v18 = vld [vmem:[%s6153_s23 + $0x38] sm:$0xff] }
 0x147   : > { %2014 = vrot.lane.b32.xlu0 %v7202_v48, %s6106_s6  ;;  %2766 = vmatmul.mubr.f32.gmra.mrb[30].mxu0 %v1225_v44  ;;  %v4577_v44 = vld [vmem:[%s6153_s23 + $0xb2] sm:$0xff] }
 0x148   : > { %v7236_v51 = vpop.permute.xlu1 %5461 }
 0x149   : > { %v7238_v39 = vpop.permute.xlu0 %5456  ;;  %4996 = vmatpush1.bf16.msra.mxu0 %v4995_v26  ;;  %v4885_v26 = vld [vmem:[%s8834_s2 + $0x198] sm:$0xff] }
 0x14a   : > { %2018 = vrot.lane.b32.xlu1 %v7228_v22, %s6106_s6  ;;  %4997 = vmatprep.subr.bf16.mxu0 %v8938_v19 }
 0x14b   : > { %5696 = vrot.lane.b32.xlu0 %v5695_v59, %s6105_s7  ;;  %v7272_v59 = vld [vmem:[%s6153_s23 + $0xaa] sm:$0xff] }
 0x14c   : > { %v7251_v31 = vpop.permute.xlu1 %5471 }
 0x14d   : > { %v7256_v46 = vpop.permute.xlu0 %5466  ;;  %4999 = vmatpush1.bf16.msra.mxu0 %v4998_v53  ;;  %v5705_v53 = vpack.i.bf16 %v4547_v41, %v4546_v14  ;;  %v5710_v14 = vpack.i.bf16 %v4711_v18, %v4710_v9  ;;  %v4580_v18 = vld [vmem:[%s6153_s23 + $0xda] sm:$0xff] }
 0x14e   : > { %5701 = vrot.lane.b32.xlu1 %v5700_v50, %s6105_s7  ;;  %5000 = vmatprep.subr.bf16.mxu0 %v8938_v19  ;;  %v4884_v50 = vld [vmem:[%s8834_s2 + $0x190] sm:$0xff] }
 0x14f   : > { %2020 = vrot.lane.b32.xlu0 %v7254_v7, %s6106_s6  ;;  %v5001_v40 = vpack.c.bf16 %v4885_v26, %v4884_v50  ;;  %v4887_v50 = vld [vmem:[%s8834_s2 + $0x1a8] sm:$0xff] }
 0x150   : > { %v7269_v11 = vpop.permute.xlu1 %5481 }
 0x151   : > { %v7276_v54 = vpop.permute.xlu0 %5476  ;;  %5002 = vmatpush1.bf16.msra.mxu0 %v5001_v40  ;;  %v4579_v40 = vld [vmem:[%s6153_s23 + $0xca] sm:$0xff] }
 0x152   : > { %2024 = vrot.lane.b32.xlu1 %v4577_v44, %s6106_s6  ;;  %5003 = vmatprep.subr.bf16.mxu0 %v8938_v19  ;;  %v4886_v44 = vld [vmem:[%s8834_s2 + $0x1a0] sm:$0xff] }
 0x153   : > { %2022 = vrot.lane.b32.xlu0 %v7272_v59, %s6106_s6  ;;  %v5004_v41 = vpack.c.bf16 %v4887_v50, %v4886_v44  ;;  %v4549_v44 = vld [vmem:[%s6204_s27 + $0xe2] sm:$0xff] }
 0x154   : > { %v7291_v35 = vpop.permute.xlu1 %5491 }
 0x155   : > { %v7293_v49 = vpop.permute.xlu0 %5486  ;;  %5005 = vmatpush1.bf16.msra.mxu0 %v5004_v41  ;;  %v5730_v41 = vpack.i.bf16 %v7010_v6, %v4549_v44 }
 0x156   : > { %2026 = vrot.lane.b32.xlu1 %v4578_v4, %s6106_s6  ;;  %v4548_v4 = vld [vmem:[%s6204_s27 + $0xda] sm:$0xff] }
 0x157   : > { %5706 = vrot.lane.b32.xlu0 %v5705_v53, %s6105_s7  ;;  %v5725_v53 = vpack.i.bf16 %v7007_v16, %v4548_v4 }
 0x158   : > { %v7304_v26 = vpop.permute.xlu1 %5501 }
 0x159   : > { %v7307_v30 = vpop.permute.xlu0 %5496 }
 0x15a   : > { %5711 = vrot.lane.b32.xlu1 %v5710_v14, %s6101_s24 }
 0x15b   : > { %2028 = vrot.lane.b32.xlu0 %v4579_v40, %s6106_s6  ;;  %v4713_v40 = vld [vmem:[%s6153_s23 + $0x50] sm:$0xff] }
 0x15c   : > { %v7311_v61 = vpop.permute.xlu1 %5511 }
 0x15d   : > { %8957 = vst [vmem:[#allocation54_spill] sm:$0xff] %v7311_v61  ;;  %v7314_v9 = vpop.permute.xlu0 %5506 }
 0x15e   : > { %5721 = vrot.lane.b32.xlu1 %v6828_v17, %s6103_s29  ;;  %v4712_v17 = vld [vmem:[%s6153_s23 + $0x48] sm:$0xff] }
 0x15f   : > { %5716 = vrot.lane.b32.xlu0 %v6669_v56, %s6102_s28  ;;  %v5735_v16 = vpack.i.bf16 %v4713_v40, %v4712_v17 }
 0x160   : > { %v7323_v50 = vpop.permute.xlu1 %5521 }
 0x161   : > { %8958 = vst [vmem:[#allocation55_spill] sm:$0xff] %v7323_v50  ;;  %v7325_v14 = vpop.permute.xlu0 %5516  ;;  %v5459_v50 = vunpack.i.h.bf16 %v7238_v39 }
 0x162   : > { %8959 = vst [vmem:[#allocation56_spill] sm:$0xff] %v7325_v14  ;;  %2030 = vrot.lane.b32.xlu1 %v4580_v18, %s6106_s6  ;;  %v4581_v18 = vld [vmem:[%s6153_s23 + $0xe2] sm:$0xff] }
 0x163   : > { %5726 = vrot.lane.b32.xlu0 %v5725_v53, %s6105_s7  ;;  %v4550_v53 = vld [vmem:[%s6204_s27 + $0xf2] sm:$0xff] }
 0x164   : > { %v7332_v58 = vpop.permute.xlu1 %5531 }
 0x165   : > { %8960 = vst [vmem:[#allocation57_spill] sm:$0xff] %v7332_v58  ;;  %v7334_v56 = vpop.permute.xlu0 %5526 }
 0x166   : > { %8961 = vst [vmem:[#allocation58_spill] sm:$0xff] %v7334_v56  ;;  %5731 = vrot.lane.b32.xlu1 %v5730_v41, %s6105_s7  ;;  %v4718_v56 = vld [vmem:[%s6153_s23 + $0x90] sm:$0xff] }
 0x167   : > { %3589 = vrot.lane.b32.xlu0 %v7026_v36, %s6106_s6  ;;  %v5750_v36 = vpack.i.bf16 %v7031_v34, %v4550_v53 }
 0x168   : > { %v7339_v4 = vpop.permute.xlu1 %5541 }
 0x169   : > { %v7342_v6 = vpop.permute.xlu0 %5536 }
 0x16a   : > { %5736 = vrot.lane.b32.xlu1 %v5735_v16, %s6101_s24  ;;  %v5539_v61 = vunpack.i.h.bf16 %v7342_v6 }
 0x16b   : > { %2032 = vrot.lane.b32.xlu0 %v4581_v18, %s6106_s6  ;;  %v4551_v18 = vld [vmem:[%s6204_s27 + $0xfa] sm:$0xff] }
 0x16c   : > { %v7347_v44 = vpop.permute.xlu1 %5551  ;;  %v5755_v53 = vpack.i.bf16 %v7034_v1, %v4551_v18 }
 0x16d   : > { %v7349_v41 = vpop.permute.xlu0 %5546 }
 0x16e   : > { %5741 = vrot.lane.b32.xlu1 %v6683_v32, %s6102_s28  ;;  %v4582_v32 = vld [vmem:[%s6153_s23 + $0xf2] sm:$0xff] }
 0x16f   : > { %3591 = vrot.lane.b32.xlu0 %v7064_v63, %s6106_s6  ;;  %v4583_v63 = vld [vmem:[%s6153_s23 + $0xfa] sm:$0xff] }
 0x170   : > { %v7356_v17 = vpop.permute.xlu1 %5561 }
 0x171   : > { %v7358_v40 = vpop.permute.xlu0 %5556 }
 0x172   : > { %5751 = vrot.lane.b32.xlu1 %v5750_v36, %s6105_s7 }
 0x173   : > { %5746 = vrot.lane.b32.xlu0 %v6867_v25, %s6103_s29  ;;  %v4714_v25 = vld [vmem:[%s6153_s23 + $0x60] sm:$0xff] }
 0x174   : > { %v7363_v16 = vpop.permute.xlu1 %5571  ;;  %v5760_v57 = vpack.i.bf16 %v4715_v47, %v4714_v25  ;;  %v4584_v47 = vld [vmem:[%s6153_s23 + $0x10a] sm:$0xff]  ;;  %v4553_v25 = vld [vmem:[%s6204_s27 + $0x112] sm:$0xff] }
 0x175   : > { %v7367_v34 = vpop.permute.xlu0 %5566 }
 0x176   : > { %3593 = vrot.lane.b32.xlu1 %v7096_v20, %s6106_s6 }
 0x177   : > { %2034 = vrot.lane.b32.xlu0 %v4582_v32, %s6106_s6  ;;  %v4746_v32 = vld [vmem:[%s6204_s27 + $0x61] sm:$0xff] }
 0x178   : > { %v7374_v36 = vpop.permute.xlu1 %5581  ;;  %v5765_v1 = vpack.i.bf16 %v4747_v10, %v4746_v32  ;;  %v5780_v32 = vpack.i.bf16 %v7103_v45, %v4553_v25  ;;  %v4585_v45 = vld [vmem:[%s6153_s23 + $0x112] sm:$0xff] }
 0x179   : > { %v7378_v21 = vpop.permute.xlu0 %5576 }
 0x17a   : > { %2036 = vrot.lane.b32.xlu1 %v4583_v63, %s6106_s6  ;;  %v4552_v63 = vld [vmem:[%s6204_s27 + $0x10a] sm:$0xff] }
 0x17b   : > { %5756 = vrot.lane.b32.xlu0 %v5755_v53, %s6105_s7 }
 0x17c   : > { %v7382_v20 = vpop.permute.xlu1 %5591 }
 0x17d   : > { %8962 = vst [vmem:[#allocation59_spill] sm:$0xff] %v7382_v20  ;;  %v7386_v38 = vpop.permute.xlu0 %5586  ;;  %v4405_v20 = vld [vmem:[%s6204_s27 + $0x20] sm:$0xff] }
 0x17e   : > { %8963 = vst [vmem:[#allocation60_spill] sm:$0xff] %v7386_v38  ;;  %3595 = vrot.lane.b32.xlu1 %v7088_v43, %s6106_s6  ;;  %v5775_v43 = vpack.i.bf16 %v7100_v29, %v4552_v63  ;;  %v4748_v63 = vld [vmem:[%s6204_s27 + $0x79] sm:$0xff] }
 0x17f   : > { %5761 = vrot.lane.b32.xlu0 %v5760_v57, %s6101_s24 }
 0x180   : > { %v7391_v18 = vpop.permute.xlu1 %5601 }
 0x181   : > { %8964 = vst [vmem:[#allocation61_spill] sm:$0xff] %v7391_v18  ;;  %v7394_v53 = vpop.permute.xlu0 %5596  ;;  %v4719_v18 = vld [vmem:[%s6153_s23 + $0x98] sm:$0xff] }
 0x182   : > { %8965 = vst [vmem:[#allocation62_spill] sm:$0xff] %v7394_v53  ;;  %5771 = vrot.lane.b32.xlu1 %v6862_v13, %s6103_s29  ;;  %v4716_v13 = vld [vmem:[%s6153_s23 + $0x78] sm:$0xff] }
 0x183   : > { %5766 = vrot.lane.b32.xlu0 %v5765_v1, %s6102_s28  ;;  %v4717_v1 = vld [vmem:[%s6153_s23 + $0x80] sm:$0xff] }
 0x184   : > { %v7402_v57 = vpop.permute.xlu1 %5611  ;;  %v5785_v29 = vpack.i.bf16 %v4717_v1, %v4716_v13  ;;  %v5800_v1 = vpack.i.bf16 %v7133_v60, %v4554_v12  ;;  %v4586_v12 = vld [vmem:[%s6153_s23 + $0x122] sm:$0xff] }
 0x185   : > { %8966 = vst [vmem:[#allocation63_spill] sm:$0xff] %v7402_v57  ;;  %v7404_v10 = vpop.permute.xlu0 %5606  ;;  %v4523_v60 = vld [vmem:[%s6153_s23 + $0x129] sm:$0xff] }
 0x186   : > { %8967 = vst [vmem:[#allocation64_spill] sm:$0xff] %v7404_v10  ;;  %2038 = vrot.lane.b32.xlu1 %v4584_v47, %s6106_s6  ;;  %v4749_v47 = vld [vmem:[%s6204_s27 + $0x81] sm:$0xff] }
 0x187   : > { %5776 = vrot.lane.b32.xlu0 %v5775_v43, %s6105_s7  ;;  %v5790_v25 = vpack.i.bf16 %v4749_v47, %v4748_v63 }
 0x188   : > { %v7411_v8 = vpop.permute.xlu1 %5621 }
 0x189   : > { %v7413_v23 = vpop.permute.xlu0 %5616 }
 0x18a   : > { %5781 = vrot.lane.b32.xlu1 %v5780_v32, %s6105_s7 }
 0x18b   : > { %3597 = vrot.lane.b32.xlu0 %v7128_v28, %s6106_s6  ;;  %v4522_v28 = vld [vmem:[%s6153_s23 + $0x121] sm:$0xff] }
 0x18c   : > { %v7420_v3 = vpop.permute.xlu1 %5631 }
 0x18d   : > { %v7423_v43 = vpop.permute.xlu0 %5626 }
 0x18e   : > { %5786 = vrot.lane.b32.xlu1 %v5785_v29, %s6101_s24  ;;  %v5795_v29 = vpack.i.bf16 %v6877_v27, %v4522_v28  ;;  %v4404_v27 = vld [vmem:[%s6204_s27 + $0x18] sm:$0xff]  ;;  %v5538_v28 = vunpack.i.l.bf16 %v7342_v6 }
 0x18f   : > { %2040 = vrot.lane.b32.xlu0 %v4585_v45, %s6106_s6  ;;  %v4555_v45 = vld [vmem:[%s6204_s27 + $0x12a] sm:$0xff] }
 0x190   : > { %v7428_v32 = vpop.permute.xlu1 %5641  ;;  %v4750_v6 = vld [vmem:[%s6204_s27 + $0x91] sm:$0xff] }
 0x191   : > { %v7431_v13 = vpop.permute.xlu0 %5636 }
 0x192   : > { %5791 = vrot.lane.b32.xlu1 %v5790_v25, %s6102_s28  ;;  %v5458_v25 = vunpack.i.l.bf16 %v7238_v39 }
 0x193   : > { %3599 = vrot.lane.b32.xlu0 %v7173_v55, %s6106_s6  ;;  %v4781_v55 = vld [vmem:[%s6153_s23 + $0x81] sm:$0xff] }
 0x194   : > { %v7438_v63 = vpop.permute.xlu1 %5651  ;;  %v5805_v10 = vpack.i.bf16 %v4781_v55, %v4523_v60  ;;  %v2094_v53 = vsel %vm1077_vm0, %v4404_v27, %v5458_v25  ;;  %v4751_v55 = vld [vmem:[%s6204_s27 + $0x99] sm:$0xff] }
 0x195   : > { %v7440_v47 = vpop.permute.xlu0 %5646 }
 0x196   : > { %5801 = vrot.lane.b32.xlu1 %v5800_v1, %s6105_s7  ;;  %v5618_v1 = vunpack.i.l.bf16 %v7413_v23 }
 0x197   : > { %5796 = vrot.lane.b32.xlu0 %v5795_v29, %s6103_s29  ;;  %v5810_v29 = vpack.i.bf16 %v7136_v2, %v4555_v45  ;;  %v5619_v45 = vunpack.i.h.bf16 %v7413_v23 }
 0x198   : > { %v7446_v57 = vpop.permute.xlu1 %5661 }
 0x199   : > { %v7453_v58 = vpop.permute.xlu0 %5656 }
 0x19a   : > { %3601 = vrot.lane.b32.xlu1 %v7202_v48, %s6106_s6  ;;  %v2126_v48 = vsel %vm1110_vm1, %v2094_v53, %v5538_v28  ;;  %v2095_v53 = vsel %vm1077_vm0, %v4405_v20, %v5459_v50  ;;  %v4587_v28 = vld [vmem:[%s6153_s23 + $0x12a] sm:$0xff]  ;;  %v5820_v50 = vpack.i.bf16 %v4751_v55, %v4750_v6  ;;  %v5544_v6 = vunpack.i.h.bf16 %v7339_v4 }
 0x19b   : > { %2042 = vrot.lane.b32.xlu0 %v4586_v12, %s6106_s6  ;;  %v5815_v12 = vpack.i.bf16 %v4719_v18, %v4718_v56  ;;  %v2158_v39 = vsel %vm1143_vm2, %v2126_v48, %v5618_v1  ;;  %v2127_v23 = vsel %vm1110_vm1, %v2095_v53, %v5539_v61  ;;  %v4406_v56 = vld [vmem:[%s6204_s27 + $0x30] sm:$0xff]  ;;  %v4556_v18 = vld [vmem:[%s6204_s27 + $0x13a] sm:$0xff]  ;;  %v5464_v1 = vunpack.i.h.bf16 %v7236_v51 }
 0x19c   : > { %v5672_v14 = vpop.permute.xlu1 %5671  ;;  %v2159_v20 = vsel %vm1143_vm2, %v2127_v23, %v5619_v45  ;;  %v5830_v53 = vpack.i.bf16 %v7206_v52, %v4556_v18 }
 0x19d   : > { %v5673_v38 = vunpack.i.l.bf16 %v5672_v14  ;;  %v7467_v2 = vpop.permute.xlu0 %5666  ;;  %v5674_v60 = vunpack.i.h.bf16 %v5672_v14  ;;  %v5543_v14 = vunpack.i.l.bf16 %v7339_v4 }
 0x19e   : > { %8968 = vst [vmem:[#allocation65_spill] sm:$0xff] %v7467_v2  ;;  %5811 = vrot.lane.b32.xlu1 %v5810_v29, %s6105_s7  ;;  %v5463_v2 = vunpack.i.l.bf16 %v7236_v51  ;;  %v5624_v51 = vunpack.i.h.bf16 %v7411_v8 }
 0x19f   : > { %5806 = vrot.lane.b32.xlu0 %v5805_v10, %s6103_s29  ;;  %v2190_v25 = vsel %vm1176_vm3, %v2158_v39, %v5673_v38  ;;  %v5623_v10 = vunpack.i.l.bf16 %v7411_v8  ;;  %v2191_v61 = vsel %vm1176_vm3, %v2159_v20, %v5674_v60  ;;  %v4524_v39 = vld [vmem:[%s6153_s23 + $0x139] sm:$0xff]  ;;  %v5628_v20 = vunpack.i.l.bf16 %v7423_v43 }
 0x1a0   : > { %v2001_v27 = vpop.permute.xlu1 %2000  ;;  %v2096_v45 = vsel %vm1077_vm0, %v4406_v56, %v5463_v2 }
 0x1a1   : > { %v1999_v29 = vpop.permute.xlu0 %1998  ;;  %v2128_v60 = vsel %vm1110_vm1, %v2096_v45, %v5543_v14  ;;  %v4783_v45 = vld [vmem:[%s6153_s23 + $0x99] sm:$0xff] }
 0x1a2   : > { %4614 = vmatprep.mubr.msk.f32.mxu1 %vm1077_vm0, %v1999_v29  ;;  %5816 = vrot.lane.b32.xlu1 %v5815_v12, %s6101_s24  ;;  %v2222_v38 = vsel %vm1209_vm4, %v2190_v25, %v1999_v29  ;;  %v4782_v12 = vld [vmem:[%s6153_s23 + $0x91] sm:$0xff]  ;;  %v2160_v52 = vsel %vm1143_vm2, %v2128_v60, %v5623_v10  ;;  %v5468_v29 = vunpack.i.l.bf16 %v7256_v46 }
 0x1a3   : > { %2044 = vrot.lane.b32.xlu0 %v4587_v28, %s6106_s6  ;;  %2402 = vmatmul.mubr.f32.vlgmr.msra.gmra.mrb[0].mxu1 %v2222_v38  ;;  %v4407_v25 = vld [vmem:[%s6204_s27 + $0x38] sm:$0xff]  ;;  %v5825_v4 = vpack.i.bf16 %v4782_v12, %v4524_v39 }
 0x1a4   : > { %4615 = vmatprep.mubr.msk.f32.mxu1 %vm1077_vm0, %v2001_v27  ;;  %v2003_v48 = vpop.permute.xlu1 %2002  ;;  %5015 = vmatpush1.bf16.msra.mxu1 %v6297_v5  ;;  %v2223_v5 = vsel %vm1209_vm4, %v2191_v61, %v2001_v27  ;;  %v2097_v2 = vsel %vm1077_vm0, %v4407_v25, %v5464_v1  ;;  %v4408_v27 = vld [vmem:[%s6204_s27 + $0x48] sm:$0xff]  ;;  %v5469_v1 = vunpack.i.h.bf16 %v7256_v46  ;;  %v4588_v12 = vld [vmem:[%s6153_s23 + $0x13a] sm:$0xff]  ;;  %v5629_v46 = vunpack.i.h.bf16 %v7423_v43 }
 0x1a5   : > { %v5677_v55 = vpop.permute.xlu0 %5676  ;;  %5007 = vmatprep.subr.bf16.mxu1 %v8938_v19  ;;  %v2129_v14 = vsel %vm1110_vm1, %v2097_v2, %v5544_v6  ;;  %v4557_v61 = vld [vmem:[%s6204_s27 + $0x142] sm:$0xff]  ;;  %v4409_v6 = vld [vmem:[%s6204_s27 + $0x50] sm:$0xff]  ;;  %v5473_v43 = vunpack.i.l.bf16 %v7251_v31 }
 0x1a6   : > { %v5678_v28 = vunpack.i.l.bf16 %v5677_v55  ;;  %5821 = vrot.lane.b32.xlu1 %v5820_v50, %s6102_s28  ;;  %v5679_v23 = vunpack.i.h.bf16 %v5677_v55  ;;  %v4525_v25 = vld [vmem:[%s6153_s23 + $0x141] sm:$0xff]  ;;  %v5549_v55 = vunpack.i.h.bf16 %v7349_v41 }
 0x1a7   : > { %3603 = vrot.lane.b32.xlu0 %v7195_v0, %s6106_s6  ;;  %2407 = vmatmul.mubr.f32.gmra.mrb[2].mxu1 %v2223_v5  ;;  %v5548_v0 = vunpack.i.l.bf16 %v7349_v41  ;;  %v5835_v41 = vpack.i.bf16 %v4783_v45, %v4525_v25 }
 0x1a8   : > { %4616 = vmatprep.mubr.msk.f32.mxu1 %vm1077_vm0, %v2003_v48  ;;  %v5682_v8 = vpop.permute.xlu1 %5681  ;;  %v2192_v56 = vsel %vm1176_vm3, %v2160_v52, %v5678_v28  ;;  %5016 = vmatpush1.bf16.msra.mxu1 %v6315_v15  ;;  %v2161_v15 = vsel %vm1143_vm2, %v2129_v14, %v5624_v51  ;;  %v4721_v52 = vld [vmem:[%s6153_s23 + $0xb0] sm:$0xff] }
 0x1a9   : > { %v2005_v38 = vpop.permute.xlu0 %2004  ;;  %v2224_v50 = vsel %vm1209_vm4, %v2192_v56, %v2003_v48  ;;  %5008 = vmatprep.subr.bf16.mxu1 %v8938_v19  ;;  %v5683_v18 = vunpack.i.l.bf16 %v5682_v8  ;;  %v2193_v10 = vsel %vm1176_vm3, %v2161_v15, %v5679_v23  ;;  %v2098_v48 = vsel %vm1077_vm0, %v4408_v27, %v5468_v29  ;;  %v4753_v15 = vld [vmem:[%s6204_s27 + $0xb1] sm:$0xff] }
 0x1aa   : > { %5831 = vrot.lane.b32.xlu1 %v5830_v53, %s6105_s7  ;;  %v2130_v53 = vsel %vm1110_vm1, %v2098_v48, %v5548_v0  ;;  %v2225_v51 = vsel %vm1209_vm4, %v2193_v10, %v2005_v38  ;;  %v5684_v5 = vunpack.i.h.bf16 %v5682_v8  ;;  %v5553_v29 = vunpack.i.l.bf16 %v7347_v44  ;;  %v4411_v48 = vld [vmem:[%s6204_s27 + $0x68] sm:$0xff] }
 0x1ab   : > { %5826 = vrot.lane.b32.xlu0 %v5825_v4, %s6103_s29  ;;  %2412 = vmatmul.mubr.f32.gmra.mrb[4].mxu1 %v2224_v50  ;;  %v2162_v28 = vsel %vm1143_vm2, %v2130_v53, %v5628_v20  ;;  %v4720_v4 = vld [vmem:[%s6153_s23 + $0xa8] sm:$0xff]  ;;  %v5633_v27 = vunpack.i.l.bf16 %v7420_v3 }
 0x1ac   : > { %4617 = vmatprep.mubr.msk.f32.mxu1 %vm1077_vm0, %v2005_v38  ;;  %v2009_v39 = vpop.permute.xlu1 %2008  ;;  %5017 = vmatpush1.bf16.msra.mxu1 %v6331_v24  ;;  %v5840_v24 = vpack.i.bf16 %v7209_v37, %v4557_v61  ;;  %v2194_v23 = vsel %vm1176_vm3, %v2162_v28, %v5683_v18  ;;  %v4410_v37 = vld [vmem:[%s6204_s27 + $0x60] sm:$0xff]  ;;  %v5845_v0 = vpack.i.bf16 %v4721_v52, %v4720_v4  ;;  %v4752_v20 = vld [vmem:[%s6204_s27 + $0xa9] sm:$0xff]  ;;  %v5474_v18 = vunpack.i.h.bf16 %v7251_v31 }
 0x1ad   : > { %v2007_v60 = vpop.permute.xlu0 %2006  ;;  %5009 = vmatprep.subr.bf16.mxu1 %v8938_v19  ;;  %v2100_v10 = vsel %vm1077_vm0, %v4410_v37, %v5473_v43  ;;  %v5634_v31 = vunpack.i.h.bf16 %v7420_v3  ;;  %v8969_v28 = vld [vmem:[#allocation2_spill] sm:$0xff]  ;;  %v5638_v52 = vunpack.i.l.bf16 %v7431_v13 }
 0x1ae   : > { %3605 = vrot.lane.b32.xlu1 %v7228_v22, %s6106_s6  ;;  %v2099_v22 = vsel %vm1077_vm0, %v4409_v6, %v5469_v1  ;;  %v2226_v14 = vsel %vm1209_vm4, %v2194_v23, %v2007_v60  ;;  %v4589_v1 = vld [vmem:[%s6153_s23 + $0x142] sm:$0xff]  ;;  %v2132_v25 = vsel %vm1110_vm1, %v2100_v10, %v5553_v29  ;;  %v5558_v23 = vunpack.i.l.bf16 %v7358_v40  ;;  %v4817_v10 = vld [vmem:[%s6204_s27 + $0xb2] sm:$0xff] }
 0x1af   : > { %2046 = vrot.lane.b32.xlu0 %v4588_v12, %s6106_s6  ;;  %2417 = vmatmul.mubr.f32.gmra.mrb[6].mxu1 %v2225_v51  ;;  %v2131_v8 = vsel %vm1110_vm1, %v2099_v22, %v5549_v55  ;;  %v5554_v12 = vunpack.i.h.bf16 %v7347_v44  ;;  %v5850_v55 = vpack.i.bf16 %v4753_v15, %v4752_v20  ;;  %v5478_v51 = vunpack.i.l.bf16 %v7276_v54 }
 0x1b0   : > { %4618 = vmatprep.mubr.msk.f32.mxu1 %vm1077_vm0, %v2007_v60  ;;  %v2011_v2 = vpop.permute.xlu1 %2010  ;;  %5018 = vmatpush1.bf16.msra.mxu1 %v6347_v33  ;;  %v2163_v33 = vsel %vm1143_vm2, %v2131_v8, %v5629_v46  ;;  %v4558_v60 = vld [vmem:[%s6204_s27 + $0x152] sm:$0xff]  ;;  %v2101_v46 = vsel %vm1077_vm0, %v4411_v48, %v5474_v18  ;;  %v4559_v18 = vld [vmem:[%s6204_s27 + $0x15a] sm:$0xff] }
 0x1b1   : > { %v5687_v56 = vpop.permute.xlu0 %5686  ;;  %5010 = vmatprep.subr.bf16.mxu1 %v8938_v19  ;;  %v2195_v50 = vsel %vm1176_vm3, %v2163_v33, %v5684_v5  ;;  %v4412_v5 = vld [vmem:[%s6204_s27 + $0x78] sm:$0xff]  ;;  %v5860_v22 = vpack.i.bf16 %v7233_v62, %v4558_v60  ;;  %v8970_v62 = vld [vmem:[#allocation3_spill] sm:$0xff]  ;;  %v5559_v33 = vunpack.i.h.bf16 %v7358_v40  ;;  %v5870_v60 = vpack.i.bf16 %v4817_v10, %v4559_v18 }
 0x1b2   : > { %5841 = vrot.lane.b32.xlu1 %v5840_v24, %s6105_s7  ;;  %v5688_v38 = vunpack.i.l.bf16 %v5687_v56  ;;  %v2227_v6 = vsel %vm1209_vm4, %v2195_v50, %v2009_v39  ;;  %v5689_v53 = vunpack.i.h.bf16 %v5687_v56  ;;  %v4526_v24 = vld [vmem:[%s6153_s23 + $0x151] sm:$0xff] }
 0x1b3   : > { %5836 = vrot.lane.b32.xlu0 %v5835_v41, %s6103_s29  ;;  %2422 = vmatmul.mubr.f32.gmra.mrb[8].mxu1 %v2226_v14  ;;  %v2133_v41 = vsel %vm1110_vm1, %v2101_v46, %v5554_v12  ;;  %v2102_v14 = vsel %vm1077_vm0, %v4412_v5, %v5478_v51  ;;  %v4590_v12 = vld [vmem:[%s6153_s23 + $0x152] sm:$0xff]  ;;  %v5484_v5 = vunpack.i.h.bf16 %v7269_v11 }
 0x1b4   : > { %4619 = vmatprep.mubr.msk.f32.mxu1 %vm1077_vm0, %v2009_v39  ;;  %v7563_v61 = vpop.permute.xlu1 %5691  ;;  %5019 = vmatpush1.bf16.msra.mxu1 %v6363_v42  ;;  %v2164_v42 = vsel %vm1143_vm2, %v2132_v25, %v5633_v27  ;;  %v4784_v39 = vld [vmem:[%s6153_s23 + $0xa9] sm:$0xff]  ;;  %v2165_v37 = vsel %vm1143_vm2, %v2133_v41, %v5634_v31  ;;  %v5479_v27 = vunpack.i.h.bf16 %v7276_v54  ;;  %v5639_v54 = vunpack.i.h.bf16 %v7431_v13  ;;  %v4527_v25 = vld [vmem:[%s6153_s23 + $0x159] sm:$0xff] }
 0x1b5   : > { %v2013_v45 = vpop.permute.xlu0 %2012  ;;  %5011 = vmatprep.subr.bf16.mxu1 %v8938_v19  ;;  %v2196_v44 = vsel %vm1176_vm3, %v2164_v42, %v5688_v38  ;;  %v5693_v29 = vunpack.i.l.bf16 %v7563_v61  ;;  %v5855_v8 = vpack.i.bf16 %v4784_v39, %v4526_v24  ;;  %v2197_v56 = vsel %vm1176_vm3, %v2165_v37, %v5689_v53  ;;  %v8971_v31 = vld [vmem:[#allocation4_spill] sm:$0xff] }
 0x1b6   : > { %5846 = vrot.lane.b32.xlu1 %v5845_v0, %s6101_s24  ;;  %v2228_v43 = vsel %vm1209_vm4, %v2196_v44, %v2011_v2  ;;  %v4413_v0 = vld [vmem:[%s6204_s27 + $0x80] sm:$0xff]  ;;  %v2229_v50 = vsel %vm1209_vm4, %v2197_v56, %v2013_v45  ;;  %v5694_v40 = vunpack.i.h.bf16 %v7563_v61  ;;  %v4414_v61 = vld [vmem:[%s6204_s27 + $0x90] sm:$0xff]  ;;  %v5643_v53 = vunpack.i.l.bf16 %v7428_v32 }
 0x1b7   : > { %2048 = vrot.lane.b32.xlu0 %v4589_v1, %s6106_s6  ;;  %2427 = vmatmul.mubr.f32.gmra.mrb[10].mxu1 %v2227_v6  ;;  %v5483_v1 = vunpack.i.l.bf16 %v7269_v11  ;;  %v2103_v13 = vsel %vm1077_vm0, %v4413_v0, %v5479_v27  ;;  %v5563_v6 = vunpack.i.l.bf16 %v7356_v17  ;;  %v5644_v11 = vunpack.i.h.bf16 %v7428_v32  ;;  %v4754_v27 = vld [vmem:[%s6204_s27 + $0xc1] sm:$0xff] }
 0x1b8   : > { %4620 = vmatprep.mubr.msk.f32.mxu1 %vm1077_vm0, %v2011_v2  ;;  %v7581_v3 = vpop.permute.xlu1 %2016  ;;  %5020 = vmatpush1.bf16.msra.mxu1 %v8969_v28  ;;  %v4723_v28 = vld [vmem:[%s6153_s23 + $0xc8] sm:$0xff]  ;;  %v4591_v0 = vld [vmem:[%s6153_s23 + $0x15a] sm:$0xff] }
 0x1b9   : > { %v2015_v4 = vpop.permute.xlu0 %2014  ;;  %5012 = vmatprep.subr.bf16.mxu1 %v8938_v19 }
 0x1ba   : > { %5851 = vrot.lane.b32.xlu1 %v5850_v55, %s6102_s28  ;;  %v2135_v55 = vsel %vm1110_vm1, %v2103_v13, %v5559_v33  ;;  %v4416_v33 = vld [vmem:[%s6204_s27 + $0xa8] sm:$0xff] }
 0x1bb   : > { %3607 = vrot.lane.b32.xlu0 %v7254_v7, %s6106_s6  ;;  %2432 = vmatmul.mubr.f32.gmra.mrb[12].mxu1 %v2228_v43  ;;  %v2134_v7 = vsel %vm1110_vm1, %v2102_v14, %v5558_v23  ;;  %v2167_v46 = vsel %vm1143_vm2, %v2135_v55, %v5639_v54  ;;  %v8972_v23 = vld [vmem:[#allocation5_spill] sm:$0xff]  ;;  %v4755_v14 = vld [vmem:[%s6204_s27 + $0xc9] sm:$0xff]  ;;  %v5569_v55 = vunpack.i.h.bf16 %v7367_v34 }
 0x1bc   : > { %4621 = vmatprep.mubr.msk.f32.mxu1 %vm1077_vm0, %v2013_v45  ;;  %v7602_v2 = vpop.permute.xlu1 %2018  ;;  %5021 = vmatpush1.bf16.msra.mxu1 %v8970_v62  ;;  %v2166_v20 = vsel %vm1143_vm2, %v2134_v7, %v5638_v52  ;;  %v4785_v45 = vld [vmem:[%s6153_s23 + $0xb1] sm:$0xff]  ;;  %v2199_v39 = vsel %vm1176_vm3, %v2167_v46, %v5694_v40  ;;  %v5564_v52 = vunpack.i.h.bf16 %v7356_v17  ;;  %v5488_v62 = vunpack.i.l.bf16 %v7293_v49  ;;  %v4818_v13 = vld [vmem:[%s6204_s27 + $0xc2] sm:$0xff] }
 0x1bd   : > { %v7608_v38 = vpop.permute.xlu0 %5696  ;;  %5013 = vmatprep.subr.bf16.mxu1 %v8938_v19  ;;  %v2198_v15 = vsel %vm1176_vm3, %v2166_v20, %v5693_v29  ;;  %v5865_v24 = vpack.i.bf16 %v4785_v45, %v4527_v25  ;;  %v2231_v37 = vsel %vm1209_vm4, %v2199_v39, %v7581_v3  ;;  %v5880_v40 = vpack.i.bf16 %v4755_v14, %v4754_v27  ;;  %v4849_v45 = vld [vmem:[%s6153_s23 + $0xb2] sm:$0xff]  ;;  %v4850_v14 = vld [vmem:[%s6153_s23 + $0xc2] sm:$0xff] }
 0x1be   : > { %5861 = vrot.lane.b32.xlu1 %v5860_v22, %s6105_s7  ;;  %v2230_v44 = vsel %vm1209_vm4, %v2198_v15, %v2015_v4  ;;  %v5698_v51 = vunpack.i.l.bf16 %v7608_v38  ;;  %v5699_v56 = vunpack.i.h.bf16 %v7608_v38  ;;  %v5568_v38 = vunpack.i.l.bf16 %v7367_v34 }
 0x1bf   : > { %5856 = vrot.lane.b32.xlu0 %v5855_v8, %s6103_s29  ;;  %2437 = vmatmul.mubr.f32.gmra.mrb[14].mxu1 %v2229_v50  ;;  %v5648_v50 = vunpack.i.l.bf16 %v7440_v47  ;;  %v2106_v25 = vsel %vm1077_vm0, %v4416_v33, %v5488_v62 }
 0x1c0   : > { %4622 = vmatprep.mubr.msk.f32.mxu1 %vm1077_vm0, %v2015_v4  ;;  %v7623_v48 = vpop.permute.xlu1 %5701  ;;  %5022 = vmatpush1.bf16.msra.mxu1 %v8971_v31  ;;  %v4415_v4 = vld [vmem:[%s6204_s27 + $0x98] sm:$0xff]  ;;  %v7699_v31 = vld [vmem:[%s6153_s23 + $0x169] sm:$0xff] }
 0x1c1   : > { %v7632_v42 = vpop.permute.xlu0 %2020  ;;  %5014 = vmatprep.subr.bf16.mxu1 %v8938_v19  ;;  %v4722_v19 = vld [vmem:[%s6153_s23 + $0xc0] sm:$0xff]  ;;  %v2105_v32 = vsel %vm1077_vm0, %v4415_v4, %v5484_v5  ;;  %v5703_v18 = vunpack.i.l.bf16 %v7623_v48 }
 0x1c2   : > { %3609 = vrot.lane.b32.xlu1 %v7272_v59, %s6106_s6  ;;  %v2104_v59 = vsel %vm1077_vm0, %v4414_v61, %v5483_v1  ;;  %v5875_v29 = vpack.i.bf16 %v4723_v28, %v4722_v19  ;;  %v2137_v7 = vsel %vm1110_vm1, %v2105_v32, %v5564_v52  ;;  %v7688_v1 = vld [vmem:[%s6204_s27 + $0x16a] sm:$0xff]  ;;  %v4786_v61 = vld [vmem:[%s6153_s23 + $0xc1] sm:$0xff]  ;;  %v5493_v19 = vunpack.i.l.bf16 %v7291_v35 }
 0x1c3   : > { %2050 = vrot.lane.b32.xlu0 %v4590_v12, %s6106_s6  ;;  %2442 = vmatmul.mubr.f32.gmra.mrb[16].mxu1 %v2230_v44  ;;  %v2136_v43 = vsel %vm1110_vm1, %v2104_v59, %v5563_v6  ;;  %v2169_v15 = vsel %vm1143_vm2, %v2137_v7, %v5644_v11  ;;  %v5489_v12 = vunpack.i.h.bf16 %v7293_v49  ;;  %v4417_v6 = vld [vmem:[%s6204_s27 + $0xb0] sm:$0xff]  ;;  %v5649_v49 = vunpack.i.h.bf16 %v7440_v47  ;;  %v4418_v5 = vld [vmem:[%s6204_s27 + $0xc0] sm:$0xff] }
 0x1c4   : > { %4623 = vmatprep.mubr.msk.f32.mxu1 %vm1077_vm0, %v7581_v3  ;;  %v7649_v41 = vpop.permute.xlu1 %2024  ;;  %5023 = vmatpush1.bf16.msra.mxu1 %v8972_v23  ;;  %v2168_v8 = vsel %vm1143_vm2, %v2136_v43, %v5643_v53  ;;  %v2201_v10 = vsel %vm1176_vm3, %v2169_v15, %v5699_v56  ;;  %v2138_v53 = vsel %vm1110_vm1, %v2106_v25, %v5568_v38  ;;  %v4678_v28 = vld [vmem:[%s6204_s27 + $0x30] sm:$0xff]  ;;  %v5573_v59 = vunpack.i.l.bf16 %v7363_v16 }
 0x1c5   : > { %v7655_v22 = vpop.permute.xlu0 %2022  ;;  %v2200_v17 = vsel %vm1176_vm3, %v2168_v8, %v5698_v51  ;;  %v5890_v46 = vpack.i.bf16 %v4818_v13, %v7688_v1  ;;  %v2170_v51 = vsel %vm1143_vm2, %v2138_v53, %v5648_v50  ;;  %v5885_v39 = vpack.i.bf16 %v4786_v61, %v7699_v31  ;;  %v4819_v8 = vld [vmem:[%s6204_s27 + $0xca] sm:$0xff] }
 0x1c6   : > { %5871 = vrot.lane.b32.xlu1 %v5870_v60, %s6105_s7  ;;  %v2232_v20 = vsel %vm1209_vm4, %v2200_v17, %v7602_v2  ;;  %v2233_v60 = vsel %vm1209_vm4, %v2201_v10, %v7632_v42  ;;  %v2202_v47 = vsel %vm1176_vm3, %v2170_v51, %v5703_v18  ;;  %v5653_v52 = vunpack.i.l.bf16 %v7438_v63  ;;  %v7754_v7 = vld [vmem:[%s6153_s23 + $0x16a] sm:$0xff] }
 0x1c7   : > { %5866 = vrot.lane.b32.xlu0 %v5865_v24, %s6103_s29  ;;  %2447 = vmatmul.mubr.f32.gmra.mrb[18].mxu1 %v2231_v37  ;;  %v5704_v24 = vunpack.i.h.bf16 %v7623_v48  ;;  %v2234_v11 = vsel %vm1209_vm4, %v2202_v47, %v7655_v22  ;;  %v5494_v32 = vunpack.i.h.bf16 %v7291_v35  ;;  %v2108_v62 = vsel %vm1077_vm0, %v4418_v5, %v5493_v19  ;;  %v7757_v38 = vld [vmem:[%s6153_s23 + $0x171] sm:$0xff]  ;;  %v4787_v50 = vld [vmem:[%s6153_s23 + $0xc9] sm:$0xff] }
 0x1c8   : > { %4624 = vmatprep.mubr.msk.f32.mxu1 %vm1077_vm0, %v7602_v2  ;;  %v7671_v3 = vpop.permute.xlu1 %2026  ;;  %v2140_v35 = vsel %vm1110_vm1, %v2108_v62, %v5573_v59  ;;  %v5654_v10 = vunpack.i.h.bf16 %v7438_v63  ;;  %v5498_v53 = vunpack.i.l.bf16 %v7307_v30  ;;  %v4820_v62 = vld [vmem:[%s6204_s27 + $0xda] sm:$0xff] }
 0x1c9   : > { %v7677_v54 = vpop.permute.xlu0 %5706  ;;  %v2172_v25 = vsel %vm1143_vm2, %v2140_v35, %v5653_v52  ;;  %v4757_v52 = vld [vmem:[%s6204_s27 + $0xe1] sm:$0xff] }
 0x1ca   : > { %5876 = vrot.lane.b32.xlu1 %v5875_v29, %s6101_s24  ;;  %v7737_v29 = vld [vmem:[%s6204_s27 + $0x172] sm:$0xff]  ;;  %v5708_v56 = vunpack.i.l.bf16 %v7677_v54  ;;  %v5709_v61 = vunpack.i.h.bf16 %v7677_v54 }
 0x1cb   : > { %2052 = vrot.lane.b32.xlu0 %v4591_v0, %s6106_s6  ;;  %2452 = vmatmul.mubr.f32.gmra.mrb[20].mxu1 %v2232_v20  ;;  %v4419_v20 = vld [vmem:[%s6204_s27 + $0xc8] sm:$0xff]  ;;  %v5900_v18 = vpack.i.bf16 %v4819_v8, %v7737_v29 }
 0x1cc   : > { %4625 = vmatprep.mubr.msk.f32.mxu1 %vm1077_vm0, %v7632_v42  ;;  %v7695_v2 = vpop.permute.xlu1 %5711  ;;  %v2107_v42 = vsel %vm1077_vm0, %v4417_v6, %v5489_v12  ;;  %v5895_v6 = vpack.i.bf16 %v4787_v50, %v7757_v38 }
 0x1cd   : > { %v7705_v44 = vpop.permute.xlu0 %2028  ;;  %v5713_v34 = vunpack.i.l.bf16 %v7695_v2  ;;  %v2139_v23 = vsel %vm1110_vm1, %v2107_v42, %v5569_v55  ;;  %v2204_v55 = vsel %vm1176_vm3, %v2172_v25, %v5708_v56  ;;  %v7814_v56 = vld [vmem:[%s6153_s23 + $0x172] sm:$0xff] }
 0x1ce   : > { %5881 = vrot.lane.b32.xlu1 %v5880_v40, %s6102_s28  ;;  %v2171_v37 = vsel %vm1143_vm2, %v2139_v23, %v5649_v49  ;;  %v5574_v40 = vunpack.i.h.bf16 %v7363_v16  ;;  %v4725_v16 = vld [vmem:[%s6153_s23 + $0xe0] sm:$0xff]  ;;  %v5714_v49 = vunpack.i.h.bf16 %v7695_v2  ;;  %v5658_v2 = vunpack.i.l.bf16 %v7453_v58 }
 0x1cf   : > { %3611 = vrot.lane.b32.xlu0 %v4849_v45, %s6106_s6  ;;  %2457 = vmatmul.mubr.f32.gmra.mrb[22].mxu1 %v2233_v60  ;;  %v3685_v17 = vsel %vm1077_vm0, %v4678_v28, %v5713_v34  ;;  %v4724_v45 = vld [vmem:[%s6153_s23 + $0xd8] sm:$0xff]  ;;  %v2236_v28 = vsel %vm1209_vm4, %v2204_v55, %v7671_v3 }
 0x1d0   : > { %4626 = vmatprep.mubr.msk.f32.mxu1 %vm1077_vm0, %v7655_v22  ;;  %v7723_v48 = vpop.permute.xlu1 %5721  ;;  %v2203_v22 = vsel %vm1176_vm3, %v2171_v37, %v5704_v24  ;;  %v5578_v24 = vunpack.i.l.bf16 %v7378_v21  ;;  %v4679_v34 = vld [vmem:[%s6204_s27 + $0x38] sm:$0xff]  ;;  %v5905_v19 = vpack.i.bf16 %v4725_v16, %v4724_v45  ;;  %v4422_v45 = vld [vmem:[%s6204_s27 + $0xf0] sm:$0xff]  ;;  %v5583_v16 = vunpack.i.l.bf16 %v7374_v36 }
 0x1d1   : > { %v7728_v4 = vpop.permute.xlu0 %5716  ;;  %v5723_v27 = vunpack.i.l.bf16 %v7723_v48  ;;  %v2235_v12 = vsel %vm1209_vm4, %v2203_v22, %v7649_v41  ;;  %v5724_v37 = vunpack.i.h.bf16 %v7723_v48  ;;  %v7822_v48 = vld [vmem:[%s6204_s27 + $0x182] sm:$0xff]  ;;  %v4788_v25 = vld [vmem:[%s6153_s23 + $0xd9] sm:$0xff] }
 0x1d2   : > { %v5718_v43 = vunpack.i.l.bf16 %v7728_v4  ;;  %5891 = vrot.lane.b32.xlu1 %v5890_v46, %s6105_s7  ;;  %v4420_v46 = vld [vmem:[%s6204_s27 + $0xd8] sm:$0xff] }
 0x1d3   : > { %5886 = vrot.lane.b32.xlu0 %v5885_v39, %s6103_s29  ;;  %2462 = vmatmul.mubr.f32.gmra.mrb[24].mxu1 %v2234_v11  ;;  %v5719_v39 = vunpack.i.h.bf16 %v7728_v4  ;;  %v4756_v4 = vld [vmem:[%s6204_s27 + $0xd9] sm:$0xff]  ;;  %v2110_v11 = vsel %vm1077_vm0, %v4420_v46, %v5498_v53 }
 0x1d4   : > { %v3717_v0 = vsel %vm1110_vm1, %v3685_v17, %v5718_v43  ;;  %4627 = vmatprep.mubr.msk.f32.mxu1 %vm1077_vm0, %v7649_v41  ;;  %v7751_v33 = vpop.permute.xlu1 %2030  ;;  %v2109_v41 = vsel %vm1077_vm0, %v4419_v20, %v5494_v32  ;;  %v5499_v43 = vunpack.i.h.bf16 %v7307_v30  ;;  %v4421_v17 = vld [vmem:[%s6204_s27 + $0xe0] sm:$0xff]  ;;  %v5910_v50 = vpack.i.bf16 %v4757_v52, %v4756_v4 }
 0x1d5   : > { %v7763_v15 = vpop.permute.xlu0 %5726  ;;  %v3749_v63 = vsel %vm1143_vm2, %v3717_v0, %v5723_v27  ;;  %v2141_v51 = vsel %vm1110_vm1, %v2109_v41, %v5574_v40  ;;  %v5579_v27 = vunpack.i.h.bf16 %v7378_v21  ;;  %v5659_v0 = vunpack.i.h.bf16 %v7453_v58  ;;  %v4821_v4 = vld [vmem:[%s6204_s27 + $0xe2] sm:$0xff] }
 0x1d6   : > { %v5729_v13 = vunpack.i.h.bf16 %v7763_v15  ;;  %3613 = vrot.lane.b32.xlu1 %v4850_v14, %s6106_s6  ;;  %v2173_v5 = vsel %vm1143_vm2, %v2141_v51, %v5654_v10  ;;  %v5728_v59 = vunpack.i.l.bf16 %v7763_v15  ;;  %v2142_v14 = vsel %vm1110_vm1, %v2110_v11, %v5578_v24 }
 0x1d7   : > { %2054 = vrot.lane.b32.xlu0 %v7754_v7, %s6106_s6  ;;  %2467 = vmatmul.mubr.f32.gmra.mrb[26].mxu1 %v2235_v12  ;;  %v2205_v23 = vsel %vm1176_vm3, %v2173_v5, %v5709_v61  ;;  %v2174_v20 = vsel %vm1143_vm2, %v2142_v14, %v5658_v2  ;;  %v5503_v58 = vunpack.i.l.bf16 %v7304_v26  ;;  %v2111_v15 = vsel %vm1077_vm0, %v4421_v17, %v5499_v43  ;;  %v7844_v12 = vld [vmem:[%s6153_s23 + $0x181] sm:$0xff] }
 0x1d8   : > { %4628 = vmatprep.mubr.msk.f32.mxu1 %vm1077_vm0, %v7671_v3  ;;  %v7785_v54 = vpop.permute.xlu1 %5731  ;;  %v3781_v60 = vsel %vm1176_vm3, %v3749_v63, %v5729_v13  ;;  %v3686_v3 = vsel %vm1077_vm0, %v4679_v34, %v5714_v49  ;;  %v2237_v21 = vsel %vm1209_vm4, %v2205_v23, %v7705_v44  ;;  %v2206_v35 = vsel %vm1176_vm3, %v2174_v20, %v5728_v59  ;;  %v7872_v23 = vld [vmem:[%s6204_s27 + $0x18a] sm:$0xff]  ;;  %v4852_v43 = vld [vmem:[%s6153_s23 + $0xda] sm:$0xff] }
 0x1d9   : > { %v3590_v47 = vpop.permute.xlu0 %3589  ;;  %v3718_v30 = vsel %vm1110_vm1, %v3686_v3, %v5719_v39  ;;  %v5734_v22 = vunpack.i.h.bf16 %v7785_v54  ;;  %v5733_v40 = vunpack.i.l.bf16 %v7785_v54  ;;  %v5920_v13 = vpack.i.bf16 %v4820_v62, %v7822_v48  ;;  %v4789_v14 = vld [vmem:[%s6153_s23 + $0xe1] sm:$0xff]  ;;  %v4681_v20 = vld [vmem:[%s6204_s27 + $0x50] sm:$0xff] }
 0x1da   : > { %v3813_v42 = vsel %vm1209_vm4, %v3781_v60, %v3590_v47  ;;  %4888 = vmatprep.mubr.msk.f32.mxu0 %vm1077_vm0, %v3590_v47  ;;  %5901 = vrot.lane.b32.xlu1 %v5900_v18, %s6105_s7  ;;  %v4851_v18 = vld [vmem:[%s6153_s23 + $0xca] sm:$0xff]  ;;  %v3750_v10 = vsel %vm1143_vm2, %v3718_v30, %v5724_v37  ;;  %v2143_v61 = vsel %vm1110_vm1, %v2111_v15, %v5579_v27  ;;  %v5663_v63 = vunpack.i.l.bf16 %v7446_v57  ;;  %v7880_v37 = vld [vmem:[%s6153_s23 + $0x182] sm:$0xff]  ;;  %v4423_v30 = vld [vmem:[%s6204_s27 + $0xf8] sm:$0xff] }
 0x1db   : > { %5896 = vrot.lane.b32.xlu0 %v5895_v6, %s6103_s29  ;;  %2472 = vmatmul.mubr.f32.gmra.mrb[28].mxu1 %v2236_v28  ;;  %v3782_v55 = vsel %vm1176_vm3, %v3750_v10, %v5734_v22  ;;  %v2238_v53 = vsel %vm1209_vm4, %v2206_v35, %v7751_v33  ;;  %v2175_v54 = vsel %vm1143_vm2, %v2143_v61, %v5659_v0  ;;  %v4680_v60 = vld [vmem:[%s6204_s27 + $0x48] sm:$0xff]  ;;  %v5504_v22 = vunpack.i.h.bf16 %v7304_v26  ;;  %v4726_v35 = vld [vmem:[%s6153_s23 + $0xf0] sm:$0xff] }
 0x1dc   : > { %3993 = vmatmul.mubr.f32.vlgmr.msra.gmra.mrb[0].mxu0 %v3813_v42  ;;  %4629 = vmatprep.mubr.msk.f32.mxu1 %vm1077_vm0, %v7705_v44  ;;  %v7811_v8 = vpop.permute.xlu1 %5736  ;;  %v5915_v51 = vpack.i.bf16 %v4788_v25, %v7844_v12  ;;  %v2207_v24 = vsel %vm1176_vm3, %v2175_v54, %v5733_v40  ;;  %v2112_v34 = vsel %vm1077_vm0, %v4422_v45, %v5503_v58  ;;  %v7884_v27 = vld [vmem:[%s6153_s23 + $0x189] sm:$0xff]  ;;  %v4727_v58 = vld [vmem:[%s6153_s23 + $0xf8] sm:$0xff]  ;;  %v5664_v15 = vunpack.i.h.bf16 %v7446_v57 }
 0x1dd   : > { %v2033_v32 = vpop.permute.xlu0 %2032  ;;  %v5738_v41 = vunpack.i.l.bf16 %v7811_v8  ;;  %v2144_v39 = vsel %vm1110_vm1, %v2112_v34, %v5583_v16  ;;  %v2113_v10 = vsel %vm1077_vm0, %v4423_v30, %v5504_v22  ;;  %v5935_v57 = vpack.i.bf16 %v4727_v58, %v4726_v35  ;;  %v8974_v30 = vld [vmem:[#allocation65_spill] sm:$0xff] }
 0x1de   : > { %5906 = vrot.lane.b32.xlu1 %v5905_v19, %s6101_s24  ;;  %v2239_v5 = vsel %vm1209_vm4, %v2207_v24, %v2033_v32  ;;  %v2176_v59 = vsel %vm1143_vm2, %v2144_v39, %v5663_v63  ;;  %v4682_v39 = vld [vmem:[%s6204_s27 + $0x60] sm:$0xff]  ;;  %v5668_v22 = vunpack.i.l.bf16 %v8974_v30 }
 0x1df   : > { %2056 = vrot.lane.b32.xlu0 %v7814_v56, %s6106_s6  ;;  %2477 = vmatmul.mubr.f32.gmra.mrb[30].mxu1 %v2237_v21  ;;  %v3687_v42 = vsel %vm1077_vm0, %v4680_v60, %v5738_v41  ;;  %v5930_v21 = vpack.i.bf16 %v4821_v4, %v7872_v23  ;;  %v4758_v41 = vld [vmem:[%s6204_s27 + $0xf1] sm:$0xff]  ;;  %v5508_v4 = vunpack.i.l.bf16 %v7314_v9 }
 0x1e0   : > { %4630 = vmatprep.mubr.msk.f32.mxu1 %vm1077_vm0, %v7751_v33  ;;  %v7838_v44 = vpop.permute.xlu1 %5741  ;;  %v7919_v60 = vld [vmem:[%s6153_s23 + $0x18a] sm:$0xff] }
 0x1e1   : > { %v3592_v6 = vpop.permute.xlu0 %3591  ;;  %v5743_v46 = vunpack.i.l.bf16 %v7838_v44  ;;  %v5744_v40 = vunpack.i.h.bf16 %v7838_v44 }
 0x1e2   : > { %4889 = vmatprep.mubr.msk.f32.mxu0 %vm1077_vm0, %v3592_v6  ;;  %5911 = vrot.lane.b32.xlu1 %v5910_v50, %s6102_s28  ;;  %v3814_v49 = vsel %vm1209_vm4, %v3782_v55, %v3592_v6  ;;  %v5584_v50 = vunpack.i.h.bf16 %v7374_v36  ;;  %v5925_v36 = vpack.i.bf16 %v4789_v14, %v7884_v27 }
 0x1e3   : > { %3615 = vrot.lane.b32.xlu0 %v4851_v18, %s6106_s6  ;;  %2482 = vmatmul.mubr.f32.gmra.mrb[32].mxu1 %v2238_v53  ;;  %v3719_v52 = vsel %vm1110_vm1, %v3687_v42, %v5743_v46  ;;  %v4759_v53 = vld [vmem:[%s6204_s27 + $0xf9] sm:$0xff] }
 0x1e4   : > { %3998 = vmatmul.mubr.f32.gmra.mrb[2].mxu0 %v3814_v49  ;;  %4631 = vmatprep.mubr.msk.f32.mxu1 %vm1077_vm0, %v2033_v32  ;;  %v5752_v33 = vpop.permute.xlu1 %5751  ;;  %v5739_v32 = vunpack.i.h.bf16 %v7811_v8  ;;  %v2145_v45 = vsel %vm1110_vm1, %v2113_v10, %v5584_v50 }
 0x1e5   : > { %v5754_v47 = vunpack.i.h.bf16 %v5752_v33  ;;  %v5753_v19 = vunpack.i.l.bf16 %v5752_v33  ;;  %v5747_v2 = vpop.permute.xlu0 %5746  ;;  %v2177_v6 = vsel %vm1143_vm2, %v2145_v45, %v5664_v15  ;;  %v5940_v33 = vpack.i.bf16 %v4759_v53, %v4758_v41  ;;  %v4761_v41 = vld [vmem:[%s6204_s27 + $0x111] sm:$0xff] }
 0x1e6   : > { %v5748_v28 = vunpack.i.l.bf16 %v5747_v2  ;;  %5921 = vrot.lane.b32.xlu1 %v5920_v13, %s6105_s7  ;;  %v5749_v18 = vunpack.i.h.bf16 %v5747_v2  ;;  %v3688_v13 = vsel %vm1077_vm0, %v4681_v20, %v5739_v32  ;;  %v4823_v2 = vld [vmem:[%s6204_s27 + $0xfa] sm:$0xff] }
 0x1e7   : > { %5916 = vrot.lane.b32.xlu0 %v5915_v51, %s6103_s29  ;;  %2487 = vmatmul.mubr.f32.gmra.mrb[34].mxu1 %v2239_v5  ;;  %v2208_v11 = vsel %vm1176_vm3, %v2176_v59, %v5753_v19  ;;  %v3720_v16 = vsel %vm1110_vm1, %v3688_v13, %v5744_v40  ;;  %v4822_v19 = vld [vmem:[%s6204_s27 + $0xf2] sm:$0xff]  ;;  %v4728_v40 = vld [vmem:[%s6153_s23 + $0x108] sm:$0xff] }
 0x1e8   : > { %v3594_v3 = vpop.permute.xlu1 %3593  ;;  %v3751_v17 = vsel %vm1143_vm2, %v3719_v52, %v5748_v28  ;;  %v3752_v55 = vsel %vm1143_vm2, %v3720_v16, %v5749_v18  ;;  %v4853_v28 = vld [vmem:[%s6153_s23 + $0xe2] sm:$0xff]  ;;  %v4790_v5 = vld [vmem:[%s6153_s23 + $0xf1] sm:$0xff]  ;;  %v4791_v59 = vld [vmem:[%s6153_s23 + $0xf9] sm:$0xff]  ;;  %v5950_v14 = vpack.i.bf16 %v4823_v2, %v4822_v19 }
 0x1e9   : > { %v2035_v62 = vpop.permute.xlu0 %2034  ;;  %4890 = vmatprep.mubr.msk.f32.mxu0 %vm1077_vm0, %v3594_v3  ;;  %v3783_v0 = vsel %vm1176_vm3, %v3751_v17, %v5754_v47  ;;  %v4824_v2 = vld [vmem:[%s6204_s27 + $0x10a] sm:$0xff] }
 0x1ea   : > { %4632 = vmatprep.mubr.msk.f32.mxu1 %vm1077_vm0, %v2035_v62  ;;  %3617 = vrot.lane.b32.xlu1 %v4852_v43, %s6106_s6  ;;  %v2240_v26 = vsel %vm1209_vm4, %v2208_v11, %v2035_v62  ;;  %v3815_v8 = vsel %vm1209_vm4, %v3783_v0, %v3594_v3  ;;  %v4424_v43 = vld [vmem:[%s6204_s27 + $0x108] sm:$0xff]  ;;  %v8973_v11 = vld [vmem:[#allocation60_spill] sm:$0xff]  ;;  %v5945_v0 = vpack.i.bf16 %v4791_v59, %v4790_v5 }
 0x1eb   : > { %2058 = vrot.lane.b32.xlu0 %v7880_v37, %s6106_s6  ;;  %2492 = vmatmul.mubr.f32.gmra.mrb[36].mxu1 %v2240_v26  ;;  %v5588_v3 = vunpack.i.l.bf16 %v8973_v11  ;;  %v4729_v26 = vld [vmem:[%s6153_s23 + $0x110] sm:$0xff]  ;;  %v2114_v35 = vsel %vm1077_vm0, %v4424_v43, %v5508_v4  ;;  %v5589_v58 = vunpack.i.h.bf16 %v8973_v11 }
 0x1ec   : > { %4003 = vmatmul.mubr.f32.gmra.mrb[4].mxu0 %v3815_v8  ;;  %v2037_v44 = vpop.permute.xlu1 %2036  ;;  %v4425_v8 = vld [vmem:[%s6204_s27 + $0x110] sm:$0xff]  ;;  %v5955_v13 = vpack.i.bf16 %v4729_v26, %v4728_v40 }
 0x1ed   : > { %v5757_v25 = vpop.permute.xlu0 %5756  ;;  %4633 = vmatprep.mubr.msk.f32.mxu1 %vm1077_vm0, %v2037_v44  ;;  %v2146_v18 = vsel %vm1110_vm1, %v2114_v35, %v5588_v3  ;;  %v4825_v4 = vld [vmem:[%s6204_s27 + $0x112] sm:$0xff]  ;;  %v4426_v35 = vld [vmem:[%s6204_s27 + $0x120] sm:$0xff] }
 0x1ee   : > { %v5759_v61 = vunpack.i.h.bf16 %v5757_v25  ;;  %v5758_v63 = vunpack.i.l.bf16 %v5757_v25  ;;  %5931 = vrot.lane.b32.xlu1 %v5930_v21, %s6105_s7  ;;  %v5509_v21 = vunpack.i.h.bf16 %v7314_v9  ;;  %v5669_v9 = vunpack.i.h.bf16 %v8974_v30  ;;  %v4793_v43 = vld [vmem:[%s6153_s23 + $0x111] sm:$0xff] }
 0x1ef   : > { %5926 = vrot.lane.b32.xlu0 %v5925_v36, %s6103_s29  ;;  %v2178_v10 = vsel %vm1143_vm2, %v2146_v18, %v5668_v22  ;;  %v4684_v18 = vld [vmem:[%s6204_s27 + $0x78] sm:$0xff] }
 0x1f0   : > { %v3596_v49 = vpop.permute.xlu1 %3595  ;;  %v2209_v54 = vsel %vm1176_vm3, %v2177_v6, %v5758_v63  ;;  %v3784_v46 = vsel %vm1176_vm3, %v3752_v55, %v5759_v61  ;;  %v4854_v63 = vld [vmem:[%s6153_s23 + $0xf2] sm:$0xff]  ;;  %v4760_v55 = vld [vmem:[%s6204_s27 + $0x109] sm:$0xff] }
 0x1f1   : > { %v7922_v51 = vpop.permute.xlu0 %5761  ;;  %v2241_v24 = vsel %vm1209_vm4, %v2209_v54, %v2037_v44  ;;  %4891 = vmatprep.mubr.msk.f32.mxu0 %vm1077_vm0, %v3596_v49  ;;  %v3816_v34 = vsel %vm1209_vm4, %v3784_v46, %v3596_v49  ;;  %v4683_v49 = vld [vmem:[%s6204_s27 + $0x68] sm:$0xff] }
 0x1f2   : > { %2497 = vmatmul.mubr.f32.gmra.mrb[38].mxu1 %v2241_v24  ;;  %5936 = vrot.lane.b32.xlu1 %v5935_v57, %s6101_s24  ;;  %v5763_v47 = vunpack.i.l.bf16 %v7922_v51  ;;  %v2115_v57 = vsel %vm1077_vm0, %v4425_v8, %v5509_v21  ;;  %v5764_v45 = vunpack.i.h.bf16 %v7922_v51 }
 0x1f3   : > { %2060 = vrot.lane.b32.xlu0 %v7919_v60, %s6106_s6  ;;  %4008 = vmatmul.mubr.f32.gmra.mrb[6].mxu0 %v3816_v34  ;;  %v2147_v53 = vsel %vm1110_vm1, %v2115_v57, %v5589_v58  ;;  %v8976_v58 = vld [vmem:[#allocation59_spill] sm:$0xff] }
 0x1f4   : > { %v7934_v42 = vpop.permute.xlu1 %5771  ;;  %v3689_v32 = vsel %vm1077_vm0, %v4682_v39, %v5763_v47  ;;  %v5960_v39 = vpack.i.bf16 %v4761_v41, %v4760_v55  ;;  %v4855_v47 = vld [vmem:[%s6153_s23 + $0xfa] sm:$0xff] }
 0x1f5   : > { %v7940_v52 = vpop.permute.xlu0 %5766  ;;  %v5773_v62 = vunpack.i.l.bf16 %v7934_v42  ;;  %v5774_v5 = vunpack.i.h.bf16 %v7934_v42  ;;  %v5970_v42 = vpack.i.bf16 %v4825_v4, %v4824_v2 }
 0x1f6   : > { %v5768_v17 = vunpack.i.l.bf16 %v7940_v52  ;;  %5941 = vrot.lane.b32.xlu1 %v5940_v33, %s6102_s28  ;;  %v5769_v54 = vunpack.i.h.bf16 %v7940_v52  ;;  %v2179_v33 = vsel %vm1143_vm2, %v2147_v53, %v5669_v9  ;;  %v4792_v52 = vld [vmem:[%s6153_s23 + $0x109] sm:$0xff] }
 0x1f7   : > { %3619 = vrot.lane.b32.xlu0 %v4853_v28, %s6106_s6  ;;  %v3690_v28 = vsel %vm1077_vm0, %v4683_v49, %v5764_v45  ;;  %v5965_v30 = vpack.i.bf16 %v4793_v43, %v4792_v52  ;;  %v4427_v43 = vld [vmem:[%s6204_s27 + $0x128] sm:$0xff] }
 0x1f8   : > { %v3721_v50 = vsel %vm1110_vm1, %v3689_v32, %v5768_v17  ;;  %v2039_v20 = vpop.permute.xlu1 %2038  ;;  %v3722_v11 = vsel %vm1110_vm1, %v3690_v28, %v5769_v54  ;;  %v4857_v54 = vld [vmem:[%s6153_s23 + $0x112] sm:$0xff] }
 0x1f9   : > { %v5777_v15 = vpop.permute.xlu0 %5776  ;;  %4634 = vmatprep.mubr.msk.f32.mxu1 %vm1077_vm0, %v2039_v20  ;;  %v3753_v25 = vsel %vm1143_vm2, %v3721_v50, %v5773_v62  ;;  %v3754_v32 = vsel %vm1143_vm2, %v3722_v11, %v5774_v5  ;;  %v4730_v62 = vld [vmem:[%s6153_s23 + $0x120] sm:$0xff]  ;;  %v5594_v11 = vunpack.i.h.bf16 %v8976_v58 }
 0x1fa   : > { %v5779_v36 = vunpack.i.h.bf16 %v5777_v15  ;;  %v5778_v44 = vunpack.i.l.bf16 %v5777_v15  ;;  %5951 = vrot.lane.b32.xlu1 %v5950_v14, %s6105_s7  ;;  %v5593_v15 = vunpack.i.l.bf16 %v8976_v58 }
 0x1fb   : > { %5946 = vrot.lane.b32.xlu0 %v5945_v0, %s6103_s29  ;;  %v4731_v0 = vld [vmem:[%s6153_s23 + $0x128] sm:$0xff] }
 0x1fc   : > { %v5782_v16 = vpop.permute.xlu1 %5781  ;;  %v2210_v61 = vsel %vm1176_vm3, %v2178_v10, %v5778_v44  ;;  %v3785_v6 = vsel %vm1176_vm3, %v3753_v25, %v5779_v36  ;;  %v5975_v36 = vpack.i.bf16 %v4731_v0, %v4730_v62  ;;  %v4856_v10 = vld [vmem:[%s6153_s23 + $0x10a] sm:$0xff]  ;;  %v4685_v62 = vld [vmem:[%s6204_s27 + $0x80] sm:$0xff] }
 0x1fd   : > { %v5783_v46 = vunpack.i.l.bf16 %v5782_v16  ;;  %v3598_v24 = vpop.permute.xlu0 %3597  ;;  %v2242_v51 = vsel %vm1209_vm4, %v2210_v61, %v2039_v20  ;;  %v5784_v3 = vunpack.i.h.bf16 %v5782_v16  ;;  %v8975_v20 = vld [vmem:[#allocation54_spill] sm:$0xff]  ;;  %v4763_v25 = vld [vmem:[%s6204_s27 + $0x129] sm:$0xff] }
 0x1fe   : > { %2502 = vmatmul.mubr.f32.gmra.mrb[40].mxu1 %v2242_v51  ;;  %4892 = vmatprep.mubr.msk.f32.mxu0 %vm1077_vm0, %v3598_v24  ;;  %v3817_v34 = vsel %vm1209_vm4, %v3785_v6, %v3598_v24  ;;  %v5513_v40 = vunpack.i.l.bf16 %v8975_v20  ;;  %v5514_v5 = vunpack.i.h.bf16 %v8975_v20 }
 0x1ff   : > { %5956 = vrot.lane.b32.xlu1 %v5955_v13, %s6101_s24  ;;  %3621 = vrot.lane.b32.xlu0 %v4854_v63, %s6106_s6  ;;  %v2211_v19 = vsel %vm1176_vm3, %v2179_v33, %v5783_v46  ;;  %v3786_v50 = vsel %vm1176_vm3, %v3754_v32, %v5784_v3  ;;  %v4762_v13 = vld [vmem:[%s6204_s27 + $0x121] sm:$0xff]  ;;  %v4827_v33 = vld [vmem:[%s6204_s27 + $0x12a] sm:$0xff] }
 0x200   : > { %4013 = vmatmul.mubr.f32.gmra.mrb[8].mxu0 %v3817_v34  ;;  %v7985_v59 = vpop.permute.xlu1 %5786  ;;  %v2116_v61 = vsel %vm1077_vm0, %v4426_v35, %v5513_v40  ;;  %v5980_v49 = vpack.i.bf16 %v4763_v25, %v4762_v13  ;;  %v4826_v46 = vld [vmem:[%s6204_s27 + $0x122] sm:$0xff]  ;;  %v2117_v20 = vsel %vm1077_vm0, %v4427_v43, %v5514_v5 }
 0x201   : > { %v2041_v17 = vpop.permute.xlu0 %2040  ;;  %v5788_v26 = vunpack.i.l.bf16 %v7985_v59  ;;  %v2148_v41 = vsel %vm1110_vm1, %v2116_v61, %v5593_v15  ;;  %v5990_v3 = vpack.i.bf16 %v4827_v33, %v4826_v46  ;;  %v4733_v32 = vld [vmem:[%s6153_s23 + $0x140] sm:$0xff]  ;;  %v4859_v61 = vld [vmem:[%s6153_s23 + $0x12a] sm:$0xff] }
 0x202   : > { %4635 = vmatprep.mubr.msk.f32.mxu1 %vm1077_vm0, %v2041_v17  ;;  %v2243_v14 = vsel %vm1209_vm4, %v2211_v19, %v2041_v17  ;;  %v4858_v15 = vld [vmem:[%s6153_s23 + $0x122] sm:$0xff]  ;;  %v4686_v33 = vld [vmem:[%s6204_s27 + $0x90] sm:$0xff] }
 0x203   : > { %5961 = vrot.lane.b32.xlu1 %v5960_v39, %s6102_s28  ;;  %3623 = vrot.lane.b32.xlu0 %v4855_v47, %s6106_s6  ;;  %v3691_v63 = vsel %vm1077_vm0, %v4684_v18, %v5788_v26  ;;  %v4794_v39 = vld [vmem:[%s6153_s23 + $0x121] sm:$0xff]  ;;  %v4795_v47 = vld [vmem:[%s6153_s23 + $0x129] sm:$0xff] }
 0x204   : > { %2507 = vmatmul.mubr.f32.gmra.mrb[42].mxu1 %v2243_v14  ;;  %v7995_v22 = vpop.permute.xlu1 %5791  ;;  %v5985_v17 = vpack.i.bf16 %v4795_v47, %v4794_v39  ;;  %v5789_v14 = vunpack.i.h.bf16 %v7985_v59  ;;  %v4764_v18 = vld [vmem:[%s6204_s27 + $0x139] sm:$0xff]  ;;  %v6085_v47 = vld [vmem:[%s6204_s27 + $0x142] sm:$0xff] }
 0x205   : > { %v3600_v21 = vpop.permute.xlu0 %3599  ;;  %v5793_v9 = vunpack.i.l.bf16 %v7995_v22  ;;  %v5794_v0 = vunpack.i.h.bf16 %v7995_v22 }
 0x206   : > { %4893 = vmatprep.mubr.msk.f32.mxu0 %vm1077_vm0, %v3600_v21  ;;  %v3818_v8 = vsel %vm1209_vm4, %v3786_v50, %v3600_v21  ;;  %v3692_v35 = vsel %vm1077_vm0, %v4685_v62, %v5789_v14 }
 0x207   : > { %5971 = vrot.lane.b32.xlu1 %v5970_v42, %s6105_s7  ;;  %5966 = vrot.lane.b32.xlu0 %v5965_v30, %s6103_s29  ;;  %v3723_v53 = vsel %vm1110_vm1, %v3691_v63, %v5793_v9  ;;  %v4732_v30 = vld [vmem:[%s6153_s23 + $0x138] sm:$0xff]  ;;  %v4765_v9 = vld [vmem:[%s6204_s27 + $0x141] sm:$0xff] }
 0x208   : > { %4018 = vmatmul.mubr.f32.gmra.mrb[10].mxu0 %v3818_v8  ;;  %v5802_v44 = vpop.permute.xlu1 %5801  ;;  %v2149_v8 = vsel %vm1110_vm1, %v2117_v20, %v5594_v11  ;;  %v5995_v59 = vpack.i.bf16 %v4733_v32, %v4732_v30  ;;  %v4828_v63 = vld [vmem:[%s6204_s27 + $0x13a] sm:$0xff] }
 0x209   : > { %v5804_v57 = vunpack.i.h.bf16 %v5802_v44  ;;  %v5803_v45 = vunpack.i.l.bf16 %v5802_v44  ;;  %v5797_v16 = vpop.permute.xlu0 %5796 }
 0x20a   : > { %v5799_v6 = vunpack.i.h.bf16 %v5797_v16  ;;  %v5798_v55 = vunpack.i.l.bf16 %v5797_v16 }
 0x20b   : > { %5976 = vrot.lane.b32.xlu1 %v5975_v36, %s6101_s24  ;;  %3625 = vrot.lane.b32.xlu0 %v4856_v10, %s6106_s6  ;;  %v3724_v36 = vsel %vm1110_vm1, %v3692_v35, %v5794_v0 }
 0x20c   : > { %v3602_v24 = vpop.permute.xlu1 %3601  ;;  %v2180_v51 = vsel %vm1143_vm2, %v2148_v41, %v5798_v55  ;;  %v3755_v34 = vsel %vm1143_vm2, %v3723_v53, %v5799_v6  ;;  %v4796_v6 = vld [vmem:[%s6153_s23 + $0x139] sm:$0xff]  ;;  %v8977_v53 = vld [vmem:[#allocation56_spill] sm:$0xff] }
 0x20d   : > { %v2043_v19 = vpop.permute.xlu0 %2042  ;;  %4894 = vmatprep.mubr.msk.f32.mxu0 %vm1077_vm0, %v3602_v24  ;;  %v2212_v2 = vsel %vm1176_vm3, %v2180_v51, %v5803_v45  ;;  %v3787_v28 = vsel %vm1176_vm3, %v3755_v34, %v5804_v57  ;;  %v6000_v45 = vpack.i.bf16 %v4765_v9, %v4764_v18  ;;  %v8978_v51 = vld [vmem:[#allocation62_spill] sm:$0xff] }
 0x20e   : > { %4636 = vmatprep.mubr.msk.f32.mxu1 %vm1077_vm0, %v2043_v19  ;;  %v2244_v4 = vsel %vm1209_vm4, %v2212_v2, %v2043_v19  ;;  %v3819_v52 = vsel %vm1209_vm4, %v3787_v28, %v3602_v24  ;;  %v4428_v24 = vld [vmem:[%s6204_s27 + $0x138] sm:$0xff]  ;;  %v5598_v34 = vunpack.i.l.bf16 %v8978_v51  ;;  %v6010_v19 = vpack.i.bf16 %v6085_v47, %v4828_v63  ;;  %v6086_v2 = vld [vmem:[%s6153_s23 + $0x141] sm:$0xff] }
 0x20f   : > { %5981 = vrot.lane.b32.xlu1 %v5980_v49, %s6102_s28  ;;  %3627 = vrot.lane.b32.xlu0 %v4857_v54, %s6106_s6  ;;  %v5518_v49 = vunpack.i.l.bf16 %v8977_v53  ;;  %v6005_v28 = vpack.i.bf16 %v6086_v2, %v4796_v6  ;;  %v4736_v47 = vld [vmem:[%s6153_s23 + $0x168] sm:$0xff] }
 0x210   : > { %2512 = vmatmul.mubr.f32.gmra.mrb[44].mxu1 %v2244_v4  ;;  %4023 = vmatmul.mubr.f32.gmra.mrb[12].mxu0 %v3819_v52  ;;  %v5812_v42 = vpop.permute.xlu1 %5811  ;;  %v4734_v4 = vld [vmem:[%s6153_s23 + $0x150] sm:$0xff]  ;;  %v4735_v52 = vld [vmem:[%s6153_s23 + $0x158] sm:$0xff] }
 0x211   : > { %v5813_v21 = vunpack.i.l.bf16 %v5812_v42  ;;  %v5807_v50 = vpop.permute.xlu0 %5806  ;;  %v5814_v44 = vunpack.i.h.bf16 %v5812_v42  ;;  %v6015_v0 = vpack.i.bf16 %v4735_v52, %v4734_v4 }
 0x212   : > { %v5809_v40 = vunpack.i.h.bf16 %v5807_v50  ;;  %v5808_v26 = vunpack.i.l.bf16 %v5807_v50  ;;  %v4860_v50 = vld [vmem:[%s6153_s23 + $0x13a] sm:$0xff] }
 0x213   : > { %5991 = vrot.lane.b32.xlu1 %v5990_v3, %s6105_s7  ;;  %5986 = vrot.lane.b32.xlu0 %v5985_v17, %s6103_s29  ;;  %v2118_v17 = vsel %vm1077_vm0, %v4428_v24, %v5518_v49  ;;  %v6087_v49 = vld [vmem:[%s6204_s27 + $0x152] sm:$0xff] }
 0x214   : > { %v8048_v58 = vpop.permute.xlu1 %5816  ;;  %v2181_v22 = vsel %vm1143_vm2, %v2149_v8, %v5808_v26  ;;  %v3756_v57 = vsel %vm1143_vm2, %v3724_v36, %v5809_v40  ;;  %v2150_v32 = vsel %vm1110_vm1, %v2118_v17, %v5598_v34  ;;  %v4766_v26 = vld [vmem:[%s6204_s27 + $0x151] sm:$0xff]  ;;  %v4767_v8 = vld [vmem:[%s6204_s27 + $0x159] sm:$0xff]  ;;  %v4768_v17 = vld [vmem:[%s6204_s27 + $0x169] sm:$0xff] }
 0x215   : > { %v2045_v10 = vpop.permute.xlu0 %2044  ;;  %v2213_v13 = vsel %vm1176_vm3, %v2181_v22, %v5813_v21  ;;  %v3788_v41 = vsel %vm1176_vm3, %v3756_v57, %v5814_v44  ;;  %v5818_v54 = vunpack.i.l.bf16 %v8048_v58  ;;  %v5519_v22 = vunpack.i.h.bf16 %v8977_v53  ;;  %v4429_v36 = vld [vmem:[%s6204_s27 + $0x140] sm:$0xff]  ;;  %v6089_v24 = vld [vmem:[%s6153_s23 + $0x151] sm:$0xff] }
 0x216   : > { %4637 = vmatprep.mubr.msk.f32.mxu1 %vm1077_vm0, %v2045_v10  ;;  %v2245_v25 = vsel %vm1209_vm4, %v2213_v13, %v2045_v10  ;;  %v5599_v44 = vunpack.i.h.bf16 %v8978_v51  ;;  %v6020_v10 = vpack.i.bf16 %v4767_v8, %v4766_v26  ;;  %v5819_v13 = vunpack.i.h.bf16 %v8048_v58  ;;  %v4861_v57 = vld [vmem:[%s6153_s23 + $0x142] sm:$0xff]  ;;  %v6090_v51 = vld [vmem:[%s6153_s23 + $0x159] sm:$0xff] }
 0x217   : > { %5996 = vrot.lane.b32.xlu1 %v5995_v59, %s6101_s24  ;;  %3629 = vrot.lane.b32.xlu0 %v4858_v15, %s6106_s6  ;;  %v3693_v14 = vsel %vm1077_vm0, %v4686_v33, %v5818_v54  ;;  %v6088_v54 = vld [vmem:[%s6204_s27 + $0x15a] sm:$0xff]  ;;  %v4688_v26 = vld [vmem:[%s6204_s27 + $0xa8] sm:$0xff] }
 0x218   : > { %2517 = vmatmul.mubr.f32.gmra.mrb[46].mxu1 %v2245_v25  ;;  %v8061_v16 = vpop.permute.xlu1 %5821 }
 0x219   : > { %v3604_v55 = vpop.permute.xlu0 %3603  ;;  %v5823_v39 = vunpack.i.l.bf16 %v8061_v16 }
 0x21a   : > { %4895 = vmatprep.mubr.msk.f32.mxu0 %vm1077_vm0, %v3604_v55  ;;  %v3820_v46 = vsel %vm1209_vm4, %v3788_v41, %v3604_v55  ;;  %v2119_v55 = vsel %vm1077_vm0, %v4429_v36, %v5519_v22 }
 0x21b   : > { %6001 = vrot.lane.b32.xlu1 %v6000_v45, %s6102_s28  ;;  %3631 = vrot.lane.b32.xlu0 %v4859_v61, %s6106_s6  ;;  %v3725_v62 = vsel %vm1110_vm1, %v3693_v14, %v5823_v39  ;;  %v4687_v45 = vld [vmem:[%s6204_s27 + $0x98] sm:$0xff]  ;;  %v5824_v61 = vunpack.i.h.bf16 %v8061_v16  ;;  %v2151_v58 = vsel %vm1110_vm1, %v2119_v55, %v5599_v44  ;;  %v6025_v16 = vpack.i.bf16 %v6090_v51, %v6089_v24 }
 0x21c   : > { %4028 = vmatmul.mubr.f32.gmra.mrb[14].mxu0 %v3820_v46  ;;  %v5832_v5 = vpop.permute.xlu1 %5831  ;;  %v6030_v46 = vpack.i.bf16 %v6088_v54, %v6087_v49  ;;  %v3694_v34 = vsel %vm1077_vm0, %v4687_v45, %v5819_v13  ;;  %v4769_v14 = vld [vmem:[%s6204_s27 + $0x171] sm:$0xff]  ;;  %v6092_v45 = vld [vmem:[%s6153_s23 + $0x15a] sm:$0xff] }
 0x21d   : > { %v5834_v43 = vunpack.i.h.bf16 %v5832_v5  ;;  %v5833_v11 = vunpack.i.l.bf16 %v5832_v5  ;;  %v5827_v3 = vpop.permute.xlu0 %5826  ;;  %v3726_v2 = vsel %vm1110_vm1, %v3694_v34, %v5824_v61  ;;  %v6050_v61 = vpack.i.bf16 %v7737_v29, %v7688_v1 }
 0x21e   : > { %v5829_v42 = vunpack.i.h.bf16 %v5827_v3  ;;  %v5828_v30 = vunpack.i.l.bf16 %v5827_v3 }
 0x21f   : > { %6011 = vrot.lane.b32.xlu1 %v6010_v19, %s6105_s7  ;;  %6006 = vrot.lane.b32.xlu0 %v6005_v28, %s6103_s29  ;;  %v4737_v19 = vld [vmem:[%s6153_s23 + $0x170] sm:$0xff] }
 0x220   : > { %v3606_v21 = vpop.permute.xlu1 %3605  ;;  %v2182_v20 = vsel %vm1143_vm2, %v2150_v32, %v5828_v30  ;;  %v3757_v40 = vsel %vm1143_vm2, %v3725_v62, %v5829_v42  ;;  %v8979_v42 = vld [vmem:[#allocation55_spill] sm:$0xff] }
 0x221   : > { %v2047_v59 = vpop.permute.xlu0 %2046  ;;  %4896 = vmatprep.mubr.msk.f32.mxu0 %vm1077_vm0, %v3606_v21  ;;  %v2214_v35 = vsel %vm1176_vm3, %v2182_v20, %v5833_v11  ;;  %v3789_v15 = vsel %vm1176_vm3, %v3757_v40, %v5834_v43  ;;  %v6035_v11 = vpack.i.bf16 %v4737_v19, %v4736_v47  ;;  %v5523_v30 = vunpack.i.l.bf16 %v8979_v42  ;;  %v4771_v47 = vld [vmem:[%s6204_s27 + $0x189] sm:$0xff] }
 0x222   : > { %4638 = vmatprep.mubr.msk.f32.mxu1 %vm1077_vm0, %v2047_v59  ;;  %v2246_v18 = vsel %vm1209_vm4, %v2214_v35, %v2047_v59  ;;  %v3821_v9 = vsel %vm1209_vm4, %v3789_v15, %v3606_v21  ;;  %v8980_v21 = vld [vmem:[#allocation61_spill] sm:$0xff]  ;;  %v6040_v35 = vpack.i.bf16 %v4769_v14, %v4768_v17  ;;  %v5524_v1 = vunpack.i.h.bf16 %v8979_v42  ;;  %v4689_v19 = vld [vmem:[%s6204_s27 + $0xb0] sm:$0xff] }
 0x223   : > { %6016 = vrot.lane.b32.xlu1 %v6015_v0, %s6101_s24  ;;  %3633 = vrot.lane.b32.xlu0 %v4860_v50, %s6106_s6  ;;  %v4430_v0 = vld [vmem:[%s6204_s27 + $0x150] sm:$0xff]  ;;  %v5603_v50 = vunpack.i.l.bf16 %v8980_v21  ;;  %v5604_v24 = vunpack.i.h.bf16 %v8980_v21  ;;  %v6070_v21 = vpack.i.bf16 %v7872_v23, %v7822_v48  ;;  %v4432_v23 = vld [vmem:[%s6204_s27 + $0x168] sm:$0xff] }
 0x224   : > { %2522 = vmatmul.mubr.f32.gmra.mrb[48].mxu1 %v2246_v18  ;;  %4033 = vmatmul.mubr.f32.gmra.mrb[16].mxu0 %v3821_v9  ;;  %v5842_v25 = vpop.permute.xlu1 %5841  ;;  %v6091_v59 = vld [vmem:[%s6153_s23 + $0x152] sm:$0xff]  ;;  %v2120_v22 = vsel %vm1077_vm0, %v4430_v0, %v5523_v30 }
 0x225   : > { %v5843_v63 = vunpack.i.l.bf16 %v5842_v25  ;;  %v5837_v6 = vpop.permute.xlu0 %5836  ;;  %v5844_v28 = vunpack.i.h.bf16 %v5842_v25  ;;  %v2152_v44 = vsel %vm1110_vm1, %v2120_v22, %v5603_v50  ;;  %v6065_v50 = vpack.i.bf16 %v7884_v27, %v7844_v12  ;;  %v8982_v12 = vld [vmem:[#allocation64_spill] sm:$0xff]  ;;  %v4690_v22 = vld [vmem:[%s6204_s27 + $0xc0] sm:$0xff] }
 0x226   : > { %v5839_v41 = vunpack.i.h.bf16 %v5837_v6  ;;  %v5838_v53 = vunpack.i.l.bf16 %v5837_v6  ;;  %v5608_v27 = vunpack.i.l.bf16 %v8982_v12 }
 0x227   : > { %6021 = vrot.lane.b32.xlu1 %v6020_v10, %s6102_s28  ;;  %3635 = vrot.lane.b32.xlu0 %v4861_v57, %s6106_s6 }
 0x228   : > { %v8116_v33 = vpop.permute.xlu1 %5846  ;;  %v2183_v39 = vsel %vm1143_vm2, %v2151_v58, %v5838_v53  ;;  %v3758_v43 = vsel %vm1143_vm2, %v3726_v2, %v5839_v41  ;;  %v4738_v53 = vld [vmem:[%s6153_s23 + $0x180] sm:$0xff]  ;;  %v4739_v58 = vld [vmem:[%s6153_s23 + $0x188] sm:$0xff] }
 0x229   : > { %v2049_v5 = vpop.permute.xlu0 %2048  ;;  %v2215_v4 = vsel %vm1176_vm3, %v2183_v39, %v5843_v63  ;;  %v3790_v62 = vsel %vm1176_vm3, %v3758_v43, %v5844_v28  ;;  %v5848_v20 = vunpack.i.l.bf16 %v8116_v33  ;;  %v6045_v63 = vpack.i.bf16 %v7757_v38, %v7699_v31  ;;  %v4431_v38 = vld [vmem:[%s6204_s27 + $0x158] sm:$0xff]  ;;  %v4770_v39 = vld [vmem:[%s6204_s27 + $0x181] sm:$0xff] }
 0x22a   : > { %4639 = vmatprep.mubr.msk.f32.mxu1 %vm1077_vm0, %v2049_v5  ;;  %v2247_v52 = vsel %vm1209_vm4, %v2215_v4, %v2049_v5  ;;  %v6055_v51 = vpack.i.bf16 %v4739_v58, %v4738_v53  ;;  %v2121_v4 = vsel %vm1077_vm0, %v4431_v38, %v5524_v1 }
 0x22b   : > { %6031 = vrot.lane.b32.xlu1 %v6030_v46, %s6105_s7  ;;  %6026 = vrot.lane.b32.xlu0 %v6025_v16, %s6103_s29  ;;  %v3695_v10 = vsel %vm1077_vm0, %v4688_v26, %v5848_v20  ;;  %v5849_v16 = vunpack.i.h.bf16 %v8116_v33  ;;  %v6060_v33 = vpack.i.bf16 %v4771_v47, %v4770_v39  ;;  %v4741_v26 = vld [vmem:[%s6153_s23 + $0x1a0] sm:$0xff] }
 0x22c   : > { %2527 = vmatmul.mubr.f32.gmra.mrb[50].mxu1 %v2247_v52  ;;  %v8128_v3 = vpop.permute.xlu1 %5851  ;;  %v4836_v39 = vld [vmem:[%s6204_s27 + $0x19a] sm:$0xff] }
 0x22d   : > { %v3608_v32 = vpop.permute.xlu0 %3607  ;;  %v5853_v8 = vunpack.i.l.bf16 %v8128_v3  ;;  %v5854_v2 = vunpack.i.h.bf16 %v8128_v3  ;;  %v3696_v17 = vsel %vm1077_vm0, %v4689_v19, %v5849_v16  ;;  %v4804_v47 = vld [vmem:[%s6153_s23 + $0x199] sm:$0xff]  ;;  %v4691_v19 = vld [vmem:[%s6204_s27 + $0xc8] sm:$0xff] }
 0x22e   : > { %4897 = vmatprep.mubr.msk.f32.mxu0 %vm1077_vm0, %v3608_v32  ;;  %v3822_v40 = vsel %vm1209_vm4, %v3790_v62, %v3608_v32 }
 0x22f   : > { %6036 = vrot.lane.b32.xlu1 %v6035_v11, %s6101_s24  ;;  %3637 = vrot.lane.b32.xlu0 %v6091_v59, %s6106_s6  ;;  %v3727_v57 = vsel %vm1110_vm1, %v3695_v10, %v5853_v8  ;;  %v2153_v11 = vsel %vm1110_vm1, %v2121_v4, %v5604_v24  ;;  %v3728_v42 = vsel %vm1110_vm1, %v3696_v17, %v5854_v2  ;;  %v4773_v10 = vld [vmem:[%s6204_s27 + $0x1a1] sm:$0xff]  ;;  %v4433_v24 = vld [vmem:[%s6204_s27 + $0x170] sm:$0xff] }
 0x230   : > { %4038 = vmatmul.mubr.f32.gmra.mrb[18].mxu0 %v3822_v40  ;;  %v5862_v15 = vpop.permute.xlu1 %5861  ;;  %v4740_v40 = vld [vmem:[%s6153_s23 + $0x198] sm:$0xff]  ;;  %v4805_v17 = vld [vmem:[%s6153_s23 + $0x1a1] sm:$0xff] }
 0x231   : > { %v5864_v18 = vunpack.i.h.bf16 %v5862_v15  ;;  %v5863_v9 = vunpack.i.l.bf16 %v5862_v15  ;;  %v5857_v36 = vpop.permute.xlu0 %5856 }
 0x232   : > { %v5859_v13 = vunpack.i.h.bf16 %v5857_v36  ;;  %v5858_v25 = vunpack.i.l.bf16 %v5857_v36 }
 0x233   : > { %6041 = vrot.lane.b32.xlu1 %v6040_v35, %s6102_s28  ;;  %3639 = vrot.lane.b32.xlu0 %v6092_v45, %s6106_s6  ;;  %v8981_v35 = vld [vmem:[#allocation58_spill] sm:$0xff] }
 0x234   : > { %v3610_v6 = vpop.permute.xlu1 %3609  ;;  %v2184_v55 = vsel %vm1143_vm2, %v2152_v44, %v5858_v25  ;;  %v3759_v41 = vsel %vm1143_vm2, %v3727_v57, %v5859_v13  ;;  %v5528_v15 = vunpack.i.l.bf16 %v8981_v35  ;;  %v4772_v44 = vld [vmem:[%s6204_s27 + $0x199] sm:$0xff] }
 0x235   : > { %v2051_v49 = vpop.permute.xlu0 %2050  ;;  %4898 = vmatprep.mubr.msk.f32.mxu0 %vm1077_vm0, %v3610_v6  ;;  %v2216_v54 = vsel %vm1176_vm3, %v2184_v55, %v5863_v9  ;;  %v3791_v46 = vsel %vm1176_vm3, %v3759_v41, %v5864_v18  ;;  %v6075_v9 = vpack.i.bf16 %v4741_v26, %v4740_v40  ;;  %v6080_v53 = vpack.i.bf16 %v4773_v10, %v4772_v44  ;;  %v4869_v26 = vld [vmem:[%s6153_s23 + $0x1a2] sm:$0xff] }
 0x236   : > { %4640 = vmatprep.mubr.msk.f32.mxu1 %vm1077_vm0, %v2051_v49  ;;  %v2248_v31 = vsel %vm1209_vm4, %v2216_v54, %v2051_v49  ;;  %v3823_v29 = vsel %vm1209_vm4, %v3791_v46, %v3610_v6  ;;  %v2122_v45 = vsel %vm1077_vm0, %v4432_v23, %v5528_v15 }
 0x237   : > { %6051 = vrot.lane.b32.xlu1 %v6050_v61, %s6105_s7  ;;  %6046 = vrot.lane.b32.xlu0 %v6045_v63, %s6103_s29  ;;  %v2154_v55 = vsel %vm1110_vm1, %v2122_v45, %v5608_v27 }
 0x238   : > { %2532 = vmatmul.mubr.f32.gmra.mrb[52].mxu1 %v2248_v31  ;;  %4043 = vmatmul.mubr.f32.gmra.mrb[20].mxu0 %v3823_v29  ;;  %v5872_v34 = vpop.permute.xlu1 %5871  ;;  %v5529_v29 = vunpack.i.h.bf16 %v8981_v35 }
 0x239   : > { %v5873_v28 = vunpack.i.l.bf16 %v5872_v34  ;;  %v5867_v5 = vpop.permute.xlu0 %5866  ;;  %v5874_v30 = vunpack.i.h.bf16 %v5872_v34 }
 0x23a   : > { %v5869_v52 = vunpack.i.h.bf16 %v5867_v5  ;;  %v5868_v43 = vunpack.i.l.bf16 %v5867_v5  ;;  %v2123_v4 = vsel %vm1077_vm0, %v4433_v24, %v5529_v29 }
 0x23b   : > { %6056 = vrot.lane.b32.xlu1 %v6055_v51, %s6101_s24  ;;  %3641 = vrot.lane.b32.xlu0 %v7754_v7, %s6106_s6  ;;  %v5609_v51 = vunpack.i.h.bf16 %v8982_v12  ;;  %v4692_v12 = vld [vmem:[%s6204_s27 + $0xd8] sm:$0xff] }
 0x23c   : > { %v8181_v14 = vpop.permute.xlu1 %5876  ;;  %v2185_v3 = vsel %vm1143_vm2, %v2153_v11, %v5868_v43  ;;  %v3760_v7 = vsel %vm1143_vm2, %v3728_v42, %v5869_v52 }
 0x23d   : > { %v2053_v32 = vpop.permute.xlu0 %2052  ;;  %v2217_v62 = vsel %vm1176_vm3, %v2185_v3, %v5873_v28  ;;  %v3792_v59 = vsel %vm1176_vm3, %v3760_v7, %v5874_v30  ;;  %v5879_v16 = vunpack.i.h.bf16 %v8181_v14 }
 0x23e   : > { %4641 = vmatprep.mubr.msk.f32.mxu1 %vm1077_vm0, %v2053_v32  ;;  %v2249_v0 = vsel %vm1209_vm4, %v2217_v62, %v2053_v32 }
 0x23f   : > { %6061 = vrot.lane.b32.xlu1 %v6060_v33, %s6102_s28  ;;  %3643 = vrot.lane.b32.xlu0 %v7814_v56, %s6106_s6  ;;  %v5878_v56 = vunpack.i.l.bf16 %v8181_v14  ;;  %v3698_v11 = vsel %vm1077_vm0, %v4691_v19, %v5879_v16  ;;  %v4868_v14 = vld [vmem:[%s6153_s23 + $0x19a] sm:$0xff]  ;;  %v8985_v16 = vld [vmem:[#allocation7_spill] sm:$0xff] }
 0x240   : > { %2537 = vmatmul.mubr.f32.gmra.mrb[54].mxu1 %v2249_v0  ;;  %v8196_v20 = vpop.permute.xlu1 %5881 }
 0x241   : > { %v3612_v8 = vpop.permute.xlu0 %3611  ;;  %v5883_v18 = vunpack.i.l.bf16 %v8196_v20  ;;  %v3697_v61 = vsel %vm1077_vm0, %v4690_v22, %v5878_v56  ;;  %v5884_v2 = vunpack.i.h.bf16 %v8196_v20  ;;  %v4434_v56 = vld [vmem:[%s6204_s27 + $0x180] sm:$0xff] }
 0x242   : > { %4899 = vmatprep.mubr.msk.f32.mxu0 %vm1077_vm0, %v3612_v8  ;;  %v3824_v48 = vsel %vm1209_vm4, %v3792_v59, %v3612_v8  ;;  %v8983_v8 = vld [vmem:[#allocation57_spill] sm:$0xff] }
 0x243   : > { %6071 = vrot.lane.b32.xlu1 %v6070_v21, %s6105_s7  ;;  %6066 = vrot.lane.b32.xlu0 %v6065_v50, %s6103_s29  ;;  %v3729_v41 = vsel %vm1110_vm1, %v3697_v61, %v5883_v18  ;;  %v3730_v42 = vsel %vm1110_vm1, %v3698_v11, %v5884_v2  ;;  %v4837_v50 = vld [vmem:[%s6204_s27 + $0x1a2] sm:$0xff]  ;;  %v5533_v59 = vunpack.i.l.bf16 %v8983_v8 }
 0x244   : > { %4048 = vmatmul.mubr.f32.gmra.mrb[22].mxu0 %v3824_v48  ;;  %v5892_v36 = vpop.permute.xlu1 %5891  ;;  %v8984_v48 = vld [vmem:[#allocation63_spill] sm:$0xff]  ;;  %v261_v2 = vld [vmem:[%s6204_s27 + $0xc0] sm:$0xff] }
 0x245   : > { %v5894_v13 = vunpack.i.h.bf16 %v5892_v36  ;;  %v5893_v25 = vunpack.i.l.bf16 %v5892_v36  ;;  %v5887_v57 = vpop.permute.xlu0 %5886  ;;  %v5613_v23 = vunpack.i.l.bf16 %v8984_v48  ;;  %v2124_v44 = vsel %vm1077_vm0, %v4434_v56, %v5533_v59 }
 0x246   : > { %v5889_v63 = vunpack.i.h.bf16 %v5887_v57  ;;  %v5888_v6 = vunpack.i.l.bf16 %v5887_v57 }
 0x247   : > { %6076 = vrot.lane.b32.xlu1 %v6075_v9, %s6101_s24  ;;  %3645 = vrot.lane.b32.xlu0 %v7880_v37, %s6106_s6  ;;  %v2156_v57 = vsel %vm1110_vm1, %v2124_v44, %v5613_v23  ;;  %v8990_v23 = vld [vmem:[#allocation39_spill] sm:$0xff] }
 0x248   : > { %v3614_v58 = vpop.permute.xlu1 %3613  ;;  %v2186_v49 = vsel %vm1143_vm2, %v2154_v55, %v5888_v6  ;;  %v3761_v54 = vsel %vm1143_vm2, %v3729_v41, %v5889_v63 }
 0x249   : > { %v2055_v46 = vpop.permute.xlu0 %2054  ;;  %4900 = vmatprep.mubr.msk.f32.mxu0 %vm1077_vm0, %v3614_v58  ;;  %v2218_v1 = vsel %vm1176_vm3, %v2186_v49, %v5893_v25  ;;  %v3793_v31 = vsel %vm1176_vm3, %v3761_v54, %v5894_v13 }
 0x24a   : > { %4642 = vmatprep.mubr.msk.f32.mxu1 %vm1077_vm0, %v2055_v46  ;;  %v2250_v37 = vsel %vm1209_vm4, %v2218_v1, %v2055_v46  ;;  %v3825_v38 = vsel %vm1209_vm4, %v3793_v31, %v3614_v58  ;;  %v5534_v58 = vunpack.i.h.bf16 %v8983_v8  ;;  %v4435_v46 = vld [vmem:[%s6204_s27 + $0x188] sm:$0xff]  ;;  %v5614_v1 = vunpack.i.h.bf16 %v8984_v48 }
 0x24b   : > { %6081 = vrot.lane.b32.xlu1 %v6080_v53, %s6102_s28  ;;  %3647 = vrot.lane.b32.xlu0 %v7919_v60, %s6106_s6  ;;  %v2155_v60 = vsel %vm1110_vm1, %v2123_v4, %v5609_v51  ;;  %v262_v8 = vld [vmem:[%s6204_s27 + $0xc8] sm:$0xff] }
 0x24c   : > { %2542 = vmatmul.mubr.f32.gmra.mrb[56].mxu1 %v2250_v37  ;;  %4053 = vmatmul.mubr.f32.gmra.mrb[24].mxu0 %v3825_v38  ;;  %v5902_v34 = vpop.permute.xlu1 %5901  ;;  %v4693_v37 = vld [vmem:[%s6204_s27 + $0xe0] sm:$0xff] }
 0x24d   : > { %v5903_v28 = vunpack.i.l.bf16 %v5902_v34  ;;  %v5897_v5 = vpop.permute.xlu0 %5896  ;;  %v5904_v30 = vunpack.i.h.bf16 %v5902_v34  ;;  %v5178_v34 = vunpack.i.l.bf16 %v8985_v16 }
 0x24e   : > { %v5899_v52 = vunpack.i.h.bf16 %v5897_v5  ;;  %v5898_v43 = vunpack.i.l.bf16 %v5897_v5 }
 0x24f   : > { %3521 = vrot.lane.b32.xlu1 %v4836_v39, %s6105_s7  ;;  %3393 = vrot.lane.b32.xlu0 %v4804_v47, %s6103_s29  ;;  %v2125_v39 = vsel %vm1077_vm0, %v4435_v46, %v5534_v58  ;;  %v8993_v58 = vld [vmem:[#allocation22_spill] sm:$0xff] }
 0x250   : > { %v8244_v33 = vpop.permute.xlu1 %5906  ;;  %v2187_v3 = vsel %vm1143_vm2, %v2155_v60, %v5898_v43  ;;  %v3762_v7 = vsel %vm1143_vm2, %v3730_v42, %v5899_v52  ;;  %v2157_v4 = vsel %vm1110_vm1, %v2125_v39, %v5614_v1  ;;  %v8987_v52 = vld [vmem:[#allocation6_spill] sm:$0xff]  ;;  %v8988_v60 = vld [vmem:[#allocation23_spill] sm:$0xff] }
 0x251   : > { %v2057_v32 = vpop.permute.xlu0 %2056  ;;  %v2219_v62 = vsel %vm1176_vm3, %v2187_v3, %v5903_v28  ;;  %v3794_v40 = vsel %vm1176_vm3, %v3762_v7, %v5904_v30  ;;  %v5908_v35 = vunpack.i.l.bf16 %v8244_v33  ;;  %v5909_v31 = vunpack.i.h.bf16 %v8244_v33  ;;  %v8986_v28 = vld [vmem:[#allocation15_spill] sm:$0xff]  ;;  %v263_v7 = vld [vmem:[%s6204_s27 + $0xd8] sm:$0xff]  ;;  %v8994_v46 = vld [vmem:[#allocation38_spill] sm:$0xff] }
 0x252   : > { %4643 = vmatprep.mubr.msk.f32.mxu1 %vm1077_vm0, %v2057_v32  ;;  %v2251_v0 = vsel %vm1209_vm4, %v2219_v62, %v2057_v32  ;;  %v5258_v5 = vunpack.i.l.bf16 %v8986_v28  ;;  %v5183_v43 = vunpack.i.l.bf16 %v8987_v52  ;;  %v5338_v11 = vunpack.i.l.bf16 %v8988_v60  ;;  %v8989_v3 = vld [vmem:[#allocation31_spill] sm:$0xff] }
 0x253   : > { %3395 = vrot.lane.b32.xlu1 %v4805_v17, %s6103_s29  ;;  %3649 = vrot.lane.b32.xlu0 %v4868_v14, %s6106_s6  ;;  %v3699_v10 = vsel %vm1077_vm0, %v4692_v12, %v5908_v35  ;;  %v3700_v33 = vsel %vm1077_vm0, %v4693_v37, %v5909_v31  ;;  %v5418_v42 = vunpack.i.l.bf16 %v8989_v3  ;;  %v5259_v59 = vunpack.i.h.bf16 %v8986_v28 }
 0x254   : > { %2547 = vmatmul.mubr.f32.gmra.mrb[58].mxu1 %v2251_v0  ;;  %v5912_v21 = vpop.permute.xlu1 %5911  ;;  %v5339_v56 = vunpack.i.h.bf16 %v8988_v60 }
 0x255   : > { %v3616_v20 = vpop.permute.xlu0 %3615  ;;  %v5913_v27 = vunpack.i.l.bf16 %v5912_v21  ;;  %v5914_v38 = vunpack.i.h.bf16 %v5912_v21  ;;  %v5179_v21 = vunpack.i.h.bf16 %v8985_v16 }
 0x256   : > { %4901 = vmatprep.mubr.msk.f32.mxu0 %vm1077_vm0, %v3616_v20  ;;  %v3826_v15 = vsel %vm1209_vm4, %v3794_v40, %v3616_v20 }
 0x257   : > { %3523 = vrot.lane.b32.xlu0 %v4837_v50, %s6105_s7  ;;  %4058 = vmatmul.mubr.f32.gmra.mrb[26].mxu0 %v3826_v15  ;;  %v3731_v45 = vsel %vm1110_vm1, %v3699_v10, %v5913_v27  ;;  %v3732_v30 = vsel %vm1110_vm1, %v3700_v33, %v5914_v38  ;;  %v1094_v50 = vsel %vm1077_vm0, %v261_v2, %v5178_v34  ;;  %v264_v15 = vld [vmem:[%s6204_s27 + $0xe0] sm:$0xff]  ;;  %v4695_v38 = vld [vmem:[%s6204_s27 + $0xf8] sm:$0xff]  ;;  %s4924_s7 = sshll.u32 %s9034_s19, 8 }
 0x258   : > { %3651 = vrot.lane.b32.xlu1 %v4869_v26, %s6106_s6  ;;  %v5922_v22 = vpop.permute.xlu1 %5921  ;;  %v5184_v26 = vunpack.i.h.bf16 %v8987_v52  ;;  %v1127_v35 = vsel %vm1110_vm1, %v1094_v50, %v5258_v5  ;;  %v1096_v27 = vsel %vm1077_vm0, %v263_v7, %v5183_v43  ;;  %v1095_v44 = vsel %vm1077_vm0, %v262_v8, %v5179_v21  ;;  %v8997_v7 = vld [vmem:[#allocation17_spill] sm:$0xff]  ;;  %s8660_s19 = scalar_lea.vmem %s8837_s5, %s4924_s7 }
 0x259   : > { %v5924_v18 = vunpack.i.h.bf16 %v5922_v22  ;;  %v5923_v9 = vunpack.i.l.bf16 %v5922_v22  ;;  %v5917_v36 = vpop.permute.xlu0 %5916  ;;  %v1160_v48 = vsel %vm1143_vm2, %v1127_v35, %v5338_v11  ;;  %v5419_v22 = vunpack.i.h.bf16 %v8989_v3  ;;  %v8996_v11 = vld [vmem:[#allocation41_spill] sm:$0xff]  ;;  %v8999_v35 = vld [vmem:[#allocation8_spill] sm:$0xff] }
 0x25a   : > { %v5919_v13 = vunpack.i.h.bf16 %v5917_v36  ;;  %v5918_v25 = vunpack.i.l.bf16 %v5917_v36  ;;  %v5268_v21 = vunpack.i.l.bf16 %v8997_v7  ;;  %v8998_v8 = vld [vmem:[#allocation25_spill] sm:$0xff] }
 0x25c   : > { %v3618_v61 = vpop.permute.xlu1 %3617  ;;  %v2188_v63 = vsel %vm1143_vm2, %v2156_v57, %v5918_v25  ;;  %v3763_v6 = vsel %vm1143_vm2, %v3731_v45, %v5919_v13  ;;  %v1097_v57 = vsel %vm1077_vm0, %v264_v15, %v5184_v26  ;;  %v8991_v45 = vld [vmem:[#allocation14_spill] sm:$0xff]  ;;  %v5193_v15 = vunpack.i.l.bf16 %v8999_v35 }
 0x25d   : > { %v2059_v55 = vpop.permute.xlu0 %2058  ;;  %4902 = vmatprep.mubr.msk.f32.mxu0 %vm1077_vm0, %v3618_v61  ;;  %v2220_v41 = vsel %vm1176_vm3, %v2188_v63, %v5923_v9  ;;  %v3795_v53 = vsel %vm1176_vm3, %v3763_v6, %v5924_v18  ;;  %v1193_v18 = vsel %vm1176_vm3, %v1160_v48, %v5418_v42  ;;  %v1128_v63 = vsel %vm1110_vm1, %v1095_v44, %v5259_v59  ;;  %v4694_v6 = vld [vmem:[%s6204_s27 + $0xf0] sm:$0xff] }
 0x25e   : > { %4644 = vmatprep.mubr.msk.f32.mxu1 %vm1077_vm0, %v2059_v55  ;;  %v2252_v49 = vsel %vm1209_vm4, %v2220_v41, %v2059_v55  ;;  %v3827_v54 = vsel %vm1209_vm4, %v3795_v53, %v3618_v61  ;;  %v1226_v10 = vsel %vm1209_vm4, %v1193_v18, %v8990_v23  ;;  %v5263_v61 = vunpack.i.l.bf16 %v8991_v45  ;;  %v8992_v41 = vld [vmem:[#allocation9_spill] sm:$0xff] }
 0x25f   : > { %2552 = vmatmul.mubr.f32.gmra.mrb[60].mxu1 %v2252_v49  ;;  %4063 = vmatmul.mubr.f32.gmra.mrb[28].mxu0 %v3827_v54  ;;  %v5188_v53 = vunpack.i.l.bf16 %v8992_v41  ;;  %v5343_v49 = vunpack.i.l.bf16 %v8993_v58  ;;  %v1161_v31 = vsel %vm1143_vm2, %v1128_v63, %v5339_v56  ;;  %v5264_v28 = vunpack.i.h.bf16 %v8991_v45  ;;  %v9000_v56 = vld [vmem:[#allocation33_spill] sm:$0xff] }
 0x260   : > { %v5932_v29 = vpop.permute.xlu1 %5931  ;;  %v1194_v34 = vsel %vm1176_vm3, %v1161_v31, %v5419_v22  ;;  %v1129_v5 = vsel %vm1110_vm1, %v1096_v27, %v5263_v61  ;;  %v5348_v59 = vunpack.i.l.bf16 %v8998_v8  ;;  %v5428_v48 = vunpack.i.l.bf16 %v9000_v56  ;;  %v267_v27 = vld [vmem:[%s6204_s27 + $0x108] sm:$0xff] }
 0x261   : > { %v5933_v24 = vunpack.i.l.bf16 %v5932_v29  ;;  %v5927_v51 = vpop.permute.xlu0 %5926  ;;  %v5934_v32 = vunpack.i.h.bf16 %v5932_v29  ;;  %v8995_v29 = vld [vmem:[#allocation30_spill] sm:$0xff]  ;;  %v1227_v2 = vsel %vm1209_vm4, %v1194_v34, %v8994_v46  ;;  %v1162_v33 = vsel %vm1143_vm2, %v1129_v5, %v5343_v49  ;;  %v9002_v31 = vld [vmem:[#allocation43_spill] sm:$0xff] }
 0x262   : > { %v5929_v47 = vunpack.i.h.bf16 %v5927_v51  ;;  %v5928_v19 = vunpack.i.l.bf16 %v5927_v51  ;;  %v5423_v37 = vunpack.i.l.bf16 %v8995_v29  ;;  %v5424_v43 = vunpack.i.h.bf16 %v8995_v29 }
 0x263   : > { %v1130_v26 = vsel %vm1110_vm1, %v1097_v57, %v5264_v28  ;;  %v5189_v22 = vunpack.i.h.bf16 %v8992_v41  ;;  %v4696_v41 = vld [vmem:[%s6204_s27 + $0x108] sm:$0xff] }
 0x264   : > { %v8293_v17 = vpop.permute.xlu1 %5936  ;;  %v2189_v14 = vsel %vm1143_vm2, %v2157_v4, %v5928_v19  ;;  %v3764_v40 = vsel %vm1143_vm2, %v3732_v30, %v5929_v47  ;;  %v5344_v4 = vunpack.i.h.bf16 %v8993_v58 }
 0x265   : > { %v2061_v62 = vpop.permute.xlu0 %2060  ;;  %v2221_v0 = vsel %vm1176_vm3, %v2189_v14, %v5933_v24  ;;  %v3796_v36 = vsel %vm1176_vm3, %v3764_v40, %v5934_v32  ;;  %v5938_v13 = vunpack.i.l.bf16 %v8293_v17  ;;  %v5939_v54 = vunpack.i.h.bf16 %v8293_v17 }
 0x266   : > { %4645 = vmatprep.mubr.msk.f32.mxu1 %vm1077_vm0, %v2061_v62  ;;  %v2253_v20 = vsel %vm1209_vm4, %v2221_v0, %v2061_v62  ;;  %v1195_v32 = vsel %vm1176_vm3, %v1162_v33, %v5423_v37  ;;  %v265_v0 = vld [vmem:[%s6204_s27 + $0xf0] sm:$0xff] }
 0x267   : > { %2557 = vmatmul.mubr.f32.gmra.mrb[62].mxu1 %v2253_v20  ;;  %v3701_v39 = vsel %vm1077_vm0, %v4694_v6, %v5938_v13  ;;  %v3702_v60 = vsel %vm1077_vm0, %v4695_v38, %v5939_v54  ;;  %v1228_v50 = vsel %vm1209_vm4, %v1195_v32, %v8996_v11  ;;  %v1098_v18 = vsel %vm1077_vm0, %v265_v0, %v5188_v53  ;;  %v266_v13 = vld [vmem:[%s6204_s27 + $0xf8] sm:$0xff] }
 0x268   : > { %4662 = vmatprep.mubr.msk.f32.mxu1 %vm1077_vm0, %v8990_v23  ;;  %v5942_v12 = vpop.permute.xlu1 %5941  ;;  %v9001_v23 = vld [vmem:[#allocation40_spill] sm:$0xff]  ;;  %v5194_v6 = vunpack.i.h.bf16 %v8999_v35  ;;  %v1100_v54 = vsel %vm1077_vm0, %v267_v27, %v5193_v15  ;;  %v1099_v37 = vsel %vm1077_vm0, %v266_v13, %v5189_v22  ;;  %v5429_v38 = vunpack.i.h.bf16 %v9000_v56  ;;  %v9007_v27 = vld [vmem:[#allocation11_spill] sm:$0xff]  ;;  %v269_v13 = vld [vmem:[%s6204_s27 + $0x120] sm:$0xff] }
 0x269   : > { %v3620_v9 = vpop.permute.xlu0 %3619  ;;  %v5943_v55 = vunpack.i.l.bf16 %v5942_v12  ;;  %v5944_v24 = vunpack.i.h.bf16 %v5942_v12  ;;  %v1163_v12 = vsel %vm1143_vm2, %v1130_v26, %v5344_v4  ;;  %v9003_v4 = vld [vmem:[#allocation16_spill] sm:$0xff]  ;;  %v5198_v22 = vunpack.i.l.bf16 %v9007_v27 }
 0x26a   : > { %4903 = vmatprep.mubr.msk.f32.mxu0 %vm1077_vm0, %v3620_v9  ;;  %v3828_v25 = vsel %vm1209_vm4, %v3796_v36, %v3620_v9  ;;  %v1196_v44 = vsel %vm1176_vm3, %v1163_v12, %v5424_v43  ;;  %v268_v26 = vld [vmem:[%s6204_s27 + $0x110] sm:$0xff] }
 0x26b   : > { %2771 = vmatmul.mubr.f32.vlgmr.msra.gmra.mrb[32].mxu1 %v1226_v10  ;;  %4068 = vmatmul.mubr.f32.gmra.mrb[30].mxu0 %v3828_v25  ;;  %v3733_v52 = vsel %vm1110_vm1, %v3701_v39, %v5943_v55  ;;  %v3734_v14 = vsel %vm1110_vm1, %v3702_v60, %v5944_v24  ;;  %v1131_v25 = vsel %vm1110_vm1, %v1098_v18, %v5268_v21  ;;  %v5269_v55 = vunpack.i.h.bf16 %v8997_v7  ;;  %v4697_v24 = vld [vmem:[%s6204_s27 + $0x110] sm:$0xff] }
 0x26c   : > { %4663 = vmatprep.mubr.msk.f32.mxu1 %vm1077_vm0, %v8994_v46  ;;  %v5952_v1 = vpop.permute.xlu1 %5951  ;;  %v1229_v61 = vsel %vm1209_vm4, %v1196_v44, %v9001_v23  ;;  %v1164_v49 = vsel %vm1143_vm2, %v1131_v25, %v5348_v59  ;;  %v5349_v46 = vunpack.i.h.bf16 %v8998_v8  ;;  %v9004_v60 = vld [vmem:[#allocation24_spill] sm:$0xff]  ;;  %v5274_v8 = vunpack.i.h.bf16 %v9003_v4 }
 0x26d   : > { %v5953_v51 = vunpack.i.l.bf16 %v5952_v1  ;;  %v5947_v16 = vpop.permute.xlu0 %5946  ;;  %v5954_v3 = vunpack.i.h.bf16 %v5952_v1  ;;  %v1197_v29 = vsel %vm1176_vm3, %v1164_v49, %v5428_v48  ;;  %v1132_v43 = vsel %vm1110_vm1, %v1099_v37, %v5269_v55  ;;  %v270_v55 = vld [vmem:[%s6204_s27 + $0x128] sm:$0xff] }
 0x26e   : > { %v5949_v47 = vunpack.i.h.bf16 %v5947_v16  ;;  %v5948_v19 = vunpack.i.l.bf16 %v5947_v16  ;;  %v1230_v39 = vsel %vm1209_vm4, %v1197_v29, %v9002_v31  ;;  %v1165_v32 = vsel %vm1143_vm2, %v1132_v43, %v5349_v46  ;;  %v4698_v29 = vld [vmem:[%s6204_s27 + $0x120] sm:$0xff] }
 0x26f   : > { %2776 = vmatmul.mubr.f32.gmra.mrb[34].mxu1 %v1227_v2  ;;  %v1101_v44 = vsel %vm1077_vm0, %v268_v26, %v5194_v6 }
 0x270   : > { %4664 = vmatprep.mubr.msk.f32.mxu1 %vm1077_vm0, %v8996_v11  ;;  %v3765_v17 = vsel %vm1143_vm2, %v3733_v52, %v5948_v19  ;;  %v3766_v40 = vsel %vm1143_vm2, %v3734_v14, %v5949_v47  ;;  %v5273_v52 = vunpack.i.l.bf16 %v9003_v4  ;;  %v5353_v11 = vunpack.i.l.bf16 %v9004_v60  ;;  %v9005_v14 = vld [vmem:[#allocation32_spill] sm:$0xff] }
 0x271   : > { %v8351_v42 = vpop.permute.xlu1 %5956  ;;  %v3622_v30 = vpop.permute.xlu0 %3621  ;;  %v3797_v62 = vsel %vm1176_vm3, %v3765_v17, %v5953_v51  ;;  %v3798_v10 = vsel %vm1176_vm3, %v3766_v40, %v5954_v3  ;;  %v5433_v3 = vunpack.i.l.bf16 %v9005_v14  ;;  %v5434_v18 = vunpack.i.h.bf16 %v9005_v14 }
 0x272   : > { %4904 = vmatprep.mubr.msk.f32.mxu0 %vm1077_vm0, %v3622_v30  ;;  %v3829_v20 = vsel %vm1209_vm4, %v3797_v62, %v3622_v30  ;;  %v5958_v57 = vunpack.i.l.bf16 %v8351_v42  ;;  %v5959_v1 = vunpack.i.h.bf16 %v8351_v42  ;;  %v9006_v30 = vld [vmem:[#allocation42_spill] sm:$0xff]  ;;  %v1133_v48 = vsel %vm1110_vm1, %v1100_v54, %v5273_v52  ;;  %v4699_v52 = vld [vmem:[%s6204_s27 + $0x128] sm:$0xff] }
 0x273   : > { %2781 = vmatmul.mubr.f32.gmra.mrb[36].mxu1 %v1228_v50  ;;  %4073 = vmatmul.mubr.f32.gmra.mrb[32].mxu0 %v3829_v20  ;;  %v1198_v20 = vsel %vm1176_vm3, %v1165_v32, %v5429_v38  ;;  %v9009_v54 = vld [vmem:[#allocation10_spill] sm:$0xff] }
 0x274   : > { %4665 = vmatprep.mubr.msk.f32.mxu1 %vm1077_vm0, %v9001_v23  ;;  %v3703_v47 = vsel %vm1077_vm0, %v4696_v41, %v5958_v57  ;;  %v3704_v42 = vsel %vm1077_vm0, %v4697_v24, %v5959_v1  ;;  %v1231_v35 = vsel %vm1209_vm4, %v1198_v20, %v9006_v30  ;;  %v5354_v23 = vunpack.i.h.bf16 %v9004_v60  ;;  %v9010_v1 = vld [vmem:[#allocation19_spill] sm:$0xff] }
 0x275   : > { %v5962_v9 = vpop.permute.xlu1 %5961  ;;  %v3624_v36 = vpop.permute.xlu0 %3623  ;;  %v1134_v41 = vsel %vm1110_vm1, %v1101_v44, %v5274_v8  ;;  %v5203_v46 = vunpack.i.l.bf16 %v9009_v54  ;;  %v5279_v32 = vunpack.i.h.bf16 %v9010_v1 }
 0x276   : > { %v8377_v45 = vpop.f32.mrb[0].mxu1  ;;  %4905 = vmatprep.mubr.msk.f32.mxu0 %vm1077_vm0, %v3624_v36  ;;  %v3830_v63 = vsel %vm1209_vm4, %v3798_v10, %v3624_v36  ;;  %v5963_v53 = vunpack.i.l.bf16 %v5962_v9  ;;  %v5964_v51 = vunpack.i.h.bf16 %v5962_v9  ;;  %v9008_v9 = vld [vmem:[#allocation45_spill] sm:$0xff]  ;;  %v1166_v36 = vsel %vm1143_vm2, %v1133_v48, %v5353_v11 }
 0x277   : > { %v2405_v58 = vpop.f32.mrb[1].mxu1  ;;  %2786 = vmatmul.mubr.f32.gmra.mrb[38].mxu1 %v1229_v61  ;;  %4078 = vmatmul.mubr.f32.gmra.mrb[34].mxu0 %v3830_v63  ;;  %v5199_v10 = vunpack.i.h.bf16 %v9007_v27  ;;  %v1199_v61 = vsel %vm1176_vm3, %v1166_v36, %v5433_v3  ;;  %v1167_v24 = vsel %vm1143_vm2, %v1134_v41, %v5354_v23  ;;  %v271_v27 = vld [vmem:[%s6204_s27 + $0x138] sm:$0xff] }
 0x278   : > { %4666 = vmatprep.mubr.msk.f32.mxu1 %vm1077_vm0, %v9002_v31  ;;  %v3735_v33 = vsel %vm1110_vm1, %v3703_v47, %v5963_v53  ;;  %v3736_v0 = vsel %vm1110_vm1, %v3704_v42, %v5964_v51  ;;  %v1232_v6 = vsel %vm1209_vm4, %v1199_v61, %v9008_v9  ;;  %v5278_v31 = vunpack.i.l.bf16 %v9010_v1  ;;  %v9012_v47 = vld [vmem:[#allocation44_spill] sm:$0xff] }
 0x279   : > { %v5972_v16 = vpop.permute.xlu1 %5971  ;;  %v5967_v34 = vpop.permute.xlu0 %5966  ;;  %v1102_v51 = vsel %vm1077_vm0, %v269_v13, %v5198_v22  ;;  %v9015_v22 = vld [vmem:[#allocation18_spill] sm:$0xff]  ;;  %v1104_v1 = vsel %vm1077_vm0, %v271_v27, %v5203_v46  ;;  %v9022_v27 = vld [vmem:[#allocation29_spill] sm:$0xff] }
 0x27a   : > { %v5973_v19 = vunpack.i.l.bf16 %v5972_v16  ;;  %v5969_v2 = vunpack.i.h.bf16 %v5967_v34  ;;  %v5968_v28 = vunpack.i.l.bf16 %v5967_v34  ;;  %v8399_v5 = vpop.f32.mrb[2].mxu1  ;;  %v5974_v7 = vunpack.i.h.bf16 %v5972_v16  ;;  %v9011_v16 = vld [vmem:[#allocation27_spill] sm:$0xff] }
 0x27b   : > { %v2410_v17 = vpop.f32.mrb[3].mxu1  ;;  %2791 = vmatmul.mubr.f32.gmra.mrb[40].mxu1 %v1230_v39  ;;  %v5358_v34 = vunpack.i.l.bf16 %v9011_v16 }
 0x27c   : > { %4667 = vmatprep.mubr.msk.f32.mxu1 %vm1077_vm0, %v9006_v30  ;;  %v3767_v62 = vsel %vm1143_vm2, %v3735_v33, %v5968_v28  ;;  %v3768_v56 = vsel %vm1143_vm2, %v3736_v0, %v5969_v2  ;;  %v1103_v2 = vsel %vm1077_vm0, %v270_v55, %v5199_v10  ;;  %v9013_v28 = vld [vmem:[#allocation35_spill] sm:$0xff]  ;;  %v5359_v0 = vunpack.i.h.bf16 %v9011_v16  ;;  %v9017_v55 = vld [vmem:[#allocation34_spill] sm:$0xff] }
 0x27d   : > { %v8412_v21 = vpop.permute.xlu1 %5976  ;;  %v3626_v50 = vpop.permute.xlu0 %3625  ;;  %v3799_v40 = vsel %vm1176_vm3, %v3767_v62, %v5973_v19  ;;  %v3800_v63 = vsel %vm1176_vm3, %v3768_v56, %v5974_v7  ;;  %v1200_v19 = vsel %vm1176_vm3, %v1167_v24, %v5434_v18  ;;  %v5438_v4 = vunpack.i.l.bf16 %v9013_v28 }
 0x27e   : > { %v8418_v59 = vpop.f32.mrb[4].mxu1  ;;  %4906 = vmatprep.mubr.msk.f32.mxu0 %vm1077_vm0, %v3626_v50  ;;  %v3831_v15 = vsel %vm1209_vm4, %v3799_v40, %v3626_v50  ;;  %v5978_v53 = vunpack.i.l.bf16 %v8412_v21  ;;  %v5979_v39 = vunpack.i.h.bf16 %v8412_v21  ;;  %v1233_v33 = vsel %vm1209_vm4, %v1200_v19, %v9012_v47  ;;  %v9014_v40 = vld [vmem:[#allocation47_spill] sm:$0xff] }
 0x27f   : > { %v2415_v12 = vpop.f32.mrb[5].mxu1  ;;  %2796 = vmatmul.mubr.f32.gmra.mrb[42].mxu1 %v1231_v35  ;;  %4083 = vmatmul.mubr.f32.gmra.mrb[36].mxu0 %v3831_v15  ;;  %v1135_v62 = vsel %vm1110_vm1, %v1102_v51, %v5278_v31  ;;  %v5439_v50 = vunpack.i.h.bf16 %v9013_v28  ;;  %v5283_v18 = vunpack.i.l.bf16 %v9015_v22  ;;  %v1136_v13 = vsel %vm1110_vm1, %v1103_v2, %v5279_v32  ;;  %v4700_v2 = vld [vmem:[%s6204_s27 + $0x138] sm:$0xff]  ;;  %v4701_v32 = vld [vmem:[%s6204_s27 + $0x140] sm:$0xff] }
 0x280   : > { %4668 = vmatprep.mubr.msk.f32.mxu1 %vm1077_vm0, %v9008_v9  ;;  %v3705_v17 = vsel %vm1077_vm0, %v4698_v29, %v5978_v53  ;;  %v3706_v20 = vsel %vm1077_vm0, %v4699_v52, %v5979_v39  ;;  %v1168_v26 = vsel %vm1143_vm2, %v1135_v62, %v5358_v34  ;;  %v5443_v41 = vunpack.i.l.bf16 %v9017_v55  ;;  %v9018_v53 = vld [vmem:[#allocation46_spill] sm:$0xff]  ;;  %v9019_v39 = vld [vmem:[#allocation13_spill] sm:$0xff] }
 0x281   : > { %v5982_v25 = vpop.permute.xlu1 %5981  ;;  %v3628_v57 = vpop.permute.xlu0 %3627  ;;  %v1201_v23 = vsel %vm1176_vm3, %v1168_v26, %v5438_v4  ;;  %v5284_v31 = vunpack.i.h.bf16 %v9015_v22  ;;  %v5368_v22 = vunpack.i.l.bf16 %v9022_v27 }
 0x282   : > { %v8440_v58 = vpop.f32.mrb[6].mxu1  ;;  %4907 = vmatprep.mubr.msk.f32.mxu0 %vm1077_vm0, %v3628_v57  ;;  %v3832_v49 = vsel %vm1209_vm4, %v3800_v63, %v3628_v57  ;;  %v5983_v37 = vunpack.i.l.bf16 %v5982_v25  ;;  %v5984_v43 = vunpack.i.h.bf16 %v5982_v25  ;;  %v1234_v36 = vsel %vm1209_vm4, %v1201_v23, %v9014_v40  ;;  %v9016_v25 = vld [vmem:[#allocation26_spill] sm:$0xff] }
 0x283   : > { %v2420_v38 = vpop.f32.mrb[7].mxu1  ;;  %2801 = vmatmul.mubr.f32.gmra.mrb[44].mxu1 %v1232_v6  ;;  %4088 = vmatmul.mubr.f32.gmra.mrb[38].mxu0 %v3832_v49  ;;  %v5363_v57 = vunpack.i.l.bf16 %v9016_v25  ;;  %v5204_v63 = vunpack.i.h.bf16 %v9009_v54  ;;  %v1169_v6 = vsel %vm1143_vm2, %v1136_v13, %v5359_v0  ;;  %v272_v49 = vld [vmem:[%s6204_s27 + $0x140] sm:$0xff]  ;;  %v1137_v54 = vsel %vm1110_vm1, %v1104_v1, %v5283_v18  ;;  %v9024_v13 = vld [vmem:[#allocation37_spill] sm:$0xff] }
 0x284   : > { %4669 = vmatprep.mubr.msk.f32.mxu1 %vm1077_vm0, %v9012_v47  ;;  %v3737_v7 = vsel %vm1110_vm1, %v3705_v17, %v5983_v37  ;;  %v3738_v35 = vsel %vm1110_vm1, %v3706_v20, %v5984_v43  ;;  %v1202_v38 = vsel %vm1176_vm3, %v1169_v6, %v5439_v50  ;;  %v5208_v47 = vunpack.i.l.bf16 %v9019_v39  ;;  %v9020_v17 = vld [vmem:[#allocation49_spill] sm:$0xff] }
 0x285   : > { %v5992_v60 = vpop.permute.xlu1 %5991  ;;  %v5987_v11 = vpop.permute.xlu0 %5986  ;;  %v1235_v46 = vsel %vm1209_vm4, %v1202_v38, %v9018_v53  ;;  %v5364_v19 = vunpack.i.h.bf16 %v9016_v25  ;;  %v1170_v52 = vsel %vm1143_vm2, %v1137_v54, %v5363_v57  ;;  %v1105_v43 = vsel %vm1077_vm0, %v272_v49, %v5204_v63 }
 0x286   : > { %v5993_v14 = vunpack.i.l.bf16 %v5992_v60  ;;  %v5989_v3 = vunpack.i.h.bf16 %v5987_v11  ;;  %v5988_v42 = vunpack.i.l.bf16 %v5987_v11  ;;  %v8462_v30 = vpop.f32.mrb[8].mxu1  ;;  %v5994_v15 = vunpack.i.h.bf16 %v5992_v60  ;;  %v273_v60 = vld [vmem:[%s6204_s27 + $0x150] sm:$0xff] }
 0x287   : > { %v2425_v21 = vpop.f32.mrb[9].mxu1  ;;  %2806 = vmatmul.mubr.f32.gmra.mrb[46].mxu1 %v1233_v33  ;;  %v5444_v11 = vunpack.i.h.bf16 %v9017_v55  ;;  %v5448_v25 = vunpack.i.l.bf16 %v9024_v13  ;;  %v5369_v38 = vunpack.i.h.bf16 %v9022_v27  ;;  %v5449_v54 = vunpack.i.h.bf16 %v9024_v13 }
 0x288   : > { %4670 = vmatprep.mubr.msk.f32.mxu1 %vm1077_vm0, %v9014_v40  ;;  %v3769_v8 = vsel %vm1143_vm2, %v3737_v7, %v5988_v42  ;;  %v3770_v10 = vsel %vm1143_vm2, %v3738_v35, %v5989_v3  ;;  %v5209_v3 = vunpack.i.h.bf16 %v9019_v39  ;;  %v1138_v42 = vsel %vm1110_vm1, %v1105_v43, %v5284_v31 }
 0x289   : > { %v8475_v56 = vpop.permute.xlu1 %5996  ;;  %v3630_v48 = vpop.permute.xlu0 %3629  ;;  %v3801_v12 = vsel %vm1176_vm3, %v3769_v8, %v5993_v14  ;;  %v3802_v24 = vsel %vm1176_vm3, %v3770_v10, %v5994_v15  ;;  %v1203_v14 = vsel %vm1176_vm3, %v1170_v52, %v5443_v41  ;;  %v1106_v35 = vsel %vm1077_vm0, %v273_v60, %v5208_v47  ;;  %v9021_v15 = vld [vmem:[#allocation21_spill] sm:$0xff]  ;;  %v275_v52 = vld [vmem:[%s6204_s27 + $0x168] sm:$0xff] }
 0x28a   : > { %v8481_v9 = vpop.f32.mrb[10].mxu1  ;;  %4908 = vmatprep.mubr.msk.f32.mxu0 %vm1077_vm0, %v3630_v48  ;;  %v3833_v44 = vsel %vm1209_vm4, %v3801_v12, %v3630_v48  ;;  %v5998_v51 = vunpack.i.l.bf16 %v8475_v56  ;;  %v5999_v33 = vunpack.i.h.bf16 %v8475_v56  ;;  %v1236_v21 = vsel %vm1209_vm4, %v1203_v14, %v9020_v17  ;;  %v9027_v14 = vld [vmem:[#allocation20_spill] sm:$0xff] }
 0x28b   : > { %v2430_v61 = vpop.f32.mrb[11].mxu1  ;;  %2811 = vmatmul.mubr.f32.gmra.mrb[48].mxu1 %v1234_v36  ;;  %4093 = vmatmul.mubr.f32.gmra.mrb[40].mxu0 %v3833_v44  ;;  %v5288_v56 = vunpack.i.l.bf16 %v9021_v15  ;;  %v1171_v12 = vsel %vm1143_vm2, %v1138_v42, %v5364_v19  ;;  %v9023_v36 = vld [vmem:[#allocation48_spill] sm:$0xff]  ;;  %v5289_v6 = vunpack.i.h.bf16 %v9021_v15 }
 0x28c   : > { %4671 = vmatprep.mubr.msk.f32.mxu1 %vm1077_vm0, %v9018_v53  ;;  %v3707_v50 = vsel %vm1077_vm0, %v4700_v2, %v5998_v51  ;;  %v3708_v18 = vsel %vm1077_vm0, %v4701_v32, %v5999_v33  ;;  %v1204_v44 = vsel %vm1176_vm3, %v1171_v12, %v5444_v11  ;;  %v274_v53 = vld [vmem:[%s6204_s27 + $0x158] sm:$0xff]  ;;  %v9025_v51 = vld [vmem:[#allocation51_spill] sm:$0xff]  ;;  %v4702_v42 = vld [vmem:[%s6204_s27 + $0x150] sm:$0xff] }
 0x28d   : > { %v6002_v29 = vpop.permute.xlu1 %6001  ;;  %v3632_v37 = vpop.permute.xlu0 %3631  ;;  %v1237_v1 = vsel %vm1209_vm4, %v1204_v44, %v9023_v36  ;;  %v1107_v47 = vsel %vm1077_vm0, %v274_v53, %v5209_v3  ;;  %v5293_v3 = vunpack.i.l.bf16 %v9027_v14  ;;  %v9030_v15 = vld [vmem:[#allocation36_spill] sm:$0xff] }
 0x28e   : > { %v8502_v16 = vpop.f32.mrb[12].mxu1  ;;  %4909 = vmatprep.mubr.msk.f32.mxu0 %vm1077_vm0, %v3632_v37  ;;  %v3834_v34 = vsel %vm1209_vm4, %v3802_v24, %v3632_v37  ;;  %v6003_v28 = vunpack.i.l.bf16 %v6002_v29  ;;  %v6004_v62 = vunpack.i.h.bf16 %v6002_v29  ;;  %v1139_v37 = vsel %vm1110_vm1, %v1106_v35, %v5288_v56 }
 0x28f   : > { %v2435_v4 = vpop.f32.mrb[13].mxu1  ;;  %2816 = vmatmul.mubr.f32.gmra.mrb[50].mxu1 %v1235_v46  ;;  %4098 = vmatmul.mubr.f32.gmra.mrb[42].mxu0 %v3834_v34  ;;  %v1172_v46 = vsel %vm1143_vm2, %v1139_v37, %v5368_v22  ;;  %v9026_v34 = vld [vmem:[#allocation12_spill] sm:$0xff]  ;;  %v1140_v43 = vsel %vm1110_vm1, %v1107_v47, %v5289_v6  ;;  %v5453_v56 = vunpack.i.l.bf16 %v9030_v15  ;;  %v5454_v53 = vunpack.i.h.bf16 %v9030_v15 }
 0x290   : > { %4672 = vmatprep.mubr.msk.f32.mxu1 %vm1077_vm0, %v9020_v17  ;;  %v3739_v48 = vsel %vm1110_vm1, %v3707_v50, %v6003_v28  ;;  %v3740_v57 = vsel %vm1110_vm1, %v3708_v18, %v6004_v62  ;;  %v5213_v39 = vunpack.i.l.bf16 %v9026_v34  ;;  %v1205_v28 = vsel %vm1176_vm3, %v1172_v46, %v5448_v25  ;;  %v276_v25 = vld [vmem:[%s6204_s27 + $0x170] sm:$0xff] }
 0x291   : > { %v6012_v0 = vpop.permute.xlu1 %6011  ;;  %v6007_v7 = vpop.permute.xlu0 %6006  ;;  %v1238_v33 = vsel %vm1209_vm4, %v1205_v28, %v9025_v51 }
 0x292   : > { %v6013_v20 = vunpack.i.l.bf16 %v6012_v0  ;;  %v6009_v40 = vunpack.i.h.bf16 %v6007_v7  ;;  %v6008_v26 = vunpack.i.l.bf16 %v6007_v7  ;;  %v8525_v8 = vpop.f32.mrb[14].mxu1  ;;  %v6014_v61 = vunpack.i.h.bf16 %v6012_v0 }
 0x293   : > { %v2440_v23 = vpop.f32.mrb[15].mxu1  ;;  %2821 = vmatmul.mubr.f32.gmra.mrb[52].mxu1 %v1236_v21  ;;  %v1173_v0 = vsel %vm1143_vm2, %v1140_v43, %v5369_v38  ;;  %v5214_v7 = vunpack.i.h.bf16 %v9026_v34  ;;  %v9028_v21 = vld [vmem:[#allocation28_spill] sm:$0xff]  ;;  %v1108_v35 = vsel %vm1077_vm0, %v275_v52, %v5213_v39 }
 0x294   : > { %4673 = vmatprep.mubr.msk.f32.mxu1 %vm1077_vm0, %v9023_v36  ;;  %v3771_v10 = vsel %vm1143_vm2, %v3739_v48, %v6008_v26  ;;  %v3772_v29 = vsel %vm1143_vm2, %v3740_v57, %v6009_v40  ;;  %v5373_v50 = vunpack.i.l.bf16 %v9028_v21  ;;  %v9029_v40 = vld [vmem:[#allocation50_spill] sm:$0xff]  ;;  %v1206_v26 = vsel %vm1176_vm3, %v1173_v0, %v5449_v54  ;;  %v4703_v48 = vld [vmem:[%s6204_s27 + $0x158] sm:$0xff]  ;;  %v9032_v52 = vld [vmem:[#allocation52_spill] sm:$0xff] }
 0x295   : > { %v8539_v63 = vpop.permute.xlu1 %6016  ;;  %v3634_v55 = vpop.permute.xlu0 %3633  ;;  %v3803_v41 = vsel %vm1176_vm3, %v3771_v10, %v6013_v20  ;;  %v3804_v4 = vsel %vm1176_vm3, %v3772_v29, %v6014_v61  ;;  %v1239_v22 = vsel %vm1209_vm4, %v1206_v26, %v9029_v40  ;;  %v5294_v57 = vunpack.i.h.bf16 %v9027_v14  ;;  %v4704_v0 = vld [vmem:[%s6204_s27 + $0x168] sm:$0xff] }
 0x296   : > { %v8544_v49 = vpop.f32.mrb[16].mxu1  ;;  %4910 = vmatprep.mubr.msk.f32.mxu0 %vm1077_vm0, %v3634_v55  ;;  %v3835_v31 = vsel %vm1209_vm4, %v3803_v41, %v3634_v55  ;;  %v6018_v60 = vunpack.i.l.bf16 %v8539_v63  ;;  %v6019_v20 = vunpack.i.h.bf16 %v8539_v63  ;;  %v1141_v61 = vsel %vm1110_vm1, %v1108_v35, %v5293_v3 }
 0x297   : > { %v2445_v24 = vpop.f32.mrb[17].mxu1  ;;  %2826 = vmatmul.mubr.f32.gmra.mrb[54].mxu1 %v1237_v1  ;;  %4103 = vmatmul.mubr.f32.gmra.mrb[44].mxu0 %v3835_v31  ;;  %v5374_v63 = vunpack.i.h.bf16 %v9028_v21  ;;  %v9031_v1 = vld [vmem:[#allocation53_spill] sm:$0xff]  ;;  %v1174_v31 = vsel %vm1143_vm2, %v1141_v61, %v5373_v50  ;;  %v1109_v34 = vsel %vm1077_vm0, %v276_v25, %v5214_v7 }
 0x298   : > { %4674 = vmatprep.mubr.msk.f32.mxu1 %vm1077_vm0, %v9025_v51  ;;  %v3709_v18 = vsel %vm1077_vm0, %v4702_v42, %v6018_v60  ;;  %v3710_v6 = vsel %vm1077_vm0, %v4703_v48, %v6019_v20  ;;  %v1207_v51 = vsel %vm1176_vm3, %v1174_v31, %v5453_v56  ;;  %v1142_v28 = vsel %vm1110_vm1, %v1109_v34, %v5294_v57  ;;  %v4705_v20 = vld [vmem:[%s6204_s27 + $0x170] sm:$0xff] }
 0x299   : > { %v6022_v19 = vpop.permute.xlu1 %6021  ;;  %v3636_v2 = vpop.permute.xlu0 %3635  ;;  %v1240_v47 = vsel %vm1209_vm4, %v1207_v51, %v9031_v1  ;;  %v1175_v43 = vsel %vm1143_vm2, %v1142_v28, %v5374_v63 }
 0x29a   : > { %v8564_v11 = vpop.f32.mrb[18].mxu1  ;;  %4911 = vmatprep.mubr.msk.f32.mxu0 %vm1077_vm0, %v3636_v2  ;;  %v3836_v17 = vsel %vm1209_vm4, %v3804_v4, %v3636_v2  ;;  %v6023_v32 = vunpack.i.l.bf16 %v6022_v19  ;;  %v6024_v23 = vunpack.i.h.bf16 %v6022_v19 }
 0x29b   : > { %v2450_v62 = vpop.f32.mrb[19].mxu1  ;;  %2831 = vmatmul.mubr.f32.gmra.mrb[56].mxu1 %v1238_v33  ;;  %4108 = vmatmul.mubr.f32.gmra.mrb[46].mxu0 %v3836_v17  ;;  %v1208_v17 = vsel %vm1176_vm3, %v1175_v43, %v5454_v53 }
 0x29c   : > { %4675 = vmatprep.mubr.msk.f32.mxu1 %vm1077_vm0, %v9029_v40  ;;  %v3741_v55 = vsel %vm1110_vm1, %v3709_v18, %v6023_v32  ;;  %v3742_v37 = vsel %vm1110_vm1, %v3710_v6, %v6024_v23  ;;  %v1241_v32 = vsel %vm1209_vm4, %v1208_v17, %v9032_v52  ;;  %v8639_v6 = vld [vmem:[%s8835_s3] ss:$0 sm:$0xff] }
 0x29d   : > { %v6032_v12 = vpop.permute.xlu1 %6031  ;;  %v6027_v27 = vpop.permute.xlu0 %6026 }
 0x29e   : > { %v6033_v36 = vunpack.i.l.bf16 %v6032_v12  ;;  %v6029_v44 = vunpack.i.h.bf16 %v6027_v27  ;;  %v6028_v10 = vunpack.i.l.bf16 %v6027_v27  ;;  %v8585_v13 = vpop.f32.mrb[20].mxu1  ;;  %v6034_v38 = vunpack.i.h.bf16 %v6032_v12 }
 0x29f   : > { %v2455_v41 = vpop.f32.mrb[21].mxu1  ;;  %2836 = vmatmul.mubr.f32.gmra.mrb[58].mxu1 %v1239_v22 }
 0x2a0   : > { %4676 = vmatprep.mubr.msk.f32.mxu1 %vm1077_vm0, %v9031_v1  ;;  %v3773_v29 = vsel %vm1143_vm2, %v3741_v55, %v6028_v10  ;;  %v3774_v2 = vsel %vm1143_vm2, %v3742_v37, %v6029_v44  ;;  %v8645_v37 = vld [vmem:[%s8836_s4] ss:$0 sm:$0xff] }
 0x2a1   : > { %v6037_v24 = vpop.permute.xlu1 %6036  ;;  %v3638_v54 = vpop.permute.xlu0 %3637  ;;  %v3805_v46 = vsel %vm1176_vm3, %v3773_v29, %v6033_v36  ;;  %v3806_v14 = vsel %vm1176_vm3, %v3774_v2, %v6034_v38 }
 0x2a2   : > { %v8602_v39 = vpop.f32.mrb[22].mxu1  ;;  %4912 = vmatprep.mubr.msk.f32.mxu0 %vm1077_vm0, %v3638_v54  ;;  %v3837_v19 = vsel %vm1209_vm4, %v3805_v46, %v3638_v54  ;;  %v6038_v3 = vunpack.i.l.bf16 %v6037_v24  ;;  %v6039_v50 = vunpack.i.h.bf16 %v6037_v24 }
 0x2a3   : > { %v2460_v4 = vpop.f32.mrb[23].mxu1  ;;  %2841 = vmatmul.mubr.f32.gmra.mrb[60].mxu1 %v1240_v47  ;;  %4113 = vmatmul.mubr.f32.gmra.mrb[48].mxu0 %v3837_v19  ;;  %v4706_v19 = vld [vmem:[%s6204_s27 + $0x180] sm:$0xff] }
 0x2a4   : > { %4677 = vmatprep.mubr.msk.f32.mxu1 %vm1077_vm0, %v9032_v52  ;;  %v3711_v15 = vsel %vm1077_vm0, %v4704_v0, %v6038_v3  ;;  %v3712_v18 = vsel %vm1077_vm0, %v4705_v20, %v6039_v50  ;;  %v4707_v52 = vld [vmem:[%s6204_s27 + $0x188] sm:$0xff] }
 0x2a5   : > { %v6042_v60 = vpop.permute.xlu1 %6041  ;;  %v3640_v33 = vpop.permute.xlu0 %3639 }
 0x2a6   : > { %v8615_v42 = vpop.f32.mrb[24].mxu1  ;;  %4913 = vmatprep.mubr.msk.f32.mxu0 %vm1077_vm0, %v3640_v33  ;;  %v3838_v62 = vsel %vm1209_vm4, %v3806_v14, %v3640_v33  ;;  %v6043_v7 = vunpack.i.l.bf16 %v6042_v60  ;;  %v6044_v40 = vunpack.i.h.bf16 %v6042_v60 }
 0x2a7   : > { %v2465_v21 = vpop.f32.mrb[25].mxu1  ;;  %2846 = vmatmul.mubr.f32.gmra.mrb[62].mxu1 %v1241_v32  ;;  %4118 = vmatmul.mubr.f32.gmra.mrb[50].mxu0 %v3838_v62 }
 0x2a8   : > { %v3743_v27 = vsel %vm1110_vm1, %v3711_v15, %v6043_v7  ;;  %v3744_v44 = vsel %vm1110_vm1, %v3712_v18, %v6044_v40 }
 0x2a9   : > { %v6052_v26 = vpop.permute.xlu1 %6051  ;;  %v6047_v35 = vpop.permute.xlu0 %6046 }
 0x2aa   : > { %v6053_v56 = vunpack.i.l.bf16 %v6052_v26  ;;  %v6049_v48 = vunpack.i.h.bf16 %v6047_v35  ;;  %v6048_v23 = vunpack.i.l.bf16 %v6047_v35  ;;  %v8624_v12 = vpop.f32.mrb[26].mxu1  ;;  %v6054_v10 = vunpack.i.h.bf16 %v6052_v26 }
 0x2ab   : > { %v2470_v22 = vpop.f32.mrb[27].mxu1 }
 0x2ac   : > { %v3775_v36 = vsel %vm1143_vm2, %v3743_v27, %v6048_v23  ;;  %v3776_v41 = vsel %vm1143_vm2, %v3744_v44, %v6049_v48 }
 0x2ad   : > { %v6057_v25 = vpop.permute.xlu1 %6056  ;;  %v3642_v57 = vpop.permute.xlu0 %3641  ;;  %v3807_v61 = vsel %vm1176_vm3, %v3775_v36, %v6053_v56  ;;  %v3808_v54 = vsel %vm1176_vm3, %v3776_v41, %v6054_v10  ;;  %v4708_v36 = vld [vmem:[%s6204_s27 + $0x198] sm:$0xff] }
 0x2ae   : > { %v8631_v63 = vpop.f32.mrb[28].mxu1  ;;  %4914 = vmatprep.mubr.msk.f32.mxu0 %vm1077_vm0, %v3642_v57  ;;  %v3839_v55 = vsel %vm1209_vm4, %v3807_v61, %v3642_v57  ;;  %v6058_v34 = vunpack.i.l.bf16 %v6057_v25  ;;  %v6059_v2 = vunpack.i.h.bf16 %v6057_v25 }
 0x2af   : > { %v3994_v53 = vpop.f32.mrb[0].mxu0  ;;  %v2475_v1 = vpop.f32.mrb[29].mxu1  ;;  %4123 = vmatmul.mubr.f32.gmra.mrb[52].mxu0 %v3839_v55 }
 0x2b0   : > { %v5024_v31 = vadd.f32 %v3994_v53, %v8377_v45  ;;  %v3996_v29 = vpop.f32.mrb[1].mxu0  ;;  %v3713_v32 = vsel %vm1077_vm0, %v4706_v19, %v6058_v34  ;;  %v3714_v7 = vsel %vm1077_vm0, %v4707_v52, %v6059_v2  ;;  %v4709_v19 = vld [vmem:[%s6204_s27 + $0x1a0] sm:$0xff] }
 0x2b1   : > { %v6062_v38 = vpop.permute.xlu1 %6061  ;;  %v3644_v24 = vpop.permute.xlu0 %3643 }
 0x2b2   : > { %v4192_v51 = vmul.f32 %v5024_v31, %v8639_v6  ;;  %v8650_v46 = vpop.f32.mrb[30].mxu1  ;;  %4915 = vmatprep.mubr.msk.f32.mxu0 %vm1077_vm0, %v3644_v24  ;;  %v3840_v45 = vsel %vm1209_vm4, %v3808_v54, %v3644_v24  ;;  %v6063_v4 = vunpack.i.l.bf16 %v6062_v38  ;;  %v6064_v43 = vunpack.i.h.bf16 %v6062_v38 }
 0x2b3   : > { %v2480_v47 = vpop.f32.mrb[31].mxu1  ;;  %4128 = vmatmul.mubr.f32.gmra.mrb[54].mxu0 %v3840_v45 }
 0x2b4   : > { %v4231_v28 = vadd.f32 %v8645_v37, %v4192_v51  ;;  %v3745_v21 = vsel %vm1110_vm1, %v3713_v32, %v6063_v4  ;;  %v3746_v40 = vsel %vm1110_vm1, %v3714_v7, %v6064_v43 }
 0x2b5   : > { %v6072_v60 = vpop.permute.xlu1 %6071  ;;  %v6067_v33 = vpop.permute.xlu0 %6066 }
 0x2b6   : > { %v4263_v17 = vmax.f32 %v4231_v28, 0.0  ;;  %v6073_v14 = vunpack.i.l.bf16 %v6072_v60  ;;  %v6069_v3 = vunpack.i.h.bf16 %v6067_v33  ;;  %v6068_v62 = vunpack.i.l.bf16 %v6067_v33 }
 0x2b7   : > { %v3999_v0 = vpop.f32.mrb[2].mxu0  ;;  %v6074_v26 = vunpack.i.h.bf16 %v6072_v60 }
 0x2b8   : > { %4296 = vst.msk [vmem:[%s8660_s19] sm:$0xff] %vm4295_vm5, %v4263_v17  ;;  %v5025_v50 = vadd.f32 %v3999_v0, %v8399_v5  ;;  %v4001_v20 = vpop.f32.mrb[3].mxu0  ;;  %v3777_v56 = vsel %vm1143_vm2, %v3745_v21, %v6068_v62  ;;  %v3778_v27 = vsel %vm1143_vm2, %v3746_v40, %v6069_v3 }
 0x2b9   : > { %v6077_v35 = vpop.permute.xlu1 %6076  ;;  %v3646_v15 = vpop.permute.xlu0 %3645  ;;  %v3809_v23 = vsel %vm1176_vm3, %v3777_v56, %v6073_v14  ;;  %v3810_v25 = vsel %vm1176_vm3, %v3778_v27, %v6074_v26 }
 0x2ba   : > { %v4193_v48 = vmul.f32 %v5025_v50, %v8639_v6  ;;  %4916 = vmatprep.mubr.msk.f32.mxu0 %vm1077_vm0, %v3646_v15  ;;  %v6078_v22 = vunpack.i.l.bf16 %v6077_v35  ;;  %v3841_v5 = vsel %vm1209_vm4, %v3809_v23, %v3646_v15  ;;  %v6079_v45 = vunpack.i.h.bf16 %v6077_v35 }
 0x2bb   : > { %4133 = vmatmul.mubr.f32.gmra.mrb[56].mxu0 %v3841_v5 }
 0x2bc   : > { %v4232_v18 = vadd.f32 %v8645_v37, %v4193_v48  ;;  %v3715_v53 = vsel %vm1077_vm0, %v4708_v36, %v6078_v22  ;;  %v3716_v60 = vsel %vm1077_vm0, %v4709_v19, %v6079_v45 }
 0x2bd   : > { %v6082_v44 = vpop.permute.xlu1 %6081  ;;  %v3648_v10 = vpop.permute.xlu0 %3647 }
 0x2be   : > { %v4264_v57 = vmax.f32 %v4232_v18, 0.0  ;;  %v6083_v61 = vunpack.i.l.bf16 %v6082_v44  ;;  %4917 = vmatprep.mubr.msk.f32.mxu0 %vm1077_vm0, %v3648_v10  ;;  %v3842_v55 = vsel %vm1209_vm4, %v3810_v25, %v3648_v10  ;;  %v6084_v34 = vunpack.i.h.bf16 %v6082_v44 }
 0x2bf   : > { %v4004_v41 = vpop.f32.mrb[4].mxu0  ;;  %4138 = vmatmul.mubr.f32.gmra.mrb[58].mxu0 %v3842_v55 }
 0x2c0   : > { %4297 = vst.msk [vmem:[%s8660_s19 + $0x8] sm:$0xff] %vm4295_vm5, %v4264_v57  ;;  %v5026_v1 = vadd.f32 %v4004_v41, %v8418_v59  ;;  %v4006_v31 = vpop.f32.mrb[5].mxu0  ;;  %v3747_v29 = vsel %vm1110_vm1, %v3715_v53, %v6083_v61  ;;  %v3748_v14 = vsel %vm1110_vm1, %v3716_v60, %v6084_v34 }
 0x2c1   : > { %v3522_v38 = vpop.permute.xlu1 %3521  ;;  %v3394_v24 = vpop.permute.xlu0 %3393 }
 0x2c2   : > { %v4194_v54 = vmul.f32 %v5026_v1, %v8639_v6  ;;  %v3779_v51 = vsel %vm1143_vm2, %v3747_v29, %v3394_v24 }
 0x2c3   : > { %v3811_v59 = vsel %vm1176_vm3, %v3779_v51, %v3522_v38 }
 0x2c4   : > { %v4233_v47 = vadd.f32 %v8645_v37, %v4194_v54 }
 0x2c5   : > { %v3396_v2 = vpop.permute.xlu1 %3395  ;;  %v3650_v28 = vpop.permute.xlu0 %3649 }
 0x2c6   : > { %v4265_v4 = vmax.f32 %v4233_v47, 0.0  ;;  %v4009_v52 = vpop.f32.mrb[6].mxu0  ;;  %4918 = vmatprep.mubr.msk.f32.mxu0 %vm1077_vm0, %v3650_v28  ;;  %v3843_v43 = vsel %vm1209_vm4, %v3811_v59, %v3650_v28  ;;  %v3780_v3 = vsel %vm1143_vm2, %v3748_v14, %v3396_v2 }
 0x2c7   : > { %v5027_v33 = vadd.f32 %v4009_v52, %v8440_v58  ;;  %v4011_v17 = vpop.f32.mrb[7].mxu0  ;;  %4143 = vmatmul.mubr.f32.gmra.mrb[60].mxu0 %v3843_v43 }
 0x2c8   : > { %4298 = vst.msk [vmem:[%s8660_s19 + $0x10] sm:$0xff] %vm4295_vm5, %v4265_v4 }
 0x2c9   : > { %v4195_v32 = vmul.f32 %v5027_v33, %v8639_v6  ;;  %v3524_v62 = vpop.permute.xlu0 %3523 }
 0x2ca   : > { %v3812_v0 = vsel %vm1176_vm3, %v3780_v3, %v3524_v62  ;;  %v3652_v7 = vpop.permute.xlu1 %3651 }
 0x2cb   : > { %v4234_v21 = vadd.f32 %v8645_v37, %v4195_v32  ;;  %4919 = vmatprep.mubr.msk.f32.mxu0 %vm1077_vm0, %v3652_v7  ;;  %v3844_v58 = vsel %vm1209_vm4, %v3812_v0, %v3652_v7 }
 0x2cc   : > { %4148 = vmatmul.mubr.f32.gmra.mrb[62].mxu0 %v3844_v58 }
 0x2cd   : > { %v4266_v50 = vmax.f32 %v4234_v21, 0.0 }
 0x2cf   : > { %4299 = vst.msk [vmem:[%s8660_s19 + $0x18] sm:$0xff] %vm4295_vm5, %v4266_v50 }
 0x2d3   : > { %v4014_v20 = vpop.f32.mrb[8].mxu0 }
 0x2d4   : > { %v5028_v40 = vadd.f32 %v4014_v20, %v8462_v30  ;;  %v4016_v26 = vpop.f32.mrb[9].mxu0 }
 0x2d6   : > { %v4196_v35 = vmul.f32 %v5028_v40, %v8639_v6 }
 0x2d8   : > { %v4235_v15 = vadd.f32 %v8645_v37, %v4196_v35 }
 0x2da   : > { %v4267_v56 = vmax.f32 %v4235_v15, 0.0 }
 0x2db   : > { %v4019_v48 = vpop.f32.mrb[10].mxu0 }
 0x2dc   : > { %4300 = vst.msk [vmem:[%s8660_s19 + $0x20] sm:$0xff] %vm4295_vm5, %v4267_v56  ;;  %v5029_v23 = vadd.f32 %v4019_v48, %v8481_v9  ;;  %v4021_v27 = vpop.f32.mrb[11].mxu0 }
 0x2de   : > { %v4197_v22 = vmul.f32 %v5029_v23, %v8639_v6 }
 0x2e0   : > { %v4236_v5 = vadd.f32 %v8645_v37, %v4197_v22 }
 0x2e2   : > { %v4268_v18 = vmax.f32 %v4236_v5, 0.0 }
 0x2e3   : > { %v4024_v30 = vpop.f32.mrb[12].mxu0 }
 0x2e4   : > { %4301 = vst.msk [vmem:[%s8660_s19 + $0x28] sm:$0xff] %vm4295_vm5, %v4268_v18  ;;  %v5030_v36 = vadd.f32 %v4024_v30, %v8502_v16  ;;  %v4026_v44 = vpop.f32.mrb[13].mxu0 }
 0x2e6   : > { %v4198_v10 = vmul.f32 %v5030_v36, %v8639_v6 }
 0x2e8   : > { %v4237_v25 = vadd.f32 %v8645_v37, %v4198_v10 }
 0x2ea   : > { %v4269_v57 = vmax.f32 %v4237_v25, 0.0 }
 0x2ec   : > { %4302 = vst.msk [vmem:[%s8660_s19 + $0x30] sm:$0xff] %vm4295_vm5, %v4269_v57 }
 0x2ef   : > { %v4029_v9 = vpop.f32.mrb[14].mxu0 }
 0x2f0   : > { %v5031_v61 = vadd.f32 %v4029_v9, %v8525_v8  ;;  %v4031_v55 = vpop.f32.mrb[15].mxu0 }
 0x2f2   : > { %v4199_v41 = vmul.f32 %v5031_v61, %v8639_v6 }
 0x2f4   : > { %v4238_v53 = vadd.f32 %v8645_v37, %v4199_v41 }
 0x2f6   : > { %v4270_v1 = vmax.f32 %v4238_v53, 0.0 }
 0x2f7   : > { %v4034_v16 = vpop.f32.mrb[16].mxu0 }
 0x2f8   : > { %4303 = vst.msk [vmem:[%s8660_s19 + $0x38] sm:$0xff] %vm4295_vm5, %v4270_v1  ;;  %v5032_v31 = vadd.f32 %v4034_v16, %v8544_v49  ;;  %v4036_v29 = vpop.f32.mrb[17].mxu0 }
 0x2fa   : > { %v4200_v38 = vmul.f32 %v5032_v31, %v8639_v6 }
 0x2fc   : > { %v4239_v24 = vadd.f32 %v8645_v37, %v4200_v38 }
 0x2fe   : > { %v4271_v54 = vmax.f32 %v4239_v24, 0.0 }
 0x300   : > { %4304 = vst.msk [vmem:[%s8660_s19 + $0x40] sm:$0xff] %vm4295_vm5, %v4271_v54 }
 0x303   : > { %v4039_v8 = vpop.f32.mrb[18].mxu0 }
 0x304   : > { %v5033_v51 = vadd.f32 %v4039_v8, %v8564_v11  ;;  %v4041_v45 = vpop.f32.mrb[19].mxu0 }
 0x306   : > { %v4201_v34 = vmul.f32 %v5033_v51, %v8639_v6 }
 0x308   : > { %v4240_v47 = vadd.f32 %v8645_v37, %v4201_v34 }
 0x30a   : > { %v4272_v19 = vmax.f32 %v4240_v47, 0.0 }
 0x30b   : > { %v4044_v49 = vpop.f32.mrb[20].mxu0 }
 0x30c   : > { %4305 = vst.msk [vmem:[%s8660_s19 + $0x48] sm:$0xff] %vm4295_vm5, %v4272_v19  ;;  %v5034_v2 = vadd.f32 %v4044_v49, %v8585_v13  ;;  %v4046_v28 = vpop.f32.mrb[21].mxu0 }
 0x30e   : > { %v4202_v59 = vmul.f32 %v5034_v2, %v8639_v6 }
 0x310   : > { %v4241_v4 = vadd.f32 %v8645_v37, %v4202_v59 }
 0x312   : > { %v4273_v52 = vmax.f32 %v4241_v4, 0.0 }
 0x314   : > { %4306 = vst.msk [vmem:[%s8660_s19 + $0x50] sm:$0xff] %vm4295_vm5, %v4273_v52 }
 0x317   : > { %v4049_v11 = vpop.f32.mrb[22].mxu0 }
 0x318   : > { %v5035_v43 = vadd.f32 %v4049_v11, %v8602_v39  ;;  %v4051_v60 = vpop.f32.mrb[23].mxu0 }
 0x31a   : > { %v4203_v33 = vmul.f32 %v5035_v43, %v8639_v6 }
 0x31c   : > { %v4242_v17 = vadd.f32 %v8645_v37, %v4203_v33 }
 0x31e   : > { %v4274_v14 = vmax.f32 %v4242_v17, 0.0 }
 0x31f   : > { %v4054_v13 = vpop.f32.mrb[24].mxu0 }
 0x320   : > { %4307 = vst.msk [vmem:[%s8660_s19 + $0x58] sm:$0xff] %vm4295_vm5, %v4274_v14  ;;  %v5036_v3 = vadd.f32 %v4054_v13, %v8615_v42  ;;  %v4056_v32 = vpop.f32.mrb[25].mxu0 }
 0x322   : > { %v4204_v62 = vmul.f32 %v5036_v3, %v8639_v6 }
 0x324   : > { %v4243_v0 = vadd.f32 %v8645_v37, %v4204_v62 }
 0x326   : > { %v4275_v7 = vmax.f32 %v4243_v0, 0.0 }
 0x328   : > { %4308 = vst.msk [vmem:[%s8660_s19 + $0x60] sm:$0xff] %vm4295_vm5, %v4275_v7 }
 0x32a   : > { %v4059_v39 = vpop.f32.mrb[26].mxu0 }
 0x32b   : > { %v5037_v21 = vadd.f32 %v4059_v39, %v8624_v12  ;;  %v4061_v58 = vpop.f32.mrb[27].mxu0 }
 0x32d   : > { %v4205_v50 = vmul.f32 %v5037_v21, %v8639_v6 }
 0x32f   : > { %v4244_v20 = vadd.f32 %v8645_v37, %v4205_v50 }
 0x331   : > { %v4276_v40 = vmax.f32 %v4244_v20, 0.0 }
 0x332   : > { %v4064_v26 = vpop.f32.mrb[28].mxu0 }
 0x333   : > { %4309 = vst.msk [vmem:[%s8660_s19 + $0x68] sm:$0xff] %vm4295_vm5, %v4276_v40  ;;  %v5038_v42 = vadd.f32 %v4064_v26, %v8631_v63  ;;  %v4066_v35 = vpop.f32.mrb[29].mxu0 }
 0x335   : > { %v4206_v15 = vmul.f32 %v5038_v42, %v8639_v6 }
 0x337   : > { %v4245_v56 = vadd.f32 %v8645_v37, %v4206_v15 }
 0x339   : > { %v4277_v48 = vmax.f32 %v4245_v56, 0.0 }
 0x33b   : > { %4310 = vst.msk [vmem:[%s8660_s19 + $0x70] sm:$0xff] %vm4295_vm5, %v4277_v48 }
 0x33e   : > { %v2772_v12 = vpop.f32.mrb[32].mxu1  ;;  %v4069_v23 = vpop.f32.mrb[30].mxu0 }
 0x33f   : > { %v5039_v27 = vadd.f32 %v4069_v23, %v8650_v46  ;;  %v2774_v22 = vpop.f32.mrb[33].mxu1  ;;  %v4071_v5 = vpop.f32.mrb[31].mxu0 }
 0x341   : > { %v4207_v18 = vmul.f32 %v5039_v27, %v8639_v6 }
 0x342   : > { %v2777_v30 = vpop.f32.mrb[34].mxu1 }
 0x343   : > { %v4246_v63 = vadd.f32 %v8645_v37, %v4207_v18  ;;  %v2779_v36 = vpop.f32.mrb[35].mxu1 }
 0x345   : > { %v4278_v44 = vmax.f32 %v4246_v63, 0.0 }
 0x346   : > { %v2782_v10 = vpop.f32.mrb[36].mxu1  ;;  %v4074_v25 = vpop.f32.mrb[32].mxu0 }
 0x347   : > { %4311 = vst.msk [vmem:[%s8660_s19 + $0x78] sm:$0xff] %vm4295_vm5, %v4278_v44  ;;  %v5040_v57 = vadd.f32 %v4074_v25, %v2772_v12  ;;  %v2784_v9 = vpop.f32.mrb[37].mxu1  ;;  %v4076_v61 = vpop.f32.mrb[33].mxu0 }
 0x349   : > { %v4208_v55 = vmul.f32 %v5040_v57, %v8639_v6 }
 0x34a   : > { %v2787_v46 = vpop.f32.mrb[38].mxu1  ;;  %v4079_v41 = vpop.f32.mrb[34].mxu0 }
 0x34b   : > { %v4247_v53 = vadd.f32 %v8645_v37, %v4208_v55  ;;  %v5041_v1 = vadd.f32 %v4079_v41, %v2777_v30  ;;  %v2789_v16 = vpop.f32.mrb[39].mxu1  ;;  %v4081_v31 = vpop.f32.mrb[35].mxu0 }
 0x34d   : > { %v4279_v29 = vmax.f32 %v4247_v53, 0.0  ;;  %v4209_v38 = vmul.f32 %v5041_v1, %v8639_v6 }
 0x34e   : > { %v2792_v24 = vpop.f32.mrb[40].mxu1 }
 0x34f   : > { %4312 = vst.msk [vmem:[%s8660_s19 + $0x80] sm:$0xff] %vm4295_vm5, %v4279_v29  ;;  %v4248_v54 = vadd.f32 %v8645_v37, %v4209_v38  ;;  %v2794_v8 = vpop.f32.mrb[41].mxu1 }
 0x351   : > { %v4280_v51 = vmax.f32 %v4248_v54, 0.0 }
 0x352   : > { %v2797_v45 = vpop.f32.mrb[42].mxu1  ;;  %v4084_v34 = vpop.f32.mrb[36].mxu0 }
 0x353   : > { %4313 = vst.msk [vmem:[%s8660_s19 + $0x88] sm:$0xff] %vm4295_vm5, %v4280_v51  ;;  %v5042_v47 = vadd.f32 %v4084_v34, %v2782_v10  ;;  %v2799_v19 = vpop.f32.mrb[43].mxu1  ;;  %v4086_v49 = vpop.f32.mrb[37].mxu0 }
 0x355   : > { %v4210_v2 = vmul.f32 %v5042_v47, %v8639_v6 }
 0x356   : > { %v2802_v28 = vpop.f32.mrb[44].mxu1  ;;  %v4089_v59 = vpop.f32.mrb[38].mxu0 }
 0x357   : > { %v4249_v4 = vadd.f32 %v8645_v37, %v4210_v2  ;;  %v5043_v52 = vadd.f32 %v4089_v59, %v2787_v46  ;;  %v2804_v11 = vpop.f32.mrb[45].mxu1  ;;  %v4091_v43 = vpop.f32.mrb[39].mxu0 }
 0x359   : > { %v4281_v60 = vmax.f32 %v4249_v4, 0.0  ;;  %v4211_v33 = vmul.f32 %v5043_v52, %v8639_v6 }
 0x35a   : > { %v2807_v17 = vpop.f32.mrb[46].mxu1 }
 0x35b   : > { %4314 = vst.msk [vmem:[%s8660_s19 + $0x90] sm:$0xff] %vm4295_vm5, %v4281_v60  ;;  %v4250_v14 = vadd.f32 %v8645_v37, %v4211_v33  ;;  %v2809_v13 = vpop.f32.mrb[47].mxu1 }
 0x35d   : > { %v4282_v3 = vmax.f32 %v4250_v14, 0.0 }
 0x35e   : > { %v2812_v32 = vpop.f32.mrb[48].mxu1  ;;  %v4094_v62 = vpop.f32.mrb[40].mxu0 }
 0x35f   : > { %4315 = vst.msk [vmem:[%s8660_s19 + $0x98] sm:$0xff] %vm4295_vm5, %v4282_v3  ;;  %v5044_v0 = vadd.f32 %v4094_v62, %v2792_v24  ;;  %v2814_v7 = vpop.f32.mrb[49].mxu1  ;;  %v4096_v39 = vpop.f32.mrb[41].mxu0 }
 0x361   : > { %v4212_v21 = vmul.f32 %v5044_v0, %v8639_v6 }
 0x362   : > { %v2817_v58 = vpop.f32.mrb[50].mxu1  ;;  %v4099_v50 = vpop.f32.mrb[42].mxu0 }
 0x363   : > { %v4251_v20 = vadd.f32 %v8645_v37, %v4212_v21  ;;  %v5045_v40 = vadd.f32 %v4099_v50, %v2797_v45  ;;  %v2819_v26 = vpop.f32.mrb[51].mxu1  ;;  %v4101_v42 = vpop.f32.mrb[43].mxu0 }
 0x365   : > { %v4283_v35 = vmax.f32 %v4251_v20, 0.0  ;;  %v4213_v15 = vmul.f32 %v5045_v40, %v8639_v6 }
 0x366   : > { %v2822_v56 = vpop.f32.mrb[52].mxu1 }
 0x367   : > { %4316 = vst.msk [vmem:[%s8660_s19 + $0xa0] sm:$0xff] %vm4295_vm5, %v4283_v35  ;;  %v4252_v48 = vadd.f32 %v8645_v37, %v4213_v15  ;;  %v2824_v12 = vpop.f32.mrb[53].mxu1 }
 0x369   : > { %v4284_v23 = vmax.f32 %v4252_v48, 0.0 }
 0x36a   : > { %v2827_v27 = vpop.f32.mrb[54].mxu1  ;;  %v4104_v22 = vpop.f32.mrb[44].mxu0 }
 0x36b   : > { %4317 = vst.msk [vmem:[%s8660_s19 + $0xa8] sm:$0xff] %vm4295_vm5, %v4284_v23  ;;  %v5046_v5 = vadd.f32 %v4104_v22, %v2802_v28  ;;  %v2829_v18 = vpop.f32.mrb[55].mxu1  ;;  %v4106_v30 = vpop.f32.mrb[45].mxu0 }
 0x36d   : > { %v4214_v63 = vmul.f32 %v5046_v5, %v8639_v6 }
 0x36e   : > { %v2832_v36 = vpop.f32.mrb[56].mxu1  ;;  %v4109_v44 = vpop.f32.mrb[46].mxu0 }
 0x36f   : > { %v4253_v10 = vadd.f32 %v8645_v37, %v4214_v63  ;;  %v5047_v25 = vadd.f32 %v4109_v44, %v2807_v17  ;;  %v2834_v57 = vpop.f32.mrb[57].mxu1  ;;  %v4111_v9 = vpop.f32.mrb[47].mxu0 }
 0x371   : > { %v4285_v61 = vmax.f32 %v4253_v10, 0.0  ;;  %v4215_v55 = vmul.f32 %v5047_v25, %v8639_v6 }
 0x372   : > { %v2837_v46 = vpop.f32.mrb[58].mxu1 }
 0x373   : > { %4318 = vst.msk [vmem:[%s8660_s19 + $0xb0] sm:$0xff] %vm4295_vm5, %v4285_v61  ;;  %v4254_v41 = vadd.f32 %v8645_v37, %v4215_v55  ;;  %v2839_v53 = vpop.f32.mrb[59].mxu1 }
 0x375   : > { %v4286_v1 = vmax.f32 %v4254_v41, 0.0 }
 0x376   : > { %v2842_v16 = vpop.f32.mrb[60].mxu1  ;;  %v4114_v31 = vpop.f32.mrb[48].mxu0 }
 0x377   : > { %4319 = vst.msk [vmem:[%s8660_s19 + $0xb8] sm:$0xff] %vm4295_vm5, %v4286_v1  ;;  %v5048_v29 = vadd.f32 %v4114_v31, %v2812_v32  ;;  %v2844_v38 = vpop.f32.mrb[61].mxu1  ;;  %v4116_v24 = vpop.f32.mrb[49].mxu0 }
 0x379   : > { %v4216_v54 = vmul.f32 %v5048_v29, %v8639_v6 }
 0x37a   : > { %v2847_v8 = vpop.f32.mrb[62].mxu1  ;;  %v4119_v51 = vpop.f32.mrb[50].mxu0 }
 0x37b   : > { %v4255_v45 = vadd.f32 %v8645_v37, %v4216_v54  ;;  %v5049_v34 = vadd.f32 %v4119_v51, %v2817_v58  ;;  %v2849_v47 = vpop.f32.mrb[63].mxu1  ;;  %v4121_v19 = vpop.f32.mrb[51].mxu0 }
 0x37d   : > { %v4287_v49 = vmax.f32 %v4255_v45, 0.0  ;;  %v4217_v2 = vmul.f32 %v5049_v34, %v8639_v6 }
 0x37f   : > { %4320 = vst.msk [vmem:[%s8660_s19 + $0xc0] sm:$0xff] %vm4295_vm5, %v4287_v49  ;;  %v4256_v28 = vadd.f32 %v8645_v37, %v4217_v2 }
 0x381   : > { %v4288_v59 = vmax.f32 %v4256_v28, 0.0 }
 0x382   : > { %v4124_v4 = vpop.f32.mrb[52].mxu0 }
 0x383   : > { %4321 = vst.msk [vmem:[%s8660_s19 + $0xc8] sm:$0xff] %vm4295_vm5, %v4288_v59  ;;  %v5050_v52 = vadd.f32 %v4124_v4, %v2822_v56  ;;  %v4126_v11 = vpop.f32.mrb[53].mxu0 }
 0x385   : > { %v4218_v43 = vmul.f32 %v5050_v52, %v8639_v6 }
 0x386   : > { %v4129_v60 = vpop.f32.mrb[54].mxu0 }
 0x387   : > { %v4257_v33 = vadd.f32 %v8645_v37, %v4218_v43  ;;  %v5051_v17 = vadd.f32 %v4129_v60, %v2827_v27  ;;  %v4131_v14 = vpop.f32.mrb[55].mxu0 }
 0x389   : > { %v4289_v13 = vmax.f32 %v4257_v33, 0.0  ;;  %v4219_v3 = vmul.f32 %v5051_v17, %v8639_v6 }
 0x38b   : > { %4322 = vst.msk [vmem:[%s8660_s19 + $0xd0] sm:$0xff] %vm4295_vm5, %v4289_v13  ;;  %v4258_v32 = vadd.f32 %v8645_v37, %v4219_v3 }
 0x38d   : > { %v4290_v62 = vmax.f32 %v4258_v32, 0.0 }
 0x38e   : > { %v4134_v0 = vpop.f32.mrb[56].mxu0 }
 0x38f   : > { %4323 = vst.msk [vmem:[%s8660_s19 + $0xd8] sm:$0xff] %vm4295_vm5, %v4290_v62  ;;  %v5052_v7 = vadd.f32 %v4134_v0, %v2832_v36  ;;  %v4136_v39 = vpop.f32.mrb[57].mxu0 }
 0x391   : > { %v4220_v21 = vmul.f32 %v5052_v7, %v8639_v6 }
 0x392   : > { %v4139_v58 = vpop.f32.mrb[58].mxu0 }
 0x393   : > { %v4259_v50 = vadd.f32 %v8645_v37, %v4220_v21  ;;  %v5053_v20 = vadd.f32 %v4139_v58, %v2837_v46  ;;  %v4141_v40 = vpop.f32.mrb[59].mxu0 }
 0x395   : > { %v4291_v26 = vmax.f32 %v4259_v50, 0.0  ;;  %v4221_v42 = vmul.f32 %v5053_v20, %v8639_v6 }
 0x397   : > { %4324 = vst.msk [vmem:[%s8660_s19 + $0xe0] sm:$0xff] %vm4295_vm5, %v4291_v26  ;;  %v4260_v35 = vadd.f32 %v8645_v37, %v4221_v42 }
 0x399   : > { %v4292_v15 = vmax.f32 %v4260_v35, 0.0 }
 0x39a   : > { %v4144_v56 = vpop.f32.mrb[60].mxu0 }
 0x39b   : > { %v5054_v48 = vadd.f32 %v4144_v56, %v2842_v16  ;;  %v4146_v12 = vpop.f32.mrb[61].mxu0  ;;  %4325 = vst.msk [vmem:[%s8660_s19 + $0xe8] sm:$0xff] %vm4295_vm5, %v4292_v15 }
 0x39d   : > { %v4222_v23 = vmul.f32 %v5054_v48, %v8639_v6 }
 0x39f   : > { %v4261_v27 = vadd.f32 %v8645_v37, %v4222_v23  ;;  %v4149_v22 = vpop.f32.mrb[62].mxu0 }
 0x3a0   : > { %v5055_v5 = vadd.f32 %v4149_v22, %v2847_v8  ;;  %v4151_v18 = vpop.f32.mrb[63].mxu0 }
 0x3a1   : > { %v4293_v30 = vmax.f32 %v4261_v27, 0.0 }
 0x3a2   : > { %v4223_v63 = vmul.f32 %v5055_v5, %v8639_v6 }
 0x3a3   : > { %4326 = vst.msk [vmem:[%s8660_s19 + $0xf0] sm:$0xff] %vm4295_vm5, %v4293_v30 }
 0x3a4   : > { %v4262_v36 = vadd.f32 %v8645_v37, %v4223_v63 }
 0x3a6   : > { %v4294_v44 = vmax.f32 %v4262_v36, 0.0 }
 0x3a8   : > { %4327 = vst.msk [vmem:[%s8660_s19 + $0xf8] sm:$0xff] %vm4295_vm5, %v4294_v44 }
 0x3a9 PF: > { %s15_s18 = sadd.s32 1, %s6099_s18  }
 0x3aa   : > { %p12_p4 = scmp.ge.s32.totalorder %s15_s18, 4  }
 0x3ac   :  { %14 = sbr.rel (!%p12_p4) target bundleno = 1 (0x1), region = 79 }

</bundles_post_ra>
